<compile_context>
chip_gen: v6e
topology: v6e:2x2x1
jax: 0.10.0
libtpu: 0.0.40
codegen_flags: <defaults>
</compile_context>

<pallas_src>
import numpy as np
import jax
import jax.numpy as jnp
from jax.experimental import pallas as pl
from jax.experimental.pallas import tpu as pltpu

F32 = jnp.float32


# ----------------------- host-side constant construction -----------------------

def _conv_taps(w_oihw):
    # F.conv2d(padding=1) weight (Cout, Cin, 3, 3) -> per-tap (9, Cout, Cin).
    co, ci = w_oihw.shape[0], w_oihw.shape[1]
    return jnp.transpose(jnp.asarray(w_oihw, F32), (2, 3, 0, 1)).reshape(9, co, ci)


def _convT_taps(w_iohw):
    # conv_transpose2d(p=1, s=1) == conv2d with channel-swapped, spatially
    # flipped weight.
    w_eq = jnp.flip(jnp.transpose(jnp.asarray(w_iohw, F32), (1, 0, 2, 3)), axis=(2, 3))
    return _conv_taps(w_eq)


def _tap_masks(H, W):
    # (9, H*W) validity masks for the 9 conv taps (zero-padding semantics).
    m = np.zeros((9, H * W), np.float32)
    t = 0
    for dy in range(3):
        for dx in range(3):
            for hh in range(H):
                for ww in range(W):
                    if 0 <= hh + dy - 1 < H and 0 <= ww + dx - 1 < W:
                        m[t, hh * W + ww] = 1.0
            t += 1
    return m


def _pool_matrix_T(H, W):
    # F.avg_pool2d(3, stride=2, padding=1, count_include_pad=True) as a
    # (H*W, Ho*Wo) matrix: pooled = y @ Pt with y laid out (C, H*W).
    Ho, Wo = (H - 1) // 2 + 1, (W - 1) // 2 + 1
    Pt = np.zeros((H * W, Ho * Wo), np.float32)
    for p in range(Ho):
        for q in range(Wo):
            for dy in range(3):
                for dx in range(3):
                    hy, wx = 2 * p + dy - 1, 2 * q + dx - 1
                    if 0 <= hy < H and 0 <= wx < W:
                        Pt[hy * W + wx, p * Wo + q] = 1.0 / 9.0
    return Pt, Ho, Wo


def _bilinear_1d(n_out, n_in):
    # F.interpolate(mode='bilinear', align_corners=True), one axis.
    m = np.zeros((n_out, n_in), np.float32)
    if n_in == 1:
        m[:, 0] = 1.0
        return m
    scale = (n_in - 1) / (n_out - 1)
    for i in range(n_out):
        src = i * scale
        lo = min(int(np.floor(src)), n_in - 1)
        hi = min(lo + 1, n_in - 1)
        w = src - lo
        m[i, lo] += 1.0 - w
        m[i, hi] += w
    return m


def _upsample_matrix_T(H, W):
    # bilinear x2 as (H*W, 4*H*W): xu = x @ Ut with x laid out (C, H*W).
    return np.kron(_bilinear_1d(2 * H, H), _bilinear_1d(2 * W, W)).T


# --------------------------------- planning ------------------------------------

def _build_plan(K, Wfin, H, W):
    consts = []

    def add(a):
        consts.append(jnp.asarray(a, F32))
        return len(consts) - 1

    mask_cache = {}

    def masks(hh, ww):
        if (hh, ww) not in mask_cache:
            mask_cache[(hh, ww)] = add(_tap_masks(hh, ww))
        return mask_cache[(hh, ww)]

    wcache = {}

    def wtaps(i, transposed):
        key = (i, transposed)
        if key not in wcache:
            w = Wfin if i == -1 else K[i]
            wcache[key] = add(_convT_taps(w) if transposed else _conv_taps(w))
        return wcache[key]

    blocks = []
    nL = len(K)
    hh, ww = H, W

    # opening conv + IN + ReLU
    blocks.append(dict(kind="open", w=wtaps(0, False), m=masks(hh, ww), width=ww))

    # encoder
    for i in range(1, nL):
        sK = K[i].shape
        if sK[0] == sK[1]:
            blocks.append(dict(kind="res", w1=wtaps(i, False), w2=wtaps(i, True),
                               m=masks(hh, ww), width=ww))
        else:
            Pt, Ho, Wo = _pool_matrix_T(hh, ww)
            blocks.append(dict(kind="down", w=wtaps(i, False), m=masks(hh, ww),
                               width=ww, p=add(Pt)))
            hh, ww = Ho, Wo

    # decoder
    for i in reversed(range(1, nL)):
        sK = K[i].shape
        if sK[0] == sK[1]:
            blocks.append(dict(kind="res", w1=wtaps(i, True), w2=wtaps(i, False),
                               m=masks(hh, ww), width=ww))
        else:
            Hf, Wf = 2 * hh, 2 * ww
            blocks.append(dict(kind="up", w=wtaps(i, True), m=masks(Hf, Wf),
                               width=Wf, u=add(_upsample_matrix_T(hh, ww))))
            hh, ww = Hf, Wf

    # closing conv
    blocks.append(dict(kind="final", w=wtaps(-1, False), m=masks(hh, ww), width=ww))
    return consts, blocks, (hh, ww), int(Wfin.shape[0])


# ------------------------------- fused kernel -----------------------------------

def _build_kernel(blocks, h, n_consts):
    h = float(h)

    def kernel(*refs):
        x_ref = refs[0]
        consts = refs[1:1 + n_consts]
        o_ref = refs[1 + n_consts]

        def conv3x3(x, w_idx, m_idx, width):
            # x: (Cin, HW) f32  ->  (Cout, HW) f32, 9 accumulating MXU taps.
            w = consts[w_idx][...]          # (9, Cout, Cin)
            m = consts[m_idx][...]          # (9, HW)
            acc = None
            t = 0
            for dy in range(3):
                for dx in range(3):
                    s = (dy - 1) * width + (dx - 1)
                    xs = x if s == 0 else jnp.roll(x, -s, axis=-1)
                    xs = xs * m[t:t + 1, :]                      # zero-pad semantics
                    y = jnp.dot(w[t], xs, preferred_element_type=F32)
                    acc = y if acc is None else acc + y
                    t += 1
            return acc

        def in_relu(y):
            # F.instance_norm (biased var, eps=1e-5, no affine) + ReLU, per channel.
            inv_n = 1.0 / y.shape[-1]
            mean = jnp.sum(y, axis=-1, keepdims=True) * inv_n
            d = y - mean
            var = jnp.sum(d * d, axis=-1, keepdims=True) * inv_n
            return jnp.maximum(d * jax.lax.rsqrt(var + 1e-5), 0.0)

        x = x_ref[0].astype(F32)            # (C0, HW), lane-dense
        skips = []
        for blk in blocks:
            kind = blk["kind"]
            if kind == "open":
                x = in_relu(conv3x3(x, blk["w"], blk["m"], blk["width"]))
            elif kind == "res":
                z = in_relu(conv3x3(x, blk["w1"], blk["m"], blk["width"]))
                z = conv3x3(z, blk["w2"], blk["m"], blk["width"])
                x = x - h * z
            elif kind == "down":
                skips.append(x)                                   # skip is pre-conv x
                y = in_relu(conv3x3(x, blk["w"], blk["m"], blk["width"]))
                x = jnp.dot(y, consts[blk["p"]][...], preferred_element_type=F32)
            elif kind == "up":
                xu = jnp.dot(x, consts[blk["u"]][...], preferred_element_type=F32)
                z = in_relu(conv3x3(xu, blk["w"], blk["m"], blk["width"]))
                x = z + skips.pop()
            else:  # "final"
                x = conv3x3(x, blk["w"], blk["m"], blk["width"])
        o_ref[0] = x.astype(o_ref.dtype)

    return kernel


# ------------------------------ public wrapper ----------------------------------

def make_vnet2d(K, Wfin, h, H, W):
    """Builds a jitted forward for fixed weights / spatial size (constants are
    preprocessed once, outside the jitted function)."""
    consts, blocks, (Ho, Wo), Cout = _build_plan(K, Wfin, H, W)
    kernel = _build_kernel(blocks, h, len(consts))

    def _const_spec(shape):
        nd = len(shape)
        return pl.BlockSpec(shape, lambda b, _nd=nd: (0,) * _nd)

    @jax.jit
    def forward(x_nchw):
        B, C0, Hx, Wx = x_nchw.shape
        assert (Hx, Wx) == (H, W)
        x = x_nchw.reshape(B, C0, H * W)                 # NCHW -> (B, C, H*W): free
        in_specs = [pl.BlockSpec((1, C0, H * W), lambda b: (b, 0, 0))]
        in_specs += [_const_spec(c.shape) for c in consts]
        out = pl.pallas_call(
            kernel,
            out_shape=jax.ShapeDtypeStruct((B, Cout, Ho * Wo), x_nchw.dtype),
            grid=(B,),
            in_specs=in_specs,
            out_specs=pl.BlockSpec((1, Cout, Ho * Wo), lambda b: (b, 0, 0)),
            compiler_params=pltpu.CompilerParams(
                dimension_semantics=("parallel",)),
        )(x, *consts)
        return out.reshape(B, Cout, Ho, Wo)              # (B, C, H*W) -> NCHW: free

    return forward


# ------------------------- pure-JAX reference (for checking) --------------------

def vnet2d_reference(x, K, Wfin, h):
    hp = jax.lax.Precision.HIGHEST

    def conv2(x, w):
        return jax.lax.conv_general_dilated(
            x, w, (1, 1), ((1, 1), (1, 1)),
            dimension_numbers=("NCHW", "OIHW", "NCHW"), precision=hp)

    def conv2T(x, w):
        w_eq = jnp.flip(jnp.transpose(w, (1, 0, 2, 3)), axis=(2, 3))
        return conv2(x, w_eq)

    def instance_norm(z):
        mean = jnp.mean(z, axis=(2, 3), keepdims=True)
        var = jnp.mean((z - mean) ** 2, axis=(2, 3), keepdims=True)
        return (z - mean) * jax.lax.rsqrt(var + 1e-5)

    def avg_pool(x):
        s = jax.lax.reduce_window(x, jnp.float32(0.0), jax.lax.add,
                                  (1, 1, 3, 3), (1, 1, 2, 2),
                                  ((0, 0), (0, 0), (1, 1), (1, 1)))
        return s / 9.0

    def upsample(x):
        _, _, H, W = x.shape
        Bh = jnp.asarray(_bilinear_1d(2 * H, H))
        Bw = jnp.asarray(_bilinear_1d(2 * W, W))
        return jnp.einsum("ph,bchw,qw->bcpq", Bh, x, Bw, precision=hp)

    nL = len(K)
    xS = []
    z = conv2(x, K[0])
    x = jax.nn.relu(instance_norm(z))
    for i in range(1, nL):
        sK = K[i].shape
        if sK[0] == sK[1]:
            z = jax.nn.relu(instance_norm(conv2(x, K[i])))
            x = x - h * conv2T(z, K[i])
        else:
            xS.append(x)
            x = jax.nn.relu(instance_norm(conv2(x, K[i])))
            x = avg_pool(x)
    n_scales = len(xS)
    for i in reversed(range(1, nL)):
        sK = K[i].shape
        if sK[0] == sK[1]:
            z = jax.nn.relu(instance_norm(conv2T(x, K[i])))
            x = x - h * conv2(z, K[i])
        else:
            n_scales -= 1
            x = upsample(x)
            z = instance_norm(conv2T(x, K[i]))
            x = jax.nn.relu(z) + xS[n_scales]
    return conv2(x, Wfin)


# ------------------------------------- main -------------------------------------

if __name__ == "__main__":
    key = jax.random.PRNGKey(0)
    ks = jax.random.split(key, 6)
    # Parameter shapes implied by the module's forward: opening conv, a fine
    # residual (square) block, a down-sampling (non-square) block, a coarse
    # residual block, and the closing conv W.
    K = [
        0.1 * jax.random.normal(ks[0], (8, 4, 3, 3), jnp.float32),    # open: 4 -> 8
        0.1 * jax.random.normal(ks[1], (8, 8, 3, 3), jnp.float32),    # residual (fine)
        0.1 * jax.random.normal(ks[2], (16, 8, 3, 3), jnp.float32),   # down: 8 -> 16
        0.1 * jax.random.normal(ks[3], (16, 16, 3, 3), jnp.float32),  # residual (coarse)
    ]
    Wfin = 0.1 * jax.random.normal(ks[4], (4, 8, 3, 3), jnp.float32)  # closing: 8 -> 4
    h = 0.1
    x = jax.random.normal(ks[5], (2, 4, 16, 16), jnp.float32)         # NCHW input

    fwd = make_vnet2d(K, Wfin, h, 16, 16)
    out = jax.block_until_ready(fwd(x))
    assert out.shape == (2, 4, 16, 16), out.shape
    assert bool(jnp.all(jnp.isfinite(out)))

    # Correctness check against a pure-JAX/XLA reference of the same forward.
    ref = jax.block_until_ready(vnet2d_reference(x, K, Wfin, h))
    np.testing.assert_allclose(np.asarray(out), np.asarray(ref), rtol=2e-2, atol=2e-2)

    print("KERNEL_OK")
</pallas_src>

<mosaic_0001>
module attributes {stable_mosaic.version = 11 : i64} {
  func.func @kernel(%arg0: i32, %arg1: memref<1x4x256xf32, #tpu.memory_space<vmem>>, %arg2: memref<9x8x4xf32, #tpu.memory_space<vmem>>, %arg3: memref<9x256xf32, #tpu.memory_space<vmem>>, %arg4: memref<9x8x8xf32, #tpu.memory_space<vmem>>, %arg5: memref<9x8x8xf32, #tpu.memory_space<vmem>>, %arg6: memref<9x16x8xf32, #tpu.memory_space<vmem>>, %arg7: memref<256x64xf32, #tpu.memory_space<vmem>>, %arg8: memref<9x16x16xf32, #tpu.memory_space<vmem>>, %arg9: memref<9x16x16xf32, #tpu.memory_space<vmem>>, %arg10: memref<9x64xf32, #tpu.memory_space<vmem>>, %arg11: memref<9x8x16xf32, #tpu.memory_space<vmem>>, %arg12: memref<64x256xf32, #tpu.memory_space<vmem>>, %arg13: memref<9x4x8xf32, #tpu.memory_space<vmem>>, %arg14: memref<1x4x256xf32, #tpu.memory_space<vmem>>) attributes {dimension_semantics = [#tpu.dimension_semantics<parallel>], iteration_bounds = array<i64: 2>, scalar_prefetch = 0 : i64, scratch_operands = 0 : i64, tpu.core_type = #tpu.core_type<tc>, window_params = [{transform_indices = @transform_0, window_bounds = array<i64: 1, 4, 256>}, {pipeline_mode = #tpu.pipeline_mode<synchronous>, transform_indices = @transform_1, window_bounds = array<i64: 9, 8, 4>}, {pipeline_mode = #tpu.pipeline_mode<synchronous>, transform_indices = @transform_2, window_bounds = array<i64: 9, 256>}, {pipeline_mode = #tpu.pipeline_mode<synchronous>, transform_indices = @transform_3, window_bounds = array<i64: 9, 8, 8>}, {pipeline_mode = #tpu.pipeline_mode<synchronous>, transform_indices = @transform_4, window_bounds = array<i64: 9, 8, 8>}, {pipeline_mode = #tpu.pipeline_mode<synchronous>, transform_indices = @transform_5, window_bounds = array<i64: 9, 16, 8>}, {pipeline_mode = #tpu.pipeline_mode<synchronous>, transform_indices = @transform_6, window_bounds = array<i64: 256, 64>}, {pipeline_mode = #tpu.pipeline_mode<synchronous>, transform_indices = @transform_7, window_bounds = array<i64: 9, 16, 16>}, {pipeline_mode = #tpu.pipeline_mode<synchronous>, transform_indices = @transform_8, window_bounds = array<i64: 9, 16, 16>}, {pipeline_mode = #tpu.pipeline_mode<synchronous>, transform_indices = @transform_9, window_bounds = array<i64: 9, 64>}, {pipeline_mode = #tpu.pipeline_mode<synchronous>, transform_indices = @transform_10, window_bounds = array<i64: 9, 8, 16>}, {pipeline_mode = #tpu.pipeline_mode<synchronous>, transform_indices = @transform_11, window_bounds = array<i64: 64, 256>}, {pipeline_mode = #tpu.pipeline_mode<synchronous>, transform_indices = @transform_12, window_bounds = array<i64: 9, 4, 8>}, {transform_indices = @transform_13, window_bounds = array<i64: 1, 4, 256>}]} {
    %c0 = arith.constant 0 : index
    %c0_0 = arith.constant 0 : index
    %c0_1 = arith.constant 0 : index
    %0 = vector.load %arg1[%c0, %c0_0, %c0_1] : memref<1x4x256xf32, #tpu.memory_space<vmem>>, vector<1x4x256xf32>
    %1 = vector.shape_cast %0 : vector<1x4x256xf32> to vector<4x256xf32>
    %c0_2 = arith.constant 0 : index
    %c0_3 = arith.constant 0 : index
    %c0_4 = arith.constant 0 : index
    %2 = vector.load %arg2[%c0_2, %c0_3, %c0_4] : memref<9x8x4xf32, #tpu.memory_space<vmem>>, vector<9x8x4xf32>
    %c0_5 = arith.constant 0 : index
    %c0_6 = arith.constant 0 : index
    %3 = vector.load %arg3[%c0_5, %c0_6] : memref<9x256xf32, #tpu.memory_space<vmem>>, vector<9x256xf32>
    %4 = vector.extract_strided_slice %1 {offsets = [0, 239], sizes = [4, 17], strides = [1, 1]} : vector<4x256xf32> to vector<4x17xf32>
    %5 = vector.extract_strided_slice %1 {offsets = [0, 0], sizes = [4, 239], strides = [1, 1]} : vector<4x256xf32> to vector<4x239xf32>
    %6 = tpu.concatenate %4, %5 in 1 : vector<4x17xf32>, vector<4x239xf32> -> vector<4x256xf32>
    %7 = vector.extract_strided_slice %3 {offsets = [0, 0], sizes = [1, 256], strides = [1, 1]} : vector<9x256xf32> to vector<1x256xf32>
    %8 = vector.broadcast %7 : vector<1x256xf32> to vector<4x256xf32>
    %9 = arith.mulf %6, %8 : vector<4x256xf32>
    %10 = vector.extract_strided_slice %2 {offsets = [0, 0, 0], sizes = [1, 8, 4], strides = [1, 1, 1]} : vector<9x8x4xf32> to vector<1x8x4xf32>
    %11 = vector.shape_cast %10 : vector<1x8x4xf32> to vector<8x4xf32>
    %cst = arith.constant dense<0.000000e+00> : vector<8x256xf32>
    %12 = tpu.matmul %11, %9, %cst {dimension_numbers = #tpu.dot_dimension_numbers<[1], [0], [0], [1], [0, 0, 1, 1], [], []>} : vector<8x4xf32>, vector<4x256xf32>, vector<8x256xf32> -> vector<8x256xf32>
    %13 = vector.extract_strided_slice %1 {offsets = [0, 240], sizes = [4, 16], strides = [1, 1]} : vector<4x256xf32> to vector<4x16xf32>
    %14 = vector.extract_strided_slice %1 {offsets = [0, 0], sizes = [4, 240], strides = [1, 1]} : vector<4x256xf32> to vector<4x240xf32>
    %15 = tpu.concatenate %13, %14 in 1 : vector<4x16xf32>, vector<4x240xf32> -> vector<4x256xf32>
    %16 = vector.extract_strided_slice %3 {offsets = [1, 0], sizes = [1, 256], strides = [1, 1]} : vector<9x256xf32> to vector<1x256xf32>
    %17 = vector.broadcast %16 : vector<1x256xf32> to vector<4x256xf32>
    %18 = arith.mulf %15, %17 : vector<4x256xf32>
    %19 = vector.extract_strided_slice %2 {offsets = [1, 0, 0], sizes = [1, 8, 4], strides = [1, 1, 1]} : vector<9x8x4xf32> to vector<1x8x4xf32>
    %20 = vector.shape_cast %19 : vector<1x8x4xf32> to vector<8x4xf32>
    %cst_7 = arith.constant dense<0.000000e+00> : vector<8x256xf32>
    %21 = tpu.matmul %20, %18, %cst_7 {dimension_numbers = #tpu.dot_dimension_numbers<[1], [0], [0], [1], [0, 0, 1, 1], [], []>} : vector<8x4xf32>, vector<4x256xf32>, vector<8x256xf32> -> vector<8x256xf32>
    %22 = arith.addf %12, %21 : vector<8x256xf32>
    %23 = vector.extract_strided_slice %1 {offsets = [0, 241], sizes = [4, 15], strides = [1, 1]} : vector<4x256xf32> to vector<4x15xf32>
    %24 = vector.extract_strided_slice %1 {offsets = [0, 0], sizes = [4, 241], strides = [1, 1]} : vector<4x256xf32> to vector<4x241xf32>
    %25 = tpu.concatenate %23, %24 in 1 : vector<4x15xf32>, vector<4x241xf32> -> vector<4x256xf32>
    %26 = vector.extract_strided_slice %3 {offsets = [2, 0], sizes = [1, 256], strides = [1, 1]} : vector<9x256xf32> to vector<1x256xf32>
    %27 = vector.broadcast %26 : vector<1x256xf32> to vector<4x256xf32>
    %28 = arith.mulf %25, %27 : vector<4x256xf32>
    %29 = vector.extract_strided_slice %2 {offsets = [2, 0, 0], sizes = [1, 8, 4], strides = [1, 1, 1]} : vector<9x8x4xf32> to vector<1x8x4xf32>
    %30 = vector.shape_cast %29 : vector<1x8x4xf32> to vector<8x4xf32>
    %cst_8 = arith.constant dense<0.000000e+00> : vector<8x256xf32>
    %31 = tpu.matmul %30, %28, %cst_8 {dimension_numbers = #tpu.dot_dimension_numbers<[1], [0], [0], [1], [0, 0, 1, 1], [], []>} : vector<8x4xf32>, vector<4x256xf32>, vector<8x256xf32> -> vector<8x256xf32>
    %32 = arith.addf %22, %31 : vector<8x256xf32>
    %33 = vector.extract_strided_slice %1 {offsets = [0, 255], sizes = [4, 1], strides = [1, 1]} : vector<4x256xf32> to vector<4x1xf32>
    %34 = vector.extract_strided_slice %1 {offsets = [0, 0], sizes = [4, 255], strides = [1, 1]} : vector<4x256xf32> to vector<4x255xf32>
    %35 = tpu.concatenate %33, %34 in 1 : vector<4x1xf32>, vector<4x255xf32> -> vector<4x256xf32>
    %36 = vector.extract_strided_slice %3 {offsets = [3, 0], sizes = [1, 256], strides = [1, 1]} : vector<9x256xf32> to vector<1x256xf32>
    %37 = vector.broadcast %36 : vector<1x256xf32> to vector<4x256xf32>
    %38 = arith.mulf %35, %37 : vector<4x256xf32>
    %39 = vector.extract_strided_slice %2 {offsets = [3, 0, 0], sizes = [1, 8, 4], strides = [1, 1, 1]} : vector<9x8x4xf32> to vector<1x8x4xf32>
    %40 = vector.shape_cast %39 : vector<1x8x4xf32> to vector<8x4xf32>
    %cst_9 = arith.constant dense<0.000000e+00> : vector<8x256xf32>
    %41 = tpu.matmul %40, %38, %cst_9 {dimension_numbers = #tpu.dot_dimension_numbers<[1], [0], [0], [1], [0, 0, 1, 1], [], []>} : vector<8x4xf32>, vector<4x256xf32>, vector<8x256xf32> -> vector<8x256xf32>
    %42 = arith.addf %32, %41 : vector<8x256xf32>
    %43 = vector.extract_strided_slice %3 {offsets = [4, 0], sizes = [1, 256], strides = [1, 1]} : vector<9x256xf32> to vector<1x256xf32>
    %44 = vector.broadcast %43 : vector<1x256xf32> to vector<4x256xf32>
    %45 = arith.mulf %1, %44 : vector<4x256xf32>
    %46 = vector.extract_strided_slice %2 {offsets = [4, 0, 0], sizes = [1, 8, 4], strides = [1, 1, 1]} : vector<9x8x4xf32> to vector<1x8x4xf32>
    %47 = vector.shape_cast %46 : vector<1x8x4xf32> to vector<8x4xf32>
    %cst_10 = arith.constant dense<0.000000e+00> : vector<8x256xf32>
    %48 = tpu.matmul %47, %45, %cst_10 {dimension_numbers = #tpu.dot_dimension_numbers<[1], [0], [0], [1], [0, 0, 1, 1], [], []>} : vector<8x4xf32>, vector<4x256xf32>, vector<8x256xf32> -> vector<8x256xf32>
    %49 = arith.addf %42, %48 : vector<8x256xf32>
    %50 = vector.extract_strided_slice %1 {offsets = [0, 1], sizes = [4, 255], strides = [1, 1]} : vector<4x256xf32> to vector<4x255xf32>
    %51 = vector.extract_strided_slice %1 {offsets = [0, 0], sizes = [4, 1], strides = [1, 1]} : vector<4x256xf32> to vector<4x1xf32>
    %52 = tpu.concatenate %50, %51 in 1 : vector<4x255xf32>, vector<4x1xf32> -> vector<4x256xf32>
    %53 = vector.extract_strided_slice %3 {offsets = [5, 0], sizes = [1, 256], strides = [1, 1]} : vector<9x256xf32> to vector<1x256xf32>
    %54 = vector.broadcast %53 : vector<1x256xf32> to vector<4x256xf32>
    %55 = arith.mulf %52, %54 : vector<4x256xf32>
    %56 = vector.extract_strided_slice %2 {offsets = [5, 0, 0], sizes = [1, 8, 4], strides = [1, 1, 1]} : vector<9x8x4xf32> to vector<1x8x4xf32>
    %57 = vector.shape_cast %56 : vector<1x8x4xf32> to vector<8x4xf32>
    %cst_11 = arith.constant dense<0.000000e+00> : vector<8x256xf32>
    %58 = tpu.matmul %57, %55, %cst_11 {dimension_numbers = #tpu.dot_dimension_numbers<[1], [0], [0], [1], [0, 0, 1, 1], [], []>} : vector<8x4xf32>, vector<4x256xf32>, vector<8x256xf32> -> vector<8x256xf32>
    %59 = arith.addf %49, %58 : vector<8x256xf32>
    %60 = vector.extract_strided_slice %1 {offsets = [0, 15], sizes = [4, 241], strides = [1, 1]} : vector<4x256xf32> to vector<4x241xf32>
    %61 = vector.extract_strided_slice %1 {offsets = [0, 0], sizes = [4, 15], strides = [1, 1]} : vector<4x256xf32> to vector<4x15xf32>
    %62 = tpu.concatenate %60, %61 in 1 : vector<4x241xf32>, vector<4x15xf32> -> vector<4x256xf32>
    %63 = vector.extract_strided_slice %3 {offsets = [6, 0], sizes = [1, 256], strides = [1, 1]} : vector<9x256xf32> to vector<1x256xf32>
    %64 = vector.broadcast %63 : vector<1x256xf32> to vector<4x256xf32>
    %65 = arith.mulf %62, %64 : vector<4x256xf32>
    %66 = vector.extract_strided_slice %2 {offsets = [6, 0, 0], sizes = [1, 8, 4], strides = [1, 1, 1]} : vector<9x8x4xf32> to vector<1x8x4xf32>
    %67 = vector.shape_cast %66 : vector<1x8x4xf32> to vector<8x4xf32>
    %cst_12 = arith.constant dense<0.000000e+00> : vector<8x256xf32>
    %68 = tpu.matmul %67, %65, %cst_12 {dimension_numbers = #tpu.dot_dimension_numbers<[1], [0], [0], [1], [0, 0, 1, 1], [], []>} : vector<8x4xf32>, vector<4x256xf32>, vector<8x256xf32> -> vector<8x256xf32>
    %69 = arith.addf %59, %68 : vector<8x256xf32>
    %70 = vector.extract_strided_slice %1 {offsets = [0, 16], sizes = [4, 240], strides = [1, 1]} : vector<4x256xf32> to vector<4x240xf32>
    %71 = vector.extract_strided_slice %1 {offsets = [0, 0], sizes = [4, 16], strides = [1, 1]} : vector<4x256xf32> to vector<4x16xf32>
    %72 = tpu.concatenate %70, %71 in 1 : vector<4x240xf32>, vector<4x16xf32> -> vector<4x256xf32>
    %73 = vector.extract_strided_slice %3 {offsets = [7, 0], sizes = [1, 256], strides = [1, 1]} : vector<9x256xf32> to vector<1x256xf32>
    %74 = vector.broadcast %73 : vector<1x256xf32> to vector<4x256xf32>
    %75 = arith.mulf %72, %74 : vector<4x256xf32>
    %76 = vector.extract_strided_slice %2 {offsets = [7, 0, 0], sizes = [1, 8, 4], strides = [1, 1, 1]} : vector<9x8x4xf32> to vector<1x8x4xf32>
    %77 = vector.shape_cast %76 : vector<1x8x4xf32> to vector<8x4xf32>
    %cst_13 = arith.constant dense<0.000000e+00> : vector<8x256xf32>
    %78 = tpu.matmul %77, %75, %cst_13 {dimension_numbers = #tpu.dot_dimension_numbers<[1], [0], [0], [1], [0, 0, 1, 1], [], []>} : vector<8x4xf32>, vector<4x256xf32>, vector<8x256xf32> -> vector<8x256xf32>
    %79 = arith.addf %69, %78 : vector<8x256xf32>
    %80 = vector.extract_strided_slice %1 {offsets = [0, 17], sizes = [4, 239], strides = [1, 1]} : vector<4x256xf32> to vector<4x239xf32>
    %81 = vector.extract_strided_slice %1 {offsets = [0, 0], sizes = [4, 17], strides = [1, 1]} : vector<4x256xf32> to vector<4x17xf32>
    %82 = tpu.concatenate %80, %81 in 1 : vector<4x239xf32>, vector<4x17xf32> -> vector<4x256xf32>
    %83 = vector.extract_strided_slice %3 {offsets = [8, 0], sizes = [1, 256], strides = [1, 1]} : vector<9x256xf32> to vector<1x256xf32>
    %84 = vector.broadcast %83 : vector<1x256xf32> to vector<4x256xf32>
    %85 = arith.mulf %82, %84 : vector<4x256xf32>
    %86 = vector.extract_strided_slice %2 {offsets = [8, 0, 0], sizes = [1, 8, 4], strides = [1, 1, 1]} : vector<9x8x4xf32> to vector<1x8x4xf32>
    %87 = vector.shape_cast %86 : vector<1x8x4xf32> to vector<8x4xf32>
    %cst_14 = arith.constant dense<0.000000e+00> : vector<8x256xf32>
    %88 = tpu.matmul %87, %85, %cst_14 {dimension_numbers = #tpu.dot_dimension_numbers<[1], [0], [0], [1], [0, 0, 1, 1], [], []>} : vector<8x4xf32>, vector<4x256xf32>, vector<8x256xf32> -> vector<8x256xf32>
    %89 = arith.addf %79, %88 : vector<8x256xf32>
    %cst_15 = arith.constant dense<0.000000e+00> : vector<8xf32>
    %90 = vector.multi_reduction <add>, %89, %cst_15 [1] : vector<8x256xf32> to vector<8xf32>
    %91 = vector.shape_cast %90 : vector<8xf32> to vector<8x1xf32>
    %cst_16 = arith.constant 3.906250e-03 : f32
    %92 = vector.broadcast %cst_16 : f32 to vector<8x1xf32>
    %93 = arith.mulf %91, %92 : vector<8x1xf32>
    %94 = vector.broadcast %93 : vector<8x1xf32> to vector<8x256xf32>
    %95 = arith.subf %89, %94 : vector<8x256xf32>
    %96 = arith.mulf %95, %95 : vector<8x256xf32>
    %cst_17 = arith.constant dense<0.000000e+00> : vector<8xf32>
    %97 = vector.multi_reduction <add>, %96, %cst_17 [1] : vector<8x256xf32> to vector<8xf32>
    %98 = vector.shape_cast %97 : vector<8xf32> to vector<8x1xf32>
    %cst_18 = arith.constant 3.906250e-03 : f32
    %99 = vector.broadcast %cst_18 : f32 to vector<8x1xf32>
    %100 = arith.mulf %98, %99 : vector<8x1xf32>
    %cst_19 = arith.constant 9.99999974E-6 : f32
    %101 = vector.broadcast %cst_19 : f32 to vector<8x1xf32>
    %102 = arith.addf %100, %101 : vector<8x1xf32>
    %103 = math.rsqrt %102 : vector<8x1xf32>
    %104 = vector.broadcast %103 : vector<8x1xf32> to vector<8x256xf32>
    %105 = arith.mulf %95, %104 : vector<8x256xf32>
    %cst_20 = arith.constant 0.000000e+00 : f32
    %106 = vector.broadcast %cst_20 : f32 to vector<8x256xf32>
    %107 = arith.maximumf %105, %106 : vector<8x256xf32>
    %c0_21 = arith.constant 0 : index
    %c0_22 = arith.constant 0 : index
    %c0_23 = arith.constant 0 : index
    %108 = vector.load %arg4[%c0_21, %c0_22, %c0_23] : memref<9x8x8xf32, #tpu.memory_space<vmem>>, vector<9x8x8xf32>
    %c0_24 = arith.constant 0 : index
    %c0_25 = arith.constant 0 : index
    %109 = vector.load %arg3[%c0_24, %c0_25] : memref<9x256xf32, #tpu.memory_space<vmem>>, vector<9x256xf32>
    %110 = vector.extract_strided_slice %107 {offsets = [0, 239], sizes = [8, 17], strides = [1, 1]} : vector<8x256xf32> to vector<8x17xf32>
    %111 = vector.extract_strided_slice %107 {offsets = [0, 0], sizes = [8, 239], strides = [1, 1]} : vector<8x256xf32> to vector<8x239xf32>
    %112 = tpu.concatenate %110, %111 in 1 : vector<8x17xf32>, vector<8x239xf32> -> vector<8x256xf32>
    %113 = vector.extract_strided_slice %109 {offsets = [0, 0], sizes = [1, 256], strides = [1, 1]} : vector<9x256xf32> to vector<1x256xf32>
    %114 = vector.broadcast %113 : vector<1x256xf32> to vector<8x256xf32>
    %115 = arith.mulf %112, %114 : vector<8x256xf32>
    %116 = vector.extract_strided_slice %108 {offsets = [0, 0, 0], sizes = [1, 8, 8], strides = [1, 1, 1]} : vector<9x8x8xf32> to vector<1x8x8xf32>
    %117 = vector.shape_cast %116 : vector<1x8x8xf32> to vector<8x8xf32>
    %cst_26 = arith.constant dense<0.000000e+00> : vector<8x256xf32>
    %118 = tpu.matmul %117, %115, %cst_26 {dimension_numbers = #tpu.dot_dimension_numbers<[1], [0], [0], [1], [0, 0, 1, 1], [], []>} : vector<8x8xf32>, vector<8x256xf32>, vector<8x256xf32> -> vector<8x256xf32>
    %119 = vector.extract_strided_slice %107 {offsets = [0, 240], sizes = [8, 16], strides = [1, 1]} : vector<8x256xf32> to vector<8x16xf32>
    %120 = vector.extract_strided_slice %107 {offsets = [0, 0], sizes = [8, 240], strides = [1, 1]} : vector<8x256xf32> to vector<8x240xf32>
    %121 = tpu.concatenate %119, %120 in 1 : vector<8x16xf32>, vector<8x240xf32> -> vector<8x256xf32>
    %122 = vector.extract_strided_slice %109 {offsets = [1, 0], sizes = [1, 256], strides = [1, 1]} : vector<9x256xf32> to vector<1x256xf32>
    %123 = vector.broadcast %122 : vector<1x256xf32> to vector<8x256xf32>
    %124 = arith.mulf %121, %123 : vector<8x256xf32>
    %125 = vector.extract_strided_slice %108 {offsets = [1, 0, 0], sizes = [1, 8, 8], strides = [1, 1, 1]} : vector<9x8x8xf32> to vector<1x8x8xf32>
    %126 = vector.shape_cast %125 : vector<1x8x8xf32> to vector<8x8xf32>
    %cst_27 = arith.constant dense<0.000000e+00> : vector<8x256xf32>
    %127 = tpu.matmul %126, %124, %cst_27 {dimension_numbers = #tpu.dot_dimension_numbers<[1], [0], [0], [1], [0, 0, 1, 1], [], []>} : vector<8x8xf32>, vector<8x256xf32>, vector<8x256xf32> -> vector<8x256xf32>
    %128 = arith.addf %118, %127 : vector<8x256xf32>
    %129 = vector.extract_strided_slice %107 {offsets = [0, 241], sizes = [8, 15], strides = [1, 1]} : vector<8x256xf32> to vector<8x15xf32>
    %130 = vector.extract_strided_slice %107 {offsets = [0, 0], sizes = [8, 241], strides = [1, 1]} : vector<8x256xf32> to vector<8x241xf32>
    %131 = tpu.concatenate %129, %130 in 1 : vector<8x15xf32>, vector<8x241xf32> -> vector<8x256xf32>
    %132 = vector.extract_strided_slice %109 {offsets = [2, 0], sizes = [1, 256], strides = [1, 1]} : vector<9x256xf32> to vector<1x256xf32>
    %133 = vector.broadcast %132 : vector<1x256xf32> to vector<8x256xf32>
    %134 = arith.mulf %131, %133 : vector<8x256xf32>
    %135 = vector.extract_strided_slice %108 {offsets = [2, 0, 0], sizes = [1, 8, 8], strides = [1, 1, 1]} : vector<9x8x8xf32> to vector<1x8x8xf32>
    %136 = vector.shape_cast %135 : vector<1x8x8xf32> to vector<8x8xf32>
    %cst_28 = arith.constant dense<0.000000e+00> : vector<8x256xf32>
    %137 = tpu.matmul %136, %134, %cst_28 {dimension_numbers = #tpu.dot_dimension_numbers<[1], [0], [0], [1], [0, 0, 1, 1], [], []>} : vector<8x8xf32>, vector<8x256xf32>, vector<8x256xf32> -> vector<8x256xf32>
    %138 = arith.addf %128, %137 : vector<8x256xf32>
    %139 = vector.extract_strided_slice %107 {offsets = [0, 255], sizes = [8, 1], strides = [1, 1]} : vector<8x256xf32> to vector<8x1xf32>
    %140 = vector.extract_strided_slice %107 {offsets = [0, 0], sizes = [8, 255], strides = [1, 1]} : vector<8x256xf32> to vector<8x255xf32>
    %141 = tpu.concatenate %139, %140 in 1 : vector<8x1xf32>, vector<8x255xf32> -> vector<8x256xf32>
    %142 = vector.extract_strided_slice %109 {offsets = [3, 0], sizes = [1, 256], strides = [1, 1]} : vector<9x256xf32> to vector<1x256xf32>
    %143 = vector.broadcast %142 : vector<1x256xf32> to vector<8x256xf32>
    %144 = arith.mulf %141, %143 : vector<8x256xf32>
    %145 = vector.extract_strided_slice %108 {offsets = [3, 0, 0], sizes = [1, 8, 8], strides = [1, 1, 1]} : vector<9x8x8xf32> to vector<1x8x8xf32>
    %146 = vector.shape_cast %145 : vector<1x8x8xf32> to vector<8x8xf32>
    %cst_29 = arith.constant dense<0.000000e+00> : vector<8x256xf32>
    %147 = tpu.matmul %146, %144, %cst_29 {dimension_numbers = #tpu.dot_dimension_numbers<[1], [0], [0], [1], [0, 0, 1, 1], [], []>} : vector<8x8xf32>, vector<8x256xf32>, vector<8x256xf32> -> vector<8x256xf32>
    %148 = arith.addf %138, %147 : vector<8x256xf32>
    %149 = vector.extract_strided_slice %109 {offsets = [4, 0], sizes = [1, 256], strides = [1, 1]} : vector<9x256xf32> to vector<1x256xf32>
    %150 = vector.broadcast %149 : vector<1x256xf32> to vector<8x256xf32>
    %151 = arith.mulf %107, %150 : vector<8x256xf32>
    %152 = vector.extract_strided_slice %108 {offsets = [4, 0, 0], sizes = [1, 8, 8], strides = [1, 1, 1]} : vector<9x8x8xf32> to vector<1x8x8xf32>
    %153 = vector.shape_cast %152 : vector<1x8x8xf32> to vector<8x8xf32>
    %cst_30 = arith.constant dense<0.000000e+00> : vector<8x256xf32>
    %154 = tpu.matmul %153, %151, %cst_30 {dimension_numbers = #tpu.dot_dimension_numbers<[1], [0], [0], [1], [0, 0, 1, 1], [], []>} : vector<8x8xf32>, vector<8x256xf32>, vector<8x256xf32> -> vector<8x256xf32>
    %155 = arith.addf %148, %154 : vector<8x256xf32>
    %156 = vector.extract_strided_slice %107 {offsets = [0, 1], sizes = [8, 255], strides = [1, 1]} : vector<8x256xf32> to vector<8x255xf32>
    %157 = vector.extract_strided_slice %107 {offsets = [0, 0], sizes = [8, 1], strides = [1, 1]} : vector<8x256xf32> to vector<8x1xf32>
    %158 = tpu.concatenate %156, %157 in 1 : vector<8x255xf32>, vector<8x1xf32> -> vector<8x256xf32>
    %159 = vector.extract_strided_slice %109 {offsets = [5, 0], sizes = [1, 256], strides = [1, 1]} : vector<9x256xf32> to vector<1x256xf32>
    %160 = vector.broadcast %159 : vector<1x256xf32> to vector<8x256xf32>
    %161 = arith.mulf %158, %160 : vector<8x256xf32>
    %162 = vector.extract_strided_slice %108 {offsets = [5, 0, 0], sizes = [1, 8, 8], strides = [1, 1, 1]} : vector<9x8x8xf32> to vector<1x8x8xf32>
    %163 = vector.shape_cast %162 : vector<1x8x8xf32> to vector<8x8xf32>
    %cst_31 = arith.constant dense<0.000000e+00> : vector<8x256xf32>
    %164 = tpu.matmul %163, %161, %cst_31 {dimension_numbers = #tpu.dot_dimension_numbers<[1], [0], [0], [1], [0, 0, 1, 1], [], []>} : vector<8x8xf32>, vector<8x256xf32>, vector<8x256xf32> -> vector<8x256xf32>
    %165 = arith.addf %155, %164 : vector<8x256xf32>
    %166 = vector.extract_strided_slice %107 {offsets = [0, 15], sizes = [8, 241], strides = [1, 1]} : vector<8x256xf32> to vector<8x241xf32>
    %167 = vector.extract_strided_slice %107 {offsets = [0, 0], sizes = [8, 15], strides = [1, 1]} : vector<8x256xf32> to vector<8x15xf32>
    %168 = tpu.concatenate %166, %167 in 1 : vector<8x241xf32>, vector<8x15xf32> -> vector<8x256xf32>
    %169 = vector.extract_strided_slice %109 {offsets = [6, 0], sizes = [1, 256], strides = [1, 1]} : vector<9x256xf32> to vector<1x256xf32>
    %170 = vector.broadcast %169 : vector<1x256xf32> to vector<8x256xf32>
    %171 = arith.mulf %168, %170 : vector<8x256xf32>
    %172 = vector.extract_strided_slice %108 {offsets = [6, 0, 0], sizes = [1, 8, 8], strides = [1, 1, 1]} : vector<9x8x8xf32> to vector<1x8x8xf32>
    %173 = vector.shape_cast %172 : vector<1x8x8xf32> to vector<8x8xf32>
    %cst_32 = arith.constant dense<0.000000e+00> : vector<8x256xf32>
    %174 = tpu.matmul %173, %171, %cst_32 {dimension_numbers = #tpu.dot_dimension_numbers<[1], [0], [0], [1], [0, 0, 1, 1], [], []>} : vector<8x8xf32>, vector<8x256xf32>, vector<8x256xf32> -> vector<8x256xf32>
    %175 = arith.addf %165, %174 : vector<8x256xf32>
    %176 = vector.extract_strided_slice %107 {offsets = [0, 16], sizes = [8, 240], strides = [1, 1]} : vector<8x256xf32> to vector<8x240xf32>
    %177 = vector.extract_strided_slice %107 {offsets = [0, 0], sizes = [8, 16], strides = [1, 1]} : vector<8x256xf32> to vector<8x16xf32>
    %178 = tpu.concatenate %176, %177 in 1 : vector<8x240xf32>, vector<8x16xf32> -> vector<8x256xf32>
    %179 = vector.extract_strided_slice %109 {offsets = [7, 0], sizes = [1, 256], strides = [1, 1]} : vector<9x256xf32> to vector<1x256xf32>
    %180 = vector.broadcast %179 : vector<1x256xf32> to vector<8x256xf32>
    %181 = arith.mulf %178, %180 : vector<8x256xf32>
    %182 = vector.extract_strided_slice %108 {offsets = [7, 0, 0], sizes = [1, 8, 8], strides = [1, 1, 1]} : vector<9x8x8xf32> to vector<1x8x8xf32>
    %183 = vector.shape_cast %182 : vector<1x8x8xf32> to vector<8x8xf32>
    %cst_33 = arith.constant dense<0.000000e+00> : vector<8x256xf32>
    %184 = tpu.matmul %183, %181, %cst_33 {dimension_numbers = #tpu.dot_dimension_numbers<[1], [0], [0], [1], [0, 0, 1, 1], [], []>} : vector<8x8xf32>, vector<8x256xf32>, vector<8x256xf32> -> vector<8x256xf32>
    %185 = arith.addf %175, %184 : vector<8x256xf32>
    %186 = vector.extract_strided_slice %107 {offsets = [0, 17], sizes = [8, 239], strides = [1, 1]} : vector<8x256xf32> to vector<8x239xf32>
    %187 = vector.extract_strided_slice %107 {offsets = [0, 0], sizes = [8, 17], strides = [1, 1]} : vector<8x256xf32> to vector<8x17xf32>
    %188 = tpu.concatenate %186, %187 in 1 : vector<8x239xf32>, vector<8x17xf32> -> vector<8x256xf32>
    %189 = vector.extract_strided_slice %109 {offsets = [8, 0], sizes = [1, 256], strides = [1, 1]} : vector<9x256xf32> to vector<1x256xf32>
    %190 = vector.broadcast %189 : vector<1x256xf32> to vector<8x256xf32>
    %191 = arith.mulf %188, %190 : vector<8x256xf32>
    %192 = vector.extract_strided_slice %108 {offsets = [8, 0, 0], sizes = [1, 8, 8], strides = [1, 1, 1]} : vector<9x8x8xf32> to vector<1x8x8xf32>
    %193 = vector.shape_cast %192 : vector<1x8x8xf32> to vector<8x8xf32>
    %cst_34 = arith.constant dense<0.000000e+00> : vector<8x256xf32>
    %194 = tpu.matmul %193, %191, %cst_34 {dimension_numbers = #tpu.dot_dimension_numbers<[1], [0], [0], [1], [0, 0, 1, 1], [], []>} : vector<8x8xf32>, vector<8x256xf32>, vector<8x256xf32> -> vector<8x256xf32>
    %195 = arith.addf %185, %194 : vector<8x256xf32>
    %cst_35 = arith.constant dense<0.000000e+00> : vector<8xf32>
    %196 = vector.multi_reduction <add>, %195, %cst_35 [1] : vector<8x256xf32> to vector<8xf32>
    %197 = vector.shape_cast %196 : vector<8xf32> to vector<8x1xf32>
    %cst_36 = arith.constant 3.906250e-03 : f32
    %198 = vector.broadcast %cst_36 : f32 to vector<8x1xf32>
    %199 = arith.mulf %197, %198 : vector<8x1xf32>
    %200 = vector.broadcast %199 : vector<8x1xf32> to vector<8x256xf32>
    %201 = arith.subf %195, %200 : vector<8x256xf32>
    %202 = arith.mulf %201, %201 : vector<8x256xf32>
    %cst_37 = arith.constant dense<0.000000e+00> : vector<8xf32>
    %203 = vector.multi_reduction <add>, %202, %cst_37 [1] : vector<8x256xf32> to vector<8xf32>
    %204 = vector.shape_cast %203 : vector<8xf32> to vector<8x1xf32>
    %cst_38 = arith.constant 3.906250e-03 : f32
    %205 = vector.broadcast %cst_38 : f32 to vector<8x1xf32>
    %206 = arith.mulf %204, %205 : vector<8x1xf32>
    %cst_39 = arith.constant 9.99999974E-6 : f32
    %207 = vector.broadcast %cst_39 : f32 to vector<8x1xf32>
    %208 = arith.addf %206, %207 : vector<8x1xf32>
    %209 = math.rsqrt %208 : vector<8x1xf32>
    %210 = vector.broadcast %209 : vector<8x1xf32> to vector<8x256xf32>
    %211 = arith.mulf %201, %210 : vector<8x256xf32>
    %cst_40 = arith.constant 0.000000e+00 : f32
    %212 = vector.broadcast %cst_40 : f32 to vector<8x256xf32>
    %213 = arith.maximumf %211, %212 : vector<8x256xf32>
    %c0_41 = arith.constant 0 : index
    %c0_42 = arith.constant 0 : index
    %c0_43 = arith.constant 0 : index
    %214 = vector.load %arg5[%c0_41, %c0_42, %c0_43] : memref<9x8x8xf32, #tpu.memory_space<vmem>>, vector<9x8x8xf32>
    %c0_44 = arith.constant 0 : index
    %c0_45 = arith.constant 0 : index
    %215 = vector.load %arg3[%c0_44, %c0_45] : memref<9x256xf32, #tpu.memory_space<vmem>>, vector<9x256xf32>
    %216 = vector.extract_strided_slice %213 {offsets = [0, 239], sizes = [8, 17], strides = [1, 1]} : vector<8x256xf32> to vector<8x17xf32>
    %217 = vector.extract_strided_slice %213 {offsets = [0, 0], sizes = [8, 239], strides = [1, 1]} : vector<8x256xf32> to vector<8x239xf32>
    %218 = tpu.concatenate %216, %217 in 1 : vector<8x17xf32>, vector<8x239xf32> -> vector<8x256xf32>
    %219 = vector.extract_strided_slice %215 {offsets = [0, 0], sizes = [1, 256], strides = [1, 1]} : vector<9x256xf32> to vector<1x256xf32>
    %220 = vector.broadcast %219 : vector<1x256xf32> to vector<8x256xf32>
    %221 = arith.mulf %218, %220 : vector<8x256xf32>
    %222 = vector.extract_strided_slice %214 {offsets = [0, 0, 0], sizes = [1, 8, 8], strides = [1, 1, 1]} : vector<9x8x8xf32> to vector<1x8x8xf32>
    %223 = vector.shape_cast %222 : vector<1x8x8xf32> to vector<8x8xf32>
    %cst_46 = arith.constant dense<0.000000e+00> : vector<8x256xf32>
    %224 = tpu.matmul %223, %221, %cst_46 {dimension_numbers = #tpu.dot_dimension_numbers<[1], [0], [0], [1], [0, 0, 1, 1], [], []>} : vector<8x8xf32>, vector<8x256xf32>, vector<8x256xf32> -> vector<8x256xf32>
    %225 = vector.extract_strided_slice %213 {offsets = [0, 240], sizes = [8, 16], strides = [1, 1]} : vector<8x256xf32> to vector<8x16xf32>
    %226 = vector.extract_strided_slice %213 {offsets = [0, 0], sizes = [8, 240], strides = [1, 1]} : vector<8x256xf32> to vector<8x240xf32>
    %227 = tpu.concatenate %225, %226 in 1 : vector<8x16xf32>, vector<8x240xf32> -> vector<8x256xf32>
    %228 = vector.extract_strided_slice %215 {offsets = [1, 0], sizes = [1, 256], strides = [1, 1]} : vector<9x256xf32> to vector<1x256xf32>
    %229 = vector.broadcast %228 : vector<1x256xf32> to vector<8x256xf32>
    %230 = arith.mulf %227, %229 : vector<8x256xf32>
    %231 = vector.extract_strided_slice %214 {offsets = [1, 0, 0], sizes = [1, 8, 8], strides = [1, 1, 1]} : vector<9x8x8xf32> to vector<1x8x8xf32>
    %232 = vector.shape_cast %231 : vector<1x8x8xf32> to vector<8x8xf32>
    %cst_47 = arith.constant dense<0.000000e+00> : vector<8x256xf32>
    %233 = tpu.matmul %232, %230, %cst_47 {dimension_numbers = #tpu.dot_dimension_numbers<[1], [0], [0], [1], [0, 0, 1, 1], [], []>} : vector<8x8xf32>, vector<8x256xf32>, vector<8x256xf32> -> vector<8x256xf32>
    %234 = arith.addf %224, %233 : vector<8x256xf32>
    %235 = vector.extract_strided_slice %213 {offsets = [0, 241], sizes = [8, 15], strides = [1, 1]} : vector<8x256xf32> to vector<8x15xf32>
    %236 = vector.extract_strided_slice %213 {offsets = [0, 0], sizes = [8, 241], strides = [1, 1]} : vector<8x256xf32> to vector<8x241xf32>
    %237 = tpu.concatenate %235, %236 in 1 : vector<8x15xf32>, vector<8x241xf32> -> vector<8x256xf32>
    %238 = vector.extract_strided_slice %215 {offsets = [2, 0], sizes = [1, 256], strides = [1, 1]} : vector<9x256xf32> to vector<1x256xf32>
    %239 = vector.broadcast %238 : vector<1x256xf32> to vector<8x256xf32>
    %240 = arith.mulf %237, %239 : vector<8x256xf32>
    %241 = vector.extract_strided_slice %214 {offsets = [2, 0, 0], sizes = [1, 8, 8], strides = [1, 1, 1]} : vector<9x8x8xf32> to vector<1x8x8xf32>
    %242 = vector.shape_cast %241 : vector<1x8x8xf32> to vector<8x8xf32>
    %cst_48 = arith.constant dense<0.000000e+00> : vector<8x256xf32>
    %243 = tpu.matmul %242, %240, %cst_48 {dimension_numbers = #tpu.dot_dimension_numbers<[1], [0], [0], [1], [0, 0, 1, 1], [], []>} : vector<8x8xf32>, vector<8x256xf32>, vector<8x256xf32> -> vector<8x256xf32>
    %244 = arith.addf %234, %243 : vector<8x256xf32>
    %245 = vector.extract_strided_slice %213 {offsets = [0, 255], sizes = [8, 1], strides = [1, 1]} : vector<8x256xf32> to vector<8x1xf32>
    %246 = vector.extract_strided_slice %213 {offsets = [0, 0], sizes = [8, 255], strides = [1, 1]} : vector<8x256xf32> to vector<8x255xf32>
    %247 = tpu.concatenate %245, %246 in 1 : vector<8x1xf32>, vector<8x255xf32> -> vector<8x256xf32>
    %248 = vector.extract_strided_slice %215 {offsets = [3, 0], sizes = [1, 256], strides = [1, 1]} : vector<9x256xf32> to vector<1x256xf32>
    %249 = vector.broadcast %248 : vector<1x256xf32> to vector<8x256xf32>
    %250 = arith.mulf %247, %249 : vector<8x256xf32>
    %251 = vector.extract_strided_slice %214 {offsets = [3, 0, 0], sizes = [1, 8, 8], strides = [1, 1, 1]} : vector<9x8x8xf32> to vector<1x8x8xf32>
    %252 = vector.shape_cast %251 : vector<1x8x8xf32> to vector<8x8xf32>
    %cst_49 = arith.constant dense<0.000000e+00> : vector<8x256xf32>
    %253 = tpu.matmul %252, %250, %cst_49 {dimension_numbers = #tpu.dot_dimension_numbers<[1], [0], [0], [1], [0, 0, 1, 1], [], []>} : vector<8x8xf32>, vector<8x256xf32>, vector<8x256xf32> -> vector<8x256xf32>
    %254 = arith.addf %244, %253 : vector<8x256xf32>
    %255 = vector.extract_strided_slice %215 {offsets = [4, 0], sizes = [1, 256], strides = [1, 1]} : vector<9x256xf32> to vector<1x256xf32>
    %256 = vector.broadcast %255 : vector<1x256xf32> to vector<8x256xf32>
    %257 = arith.mulf %213, %256 : vector<8x256xf32>
    %258 = vector.extract_strided_slice %214 {offsets = [4, 0, 0], sizes = [1, 8, 8], strides = [1, 1, 1]} : vector<9x8x8xf32> to vector<1x8x8xf32>
    %259 = vector.shape_cast %258 : vector<1x8x8xf32> to vector<8x8xf32>
    %cst_50 = arith.constant dense<0.000000e+00> : vector<8x256xf32>
    %260 = tpu.matmul %259, %257, %cst_50 {dimension_numbers = #tpu.dot_dimension_numbers<[1], [0], [0], [1], [0, 0, 1, 1], [], []>} : vector<8x8xf32>, vector<8x256xf32>, vector<8x256xf32> -> vector<8x256xf32>
    %261 = arith.addf %254, %260 : vector<8x256xf32>
    %262 = vector.extract_strided_slice %213 {offsets = [0, 1], sizes = [8, 255], strides = [1, 1]} : vector<8x256xf32> to vector<8x255xf32>
    %263 = vector.extract_strided_slice %213 {offsets = [0, 0], sizes = [8, 1], strides = [1, 1]} : vector<8x256xf32> to vector<8x1xf32>
    %264 = tpu.concatenate %262, %263 in 1 : vector<8x255xf32>, vector<8x1xf32> -> vector<8x256xf32>
    %265 = vector.extract_strided_slice %215 {offsets = [5, 0], sizes = [1, 256], strides = [1, 1]} : vector<9x256xf32> to vector<1x256xf32>
    %266 = vector.broadcast %265 : vector<1x256xf32> to vector<8x256xf32>
    %267 = arith.mulf %264, %266 : vector<8x256xf32>
    %268 = vector.extract_strided_slice %214 {offsets = [5, 0, 0], sizes = [1, 8, 8], strides = [1, 1, 1]} : vector<9x8x8xf32> to vector<1x8x8xf32>
    %269 = vector.shape_cast %268 : vector<1x8x8xf32> to vector<8x8xf32>
    %cst_51 = arith.constant dense<0.000000e+00> : vector<8x256xf32>
    %270 = tpu.matmul %269, %267, %cst_51 {dimension_numbers = #tpu.dot_dimension_numbers<[1], [0], [0], [1], [0, 0, 1, 1], [], []>} : vector<8x8xf32>, vector<8x256xf32>, vector<8x256xf32> -> vector<8x256xf32>
    %271 = arith.addf %261, %270 : vector<8x256xf32>
    %272 = vector.extract_strided_slice %213 {offsets = [0, 15], sizes = [8, 241], strides = [1, 1]} : vector<8x256xf32> to vector<8x241xf32>
    %273 = vector.extract_strided_slice %213 {offsets = [0, 0], sizes = [8, 15], strides = [1, 1]} : vector<8x256xf32> to vector<8x15xf32>
    %274 = tpu.concatenate %272, %273 in 1 : vector<8x241xf32>, vector<8x15xf32> -> vector<8x256xf32>
    %275 = vector.extract_strided_slice %215 {offsets = [6, 0], sizes = [1, 256], strides = [1, 1]} : vector<9x256xf32> to vector<1x256xf32>
    %276 = vector.broadcast %275 : vector<1x256xf32> to vector<8x256xf32>
    %277 = arith.mulf %274, %276 : vector<8x256xf32>
    %278 = vector.extract_strided_slice %214 {offsets = [6, 0, 0], sizes = [1, 8, 8], strides = [1, 1, 1]} : vector<9x8x8xf32> to vector<1x8x8xf32>
    %279 = vector.shape_cast %278 : vector<1x8x8xf32> to vector<8x8xf32>
    %cst_52 = arith.constant dense<0.000000e+00> : vector<8x256xf32>
    %280 = tpu.matmul %279, %277, %cst_52 {dimension_numbers = #tpu.dot_dimension_numbers<[1], [0], [0], [1], [0, 0, 1, 1], [], []>} : vector<8x8xf32>, vector<8x256xf32>, vector<8x256xf32> -> vector<8x256xf32>
    %281 = arith.addf %271, %280 : vector<8x256xf32>
    %282 = vector.extract_strided_slice %213 {offsets = [0, 16], sizes = [8, 240], strides = [1, 1]} : vector<8x256xf32> to vector<8x240xf32>
    %283 = vector.extract_strided_slice %213 {offsets = [0, 0], sizes = [8, 16], strides = [1, 1]} : vector<8x256xf32> to vector<8x16xf32>
    %284 = tpu.concatenate %282, %283 in 1 : vector<8x240xf32>, vector<8x16xf32> -> vector<8x256xf32>
    %285 = vector.extract_strided_slice %215 {offsets = [7, 0], sizes = [1, 256], strides = [1, 1]} : vector<9x256xf32> to vector<1x256xf32>
    %286 = vector.broadcast %285 : vector<1x256xf32> to vector<8x256xf32>
    %287 = arith.mulf %284, %286 : vector<8x256xf32>
    %288 = vector.extract_strided_slice %214 {offsets = [7, 0, 0], sizes = [1, 8, 8], strides = [1, 1, 1]} : vector<9x8x8xf32> to vector<1x8x8xf32>
    %289 = vector.shape_cast %288 : vector<1x8x8xf32> to vector<8x8xf32>
    %cst_53 = arith.constant dense<0.000000e+00> : vector<8x256xf32>
    %290 = tpu.matmul %289, %287, %cst_53 {dimension_numbers = #tpu.dot_dimension_numbers<[1], [0], [0], [1], [0, 0, 1, 1], [], []>} : vector<8x8xf32>, vector<8x256xf32>, vector<8x256xf32> -> vector<8x256xf32>
    %291 = arith.addf %281, %290 : vector<8x256xf32>
    %292 = vector.extract_strided_slice %213 {offsets = [0, 17], sizes = [8, 239], strides = [1, 1]} : vector<8x256xf32> to vector<8x239xf32>
    %293 = vector.extract_strided_slice %213 {offsets = [0, 0], sizes = [8, 17], strides = [1, 1]} : vector<8x256xf32> to vector<8x17xf32>
    %294 = tpu.concatenate %292, %293 in 1 : vector<8x239xf32>, vector<8x17xf32> -> vector<8x256xf32>
    %295 = vector.extract_strided_slice %215 {offsets = [8, 0], sizes = [1, 256], strides = [1, 1]} : vector<9x256xf32> to vector<1x256xf32>
    %296 = vector.broadcast %295 : vector<1x256xf32> to vector<8x256xf32>
    %297 = arith.mulf %294, %296 : vector<8x256xf32>
    %298 = vector.extract_strided_slice %214 {offsets = [8, 0, 0], sizes = [1, 8, 8], strides = [1, 1, 1]} : vector<9x8x8xf32> to vector<1x8x8xf32>
    %299 = vector.shape_cast %298 : vector<1x8x8xf32> to vector<8x8xf32>
    %cst_54 = arith.constant dense<0.000000e+00> : vector<8x256xf32>
    %300 = tpu.matmul %299, %297, %cst_54 {dimension_numbers = #tpu.dot_dimension_numbers<[1], [0], [0], [1], [0, 0, 1, 1], [], []>} : vector<8x8xf32>, vector<8x256xf32>, vector<8x256xf32> -> vector<8x256xf32>
    %301 = arith.addf %291, %300 : vector<8x256xf32>
    %cst_55 = arith.constant 1.000000e-01 : f32
    %302 = vector.broadcast %cst_55 : f32 to vector<8x256xf32>
    %303 = arith.mulf %302, %301 : vector<8x256xf32>
    %304 = arith.subf %107, %303 : vector<8x256xf32>
    %c0_56 = arith.constant 0 : index
    %c0_57 = arith.constant 0 : index
    %c0_58 = arith.constant 0 : index
    %305 = vector.load %arg6[%c0_56, %c0_57, %c0_58] : memref<9x16x8xf32, #tpu.memory_space<vmem>>, vector<9x16x8xf32>
    %c0_59 = arith.constant 0 : index
    %c0_60 = arith.constant 0 : index
    %306 = vector.load %arg3[%c0_59, %c0_60] : memref<9x256xf32, #tpu.memory_space<vmem>>, vector<9x256xf32>
    %307 = vector.extract_strided_slice %304 {offsets = [0, 239], sizes = [8, 17], strides = [1, 1]} : vector<8x256xf32> to vector<8x17xf32>
    %308 = vector.extract_strided_slice %304 {offsets = [0, 0], sizes = [8, 239], strides = [1, 1]} : vector<8x256xf32> to vector<8x239xf32>
    %309 = tpu.concatenate %307, %308 in 1 : vector<8x17xf32>, vector<8x239xf32> -> vector<8x256xf32>
    %310 = vector.extract_strided_slice %306 {offsets = [0, 0], sizes = [1, 256], strides = [1, 1]} : vector<9x256xf32> to vector<1x256xf32>
    %311 = vector.broadcast %310 : vector<1x256xf32> to vector<8x256xf32>
    %312 = arith.mulf %309, %311 : vector<8x256xf32>
    %313 = vector.extract_strided_slice %305 {offsets = [0, 0, 0], sizes = [1, 16, 8], strides = [1, 1, 1]} : vector<9x16x8xf32> to vector<1x16x8xf32>
    %314 = vector.shape_cast %313 : vector<1x16x8xf32> to vector<16x8xf32>
    %cst_61 = arith.constant dense<0.000000e+00> : vector<16x256xf32>
    %315 = tpu.matmul %314, %312, %cst_61 {dimension_numbers = #tpu.dot_dimension_numbers<[1], [0], [0], [1], [0, 0, 1, 1], [], []>} : vector<16x8xf32>, vector<8x256xf32>, vector<16x256xf32> -> vector<16x256xf32>
    %316 = vector.extract_strided_slice %304 {offsets = [0, 240], sizes = [8, 16], strides = [1, 1]} : vector<8x256xf32> to vector<8x16xf32>
    %317 = vector.extract_strided_slice %304 {offsets = [0, 0], sizes = [8, 240], strides = [1, 1]} : vector<8x256xf32> to vector<8x240xf32>
    %318 = tpu.concatenate %316, %317 in 1 : vector<8x16xf32>, vector<8x240xf32> -> vector<8x256xf32>
    %319 = vector.extract_strided_slice %306 {offsets = [1, 0], sizes = [1, 256], strides = [1, 1]} : vector<9x256xf32> to vector<1x256xf32>
    %320 = vector.broadcast %319 : vector<1x256xf32> to vector<8x256xf32>
    %321 = arith.mulf %318, %320 : vector<8x256xf32>
    %322 = vector.extract_strided_slice %305 {offsets = [1, 0, 0], sizes = [1, 16, 8], strides = [1, 1, 1]} : vector<9x16x8xf32> to vector<1x16x8xf32>
    %323 = vector.shape_cast %322 : vector<1x16x8xf32> to vector<16x8xf32>
    %cst_62 = arith.constant dense<0.000000e+00> : vector<16x256xf32>
    %324 = tpu.matmul %323, %321, %cst_62 {dimension_numbers = #tpu.dot_dimension_numbers<[1], [0], [0], [1], [0, 0, 1, 1], [], []>} : vector<16x8xf32>, vector<8x256xf32>, vector<16x256xf32> -> vector<16x256xf32>
    %325 = arith.addf %315, %324 : vector<16x256xf32>
    %326 = vector.extract_strided_slice %304 {offsets = [0, 241], sizes = [8, 15], strides = [1, 1]} : vector<8x256xf32> to vector<8x15xf32>
    %327 = vector.extract_strided_slice %304 {offsets = [0, 0], sizes = [8, 241], strides = [1, 1]} : vector<8x256xf32> to vector<8x241xf32>
    %328 = tpu.concatenate %326, %327 in 1 : vector<8x15xf32>, vector<8x241xf32> -> vector<8x256xf32>
    %329 = vector.extract_strided_slice %306 {offsets = [2, 0], sizes = [1, 256], strides = [1, 1]} : vector<9x256xf32> to vector<1x256xf32>
    %330 = vector.broadcast %329 : vector<1x256xf32> to vector<8x256xf32>
    %331 = arith.mulf %328, %330 : vector<8x256xf32>
    %332 = vector.extract_strided_slice %305 {offsets = [2, 0, 0], sizes = [1, 16, 8], strides = [1, 1, 1]} : vector<9x16x8xf32> to vector<1x16x8xf32>
    %333 = vector.shape_cast %332 : vector<1x16x8xf32> to vector<16x8xf32>
    %cst_63 = arith.constant dense<0.000000e+00> : vector<16x256xf32>
    %334 = tpu.matmul %333, %331, %cst_63 {dimension_numbers = #tpu.dot_dimension_numbers<[1], [0], [0], [1], [0, 0, 1, 1], [], []>} : vector<16x8xf32>, vector<8x256xf32>, vector<16x256xf32> -> vector<16x256xf32>
    %335 = arith.addf %325, %334 : vector<16x256xf32>
    %336 = vector.extract_strided_slice %304 {offsets = [0, 255], sizes = [8, 1], strides = [1, 1]} : vector<8x256xf32> to vector<8x1xf32>
    %337 = vector.extract_strided_slice %304 {offsets = [0, 0], sizes = [8, 255], strides = [1, 1]} : vector<8x256xf32> to vector<8x255xf32>
    %338 = tpu.concatenate %336, %337 in 1 : vector<8x1xf32>, vector<8x255xf32> -> vector<8x256xf32>
    %339 = vector.extract_strided_slice %306 {offsets = [3, 0], sizes = [1, 256], strides = [1, 1]} : vector<9x256xf32> to vector<1x256xf32>
    %340 = vector.broadcast %339 : vector<1x256xf32> to vector<8x256xf32>
    %341 = arith.mulf %338, %340 : vector<8x256xf32>
    %342 = vector.extract_strided_slice %305 {offsets = [3, 0, 0], sizes = [1, 16, 8], strides = [1, 1, 1]} : vector<9x16x8xf32> to vector<1x16x8xf32>
    %343 = vector.shape_cast %342 : vector<1x16x8xf32> to vector<16x8xf32>
    %cst_64 = arith.constant dense<0.000000e+00> : vector<16x256xf32>
    %344 = tpu.matmul %343, %341, %cst_64 {dimension_numbers = #tpu.dot_dimension_numbers<[1], [0], [0], [1], [0, 0, 1, 1], [], []>} : vector<16x8xf32>, vector<8x256xf32>, vector<16x256xf32> -> vector<16x256xf32>
    %345 = arith.addf %335, %344 : vector<16x256xf32>
    %346 = vector.extract_strided_slice %306 {offsets = [4, 0], sizes = [1, 256], strides = [1, 1]} : vector<9x256xf32> to vector<1x256xf32>
    %347 = vector.broadcast %346 : vector<1x256xf32> to vector<8x256xf32>
    %348 = arith.mulf %304, %347 : vector<8x256xf32>
    %349 = vector.extract_strided_slice %305 {offsets = [4, 0, 0], sizes = [1, 16, 8], strides = [1, 1, 1]} : vector<9x16x8xf32> to vector<1x16x8xf32>
    %350 = vector.shape_cast %349 : vector<1x16x8xf32> to vector<16x8xf32>
    %cst_65 = arith.constant dense<0.000000e+00> : vector<16x256xf32>
    %351 = tpu.matmul %350, %348, %cst_65 {dimension_numbers = #tpu.dot_dimension_numbers<[1], [0], [0], [1], [0, 0, 1, 1], [], []>} : vector<16x8xf32>, vector<8x256xf32>, vector<16x256xf32> -> vector<16x256xf32>
    %352 = arith.addf %345, %351 : vector<16x256xf32>
    %353 = vector.extract_strided_slice %304 {offsets = [0, 1], sizes = [8, 255], strides = [1, 1]} : vector<8x256xf32> to vector<8x255xf32>
    %354 = vector.extract_strided_slice %304 {offsets = [0, 0], sizes = [8, 1], strides = [1, 1]} : vector<8x256xf32> to vector<8x1xf32>
    %355 = tpu.concatenate %353, %354 in 1 : vector<8x255xf32>, vector<8x1xf32> -> vector<8x256xf32>
    %356 = vector.extract_strided_slice %306 {offsets = [5, 0], sizes = [1, 256], strides = [1, 1]} : vector<9x256xf32> to vector<1x256xf32>
    %357 = vector.broadcast %356 : vector<1x256xf32> to vector<8x256xf32>
    %358 = arith.mulf %355, %357 : vector<8x256xf32>
    %359 = vector.extract_strided_slice %305 {offsets = [5, 0, 0], sizes = [1, 16, 8], strides = [1, 1, 1]} : vector<9x16x8xf32> to vector<1x16x8xf32>
    %360 = vector.shape_cast %359 : vector<1x16x8xf32> to vector<16x8xf32>
    %cst_66 = arith.constant dense<0.000000e+00> : vector<16x256xf32>
    %361 = tpu.matmul %360, %358, %cst_66 {dimension_numbers = #tpu.dot_dimension_numbers<[1], [0], [0], [1], [0, 0, 1, 1], [], []>} : vector<16x8xf32>, vector<8x256xf32>, vector<16x256xf32> -> vector<16x256xf32>
    %362 = arith.addf %352, %361 : vector<16x256xf32>
    %363 = vector.extract_strided_slice %304 {offsets = [0, 15], sizes = [8, 241], strides = [1, 1]} : vector<8x256xf32> to vector<8x241xf32>
    %364 = vector.extract_strided_slice %304 {offsets = [0, 0], sizes = [8, 15], strides = [1, 1]} : vector<8x256xf32> to vector<8x15xf32>
    %365 = tpu.concatenate %363, %364 in 1 : vector<8x241xf32>, vector<8x15xf32> -> vector<8x256xf32>
    %366 = vector.extract_strided_slice %306 {offsets = [6, 0], sizes = [1, 256], strides = [1, 1]} : vector<9x256xf32> to vector<1x256xf32>
    %367 = vector.broadcast %366 : vector<1x256xf32> to vector<8x256xf32>
    %368 = arith.mulf %365, %367 : vector<8x256xf32>
    %369 = vector.extract_strided_slice %305 {offsets = [6, 0, 0], sizes = [1, 16, 8], strides = [1, 1, 1]} : vector<9x16x8xf32> to vector<1x16x8xf32>
    %370 = vector.shape_cast %369 : vector<1x16x8xf32> to vector<16x8xf32>
    %cst_67 = arith.constant dense<0.000000e+00> : vector<16x256xf32>
    %371 = tpu.matmul %370, %368, %cst_67 {dimension_numbers = #tpu.dot_dimension_numbers<[1], [0], [0], [1], [0, 0, 1, 1], [], []>} : vector<16x8xf32>, vector<8x256xf32>, vector<16x256xf32> -> vector<16x256xf32>
    %372 = arith.addf %362, %371 : vector<16x256xf32>
    %373 = vector.extract_strided_slice %304 {offsets = [0, 16], sizes = [8, 240], strides = [1, 1]} : vector<8x256xf32> to vector<8x240xf32>
    %374 = vector.extract_strided_slice %304 {offsets = [0, 0], sizes = [8, 16], strides = [1, 1]} : vector<8x256xf32> to vector<8x16xf32>
    %375 = tpu.concatenate %373, %374 in 1 : vector<8x240xf32>, vector<8x16xf32> -> vector<8x256xf32>
    %376 = vector.extract_strided_slice %306 {offsets = [7, 0], sizes = [1, 256], strides = [1, 1]} : vector<9x256xf32> to vector<1x256xf32>
    %377 = vector.broadcast %376 : vector<1x256xf32> to vector<8x256xf32>
    %378 = arith.mulf %375, %377 : vector<8x256xf32>
    %379 = vector.extract_strided_slice %305 {offsets = [7, 0, 0], sizes = [1, 16, 8], strides = [1, 1, 1]} : vector<9x16x8xf32> to vector<1x16x8xf32>
    %380 = vector.shape_cast %379 : vector<1x16x8xf32> to vector<16x8xf32>
    %cst_68 = arith.constant dense<0.000000e+00> : vector<16x256xf32>
    %381 = tpu.matmul %380, %378, %cst_68 {dimension_numbers = #tpu.dot_dimension_numbers<[1], [0], [0], [1], [0, 0, 1, 1], [], []>} : vector<16x8xf32>, vector<8x256xf32>, vector<16x256xf32> -> vector<16x256xf32>
    %382 = arith.addf %372, %381 : vector<16x256xf32>
    %383 = vector.extract_strided_slice %304 {offsets = [0, 17], sizes = [8, 239], strides = [1, 1]} : vector<8x256xf32> to vector<8x239xf32>
    %384 = vector.extract_strided_slice %304 {offsets = [0, 0], sizes = [8, 17], strides = [1, 1]} : vector<8x256xf32> to vector<8x17xf32>
    %385 = tpu.concatenate %383, %384 in 1 : vector<8x239xf32>, vector<8x17xf32> -> vector<8x256xf32>
    %386 = vector.extract_strided_slice %306 {offsets = [8, 0], sizes = [1, 256], strides = [1, 1]} : vector<9x256xf32> to vector<1x256xf32>
    %387 = vector.broadcast %386 : vector<1x256xf32> to vector<8x256xf32>
    %388 = arith.mulf %385, %387 : vector<8x256xf32>
    %389 = vector.extract_strided_slice %305 {offsets = [8, 0, 0], sizes = [1, 16, 8], strides = [1, 1, 1]} : vector<9x16x8xf32> to vector<1x16x8xf32>
    %390 = vector.shape_cast %389 : vector<1x16x8xf32> to vector<16x8xf32>
    %cst_69 = arith.constant dense<0.000000e+00> : vector<16x256xf32>
    %391 = tpu.matmul %390, %388, %cst_69 {dimension_numbers = #tpu.dot_dimension_numbers<[1], [0], [0], [1], [0, 0, 1, 1], [], []>} : vector<16x8xf32>, vector<8x256xf32>, vector<16x256xf32> -> vector<16x256xf32>
    %392 = arith.addf %382, %391 : vector<16x256xf32>
    %cst_70 = arith.constant dense<0.000000e+00> : vector<16xf32>
    %393 = vector.multi_reduction <add>, %392, %cst_70 [1] : vector<16x256xf32> to vector<16xf32>
    %394 = vector.shape_cast %393 : vector<16xf32> to vector<16x1xf32>
    %cst_71 = arith.constant 3.906250e-03 : f32
    %395 = vector.broadcast %cst_71 : f32 to vector<16x1xf32>
    %396 = arith.mulf %394, %395 : vector<16x1xf32>
    %397 = vector.broadcast %396 : vector<16x1xf32> to vector<16x256xf32>
    %398 = arith.subf %392, %397 : vector<16x256xf32>
    %399 = arith.mulf %398, %398 : vector<16x256xf32>
    %cst_72 = arith.constant dense<0.000000e+00> : vector<16xf32>
    %400 = vector.multi_reduction <add>, %399, %cst_72 [1] : vector<16x256xf32> to vector<16xf32>
    %401 = vector.shape_cast %400 : vector<16xf32> to vector<16x1xf32>
    %cst_73 = arith.constant 3.906250e-03 : f32
    %402 = vector.broadcast %cst_73 : f32 to vector<16x1xf32>
    %403 = arith.mulf %401, %402 : vector<16x1xf32>
    %cst_74 = arith.constant 9.99999974E-6 : f32
    %404 = vector.broadcast %cst_74 : f32 to vector<16x1xf32>
    %405 = arith.addf %403, %404 : vector<16x1xf32>
    %406 = math.rsqrt %405 : vector<16x1xf32>
    %407 = vector.broadcast %406 : vector<16x1xf32> to vector<16x256xf32>
    %408 = arith.mulf %398, %407 : vector<16x256xf32>
    %cst_75 = arith.constant 0.000000e+00 : f32
    %409 = vector.broadcast %cst_75 : f32 to vector<16x256xf32>
    %410 = arith.maximumf %408, %409 : vector<16x256xf32>
    %c0_76 = arith.constant 0 : index
    %c0_77 = arith.constant 0 : index
    %411 = vector.load %arg7[%c0_76, %c0_77] : memref<256x64xf32, #tpu.memory_space<vmem>>, vector<256x64xf32>
    %cst_78 = arith.constant dense<0.000000e+00> : vector<16x64xf32>
    %412 = tpu.matmul %410, %411, %cst_78 {dimension_numbers = #tpu.dot_dimension_numbers<[1], [0], [0], [1], [0, 0, 1, 1], [], []>} : vector<16x256xf32>, vector<256x64xf32>, vector<16x64xf32> -> vector<16x64xf32>
    %c0_79 = arith.constant 0 : index
    %c0_80 = arith.constant 0 : index
    %c0_81 = arith.constant 0 : index
    %413 = vector.load %arg8[%c0_79, %c0_80, %c0_81] : memref<9x16x16xf32, #tpu.memory_space<vmem>>, vector<9x16x16xf32>
    %c0_82 = arith.constant 0 : index
    %c0_83 = arith.constant 0 : index
    %414 = vector.load %arg10[%c0_82, %c0_83] : memref<9x64xf32, #tpu.memory_space<vmem>>, vector<9x64xf32>
    %415 = vector.extract_strided_slice %412 {offsets = [0, 55], sizes = [16, 9], strides = [1, 1]} : vector<16x64xf32> to vector<16x9xf32>
    %416 = vector.extract_strided_slice %412 {offsets = [0, 0], sizes = [16, 55], strides = [1, 1]} : vector<16x64xf32> to vector<16x55xf32>
    %417 = tpu.concatenate %415, %416 in 1 : vector<16x9xf32>, vector<16x55xf32> -> vector<16x64xf32>
    %418 = vector.extract_strided_slice %414 {offsets = [0, 0], sizes = [1, 64], strides = [1, 1]} : vector<9x64xf32> to vector<1x64xf32>
    %419 = vector.broadcast %418 : vector<1x64xf32> to vector<16x64xf32>
    %420 = arith.mulf %417, %419 : vector<16x64xf32>
    %421 = vector.extract_strided_slice %413 {offsets = [0, 0, 0], sizes = [1, 16, 16], strides = [1, 1, 1]} : vector<9x16x16xf32> to vector<1x16x16xf32>
    %422 = vector.shape_cast %421 : vector<1x16x16xf32> to vector<16x16xf32>
    %cst_84 = arith.constant dense<0.000000e+00> : vector<16x64xf32>
    %423 = tpu.matmul %422, %420, %cst_84 {dimension_numbers = #tpu.dot_dimension_numbers<[1], [0], [0], [1], [0, 0, 1, 1], [], []>} : vector<16x16xf32>, vector<16x64xf32>, vector<16x64xf32> -> vector<16x64xf32>
    %424 = vector.extract_strided_slice %412 {offsets = [0, 56], sizes = [16, 8], strides = [1, 1]} : vector<16x64xf32> to vector<16x8xf32>
    %425 = vector.extract_strided_slice %412 {offsets = [0, 0], sizes = [16, 56], strides = [1, 1]} : vector<16x64xf32> to vector<16x56xf32>
    %426 = tpu.concatenate %424, %425 in 1 : vector<16x8xf32>, vector<16x56xf32> -> vector<16x64xf32>
    %427 = vector.extract_strided_slice %414 {offsets = [1, 0], sizes = [1, 64], strides = [1, 1]} : vector<9x64xf32> to vector<1x64xf32>
    %428 = vector.broadcast %427 : vector<1x64xf32> to vector<16x64xf32>
    %429 = arith.mulf %426, %428 : vector<16x64xf32>
    %430 = vector.extract_strided_slice %413 {offsets = [1, 0, 0], sizes = [1, 16, 16], strides = [1, 1, 1]} : vector<9x16x16xf32> to vector<1x16x16xf32>
    %431 = vector.shape_cast %430 : vector<1x16x16xf32> to vector<16x16xf32>
    %cst_85 = arith.constant dense<0.000000e+00> : vector<16x64xf32>
    %432 = tpu.matmul %431, %429, %cst_85 {dimension_numbers = #tpu.dot_dimension_numbers<[1], [0], [0], [1], [0, 0, 1, 1], [], []>} : vector<16x16xf32>, vector<16x64xf32>, vector<16x64xf32> -> vector<16x64xf32>
    %433 = arith.addf %423, %432 : vector<16x64xf32>
    %434 = vector.extract_strided_slice %412 {offsets = [0, 57], sizes = [16, 7], strides = [1, 1]} : vector<16x64xf32> to vector<16x7xf32>
    %435 = vector.extract_strided_slice %412 {offsets = [0, 0], sizes = [16, 57], strides = [1, 1]} : vector<16x64xf32> to vector<16x57xf32>
    %436 = tpu.concatenate %434, %435 in 1 : vector<16x7xf32>, vector<16x57xf32> -> vector<16x64xf32>
    %437 = vector.extract_strided_slice %414 {offsets = [2, 0], sizes = [1, 64], strides = [1, 1]} : vector<9x64xf32> to vector<1x64xf32>
    %438 = vector.broadcast %437 : vector<1x64xf32> to vector<16x64xf32>
    %439 = arith.mulf %436, %438 : vector<16x64xf32>
    %440 = vector.extract_strided_slice %413 {offsets = [2, 0, 0], sizes = [1, 16, 16], strides = [1, 1, 1]} : vector<9x16x16xf32> to vector<1x16x16xf32>
    %441 = vector.shape_cast %440 : vector<1x16x16xf32> to vector<16x16xf32>
    %cst_86 = arith.constant dense<0.000000e+00> : vector<16x64xf32>
    %442 = tpu.matmul %441, %439, %cst_86 {dimension_numbers = #tpu.dot_dimension_numbers<[1], [0], [0], [1], [0, 0, 1, 1], [], []>} : vector<16x16xf32>, vector<16x64xf32>, vector<16x64xf32> -> vector<16x64xf32>
    %443 = arith.addf %433, %442 : vector<16x64xf32>
    %444 = vector.extract_strided_slice %412 {offsets = [0, 63], sizes = [16, 1], strides = [1, 1]} : vector<16x64xf32> to vector<16x1xf32>
    %445 = vector.extract_strided_slice %412 {offsets = [0, 0], sizes = [16, 63], strides = [1, 1]} : vector<16x64xf32> to vector<16x63xf32>
    %446 = tpu.concatenate %444, %445 in 1 : vector<16x1xf32>, vector<16x63xf32> -> vector<16x64xf32>
    %447 = vector.extract_strided_slice %414 {offsets = [3, 0], sizes = [1, 64], strides = [1, 1]} : vector<9x64xf32> to vector<1x64xf32>
    %448 = vector.broadcast %447 : vector<1x64xf32> to vector<16x64xf32>
    %449 = arith.mulf %446, %448 : vector<16x64xf32>
    %450 = vector.extract_strided_slice %413 {offsets = [3, 0, 0], sizes = [1, 16, 16], strides = [1, 1, 1]} : vector<9x16x16xf32> to vector<1x16x16xf32>
    %451 = vector.shape_cast %450 : vector<1x16x16xf32> to vector<16x16xf32>
    %cst_87 = arith.constant dense<0.000000e+00> : vector<16x64xf32>
    %452 = tpu.matmul %451, %449, %cst_87 {dimension_numbers = #tpu.dot_dimension_numbers<[1], [0], [0], [1], [0, 0, 1, 1], [], []>} : vector<16x16xf32>, vector<16x64xf32>, vector<16x64xf32> -> vector<16x64xf32>
    %453 = arith.addf %443, %452 : vector<16x64xf32>
    %454 = vector.extract_strided_slice %414 {offsets = [4, 0], sizes = [1, 64], strides = [1, 1]} : vector<9x64xf32> to vector<1x64xf32>
    %455 = vector.broadcast %454 : vector<1x64xf32> to vector<16x64xf32>
    %456 = arith.mulf %412, %455 : vector<16x64xf32>
    %457 = vector.extract_strided_slice %413 {offsets = [4, 0, 0], sizes = [1, 16, 16], strides = [1, 1, 1]} : vector<9x16x16xf32> to vector<1x16x16xf32>
    %458 = vector.shape_cast %457 : vector<1x16x16xf32> to vector<16x16xf32>
    %cst_88 = arith.constant dense<0.000000e+00> : vector<16x64xf32>
    %459 = tpu.matmul %458, %456, %cst_88 {dimension_numbers = #tpu.dot_dimension_numbers<[1], [0], [0], [1], [0, 0, 1, 1], [], []>} : vector<16x16xf32>, vector<16x64xf32>, vector<16x64xf32> -> vector<16x64xf32>
    %460 = arith.addf %453, %459 : vector<16x64xf32>
    %461 = vector.extract_strided_slice %412 {offsets = [0, 1], sizes = [16, 63], strides = [1, 1]} : vector<16x64xf32> to vector<16x63xf32>
    %462 = vector.extract_strided_slice %412 {offsets = [0, 0], sizes = [16, 1], strides = [1, 1]} : vector<16x64xf32> to vector<16x1xf32>
    %463 = tpu.concatenate %461, %462 in 1 : vector<16x63xf32>, vector<16x1xf32> -> vector<16x64xf32>
    %464 = vector.extract_strided_slice %414 {offsets = [5, 0], sizes = [1, 64], strides = [1, 1]} : vector<9x64xf32> to vector<1x64xf32>
    %465 = vector.broadcast %464 : vector<1x64xf32> to vector<16x64xf32>
    %466 = arith.mulf %463, %465 : vector<16x64xf32>
    %467 = vector.extract_strided_slice %413 {offsets = [5, 0, 0], sizes = [1, 16, 16], strides = [1, 1, 1]} : vector<9x16x16xf32> to vector<1x16x16xf32>
    %468 = vector.shape_cast %467 : vector<1x16x16xf32> to vector<16x16xf32>
    %cst_89 = arith.constant dense<0.000000e+00> : vector<16x64xf32>
    %469 = tpu.matmul %468, %466, %cst_89 {dimension_numbers = #tpu.dot_dimension_numbers<[1], [0], [0], [1], [0, 0, 1, 1], [], []>} : vector<16x16xf32>, vector<16x64xf32>, vector<16x64xf32> -> vector<16x64xf32>
    %470 = arith.addf %460, %469 : vector<16x64xf32>
    %471 = vector.extract_strided_slice %412 {offsets = [0, 7], sizes = [16, 57], strides = [1, 1]} : vector<16x64xf32> to vector<16x57xf32>
    %472 = vector.extract_strided_slice %412 {offsets = [0, 0], sizes = [16, 7], strides = [1, 1]} : vector<16x64xf32> to vector<16x7xf32>
    %473 = tpu.concatenate %471, %472 in 1 : vector<16x57xf32>, vector<16x7xf32> -> vector<16x64xf32>
    %474 = vector.extract_strided_slice %414 {offsets = [6, 0], sizes = [1, 64], strides = [1, 1]} : vector<9x64xf32> to vector<1x64xf32>
    %475 = vector.broadcast %474 : vector<1x64xf32> to vector<16x64xf32>
    %476 = arith.mulf %473, %475 : vector<16x64xf32>
    %477 = vector.extract_strided_slice %413 {offsets = [6, 0, 0], sizes = [1, 16, 16], strides = [1, 1, 1]} : vector<9x16x16xf32> to vector<1x16x16xf32>
    %478 = vector.shape_cast %477 : vector<1x16x16xf32> to vector<16x16xf32>
    %cst_90 = arith.constant dense<0.000000e+00> : vector<16x64xf32>
    %479 = tpu.matmul %478, %476, %cst_90 {dimension_numbers = #tpu.dot_dimension_numbers<[1], [0], [0], [1], [0, 0, 1, 1], [], []>} : vector<16x16xf32>, vector<16x64xf32>, vector<16x64xf32> -> vector<16x64xf32>
    %480 = arith.addf %470, %479 : vector<16x64xf32>
    %481 = vector.extract_strided_slice %412 {offsets = [0, 8], sizes = [16, 56], strides = [1, 1]} : vector<16x64xf32> to vector<16x56xf32>
    %482 = vector.extract_strided_slice %412 {offsets = [0, 0], sizes = [16, 8], strides = [1, 1]} : vector<16x64xf32> to vector<16x8xf32>
    %483 = tpu.concatenate %481, %482 in 1 : vector<16x56xf32>, vector<16x8xf32> -> vector<16x64xf32>
    %484 = vector.extract_strided_slice %414 {offsets = [7, 0], sizes = [1, 64], strides = [1, 1]} : vector<9x64xf32> to vector<1x64xf32>
    %485 = vector.broadcast %484 : vector<1x64xf32> to vector<16x64xf32>
    %486 = arith.mulf %483, %485 : vector<16x64xf32>
    %487 = vector.extract_strided_slice %413 {offsets = [7, 0, 0], sizes = [1, 16, 16], strides = [1, 1, 1]} : vector<9x16x16xf32> to vector<1x16x16xf32>
    %488 = vector.shape_cast %487 : vector<1x16x16xf32> to vector<16x16xf32>
    %cst_91 = arith.constant dense<0.000000e+00> : vector<16x64xf32>
    %489 = tpu.matmul %488, %486, %cst_91 {dimension_numbers = #tpu.dot_dimension_numbers<[1], [0], [0], [1], [0, 0, 1, 1], [], []>} : vector<16x16xf32>, vector<16x64xf32>, vector<16x64xf32> -> vector<16x64xf32>
    %490 = arith.addf %480, %489 : vector<16x64xf32>
    %491 = vector.extract_strided_slice %412 {offsets = [0, 9], sizes = [16, 55], strides = [1, 1]} : vector<16x64xf32> to vector<16x55xf32>
    %492 = vector.extract_strided_slice %412 {offsets = [0, 0], sizes = [16, 9], strides = [1, 1]} : vector<16x64xf32> to vector<16x9xf32>
    %493 = tpu.concatenate %491, %492 in 1 : vector<16x55xf32>, vector<16x9xf32> -> vector<16x64xf32>
    %494 = vector.extract_strided_slice %414 {offsets = [8, 0], sizes = [1, 64], strides = [1, 1]} : vector<9x64xf32> to vector<1x64xf32>
    %495 = vector.broadcast %494 : vector<1x64xf32> to vector<16x64xf32>
    %496 = arith.mulf %493, %495 : vector<16x64xf32>
    %497 = vector.extract_strided_slice %413 {offsets = [8, 0, 0], sizes = [1, 16, 16], strides = [1, 1, 1]} : vector<9x16x16xf32> to vector<1x16x16xf32>
    %498 = vector.shape_cast %497 : vector<1x16x16xf32> to vector<16x16xf32>
    %cst_92 = arith.constant dense<0.000000e+00> : vector<16x64xf32>
    %499 = tpu.matmul %498, %496, %cst_92 {dimension_numbers = #tpu.dot_dimension_numbers<[1], [0], [0], [1], [0, 0, 1, 1], [], []>} : vector<16x16xf32>, vector<16x64xf32>, vector<16x64xf32> -> vector<16x64xf32>
    %500 = arith.addf %490, %499 : vector<16x64xf32>
    %cst_93 = arith.constant dense<0.000000e+00> : vector<16xf32>
    %501 = vector.multi_reduction <add>, %500, %cst_93 [1] : vector<16x64xf32> to vector<16xf32>
    %502 = vector.shape_cast %501 : vector<16xf32> to vector<16x1xf32>
    %cst_94 = arith.constant 1.562500e-02 : f32
    %503 = vector.broadcast %cst_94 : f32 to vector<16x1xf32>
    %504 = arith.mulf %502, %503 : vector<16x1xf32>
    %505 = vector.broadcast %504 : vector<16x1xf32> to vector<16x64xf32>
    %506 = arith.subf %500, %505 : vector<16x64xf32>
    %507 = arith.mulf %506, %506 : vector<16x64xf32>
    %cst_95 = arith.constant dense<0.000000e+00> : vector<16xf32>
    %508 = vector.multi_reduction <add>, %507, %cst_95 [1] : vector<16x64xf32> to vector<16xf32>
    %509 = vector.shape_cast %508 : vector<16xf32> to vector<16x1xf32>
    %cst_96 = arith.constant 1.562500e-02 : f32
    %510 = vector.broadcast %cst_96 : f32 to vector<16x1xf32>
    %511 = arith.mulf %509, %510 : vector<16x1xf32>
    %cst_97 = arith.constant 9.99999974E-6 : f32
    %512 = vector.broadcast %cst_97 : f32 to vector<16x1xf32>
    %513 = arith.addf %511, %512 : vector<16x1xf32>
    %514 = math.rsqrt %513 : vector<16x1xf32>
    %515 = vector.broadcast %514 : vector<16x1xf32> to vector<16x64xf32>
    %516 = arith.mulf %506, %515 : vector<16x64xf32>
    %cst_98 = arith.constant 0.000000e+00 : f32
    %517 = vector.broadcast %cst_98 : f32 to vector<16x64xf32>
    %518 = arith.maximumf %516, %517 : vector<16x64xf32>
    %c0_99 = arith.constant 0 : index
    %c0_100 = arith.constant 0 : index
    %c0_101 = arith.constant 0 : index
    %519 = vector.load %arg9[%c0_99, %c0_100, %c0_101] : memref<9x16x16xf32, #tpu.memory_space<vmem>>, vector<9x16x16xf32>
    %c0_102 = arith.constant 0 : index
    %c0_103 = arith.constant 0 : index
    %520 = vector.load %arg10[%c0_102, %c0_103] : memref<9x64xf32, #tpu.memory_space<vmem>>, vector<9x64xf32>
    %521 = vector.extract_strided_slice %518 {offsets = [0, 55], sizes = [16, 9], strides = [1, 1]} : vector<16x64xf32> to vector<16x9xf32>
    %522 = vector.extract_strided_slice %518 {offsets = [0, 0], sizes = [16, 55], strides = [1, 1]} : vector<16x64xf32> to vector<16x55xf32>
    %523 = tpu.concatenate %521, %522 in 1 : vector<16x9xf32>, vector<16x55xf32> -> vector<16x64xf32>
    %524 = vector.extract_strided_slice %520 {offsets = [0, 0], sizes = [1, 64], strides = [1, 1]} : vector<9x64xf32> to vector<1x64xf32>
    %525 = vector.broadcast %524 : vector<1x64xf32> to vector<16x64xf32>
    %526 = arith.mulf %523, %525 : vector<16x64xf32>
    %527 = vector.extract_strided_slice %519 {offsets = [0, 0, 0], sizes = [1, 16, 16], strides = [1, 1, 1]} : vector<9x16x16xf32> to vector<1x16x16xf32>
    %528 = vector.shape_cast %527 : vector<1x16x16xf32> to vector<16x16xf32>
    %cst_104 = arith.constant dense<0.000000e+00> : vector<16x64xf32>
    %529 = tpu.matmul %528, %526, %cst_104 {dimension_numbers = #tpu.dot_dimension_numbers<[1], [0], [0], [1], [0, 0, 1, 1], [], []>} : vector<16x16xf32>, vector<16x64xf32>, vector<16x64xf32> -> vector<16x64xf32>
    %530 = vector.extract_strided_slice %518 {offsets = [0, 56], sizes = [16, 8], strides = [1, 1]} : vector<16x64xf32> to vector<16x8xf32>
    %531 = vector.extract_strided_slice %518 {offsets = [0, 0], sizes = [16, 56], strides = [1, 1]} : vector<16x64xf32> to vector<16x56xf32>
    %532 = tpu.concatenate %530, %531 in 1 : vector<16x8xf32>, vector<16x56xf32> -> vector<16x64xf32>
    %533 = vector.extract_strided_slice %520 {offsets = [1, 0], sizes = [1, 64], strides = [1, 1]} : vector<9x64xf32> to vector<1x64xf32>
    %534 = vector.broadcast %533 : vector<1x64xf32> to vector<16x64xf32>
    %535 = arith.mulf %532, %534 : vector<16x64xf32>
    %536 = vector.extract_strided_slice %519 {offsets = [1, 0, 0], sizes = [1, 16, 16], strides = [1, 1, 1]} : vector<9x16x16xf32> to vector<1x16x16xf32>
    %537 = vector.shape_cast %536 : vector<1x16x16xf32> to vector<16x16xf32>
    %cst_105 = arith.constant dense<0.000000e+00> : vector<16x64xf32>
    %538 = tpu.matmul %537, %535, %cst_105 {dimension_numbers = #tpu.dot_dimension_numbers<[1], [0], [0], [1], [0, 0, 1, 1], [], []>} : vector<16x16xf32>, vector<16x64xf32>, vector<16x64xf32> -> vector<16x64xf32>
    %539 = arith.addf %529, %538 : vector<16x64xf32>
    %540 = vector.extract_strided_slice %518 {offsets = [0, 57], sizes = [16, 7], strides = [1, 1]} : vector<16x64xf32> to vector<16x7xf32>
    %541 = vector.extract_strided_slice %518 {offsets = [0, 0], sizes = [16, 57], strides = [1, 1]} : vector<16x64xf32> to vector<16x57xf32>
    %542 = tpu.concatenate %540, %541 in 1 : vector<16x7xf32>, vector<16x57xf32> -> vector<16x64xf32>
    %543 = vector.extract_strided_slice %520 {offsets = [2, 0], sizes = [1, 64], strides = [1, 1]} : vector<9x64xf32> to vector<1x64xf32>
    %544 = vector.broadcast %543 : vector<1x64xf32> to vector<16x64xf32>
    %545 = arith.mulf %542, %544 : vector<16x64xf32>
    %546 = vector.extract_strided_slice %519 {offsets = [2, 0, 0], sizes = [1, 16, 16], strides = [1, 1, 1]} : vector<9x16x16xf32> to vector<1x16x16xf32>
    %547 = vector.shape_cast %546 : vector<1x16x16xf32> to vector<16x16xf32>
    %cst_106 = arith.constant dense<0.000000e+00> : vector<16x64xf32>
    %548 = tpu.matmul %547, %545, %cst_106 {dimension_numbers = #tpu.dot_dimension_numbers<[1], [0], [0], [1], [0, 0, 1, 1], [], []>} : vector<16x16xf32>, vector<16x64xf32>, vector<16x64xf32> -> vector<16x64xf32>
    %549 = arith.addf %539, %548 : vector<16x64xf32>
    %550 = vector.extract_strided_slice %518 {offsets = [0, 63], sizes = [16, 1], strides = [1, 1]} : vector<16x64xf32> to vector<16x1xf32>
    %551 = vector.extract_strided_slice %518 {offsets = [0, 0], sizes = [16, 63], strides = [1, 1]} : vector<16x64xf32> to vector<16x63xf32>
    %552 = tpu.concatenate %550, %551 in 1 : vector<16x1xf32>, vector<16x63xf32> -> vector<16x64xf32>
    %553 = vector.extract_strided_slice %520 {offsets = [3, 0], sizes = [1, 64], strides = [1, 1]} : vector<9x64xf32> to vector<1x64xf32>
    %554 = vector.broadcast %553 : vector<1x64xf32> to vector<16x64xf32>
    %555 = arith.mulf %552, %554 : vector<16x64xf32>
    %556 = vector.extract_strided_slice %519 {offsets = [3, 0, 0], sizes = [1, 16, 16], strides = [1, 1, 1]} : vector<9x16x16xf32> to vector<1x16x16xf32>
    %557 = vector.shape_cast %556 : vector<1x16x16xf32> to vector<16x16xf32>
    %cst_107 = arith.constant dense<0.000000e+00> : vector<16x64xf32>
    %558 = tpu.matmul %557, %555, %cst_107 {dimension_numbers = #tpu.dot_dimension_numbers<[1], [0], [0], [1], [0, 0, 1, 1], [], []>} : vector<16x16xf32>, vector<16x64xf32>, vector<16x64xf32> -> vector<16x64xf32>
    %559 = arith.addf %549, %558 : vector<16x64xf32>
    %560 = vector.extract_strided_slice %520 {offsets = [4, 0], sizes = [1, 64], strides = [1, 1]} : vector<9x64xf32> to vector<1x64xf32>
    %561 = vector.broadcast %560 : vector<1x64xf32> to vector<16x64xf32>
    %562 = arith.mulf %518, %561 : vector<16x64xf32>
    %563 = vector.extract_strided_slice %519 {offsets = [4, 0, 0], sizes = [1, 16, 16], strides = [1, 1, 1]} : vector<9x16x16xf32> to vector<1x16x16xf32>
    %564 = vector.shape_cast %563 : vector<1x16x16xf32> to vector<16x16xf32>
    %cst_108 = arith.constant dense<0.000000e+00> : vector<16x64xf32>
    %565 = tpu.matmul %564, %562, %cst_108 {dimension_numbers = #tpu.dot_dimension_numbers<[1], [0], [0], [1], [0, 0, 1, 1], [], []>} : vector<16x16xf32>, vector<16x64xf32>, vector<16x64xf32> -> vector<16x64xf32>
    %566 = arith.addf %559, %565 : vector<16x64xf32>
    %567 = vector.extract_strided_slice %518 {offsets = [0, 1], sizes = [16, 63], strides = [1, 1]} : vector<16x64xf32> to vector<16x63xf32>
    %568 = vector.extract_strided_slice %518 {offsets = [0, 0], sizes = [16, 1], strides = [1, 1]} : vector<16x64xf32> to vector<16x1xf32>
    %569 = tpu.concatenate %567, %568 in 1 : vector<16x63xf32>, vector<16x1xf32> -> vector<16x64xf32>
    %570 = vector.extract_strided_slice %520 {offsets = [5, 0], sizes = [1, 64], strides = [1, 1]} : vector<9x64xf32> to vector<1x64xf32>
    %571 = vector.broadcast %570 : vector<1x64xf32> to vector<16x64xf32>
    %572 = arith.mulf %569, %571 : vector<16x64xf32>
    %573 = vector.extract_strided_slice %519 {offsets = [5, 0, 0], sizes = [1, 16, 16], strides = [1, 1, 1]} : vector<9x16x16xf32> to vector<1x16x16xf32>
    %574 = vector.shape_cast %573 : vector<1x16x16xf32> to vector<16x16xf32>
    %cst_109 = arith.constant dense<0.000000e+00> : vector<16x64xf32>
    %575 = tpu.matmul %574, %572, %cst_109 {dimension_numbers = #tpu.dot_dimension_numbers<[1], [0], [0], [1], [0, 0, 1, 1], [], []>} : vector<16x16xf32>, vector<16x64xf32>, vector<16x64xf32> -> vector<16x64xf32>
    %576 = arith.addf %566, %575 : vector<16x64xf32>
    %577 = vector.extract_strided_slice %518 {offsets = [0, 7], sizes = [16, 57], strides = [1, 1]} : vector<16x64xf32> to vector<16x57xf32>
    %578 = vector.extract_strided_slice %518 {offsets = [0, 0], sizes = [16, 7], strides = [1, 1]} : vector<16x64xf32> to vector<16x7xf32>
    %579 = tpu.concatenate %577, %578 in 1 : vector<16x57xf32>, vector<16x7xf32> -> vector<16x64xf32>
    %580 = vector.extract_strided_slice %520 {offsets = [6, 0], sizes = [1, 64], strides = [1, 1]} : vector<9x64xf32> to vector<1x64xf32>
    %581 = vector.broadcast %580 : vector<1x64xf32> to vector<16x64xf32>
    %582 = arith.mulf %579, %581 : vector<16x64xf32>
    %583 = vector.extract_strided_slice %519 {offsets = [6, 0, 0], sizes = [1, 16, 16], strides = [1, 1, 1]} : vector<9x16x16xf32> to vector<1x16x16xf32>
    %584 = vector.shape_cast %583 : vector<1x16x16xf32> to vector<16x16xf32>
    %cst_110 = arith.constant dense<0.000000e+00> : vector<16x64xf32>
    %585 = tpu.matmul %584, %582, %cst_110 {dimension_numbers = #tpu.dot_dimension_numbers<[1], [0], [0], [1], [0, 0, 1, 1], [], []>} : vector<16x16xf32>, vector<16x64xf32>, vector<16x64xf32> -> vector<16x64xf32>
    %586 = arith.addf %576, %585 : vector<16x64xf32>
    %587 = vector.extract_strided_slice %518 {offsets = [0, 8], sizes = [16, 56], strides = [1, 1]} : vector<16x64xf32> to vector<16x56xf32>
    %588 = vector.extract_strided_slice %518 {offsets = [0, 0], sizes = [16, 8], strides = [1, 1]} : vector<16x64xf32> to vector<16x8xf32>
    %589 = tpu.concatenate %587, %588 in 1 : vector<16x56xf32>, vector<16x8xf32> -> vector<16x64xf32>
    %590 = vector.extract_strided_slice %520 {offsets = [7, 0], sizes = [1, 64], strides = [1, 1]} : vector<9x64xf32> to vector<1x64xf32>
    %591 = vector.broadcast %590 : vector<1x64xf32> to vector<16x64xf32>
    %592 = arith.mulf %589, %591 : vector<16x64xf32>
    %593 = vector.extract_strided_slice %519 {offsets = [7, 0, 0], sizes = [1, 16, 16], strides = [1, 1, 1]} : vector<9x16x16xf32> to vector<1x16x16xf32>
    %594 = vector.shape_cast %593 : vector<1x16x16xf32> to vector<16x16xf32>
    %cst_111 = arith.constant dense<0.000000e+00> : vector<16x64xf32>
    %595 = tpu.matmul %594, %592, %cst_111 {dimension_numbers = #tpu.dot_dimension_numbers<[1], [0], [0], [1], [0, 0, 1, 1], [], []>} : vector<16x16xf32>, vector<16x64xf32>, vector<16x64xf32> -> vector<16x64xf32>
    %596 = arith.addf %586, %595 : vector<16x64xf32>
    %597 = vector.extract_strided_slice %518 {offsets = [0, 9], sizes = [16, 55], strides = [1, 1]} : vector<16x64xf32> to vector<16x55xf32>
    %598 = vector.extract_strided_slice %518 {offsets = [0, 0], sizes = [16, 9], strides = [1, 1]} : vector<16x64xf32> to vector<16x9xf32>
    %599 = tpu.concatenate %597, %598 in 1 : vector<16x55xf32>, vector<16x9xf32> -> vector<16x64xf32>
    %600 = vector.extract_strided_slice %520 {offsets = [8, 0], sizes = [1, 64], strides = [1, 1]} : vector<9x64xf32> to vector<1x64xf32>
    %601 = vector.broadcast %600 : vector<1x64xf32> to vector<16x64xf32>
    %602 = arith.mulf %599, %601 : vector<16x64xf32>
    %603 = vector.extract_strided_slice %519 {offsets = [8, 0, 0], sizes = [1, 16, 16], strides = [1, 1, 1]} : vector<9x16x16xf32> to vector<1x16x16xf32>
    %604 = vector.shape_cast %603 : vector<1x16x16xf32> to vector<16x16xf32>
    %cst_112 = arith.constant dense<0.000000e+00> : vector<16x64xf32>
    %605 = tpu.matmul %604, %602, %cst_112 {dimension_numbers = #tpu.dot_dimension_numbers<[1], [0], [0], [1], [0, 0, 1, 1], [], []>} : vector<16x16xf32>, vector<16x64xf32>, vector<16x64xf32> -> vector<16x64xf32>
    %606 = arith.addf %596, %605 : vector<16x64xf32>
    %cst_113 = arith.constant 1.000000e-01 : f32
    %607 = vector.broadcast %cst_113 : f32 to vector<16x64xf32>
    %608 = arith.mulf %607, %606 : vector<16x64xf32>
    %609 = arith.subf %412, %608 : vector<16x64xf32>
    %c0_114 = arith.constant 0 : index
    %c0_115 = arith.constant 0 : index
    %c0_116 = arith.constant 0 : index
    %610 = vector.load %arg9[%c0_114, %c0_115, %c0_116] : memref<9x16x16xf32, #tpu.memory_space<vmem>>, vector<9x16x16xf32>
    %c0_117 = arith.constant 0 : index
    %c0_118 = arith.constant 0 : index
    %611 = vector.load %arg10[%c0_117, %c0_118] : memref<9x64xf32, #tpu.memory_space<vmem>>, vector<9x64xf32>
    %612 = vector.extract_strided_slice %609 {offsets = [0, 55], sizes = [16, 9], strides = [1, 1]} : vector<16x64xf32> to vector<16x9xf32>
    %613 = vector.extract_strided_slice %609 {offsets = [0, 0], sizes = [16, 55], strides = [1, 1]} : vector<16x64xf32> to vector<16x55xf32>
    %614 = tpu.concatenate %612, %613 in 1 : vector<16x9xf32>, vector<16x55xf32> -> vector<16x64xf32>
    %615 = vector.extract_strided_slice %611 {offsets = [0, 0], sizes = [1, 64], strides = [1, 1]} : vector<9x64xf32> to vector<1x64xf32>
    %616 = vector.broadcast %615 : vector<1x64xf32> to vector<16x64xf32>
    %617 = arith.mulf %614, %616 : vector<16x64xf32>
    %618 = vector.extract_strided_slice %610 {offsets = [0, 0, 0], sizes = [1, 16, 16], strides = [1, 1, 1]} : vector<9x16x16xf32> to vector<1x16x16xf32>
    %619 = vector.shape_cast %618 : vector<1x16x16xf32> to vector<16x16xf32>
    %cst_119 = arith.constant dense<0.000000e+00> : vector<16x64xf32>
    %620 = tpu.matmul %619, %617, %cst_119 {dimension_numbers = #tpu.dot_dimension_numbers<[1], [0], [0], [1], [0, 0, 1, 1], [], []>} : vector<16x16xf32>, vector<16x64xf32>, vector<16x64xf32> -> vector<16x64xf32>
    %621 = vector.extract_strided_slice %609 {offsets = [0, 56], sizes = [16, 8], strides = [1, 1]} : vector<16x64xf32> to vector<16x8xf32>
    %622 = vector.extract_strided_slice %609 {offsets = [0, 0], sizes = [16, 56], strides = [1, 1]} : vector<16x64xf32> to vector<16x56xf32>
    %623 = tpu.concatenate %621, %622 in 1 : vector<16x8xf32>, vector<16x56xf32> -> vector<16x64xf32>
    %624 = vector.extract_strided_slice %611 {offsets = [1, 0], sizes = [1, 64], strides = [1, 1]} : vector<9x64xf32> to vector<1x64xf32>
    %625 = vector.broadcast %624 : vector<1x64xf32> to vector<16x64xf32>
    %626 = arith.mulf %623, %625 : vector<16x64xf32>
    %627 = vector.extract_strided_slice %610 {offsets = [1, 0, 0], sizes = [1, 16, 16], strides = [1, 1, 1]} : vector<9x16x16xf32> to vector<1x16x16xf32>
    %628 = vector.shape_cast %627 : vector<1x16x16xf32> to vector<16x16xf32>
    %cst_120 = arith.constant dense<0.000000e+00> : vector<16x64xf32>
    %629 = tpu.matmul %628, %626, %cst_120 {dimension_numbers = #tpu.dot_dimension_numbers<[1], [0], [0], [1], [0, 0, 1, 1], [], []>} : vector<16x16xf32>, vector<16x64xf32>, vector<16x64xf32> -> vector<16x64xf32>
    %630 = arith.addf %620, %629 : vector<16x64xf32>
    %631 = vector.extract_strided_slice %609 {offsets = [0, 57], sizes = [16, 7], strides = [1, 1]} : vector<16x64xf32> to vector<16x7xf32>
    %632 = vector.extract_strided_slice %609 {offsets = [0, 0], sizes = [16, 57], strides = [1, 1]} : vector<16x64xf32> to vector<16x57xf32>
    %633 = tpu.concatenate %631, %632 in 1 : vector<16x7xf32>, vector<16x57xf32> -> vector<16x64xf32>
    %634 = vector.extract_strided_slice %611 {offsets = [2, 0], sizes = [1, 64], strides = [1, 1]} : vector<9x64xf32> to vector<1x64xf32>
    %635 = vector.broadcast %634 : vector<1x64xf32> to vector<16x64xf32>
    %636 = arith.mulf %633, %635 : vector<16x64xf32>
    %637 = vector.extract_strided_slice %610 {offsets = [2, 0, 0], sizes = [1, 16, 16], strides = [1, 1, 1]} : vector<9x16x16xf32> to vector<1x16x16xf32>
    %638 = vector.shape_cast %637 : vector<1x16x16xf32> to vector<16x16xf32>
    %cst_121 = arith.constant dense<0.000000e+00> : vector<16x64xf32>
    %639 = tpu.matmul %638, %636, %cst_121 {dimension_numbers = #tpu.dot_dimension_numbers<[1], [0], [0], [1], [0, 0, 1, 1], [], []>} : vector<16x16xf32>, vector<16x64xf32>, vector<16x64xf32> -> vector<16x64xf32>
    %640 = arith.addf %630, %639 : vector<16x64xf32>
    %641 = vector.extract_strided_slice %609 {offsets = [0, 63], sizes = [16, 1], strides = [1, 1]} : vector<16x64xf32> to vector<16x1xf32>
    %642 = vector.extract_strided_slice %609 {offsets = [0, 0], sizes = [16, 63], strides = [1, 1]} : vector<16x64xf32> to vector<16x63xf32>
    %643 = tpu.concatenate %641, %642 in 1 : vector<16x1xf32>, vector<16x63xf32> -> vector<16x64xf32>
    %644 = vector.extract_strided_slice %611 {offsets = [3, 0], sizes = [1, 64], strides = [1, 1]} : vector<9x64xf32> to vector<1x64xf32>
    %645 = vector.broadcast %644 : vector<1x64xf32> to vector<16x64xf32>
    %646 = arith.mulf %643, %645 : vector<16x64xf32>
    %647 = vector.extract_strided_slice %610 {offsets = [3, 0, 0], sizes = [1, 16, 16], strides = [1, 1, 1]} : vector<9x16x16xf32> to vector<1x16x16xf32>
    %648 = vector.shape_cast %647 : vector<1x16x16xf32> to vector<16x16xf32>
    %cst_122 = arith.constant dense<0.000000e+00> : vector<16x64xf32>
    %649 = tpu.matmul %648, %646, %cst_122 {dimension_numbers = #tpu.dot_dimension_numbers<[1], [0], [0], [1], [0, 0, 1, 1], [], []>} : vector<16x16xf32>, vector<16x64xf32>, vector<16x64xf32> -> vector<16x64xf32>
    %650 = arith.addf %640, %649 : vector<16x64xf32>
    %651 = vector.extract_strided_slice %611 {offsets = [4, 0], sizes = [1, 64], strides = [1, 1]} : vector<9x64xf32> to vector<1x64xf32>
    %652 = vector.broadcast %651 : vector<1x64xf32> to vector<16x64xf32>
    %653 = arith.mulf %609, %652 : vector<16x64xf32>
    %654 = vector.extract_strided_slice %610 {offsets = [4, 0, 0], sizes = [1, 16, 16], strides = [1, 1, 1]} : vector<9x16x16xf32> to vector<1x16x16xf32>
    %655 = vector.shape_cast %654 : vector<1x16x16xf32> to vector<16x16xf32>
    %cst_123 = arith.constant dense<0.000000e+00> : vector<16x64xf32>
    %656 = tpu.matmul %655, %653, %cst_123 {dimension_numbers = #tpu.dot_dimension_numbers<[1], [0], [0], [1], [0, 0, 1, 1], [], []>} : vector<16x16xf32>, vector<16x64xf32>, vector<16x64xf32> -> vector<16x64xf32>
    %657 = arith.addf %650, %656 : vector<16x64xf32>
    %658 = vector.extract_strided_slice %609 {offsets = [0, 1], sizes = [16, 63], strides = [1, 1]} : vector<16x64xf32> to vector<16x63xf32>
    %659 = vector.extract_strided_slice %609 {offsets = [0, 0], sizes = [16, 1], strides = [1, 1]} : vector<16x64xf32> to vector<16x1xf32>
    %660 = tpu.concatenate %658, %659 in 1 : vector<16x63xf32>, vector<16x1xf32> -> vector<16x64xf32>
    %661 = vector.extract_strided_slice %611 {offsets = [5, 0], sizes = [1, 64], strides = [1, 1]} : vector<9x64xf32> to vector<1x64xf32>
    %662 = vector.broadcast %661 : vector<1x64xf32> to vector<16x64xf32>
    %663 = arith.mulf %660, %662 : vector<16x64xf32>
    %664 = vector.extract_strided_slice %610 {offsets = [5, 0, 0], sizes = [1, 16, 16], strides = [1, 1, 1]} : vector<9x16x16xf32> to vector<1x16x16xf32>
    %665 = vector.shape_cast %664 : vector<1x16x16xf32> to vector<16x16xf32>
    %cst_124 = arith.constant dense<0.000000e+00> : vector<16x64xf32>
    %666 = tpu.matmul %665, %663, %cst_124 {dimension_numbers = #tpu.dot_dimension_numbers<[1], [0], [0], [1], [0, 0, 1, 1], [], []>} : vector<16x16xf32>, vector<16x64xf32>, vector<16x64xf32> -> vector<16x64xf32>
    %667 = arith.addf %657, %666 : vector<16x64xf32>
    %668 = vector.extract_strided_slice %609 {offsets = [0, 7], sizes = [16, 57], strides = [1, 1]} : vector<16x64xf32> to vector<16x57xf32>
    %669 = vector.extract_strided_slice %609 {offsets = [0, 0], sizes = [16, 7], strides = [1, 1]} : vector<16x64xf32> to vector<16x7xf32>
    %670 = tpu.concatenate %668, %669 in 1 : vector<16x57xf32>, vector<16x7xf32> -> vector<16x64xf32>
    %671 = vector.extract_strided_slice %611 {offsets = [6, 0], sizes = [1, 64], strides = [1, 1]} : vector<9x64xf32> to vector<1x64xf32>
    %672 = vector.broadcast %671 : vector<1x64xf32> to vector<16x64xf32>
    %673 = arith.mulf %670, %672 : vector<16x64xf32>
    %674 = vector.extract_strided_slice %610 {offsets = [6, 0, 0], sizes = [1, 16, 16], strides = [1, 1, 1]} : vector<9x16x16xf32> to vector<1x16x16xf32>
    %675 = vector.shape_cast %674 : vector<1x16x16xf32> to vector<16x16xf32>
    %cst_125 = arith.constant dense<0.000000e+00> : vector<16x64xf32>
    %676 = tpu.matmul %675, %673, %cst_125 {dimension_numbers = #tpu.dot_dimension_numbers<[1], [0], [0], [1], [0, 0, 1, 1], [], []>} : vector<16x16xf32>, vector<16x64xf32>, vector<16x64xf32> -> vector<16x64xf32>
    %677 = arith.addf %667, %676 : vector<16x64xf32>
    %678 = vector.extract_strided_slice %609 {offsets = [0, 8], sizes = [16, 56], strides = [1, 1]} : vector<16x64xf32> to vector<16x56xf32>
    %679 = vector.extract_strided_slice %609 {offsets = [0, 0], sizes = [16, 8], strides = [1, 1]} : vector<16x64xf32> to vector<16x8xf32>
    %680 = tpu.concatenate %678, %679 in 1 : vector<16x56xf32>, vector<16x8xf32> -> vector<16x64xf32>
    %681 = vector.extract_strided_slice %611 {offsets = [7, 0], sizes = [1, 64], strides = [1, 1]} : vector<9x64xf32> to vector<1x64xf32>
    %682 = vector.broadcast %681 : vector<1x64xf32> to vector<16x64xf32>
    %683 = arith.mulf %680, %682 : vector<16x64xf32>
    %684 = vector.extract_strided_slice %610 {offsets = [7, 0, 0], sizes = [1, 16, 16], strides = [1, 1, 1]} : vector<9x16x16xf32> to vector<1x16x16xf32>
    %685 = vector.shape_cast %684 : vector<1x16x16xf32> to vector<16x16xf32>
    %cst_126 = arith.constant dense<0.000000e+00> : vector<16x64xf32>
    %686 = tpu.matmul %685, %683, %cst_126 {dimension_numbers = #tpu.dot_dimension_numbers<[1], [0], [0], [1], [0, 0, 1, 1], [], []>} : vector<16x16xf32>, vector<16x64xf32>, vector<16x64xf32> -> vector<16x64xf32>
    %687 = arith.addf %677, %686 : vector<16x64xf32>
    %688 = vector.extract_strided_slice %609 {offsets = [0, 9], sizes = [16, 55], strides = [1, 1]} : vector<16x64xf32> to vector<16x55xf32>
    %689 = vector.extract_strided_slice %609 {offsets = [0, 0], sizes = [16, 9], strides = [1, 1]} : vector<16x64xf32> to vector<16x9xf32>
    %690 = tpu.concatenate %688, %689 in 1 : vector<16x55xf32>, vector<16x9xf32> -> vector<16x64xf32>
    %691 = vector.extract_strided_slice %611 {offsets = [8, 0], sizes = [1, 64], strides = [1, 1]} : vector<9x64xf32> to vector<1x64xf32>
    %692 = vector.broadcast %691 : vector<1x64xf32> to vector<16x64xf32>
    %693 = arith.mulf %690, %692 : vector<16x64xf32>
    %694 = vector.extract_strided_slice %610 {offsets = [8, 0, 0], sizes = [1, 16, 16], strides = [1, 1, 1]} : vector<9x16x16xf32> to vector<1x16x16xf32>
    %695 = vector.shape_cast %694 : vector<1x16x16xf32> to vector<16x16xf32>
    %cst_127 = arith.constant dense<0.000000e+00> : vector<16x64xf32>
    %696 = tpu.matmul %695, %693, %cst_127 {dimension_numbers = #tpu.dot_dimension_numbers<[1], [0], [0], [1], [0, 0, 1, 1], [], []>} : vector<16x16xf32>, vector<16x64xf32>, vector<16x64xf32> -> vector<16x64xf32>
    %697 = arith.addf %687, %696 : vector<16x64xf32>
    %cst_128 = arith.constant dense<0.000000e+00> : vector<16xf32>
    %698 = vector.multi_reduction <add>, %697, %cst_128 [1] : vector<16x64xf32> to vector<16xf32>
    %699 = vector.shape_cast %698 : vector<16xf32> to vector<16x1xf32>
    %cst_129 = arith.constant 1.562500e-02 : f32
    %700 = vector.broadcast %cst_129 : f32 to vector<16x1xf32>
    %701 = arith.mulf %699, %700 : vector<16x1xf32>
    %702 = vector.broadcast %701 : vector<16x1xf32> to vector<16x64xf32>
    %703 = arith.subf %697, %702 : vector<16x64xf32>
    %704 = arith.mulf %703, %703 : vector<16x64xf32>
    %cst_130 = arith.constant dense<0.000000e+00> : vector<16xf32>
    %705 = vector.multi_reduction <add>, %704, %cst_130 [1] : vector<16x64xf32> to vector<16xf32>
    %706 = vector.shape_cast %705 : vector<16xf32> to vector<16x1xf32>
    %cst_131 = arith.constant 1.562500e-02 : f32
    %707 = vector.broadcast %cst_131 : f32 to vector<16x1xf32>
    %708 = arith.mulf %706, %707 : vector<16x1xf32>
    %cst_132 = arith.constant 9.99999974E-6 : f32
    %709 = vector.broadcast %cst_132 : f32 to vector<16x1xf32>
    %710 = arith.addf %708, %709 : vector<16x1xf32>
    %711 = math.rsqrt %710 : vector<16x1xf32>
    %712 = vector.broadcast %711 : vector<16x1xf32> to vector<16x64xf32>
    %713 = arith.mulf %703, %712 : vector<16x64xf32>
    %cst_133 = arith.constant 0.000000e+00 : f32
    %714 = vector.broadcast %cst_133 : f32 to vector<16x64xf32>
    %715 = arith.maximumf %713, %714 : vector<16x64xf32>
    %c0_134 = arith.constant 0 : index
    %c0_135 = arith.constant 0 : index
    %c0_136 = arith.constant 0 : index
    %716 = vector.load %arg8[%c0_134, %c0_135, %c0_136] : memref<9x16x16xf32, #tpu.memory_space<vmem>>, vector<9x16x16xf32>
    %c0_137 = arith.constant 0 : index
    %c0_138 = arith.constant 0 : index
    %717 = vector.load %arg10[%c0_137, %c0_138] : memref<9x64xf32, #tpu.memory_space<vmem>>, vector<9x64xf32>
    %718 = vector.extract_strided_slice %715 {offsets = [0, 55], sizes = [16, 9], strides = [1, 1]} : vector<16x64xf32> to vector<16x9xf32>
    %719 = vector.extract_strided_slice %715 {offsets = [0, 0], sizes = [16, 55], strides = [1, 1]} : vector<16x64xf32> to vector<16x55xf32>
    %720 = tpu.concatenate %718, %719 in 1 : vector<16x9xf32>, vector<16x55xf32> -> vector<16x64xf32>
    %721 = vector.extract_strided_slice %717 {offsets = [0, 0], sizes = [1, 64], strides = [1, 1]} : vector<9x64xf32> to vector<1x64xf32>
    %722 = vector.broadcast %721 : vector<1x64xf32> to vector<16x64xf32>
    %723 = arith.mulf %720, %722 : vector<16x64xf32>
    %724 = vector.extract_strided_slice %716 {offsets = [0, 0, 0], sizes = [1, 16, 16], strides = [1, 1, 1]} : vector<9x16x16xf32> to vector<1x16x16xf32>
    %725 = vector.shape_cast %724 : vector<1x16x16xf32> to vector<16x16xf32>
    %cst_139 = arith.constant dense<0.000000e+00> : vector<16x64xf32>
    %726 = tpu.matmul %725, %723, %cst_139 {dimension_numbers = #tpu.dot_dimension_numbers<[1], [0], [0], [1], [0, 0, 1, 1], [], []>} : vector<16x16xf32>, vector<16x64xf32>, vector<16x64xf32> -> vector<16x64xf32>
    %727 = vector.extract_strided_slice %715 {offsets = [0, 56], sizes = [16, 8], strides = [1, 1]} : vector<16x64xf32> to vector<16x8xf32>
    %728 = vector.extract_strided_slice %715 {offsets = [0, 0], sizes = [16, 56], strides = [1, 1]} : vector<16x64xf32> to vector<16x56xf32>
    %729 = tpu.concatenate %727, %728 in 1 : vector<16x8xf32>, vector<16x56xf32> -> vector<16x64xf32>
    %730 = vector.extract_strided_slice %717 {offsets = [1, 0], sizes = [1, 64], strides = [1, 1]} : vector<9x64xf32> to vector<1x64xf32>
    %731 = vector.broadcast %730 : vector<1x64xf32> to vector<16x64xf32>
    %732 = arith.mulf %729, %731 : vector<16x64xf32>
    %733 = vector.extract_strided_slice %716 {offsets = [1, 0, 0], sizes = [1, 16, 16], strides = [1, 1, 1]} : vector<9x16x16xf32> to vector<1x16x16xf32>
    %734 = vector.shape_cast %733 : vector<1x16x16xf32> to vector<16x16xf32>
    %cst_140 = arith.constant dense<0.000000e+00> : vector<16x64xf32>
    %735 = tpu.matmul %734, %732, %cst_140 {dimension_numbers = #tpu.dot_dimension_numbers<[1], [0], [0], [1], [0, 0, 1, 1], [], []>} : vector<16x16xf32>, vector<16x64xf32>, vector<16x64xf32> -> vector<16x64xf32>
    %736 = arith.addf %726, %735 : vector<16x64xf32>
    %737 = vector.extract_strided_slice %715 {offsets = [0, 57], sizes = [16, 7], strides = [1, 1]} : vector<16x64xf32> to vector<16x7xf32>
    %738 = vector.extract_strided_slice %715 {offsets = [0, 0], sizes = [16, 57], strides = [1, 1]} : vector<16x64xf32> to vector<16x57xf32>
    %739 = tpu.concatenate %737, %738 in 1 : vector<16x7xf32>, vector<16x57xf32> -> vector<16x64xf32>
    %740 = vector.extract_strided_slice %717 {offsets = [2, 0], sizes = [1, 64], strides = [1, 1]} : vector<9x64xf32> to vector<1x64xf32>
    %741 = vector.broadcast %740 : vector<1x64xf32> to vector<16x64xf32>
    %742 = arith.mulf %739, %741 : vector<16x64xf32>
    %743 = vector.extract_strided_slice %716 {offsets = [2, 0, 0], sizes = [1, 16, 16], strides = [1, 1, 1]} : vector<9x16x16xf32> to vector<1x16x16xf32>
    %744 = vector.shape_cast %743 : vector<1x16x16xf32> to vector<16x16xf32>
    %cst_141 = arith.constant dense<0.000000e+00> : vector<16x64xf32>
    %745 = tpu.matmul %744, %742, %cst_141 {dimension_numbers = #tpu.dot_dimension_numbers<[1], [0], [0], [1], [0, 0, 1, 1], [], []>} : vector<16x16xf32>, vector<16x64xf32>, vector<16x64xf32> -> vector<16x64xf32>
    %746 = arith.addf %736, %745 : vector<16x64xf32>
    %747 = vector.extract_strided_slice %715 {offsets = [0, 63], sizes = [16, 1], strides = [1, 1]} : vector<16x64xf32> to vector<16x1xf32>
    %748 = vector.extract_strided_slice %715 {offsets = [0, 0], sizes = [16, 63], strides = [1, 1]} : vector<16x64xf32> to vector<16x63xf32>
    %749 = tpu.concatenate %747, %748 in 1 : vector<16x1xf32>, vector<16x63xf32> -> vector<16x64xf32>
    %750 = vector.extract_strided_slice %717 {offsets = [3, 0], sizes = [1, 64], strides = [1, 1]} : vector<9x64xf32> to vector<1x64xf32>
    %751 = vector.broadcast %750 : vector<1x64xf32> to vector<16x64xf32>
    %752 = arith.mulf %749, %751 : vector<16x64xf32>
    %753 = vector.extract_strided_slice %716 {offsets = [3, 0, 0], sizes = [1, 16, 16], strides = [1, 1, 1]} : vector<9x16x16xf32> to vector<1x16x16xf32>
    %754 = vector.shape_cast %753 : vector<1x16x16xf32> to vector<16x16xf32>
    %cst_142 = arith.constant dense<0.000000e+00> : vector<16x64xf32>
    %755 = tpu.matmul %754, %752, %cst_142 {dimension_numbers = #tpu.dot_dimension_numbers<[1], [0], [0], [1], [0, 0, 1, 1], [], []>} : vector<16x16xf32>, vector<16x64xf32>, vector<16x64xf32> -> vector<16x64xf32>
    %756 = arith.addf %746, %755 : vector<16x64xf32>
    %757 = vector.extract_strided_slice %717 {offsets = [4, 0], sizes = [1, 64], strides = [1, 1]} : vector<9x64xf32> to vector<1x64xf32>
    %758 = vector.broadcast %757 : vector<1x64xf32> to vector<16x64xf32>
    %759 = arith.mulf %715, %758 : vector<16x64xf32>
    %760 = vector.extract_strided_slice %716 {offsets = [4, 0, 0], sizes = [1, 16, 16], strides = [1, 1, 1]} : vector<9x16x16xf32> to vector<1x16x16xf32>
    %761 = vector.shape_cast %760 : vector<1x16x16xf32> to vector<16x16xf32>
    %cst_143 = arith.constant dense<0.000000e+00> : vector<16x64xf32>
    %762 = tpu.matmul %761, %759, %cst_143 {dimension_numbers = #tpu.dot_dimension_numbers<[1], [0], [0], [1], [0, 0, 1, 1], [], []>} : vector<16x16xf32>, vector<16x64xf32>, vector<16x64xf32> -> vector<16x64xf32>
    %763 = arith.addf %756, %762 : vector<16x64xf32>
    %764 = vector.extract_strided_slice %715 {offsets = [0, 1], sizes = [16, 63], strides = [1, 1]} : vector<16x64xf32> to vector<16x63xf32>
    %765 = vector.extract_strided_slice %715 {offsets = [0, 0], sizes = [16, 1], strides = [1, 1]} : vector<16x64xf32> to vector<16x1xf32>
    %766 = tpu.concatenate %764, %765 in 1 : vector<16x63xf32>, vector<16x1xf32> -> vector<16x64xf32>
    %767 = vector.extract_strided_slice %717 {offsets = [5, 0], sizes = [1, 64], strides = [1, 1]} : vector<9x64xf32> to vector<1x64xf32>
    %768 = vector.broadcast %767 : vector<1x64xf32> to vector<16x64xf32>
    %769 = arith.mulf %766, %768 : vector<16x64xf32>
    %770 = vector.extract_strided_slice %716 {offsets = [5, 0, 0], sizes = [1, 16, 16], strides = [1, 1, 1]} : vector<9x16x16xf32> to vector<1x16x16xf32>
    %771 = vector.shape_cast %770 : vector<1x16x16xf32> to vector<16x16xf32>
    %cst_144 = arith.constant dense<0.000000e+00> : vector<16x64xf32>
    %772 = tpu.matmul %771, %769, %cst_144 {dimension_numbers = #tpu.dot_dimension_numbers<[1], [0], [0], [1], [0, 0, 1, 1], [], []>} : vector<16x16xf32>, vector<16x64xf32>, vector<16x64xf32> -> vector<16x64xf32>
    %773 = arith.addf %763, %772 : vector<16x64xf32>
    %774 = vector.extract_strided_slice %715 {offsets = [0, 7], sizes = [16, 57], strides = [1, 1]} : vector<16x64xf32> to vector<16x57xf32>
    %775 = vector.extract_strided_slice %715 {offsets = [0, 0], sizes = [16, 7], strides = [1, 1]} : vector<16x64xf32> to vector<16x7xf32>
    %776 = tpu.concatenate %774, %775 in 1 : vector<16x57xf32>, vector<16x7xf32> -> vector<16x64xf32>
    %777 = vector.extract_strided_slice %717 {offsets = [6, 0], sizes = [1, 64], strides = [1, 1]} : vector<9x64xf32> to vector<1x64xf32>
    %778 = vector.broadcast %777 : vector<1x64xf32> to vector<16x64xf32>
    %779 = arith.mulf %776, %778 : vector<16x64xf32>
    %780 = vector.extract_strided_slice %716 {offsets = [6, 0, 0], sizes = [1, 16, 16], strides = [1, 1, 1]} : vector<9x16x16xf32> to vector<1x16x16xf32>
    %781 = vector.shape_cast %780 : vector<1x16x16xf32> to vector<16x16xf32>
    %cst_145 = arith.constant dense<0.000000e+00> : vector<16x64xf32>
    %782 = tpu.matmul %781, %779, %cst_145 {dimension_numbers = #tpu.dot_dimension_numbers<[1], [0], [0], [1], [0, 0, 1, 1], [], []>} : vector<16x16xf32>, vector<16x64xf32>, vector<16x64xf32> -> vector<16x64xf32>
    %783 = arith.addf %773, %782 : vector<16x64xf32>
    %784 = vector.extract_strided_slice %715 {offsets = [0, 8], sizes = [16, 56], strides = [1, 1]} : vector<16x64xf32> to vector<16x56xf32>
    %785 = vector.extract_strided_slice %715 {offsets = [0, 0], sizes = [16, 8], strides = [1, 1]} : vector<16x64xf32> to vector<16x8xf32>
    %786 = tpu.concatenate %784, %785 in 1 : vector<16x56xf32>, vector<16x8xf32> -> vector<16x64xf32>
    %787 = vector.extract_strided_slice %717 {offsets = [7, 0], sizes = [1, 64], strides = [1, 1]} : vector<9x64xf32> to vector<1x64xf32>
    %788 = vector.broadcast %787 : vector<1x64xf32> to vector<16x64xf32>
    %789 = arith.mulf %786, %788 : vector<16x64xf32>
    %790 = vector.extract_strided_slice %716 {offsets = [7, 0, 0], sizes = [1, 16, 16], strides = [1, 1, 1]} : vector<9x16x16xf32> to vector<1x16x16xf32>
    %791 = vector.shape_cast %790 : vector<1x16x16xf32> to vector<16x16xf32>
    %cst_146 = arith.constant dense<0.000000e+00> : vector<16x64xf32>
    %792 = tpu.matmul %791, %789, %cst_146 {dimension_numbers = #tpu.dot_dimension_numbers<[1], [0], [0], [1], [0, 0, 1, 1], [], []>} : vector<16x16xf32>, vector<16x64xf32>, vector<16x64xf32> -> vector<16x64xf32>
    %793 = arith.addf %783, %792 : vector<16x64xf32>
    %794 = vector.extract_strided_slice %715 {offsets = [0, 9], sizes = [16, 55], strides = [1, 1]} : vector<16x64xf32> to vector<16x55xf32>
    %795 = vector.extract_strided_slice %715 {offsets = [0, 0], sizes = [16, 9], strides = [1, 1]} : vector<16x64xf32> to vector<16x9xf32>
    %796 = tpu.concatenate %794, %795 in 1 : vector<16x55xf32>, vector<16x9xf32> -> vector<16x64xf32>
    %797 = vector.extract_strided_slice %717 {offsets = [8, 0], sizes = [1, 64], strides = [1, 1]} : vector<9x64xf32> to vector<1x64xf32>
    %798 = vector.broadcast %797 : vector<1x64xf32> to vector<16x64xf32>
    %799 = arith.mulf %796, %798 : vector<16x64xf32>
    %800 = vector.extract_strided_slice %716 {offsets = [8, 0, 0], sizes = [1, 16, 16], strides = [1, 1, 1]} : vector<9x16x16xf32> to vector<1x16x16xf32>
    %801 = vector.shape_cast %800 : vector<1x16x16xf32> to vector<16x16xf32>
    %cst_147 = arith.constant dense<0.000000e+00> : vector<16x64xf32>
    %802 = tpu.matmul %801, %799, %cst_147 {dimension_numbers = #tpu.dot_dimension_numbers<[1], [0], [0], [1], [0, 0, 1, 1], [], []>} : vector<16x16xf32>, vector<16x64xf32>, vector<16x64xf32> -> vector<16x64xf32>
    %803 = arith.addf %793, %802 : vector<16x64xf32>
    %cst_148 = arith.constant 1.000000e-01 : f32
    %804 = vector.broadcast %cst_148 : f32 to vector<16x64xf32>
    %805 = arith.mulf %804, %803 : vector<16x64xf32>
    %806 = arith.subf %609, %805 : vector<16x64xf32>
    %c0_149 = arith.constant 0 : index
    %c0_150 = arith.constant 0 : index
    %807 = vector.load %arg12[%c0_149, %c0_150] : memref<64x256xf32, #tpu.memory_space<vmem>>, vector<64x256xf32>
    %cst_151 = arith.constant dense<0.000000e+00> : vector<16x256xf32>
    %808 = tpu.matmul %806, %807, %cst_151 {dimension_numbers = #tpu.dot_dimension_numbers<[1], [0], [0], [1], [0, 0, 1, 1], [], []>} : vector<16x64xf32>, vector<64x256xf32>, vector<16x256xf32> -> vector<16x256xf32>
    %c0_152 = arith.constant 0 : index
    %c0_153 = arith.constant 0 : index
    %c0_154 = arith.constant 0 : index
    %809 = vector.load %arg11[%c0_152, %c0_153, %c0_154] : memref<9x8x16xf32, #tpu.memory_space<vmem>>, vector<9x8x16xf32>
    %c0_155 = arith.constant 0 : index
    %c0_156 = arith.constant 0 : index
    %810 = vector.load %arg3[%c0_155, %c0_156] : memref<9x256xf32, #tpu.memory_space<vmem>>, vector<9x256xf32>
    %811 = vector.extract_strided_slice %808 {offsets = [0, 239], sizes = [16, 17], strides = [1, 1]} : vector<16x256xf32> to vector<16x17xf32>
    %812 = vector.extract_strided_slice %808 {offsets = [0, 0], sizes = [16, 239], strides = [1, 1]} : vector<16x256xf32> to vector<16x239xf32>
    %813 = tpu.concatenate %811, %812 in 1 : vector<16x17xf32>, vector<16x239xf32> -> vector<16x256xf32>
    %814 = vector.extract_strided_slice %810 {offsets = [0, 0], sizes = [1, 256], strides = [1, 1]} : vector<9x256xf32> to vector<1x256xf32>
    %815 = vector.broadcast %814 : vector<1x256xf32> to vector<16x256xf32>
    %816 = arith.mulf %813, %815 : vector<16x256xf32>
    %817 = vector.extract_strided_slice %809 {offsets = [0, 0, 0], sizes = [1, 8, 16], strides = [1, 1, 1]} : vector<9x8x16xf32> to vector<1x8x16xf32>
    %818 = vector.shape_cast %817 : vector<1x8x16xf32> to vector<8x16xf32>
    %cst_157 = arith.constant dense<0.000000e+00> : vector<8x256xf32>
    %819 = tpu.matmul %818, %816, %cst_157 {dimension_numbers = #tpu.dot_dimension_numbers<[1], [0], [0], [1], [0, 0, 1, 1], [], []>} : vector<8x16xf32>, vector<16x256xf32>, vector<8x256xf32> -> vector<8x256xf32>
    %820 = vector.extract_strided_slice %808 {offsets = [0, 240], sizes = [16, 16], strides = [1, 1]} : vector<16x256xf32> to vector<16x16xf32>
    %821 = vector.extract_strided_slice %808 {offsets = [0, 0], sizes = [16, 240], strides = [1, 1]} : vector<16x256xf32> to vector<16x240xf32>
    %822 = tpu.concatenate %820, %821 in 1 : vector<16x16xf32>, vector<16x240xf32> -> vector<16x256xf32>
    %823 = vector.extract_strided_slice %810 {offsets = [1, 0], sizes = [1, 256], strides = [1, 1]} : vector<9x256xf32> to vector<1x256xf32>
    %824 = vector.broadcast %823 : vector<1x256xf32> to vector<16x256xf32>
    %825 = arith.mulf %822, %824 : vector<16x256xf32>
    %826 = vector.extract_strided_slice %809 {offsets = [1, 0, 0], sizes = [1, 8, 16], strides = [1, 1, 1]} : vector<9x8x16xf32> to vector<1x8x16xf32>
    %827 = vector.shape_cast %826 : vector<1x8x16xf32> to vector<8x16xf32>
    %cst_158 = arith.constant dense<0.000000e+00> : vector<8x256xf32>
    %828 = tpu.matmul %827, %825, %cst_158 {dimension_numbers = #tpu.dot_dimension_numbers<[1], [0], [0], [1], [0, 0, 1, 1], [], []>} : vector<8x16xf32>, vector<16x256xf32>, vector<8x256xf32> -> vector<8x256xf32>
    %829 = arith.addf %819, %828 : vector<8x256xf32>
    %830 = vector.extract_strided_slice %808 {offsets = [0, 241], sizes = [16, 15], strides = [1, 1]} : vector<16x256xf32> to vector<16x15xf32>
    %831 = vector.extract_strided_slice %808 {offsets = [0, 0], sizes = [16, 241], strides = [1, 1]} : vector<16x256xf32> to vector<16x241xf32>
    %832 = tpu.concatenate %830, %831 in 1 : vector<16x15xf32>, vector<16x241xf32> -> vector<16x256xf32>
    %833 = vector.extract_strided_slice %810 {offsets = [2, 0], sizes = [1, 256], strides = [1, 1]} : vector<9x256xf32> to vector<1x256xf32>
    %834 = vector.broadcast %833 : vector<1x256xf32> to vector<16x256xf32>
    %835 = arith.mulf %832, %834 : vector<16x256xf32>
    %836 = vector.extract_strided_slice %809 {offsets = [2, 0, 0], sizes = [1, 8, 16], strides = [1, 1, 1]} : vector<9x8x16xf32> to vector<1x8x16xf32>
    %837 = vector.shape_cast %836 : vector<1x8x16xf32> to vector<8x16xf32>
    %cst_159 = arith.constant dense<0.000000e+00> : vector<8x256xf32>
    %838 = tpu.matmul %837, %835, %cst_159 {dimension_numbers = #tpu.dot_dimension_numbers<[1], [0], [0], [1], [0, 0, 1, 1], [], []>} : vector<8x16xf32>, vector<16x256xf32>, vector<8x256xf32> -> vector<8x256xf32>
    %839 = arith.addf %829, %838 : vector<8x256xf32>
    %840 = vector.extract_strided_slice %808 {offsets = [0, 255], sizes = [16, 1], strides = [1, 1]} : vector<16x256xf32> to vector<16x1xf32>
    %841 = vector.extract_strided_slice %808 {offsets = [0, 0], sizes = [16, 255], strides = [1, 1]} : vector<16x256xf32> to vector<16x255xf32>
    %842 = tpu.concatenate %840, %841 in 1 : vector<16x1xf32>, vector<16x255xf32> -> vector<16x256xf32>
    %843 = vector.extract_strided_slice %810 {offsets = [3, 0], sizes = [1, 256], strides = [1, 1]} : vector<9x256xf32> to vector<1x256xf32>
    %844 = vector.broadcast %843 : vector<1x256xf32> to vector<16x256xf32>
    %845 = arith.mulf %842, %844 : vector<16x256xf32>
    %846 = vector.extract_strided_slice %809 {offsets = [3, 0, 0], sizes = [1, 8, 16], strides = [1, 1, 1]} : vector<9x8x16xf32> to vector<1x8x16xf32>
    %847 = vector.shape_cast %846 : vector<1x8x16xf32> to vector<8x16xf32>
    %cst_160 = arith.constant dense<0.000000e+00> : vector<8x256xf32>
    %848 = tpu.matmul %847, %845, %cst_160 {dimension_numbers = #tpu.dot_dimension_numbers<[1], [0], [0], [1], [0, 0, 1, 1], [], []>} : vector<8x16xf32>, vector<16x256xf32>, vector<8x256xf32> -> vector<8x256xf32>
    %849 = arith.addf %839, %848 : vector<8x256xf32>
    %850 = vector.extract_strided_slice %810 {offsets = [4, 0], sizes = [1, 256], strides = [1, 1]} : vector<9x256xf32> to vector<1x256xf32>
    %851 = vector.broadcast %850 : vector<1x256xf32> to vector<16x256xf32>
    %852 = arith.mulf %808, %851 : vector<16x256xf32>
    %853 = vector.extract_strided_slice %809 {offsets = [4, 0, 0], sizes = [1, 8, 16], strides = [1, 1, 1]} : vector<9x8x16xf32> to vector<1x8x16xf32>
    %854 = vector.shape_cast %853 : vector<1x8x16xf32> to vector<8x16xf32>
    %cst_161 = arith.constant dense<0.000000e+00> : vector<8x256xf32>
    %855 = tpu.matmul %854, %852, %cst_161 {dimension_numbers = #tpu.dot_dimension_numbers<[1], [0], [0], [1], [0, 0, 1, 1], [], []>} : vector<8x16xf32>, vector<16x256xf32>, vector<8x256xf32> -> vector<8x256xf32>
    %856 = arith.addf %849, %855 : vector<8x256xf32>
    %857 = vector.extract_strided_slice %808 {offsets = [0, 1], sizes = [16, 255], strides = [1, 1]} : vector<16x256xf32> to vector<16x255xf32>
    %858 = vector.extract_strided_slice %808 {offsets = [0, 0], sizes = [16, 1], strides = [1, 1]} : vector<16x256xf32> to vector<16x1xf32>
    %859 = tpu.concatenate %857, %858 in 1 : vector<16x255xf32>, vector<16x1xf32> -> vector<16x256xf32>
    %860 = vector.extract_strided_slice %810 {offsets = [5, 0], sizes = [1, 256], strides = [1, 1]} : vector<9x256xf32> to vector<1x256xf32>
    %861 = vector.broadcast %860 : vector<1x256xf32> to vector<16x256xf32>
    %862 = arith.mulf %859, %861 : vector<16x256xf32>
    %863 = vector.extract_strided_slice %809 {offsets = [5, 0, 0], sizes = [1, 8, 16], strides = [1, 1, 1]} : vector<9x8x16xf32> to vector<1x8x16xf32>
    %864 = vector.shape_cast %863 : vector<1x8x16xf32> to vector<8x16xf32>
    %cst_162 = arith.constant dense<0.000000e+00> : vector<8x256xf32>
    %865 = tpu.matmul %864, %862, %cst_162 {dimension_numbers = #tpu.dot_dimension_numbers<[1], [0], [0], [1], [0, 0, 1, 1], [], []>} : vector<8x16xf32>, vector<16x256xf32>, vector<8x256xf32> -> vector<8x256xf32>
    %866 = arith.addf %856, %865 : vector<8x256xf32>
    %867 = vector.extract_strided_slice %808 {offsets = [0, 15], sizes = [16, 241], strides = [1, 1]} : vector<16x256xf32> to vector<16x241xf32>
    %868 = vector.extract_strided_slice %808 {offsets = [0, 0], sizes = [16, 15], strides = [1, 1]} : vector<16x256xf32> to vector<16x15xf32>
    %869 = tpu.concatenate %867, %868 in 1 : vector<16x241xf32>, vector<16x15xf32> -> vector<16x256xf32>
    %870 = vector.extract_strided_slice %810 {offsets = [6, 0], sizes = [1, 256], strides = [1, 1]} : vector<9x256xf32> to vector<1x256xf32>
    %871 = vector.broadcast %870 : vector<1x256xf32> to vector<16x256xf32>
    %872 = arith.mulf %869, %871 : vector<16x256xf32>
    %873 = vector.extract_strided_slice %809 {offsets = [6, 0, 0], sizes = [1, 8, 16], strides = [1, 1, 1]} : vector<9x8x16xf32> to vector<1x8x16xf32>
    %874 = vector.shape_cast %873 : vector<1x8x16xf32> to vector<8x16xf32>
    %cst_163 = arith.constant dense<0.000000e+00> : vector<8x256xf32>
    %875 = tpu.matmul %874, %872, %cst_163 {dimension_numbers = #tpu.dot_dimension_numbers<[1], [0], [0], [1], [0, 0, 1, 1], [], []>} : vector<8x16xf32>, vector<16x256xf32>, vector<8x256xf32> -> vector<8x256xf32>
    %876 = arith.addf %866, %875 : vector<8x256xf32>
    %877 = vector.extract_strided_slice %808 {offsets = [0, 16], sizes = [16, 240], strides = [1, 1]} : vector<16x256xf32> to vector<16x240xf32>
    %878 = vector.extract_strided_slice %808 {offsets = [0, 0], sizes = [16, 16], strides = [1, 1]} : vector<16x256xf32> to vector<16x16xf32>
    %879 = tpu.concatenate %877, %878 in 1 : vector<16x240xf32>, vector<16x16xf32> -> vector<16x256xf32>
    %880 = vector.extract_strided_slice %810 {offsets = [7, 0], sizes = [1, 256], strides = [1, 1]} : vector<9x256xf32> to vector<1x256xf32>
    %881 = vector.broadcast %880 : vector<1x256xf32> to vector<16x256xf32>
    %882 = arith.mulf %879, %881 : vector<16x256xf32>
    %883 = vector.extract_strided_slice %809 {offsets = [7, 0, 0], sizes = [1, 8, 16], strides = [1, 1, 1]} : vector<9x8x16xf32> to vector<1x8x16xf32>
    %884 = vector.shape_cast %883 : vector<1x8x16xf32> to vector<8x16xf32>
    %cst_164 = arith.constant dense<0.000000e+00> : vector<8x256xf32>
    %885 = tpu.matmul %884, %882, %cst_164 {dimension_numbers = #tpu.dot_dimension_numbers<[1], [0], [0], [1], [0, 0, 1, 1], [], []>} : vector<8x16xf32>, vector<16x256xf32>, vector<8x256xf32> -> vector<8x256xf32>
    %886 = arith.addf %876, %885 : vector<8x256xf32>
    %887 = vector.extract_strided_slice %808 {offsets = [0, 17], sizes = [16, 239], strides = [1, 1]} : vector<16x256xf32> to vector<16x239xf32>
    %888 = vector.extract_strided_slice %808 {offsets = [0, 0], sizes = [16, 17], strides = [1, 1]} : vector<16x256xf32> to vector<16x17xf32>
    %889 = tpu.concatenate %887, %888 in 1 : vector<16x239xf32>, vector<16x17xf32> -> vector<16x256xf32>
    %890 = vector.extract_strided_slice %810 {offsets = [8, 0], sizes = [1, 256], strides = [1, 1]} : vector<9x256xf32> to vector<1x256xf32>
    %891 = vector.broadcast %890 : vector<1x256xf32> to vector<16x256xf32>
    %892 = arith.mulf %889, %891 : vector<16x256xf32>
    %893 = vector.extract_strided_slice %809 {offsets = [8, 0, 0], sizes = [1, 8, 16], strides = [1, 1, 1]} : vector<9x8x16xf32> to vector<1x8x16xf32>
    %894 = vector.shape_cast %893 : vector<1x8x16xf32> to vector<8x16xf32>
    %cst_165 = arith.constant dense<0.000000e+00> : vector<8x256xf32>
    %895 = tpu.matmul %894, %892, %cst_165 {dimension_numbers = #tpu.dot_dimension_numbers<[1], [0], [0], [1], [0, 0, 1, 1], [], []>} : vector<8x16xf32>, vector<16x256xf32>, vector<8x256xf32> -> vector<8x256xf32>
    %896 = arith.addf %886, %895 : vector<8x256xf32>
    %cst_166 = arith.constant dense<0.000000e+00> : vector<8xf32>
    %897 = vector.multi_reduction <add>, %896, %cst_166 [1] : vector<8x256xf32> to vector<8xf32>
    %898 = vector.shape_cast %897 : vector<8xf32> to vector<8x1xf32>
    %cst_167 = arith.constant 3.906250e-03 : f32
    %899 = vector.broadcast %cst_167 : f32 to vector<8x1xf32>
    %900 = arith.mulf %898, %899 : vector<8x1xf32>
    %901 = vector.broadcast %900 : vector<8x1xf32> to vector<8x256xf32>
    %902 = arith.subf %896, %901 : vector<8x256xf32>
    %903 = arith.mulf %902, %902 : vector<8x256xf32>
    %cst_168 = arith.constant dense<0.000000e+00> : vector<8xf32>
    %904 = vector.multi_reduction <add>, %903, %cst_168 [1] : vector<8x256xf32> to vector<8xf32>
    %905 = vector.shape_cast %904 : vector<8xf32> to vector<8x1xf32>
    %cst_169 = arith.constant 3.906250e-03 : f32
    %906 = vector.broadcast %cst_169 : f32 to vector<8x1xf32>
    %907 = arith.mulf %905, %906 : vector<8x1xf32>
    %cst_170 = arith.constant 9.99999974E-6 : f32
    %908 = vector.broadcast %cst_170 : f32 to vector<8x1xf32>
    %909 = arith.addf %907, %908 : vector<8x1xf32>
    %910 = math.rsqrt %909 : vector<8x1xf32>
    %911 = vector.broadcast %910 : vector<8x1xf32> to vector<8x256xf32>
    %912 = arith.mulf %902, %911 : vector<8x256xf32>
    %cst_171 = arith.constant 0.000000e+00 : f32
    %913 = vector.broadcast %cst_171 : f32 to vector<8x256xf32>
    %914 = arith.maximumf %912, %913 : vector<8x256xf32>
    %915 = arith.addf %914, %304 : vector<8x256xf32>
    %c0_172 = arith.constant 0 : index
    %c0_173 = arith.constant 0 : index
    %c0_174 = arith.constant 0 : index
    %916 = vector.load %arg5[%c0_172, %c0_173, %c0_174] : memref<9x8x8xf32, #tpu.memory_space<vmem>>, vector<9x8x8xf32>
    %c0_175 = arith.constant 0 : index
    %c0_176 = arith.constant 0 : index
    %917 = vector.load %arg3[%c0_175, %c0_176] : memref<9x256xf32, #tpu.memory_space<vmem>>, vector<9x256xf32>
    %918 = vector.extract_strided_slice %915 {offsets = [0, 239], sizes = [8, 17], strides = [1, 1]} : vector<8x256xf32> to vector<8x17xf32>
    %919 = vector.extract_strided_slice %915 {offsets = [0, 0], sizes = [8, 239], strides = [1, 1]} : vector<8x256xf32> to vector<8x239xf32>
    %920 = tpu.concatenate %918, %919 in 1 : vector<8x17xf32>, vector<8x239xf32> -> vector<8x256xf32>
    %921 = vector.extract_strided_slice %917 {offsets = [0, 0], sizes = [1, 256], strides = [1, 1]} : vector<9x256xf32> to vector<1x256xf32>
    %922 = vector.broadcast %921 : vector<1x256xf32> to vector<8x256xf32>
    %923 = arith.mulf %920, %922 : vector<8x256xf32>
    %924 = vector.extract_strided_slice %916 {offsets = [0, 0, 0], sizes = [1, 8, 8], strides = [1, 1, 1]} : vector<9x8x8xf32> to vector<1x8x8xf32>
    %925 = vector.shape_cast %924 : vector<1x8x8xf32> to vector<8x8xf32>
    %cst_177 = arith.constant dense<0.000000e+00> : vector<8x256xf32>
    %926 = tpu.matmul %925, %923, %cst_177 {dimension_numbers = #tpu.dot_dimension_numbers<[1], [0], [0], [1], [0, 0, 1, 1], [], []>} : vector<8x8xf32>, vector<8x256xf32>, vector<8x256xf32> -> vector<8x256xf32>
    %927 = vector.extract_strided_slice %915 {offsets = [0, 240], sizes = [8, 16], strides = [1, 1]} : vector<8x256xf32> to vector<8x16xf32>
    %928 = vector.extract_strided_slice %915 {offsets = [0, 0], sizes = [8, 240], strides = [1, 1]} : vector<8x256xf32> to vector<8x240xf32>
    %929 = tpu.concatenate %927, %928 in 1 : vector<8x16xf32>, vector<8x240xf32> -> vector<8x256xf32>
    %930 = vector.extract_strided_slice %917 {offsets = [1, 0], sizes = [1, 256], strides = [1, 1]} : vector<9x256xf32> to vector<1x256xf32>
    %931 = vector.broadcast %930 : vector<1x256xf32> to vector<8x256xf32>
    %932 = arith.mulf %929, %931 : vector<8x256xf32>
    %933 = vector.extract_strided_slice %916 {offsets = [1, 0, 0], sizes = [1, 8, 8], strides = [1, 1, 1]} : vector<9x8x8xf32> to vector<1x8x8xf32>
    %934 = vector.shape_cast %933 : vector<1x8x8xf32> to vector<8x8xf32>
    %cst_178 = arith.constant dense<0.000000e+00> : vector<8x256xf32>
    %935 = tpu.matmul %934, %932, %cst_178 {dimension_numbers = #tpu.dot_dimension_numbers<[1], [0], [0], [1], [0, 0, 1, 1], [], []>} : vector<8x8xf32>, vector<8x256xf32>, vector<8x256xf32> -> vector<8x256xf32>
    %936 = arith.addf %926, %935 : vector<8x256xf32>
    %937 = vector.extract_strided_slice %915 {offsets = [0, 241], sizes = [8, 15], strides = [1, 1]} : vector<8x256xf32> to vector<8x15xf32>
    %938 = vector.extract_strided_slice %915 {offsets = [0, 0], sizes = [8, 241], strides = [1, 1]} : vector<8x256xf32> to vector<8x241xf32>
    %939 = tpu.concatenate %937, %938 in 1 : vector<8x15xf32>, vector<8x241xf32> -> vector<8x256xf32>
    %940 = vector.extract_strided_slice %917 {offsets = [2, 0], sizes = [1, 256], strides = [1, 1]} : vector<9x256xf32> to vector<1x256xf32>
    %941 = vector.broadcast %940 : vector<1x256xf32> to vector<8x256xf32>
    %942 = arith.mulf %939, %941 : vector<8x256xf32>
    %943 = vector.extract_strided_slice %916 {offsets = [2, 0, 0], sizes = [1, 8, 8], strides = [1, 1, 1]} : vector<9x8x8xf32> to vector<1x8x8xf32>
    %944 = vector.shape_cast %943 : vector<1x8x8xf32> to vector<8x8xf32>
    %cst_179 = arith.constant dense<0.000000e+00> : vector<8x256xf32>
    %945 = tpu.matmul %944, %942, %cst_179 {dimension_numbers = #tpu.dot_dimension_numbers<[1], [0], [0], [1], [0, 0, 1, 1], [], []>} : vector<8x8xf32>, vector<8x256xf32>, vector<8x256xf32> -> vector<8x256xf32>
    %946 = arith.addf %936, %945 : vector<8x256xf32>
    %947 = vector.extract_strided_slice %915 {offsets = [0, 255], sizes = [8, 1], strides = [1, 1]} : vector<8x256xf32> to vector<8x1xf32>
    %948 = vector.extract_strided_slice %915 {offsets = [0, 0], sizes = [8, 255], strides = [1, 1]} : vector<8x256xf32> to vector<8x255xf32>
    %949 = tpu.concatenate %947, %948 in 1 : vector<8x1xf32>, vector<8x255xf32> -> vector<8x256xf32>
    %950 = vector.extract_strided_slice %917 {offsets = [3, 0], sizes = [1, 256], strides = [1, 1]} : vector<9x256xf32> to vector<1x256xf32>
    %951 = vector.broadcast %950 : vector<1x256xf32> to vector<8x256xf32>
    %952 = arith.mulf %949, %951 : vector<8x256xf32>
    %953 = vector.extract_strided_slice %916 {offsets = [3, 0, 0], sizes = [1, 8, 8], strides = [1, 1, 1]} : vector<9x8x8xf32> to vector<1x8x8xf32>
    %954 = vector.shape_cast %953 : vector<1x8x8xf32> to vector<8x8xf32>
    %cst_180 = arith.constant dense<0.000000e+00> : vector<8x256xf32>
    %955 = tpu.matmul %954, %952, %cst_180 {dimension_numbers = #tpu.dot_dimension_numbers<[1], [0], [0], [1], [0, 0, 1, 1], [], []>} : vector<8x8xf32>, vector<8x256xf32>, vector<8x256xf32> -> vector<8x256xf32>
    %956 = arith.addf %946, %955 : vector<8x256xf32>
    %957 = vector.extract_strided_slice %917 {offsets = [4, 0], sizes = [1, 256], strides = [1, 1]} : vector<9x256xf32> to vector<1x256xf32>
    %958 = vector.broadcast %957 : vector<1x256xf32> to vector<8x256xf32>
    %959 = arith.mulf %915, %958 : vector<8x256xf32>
    %960 = vector.extract_strided_slice %916 {offsets = [4, 0, 0], sizes = [1, 8, 8], strides = [1, 1, 1]} : vector<9x8x8xf32> to vector<1x8x8xf32>
    %961 = vector.shape_cast %960 : vector<1x8x8xf32> to vector<8x8xf32>
    %cst_181 = arith.constant dense<0.000000e+00> : vector<8x256xf32>
    %962 = tpu.matmul %961, %959, %cst_181 {dimension_numbers = #tpu.dot_dimension_numbers<[1], [0], [0], [1], [0, 0, 1, 1], [], []>} : vector<8x8xf32>, vector<8x256xf32>, vector<8x256xf32> -> vector<8x256xf32>
    %963 = arith.addf %956, %962 : vector<8x256xf32>
    %964 = vector.extract_strided_slice %915 {offsets = [0, 1], sizes = [8, 255], strides = [1, 1]} : vector<8x256xf32> to vector<8x255xf32>
    %965 = vector.extract_strided_slice %915 {offsets = [0, 0], sizes = [8, 1], strides = [1, 1]} : vector<8x256xf32> to vector<8x1xf32>
    %966 = tpu.concatenate %964, %965 in 1 : vector<8x255xf32>, vector<8x1xf32> -> vector<8x256xf32>
    %967 = vector.extract_strided_slice %917 {offsets = [5, 0], sizes = [1, 256], strides = [1, 1]} : vector<9x256xf32> to vector<1x256xf32>
    %968 = vector.broadcast %967 : vector<1x256xf32> to vector<8x256xf32>
    %969 = arith.mulf %966, %968 : vector<8x256xf32>
    %970 = vector.extract_strided_slice %916 {offsets = [5, 0, 0], sizes = [1, 8, 8], strides = [1, 1, 1]} : vector<9x8x8xf32> to vector<1x8x8xf32>
    %971 = vector.shape_cast %970 : vector<1x8x8xf32> to vector<8x8xf32>
    %cst_182 = arith.constant dense<0.000000e+00> : vector<8x256xf32>
    %972 = tpu.matmul %971, %969, %cst_182 {dimension_numbers = #tpu.dot_dimension_numbers<[1], [0], [0], [1], [0, 0, 1, 1], [], []>} : vector<8x8xf32>, vector<8x256xf32>, vector<8x256xf32> -> vector<8x256xf32>
    %973 = arith.addf %963, %972 : vector<8x256xf32>
    %974 = vector.extract_strided_slice %915 {offsets = [0, 15], sizes = [8, 241], strides = [1, 1]} : vector<8x256xf32> to vector<8x241xf32>
    %975 = vector.extract_strided_slice %915 {offsets = [0, 0], sizes = [8, 15], strides = [1, 1]} : vector<8x256xf32> to vector<8x15xf32>
    %976 = tpu.concatenate %974, %975 in 1 : vector<8x241xf32>, vector<8x15xf32> -> vector<8x256xf32>
    %977 = vector.extract_strided_slice %917 {offsets = [6, 0], sizes = [1, 256], strides = [1, 1]} : vector<9x256xf32> to vector<1x256xf32>
    %978 = vector.broadcast %977 : vector<1x256xf32> to vector<8x256xf32>
    %979 = arith.mulf %976, %978 : vector<8x256xf32>
    %980 = vector.extract_strided_slice %916 {offsets = [6, 0, 0], sizes = [1, 8, 8], strides = [1, 1, 1]} : vector<9x8x8xf32> to vector<1x8x8xf32>
    %981 = vector.shape_cast %980 : vector<1x8x8xf32> to vector<8x8xf32>
    %cst_183 = arith.constant dense<0.000000e+00> : vector<8x256xf32>
    %982 = tpu.matmul %981, %979, %cst_183 {dimension_numbers = #tpu.dot_dimension_numbers<[1], [0], [0], [1], [0, 0, 1, 1], [], []>} : vector<8x8xf32>, vector<8x256xf32>, vector<8x256xf32> -> vector<8x256xf32>
    %983 = arith.addf %973, %982 : vector<8x256xf32>
    %984 = vector.extract_strided_slice %915 {offsets = [0, 16], sizes = [8, 240], strides = [1, 1]} : vector<8x256xf32> to vector<8x240xf32>
    %985 = vector.extract_strided_slice %915 {offsets = [0, 0], sizes = [8, 16], strides = [1, 1]} : vector<8x256xf32> to vector<8x16xf32>
    %986 = tpu.concatenate %984, %985 in 1 : vector<8x240xf32>, vector<8x16xf32> -> vector<8x256xf32>
    %987 = vector.extract_strided_slice %917 {offsets = [7, 0], sizes = [1, 256], strides = [1, 1]} : vector<9x256xf32> to vector<1x256xf32>
    %988 = vector.broadcast %987 : vector<1x256xf32> to vector<8x256xf32>
    %989 = arith.mulf %986, %988 : vector<8x256xf32>
    %990 = vector.extract_strided_slice %916 {offsets = [7, 0, 0], sizes = [1, 8, 8], strides = [1, 1, 1]} : vector<9x8x8xf32> to vector<1x8x8xf32>
    %991 = vector.shape_cast %990 : vector<1x8x8xf32> to vector<8x8xf32>
    %cst_184 = arith.constant dense<0.000000e+00> : vector<8x256xf32>
    %992 = tpu.matmul %991, %989, %cst_184 {dimension_numbers = #tpu.dot_dimension_numbers<[1], [0], [0], [1], [0, 0, 1, 1], [], []>} : vector<8x8xf32>, vector<8x256xf32>, vector<8x256xf32> -> vector<8x256xf32>
    %993 = arith.addf %983, %992 : vector<8x256xf32>
    %994 = vector.extract_strided_slice %915 {offsets = [0, 17], sizes = [8, 239], strides = [1, 1]} : vector<8x256xf32> to vector<8x239xf32>
    %995 = vector.extract_strided_slice %915 {offsets = [0, 0], sizes = [8, 17], strides = [1, 1]} : vector<8x256xf32> to vector<8x17xf32>
    %996 = tpu.concatenate %994, %995 in 1 : vector<8x239xf32>, vector<8x17xf32> -> vector<8x256xf32>
    %997 = vector.extract_strided_slice %917 {offsets = [8, 0], sizes = [1, 256], strides = [1, 1]} : vector<9x256xf32> to vector<1x256xf32>
    %998 = vector.broadcast %997 : vector<1x256xf32> to vector<8x256xf32>
    %999 = arith.mulf %996, %998 : vector<8x256xf32>
    %1000 = vector.extract_strided_slice %916 {offsets = [8, 0, 0], sizes = [1, 8, 8], strides = [1, 1, 1]} : vector<9x8x8xf32> to vector<1x8x8xf32>
    %1001 = vector.shape_cast %1000 : vector<1x8x8xf32> to vector<8x8xf32>
    %cst_185 = arith.constant dense<0.000000e+00> : vector<8x256xf32>
    %1002 = tpu.matmul %1001, %999, %cst_185 {dimension_numbers = #tpu.dot_dimension_numbers<[1], [0], [0], [1], [0, 0, 1, 1], [], []>} : vector<8x8xf32>, vector<8x256xf32>, vector<8x256xf32> -> vector<8x256xf32>
    %1003 = arith.addf %993, %1002 : vector<8x256xf32>
    %cst_186 = arith.constant dense<0.000000e+00> : vector<8xf32>
    %1004 = vector.multi_reduction <add>, %1003, %cst_186 [1] : vector<8x256xf32> to vector<8xf32>
    %1005 = vector.shape_cast %1004 : vector<8xf32> to vector<8x1xf32>
    %cst_187 = arith.constant 3.906250e-03 : f32
    %1006 = vector.broadcast %cst_187 : f32 to vector<8x1xf32>
    %1007 = arith.mulf %1005, %1006 : vector<8x1xf32>
    %1008 = vector.broadcast %1007 : vector<8x1xf32> to vector<8x256xf32>
    %1009 = arith.subf %1003, %1008 : vector<8x256xf32>
    %1010 = arith.mulf %1009, %1009 : vector<8x256xf32>
    %cst_188 = arith.constant dense<0.000000e+00> : vector<8xf32>
    %1011 = vector.multi_reduction <add>, %1010, %cst_188 [1] : vector<8x256xf32> to vector<8xf32>
    %1012 = vector.shape_cast %1011 : vector<8xf32> to vector<8x1xf32>
    %cst_189 = arith.constant 3.906250e-03 : f32
    %1013 = vector.broadcast %cst_189 : f32 to vector<8x1xf32>
    %1014 = arith.mulf %1012, %1013 : vector<8x1xf32>
    %cst_190 = arith.constant 9.99999974E-6 : f32
    %1015 = vector.broadcast %cst_190 : f32 to vector<8x1xf32>
    %1016 = arith.addf %1014, %1015 : vector<8x1xf32>
    %1017 = math.rsqrt %1016 : vector<8x1xf32>
    %1018 = vector.broadcast %1017 : vector<8x1xf32> to vector<8x256xf32>
    %1019 = arith.mulf %1009, %1018 : vector<8x256xf32>
    %cst_191 = arith.constant 0.000000e+00 : f32
    %1020 = vector.broadcast %cst_191 : f32 to vector<8x256xf32>
    %1021 = arith.maximumf %1019, %1020 : vector<8x256xf32>
    %c0_192 = arith.constant 0 : index
    %c0_193 = arith.constant 0 : index
    %c0_194 = arith.constant 0 : index
    %1022 = vector.load %arg4[%c0_192, %c0_193, %c0_194] : memref<9x8x8xf32, #tpu.memory_space<vmem>>, vector<9x8x8xf32>
    %c0_195 = arith.constant 0 : index
    %c0_196 = arith.constant 0 : index
    %1023 = vector.load %arg3[%c0_195, %c0_196] : memref<9x256xf32, #tpu.memory_space<vmem>>, vector<9x256xf32>
    %1024 = vector.extract_strided_slice %1021 {offsets = [0, 239], sizes = [8, 17], strides = [1, 1]} : vector<8x256xf32> to vector<8x17xf32>
    %1025 = vector.extract_strided_slice %1021 {offsets = [0, 0], sizes = [8, 239], strides = [1, 1]} : vector<8x256xf32> to vector<8x239xf32>
    %1026 = tpu.concatenate %1024, %1025 in 1 : vector<8x17xf32>, vector<8x239xf32> -> vector<8x256xf32>
    %1027 = vector.extract_strided_slice %1023 {offsets = [0, 0], sizes = [1, 256], strides = [1, 1]} : vector<9x256xf32> to vector<1x256xf32>
    %1028 = vector.broadcast %1027 : vector<1x256xf32> to vector<8x256xf32>
    %1029 = arith.mulf %1026, %1028 : vector<8x256xf32>
    %1030 = vector.extract_strided_slice %1022 {offsets = [0, 0, 0], sizes = [1, 8, 8], strides = [1, 1, 1]} : vector<9x8x8xf32> to vector<1x8x8xf32>
    %1031 = vector.shape_cast %1030 : vector<1x8x8xf32> to vector<8x8xf32>
    %cst_197 = arith.constant dense<0.000000e+00> : vector<8x256xf32>
    %1032 = tpu.matmul %1031, %1029, %cst_197 {dimension_numbers = #tpu.dot_dimension_numbers<[1], [0], [0], [1], [0, 0, 1, 1], [], []>} : vector<8x8xf32>, vector<8x256xf32>, vector<8x256xf32> -> vector<8x256xf32>
    %1033 = vector.extract_strided_slice %1021 {offsets = [0, 240], sizes = [8, 16], strides = [1, 1]} : vector<8x256xf32> to vector<8x16xf32>
    %1034 = vector.extract_strided_slice %1021 {offsets = [0, 0], sizes = [8, 240], strides = [1, 1]} : vector<8x256xf32> to vector<8x240xf32>
    %1035 = tpu.concatenate %1033, %1034 in 1 : vector<8x16xf32>, vector<8x240xf32> -> vector<8x256xf32>
    %1036 = vector.extract_strided_slice %1023 {offsets = [1, 0], sizes = [1, 256], strides = [1, 1]} : vector<9x256xf32> to vector<1x256xf32>
    %1037 = vector.broadcast %1036 : vector<1x256xf32> to vector<8x256xf32>
    %1038 = arith.mulf %1035, %1037 : vector<8x256xf32>
    %1039 = vector.extract_strided_slice %1022 {offsets = [1, 0, 0], sizes = [1, 8, 8], strides = [1, 1, 1]} : vector<9x8x8xf32> to vector<1x8x8xf32>
    %1040 = vector.shape_cast %1039 : vector<1x8x8xf32> to vector<8x8xf32>
    %cst_198 = arith.constant dense<0.000000e+00> : vector<8x256xf32>
    %1041 = tpu.matmul %1040, %1038, %cst_198 {dimension_numbers = #tpu.dot_dimension_numbers<[1], [0], [0], [1], [0, 0, 1, 1], [], []>} : vector<8x8xf32>, vector<8x256xf32>, vector<8x256xf32> -> vector<8x256xf32>
    %1042 = arith.addf %1032, %1041 : vector<8x256xf32>
    %1043 = vector.extract_strided_slice %1021 {offsets = [0, 241], sizes = [8, 15], strides = [1, 1]} : vector<8x256xf32> to vector<8x15xf32>
    %1044 = vector.extract_strided_slice %1021 {offsets = [0, 0], sizes = [8, 241], strides = [1, 1]} : vector<8x256xf32> to vector<8x241xf32>
    %1045 = tpu.concatenate %1043, %1044 in 1 : vector<8x15xf32>, vector<8x241xf32> -> vector<8x256xf32>
    %1046 = vector.extract_strided_slice %1023 {offsets = [2, 0], sizes = [1, 256], strides = [1, 1]} : vector<9x256xf32> to vector<1x256xf32>
    %1047 = vector.broadcast %1046 : vector<1x256xf32> to vector<8x256xf32>
    %1048 = arith.mulf %1045, %1047 : vector<8x256xf32>
    %1049 = vector.extract_strided_slice %1022 {offsets = [2, 0, 0], sizes = [1, 8, 8], strides = [1, 1, 1]} : vector<9x8x8xf32> to vector<1x8x8xf32>
    %1050 = vector.shape_cast %1049 : vector<1x8x8xf32> to vector<8x8xf32>
    %cst_199 = arith.constant dense<0.000000e+00> : vector<8x256xf32>
    %1051 = tpu.matmul %1050, %1048, %cst_199 {dimension_numbers = #tpu.dot_dimension_numbers<[1], [0], [0], [1], [0, 0, 1, 1], [], []>} : vector<8x8xf32>, vector<8x256xf32>, vector<8x256xf32> -> vector<8x256xf32>
    %1052 = arith.addf %1042, %1051 : vector<8x256xf32>
    %1053 = vector.extract_strided_slice %1021 {offsets = [0, 255], sizes = [8, 1], strides = [1, 1]} : vector<8x256xf32> to vector<8x1xf32>
    %1054 = vector.extract_strided_slice %1021 {offsets = [0, 0], sizes = [8, 255], strides = [1, 1]} : vector<8x256xf32> to vector<8x255xf32>
    %1055 = tpu.concatenate %1053, %1054 in 1 : vector<8x1xf32>, vector<8x255xf32> -> vector<8x256xf32>
    %1056 = vector.extract_strided_slice %1023 {offsets = [3, 0], sizes = [1, 256], strides = [1, 1]} : vector<9x256xf32> to vector<1x256xf32>
    %1057 = vector.broadcast %1056 : vector<1x256xf32> to vector<8x256xf32>
    %1058 = arith.mulf %1055, %1057 : vector<8x256xf32>
    %1059 = vector.extract_strided_slice %1022 {offsets = [3, 0, 0], sizes = [1, 8, 8], strides = [1, 1, 1]} : vector<9x8x8xf32> to vector<1x8x8xf32>
    %1060 = vector.shape_cast %1059 : vector<1x8x8xf32> to vector<8x8xf32>
    %cst_200 = arith.constant dense<0.000000e+00> : vector<8x256xf32>
    %1061 = tpu.matmul %1060, %1058, %cst_200 {dimension_numbers = #tpu.dot_dimension_numbers<[1], [0], [0], [1], [0, 0, 1, 1], [], []>} : vector<8x8xf32>, vector<8x256xf32>, vector<8x256xf32> -> vector<8x256xf32>
    %1062 = arith.addf %1052, %1061 : vector<8x256xf32>
    %1063 = vector.extract_strided_slice %1023 {offsets = [4, 0], sizes = [1, 256], strides = [1, 1]} : vector<9x256xf32> to vector<1x256xf32>
    %1064 = vector.broadcast %1063 : vector<1x256xf32> to vector<8x256xf32>
    %1065 = arith.mulf %1021, %1064 : vector<8x256xf32>
    %1066 = vector.extract_strided_slice %1022 {offsets = [4, 0, 0], sizes = [1, 8, 8], strides = [1, 1, 1]} : vector<9x8x8xf32> to vector<1x8x8xf32>
    %1067 = vector.shape_cast %1066 : vector<1x8x8xf32> to vector<8x8xf32>
    %cst_201 = arith.constant dense<0.000000e+00> : vector<8x256xf32>
    %1068 = tpu.matmul %1067, %1065, %cst_201 {dimension_numbers = #tpu.dot_dimension_numbers<[1], [0], [0], [1], [0, 0, 1, 1], [], []>} : vector<8x8xf32>, vector<8x256xf32>, vector<8x256xf32> -> vector<8x256xf32>
    %1069 = arith.addf %1062, %1068 : vector<8x256xf32>
    %1070 = vector.extract_strided_slice %1021 {offsets = [0, 1], sizes = [8, 255], strides = [1, 1]} : vector<8x256xf32> to vector<8x255xf32>
    %1071 = vector.extract_strided_slice %1021 {offsets = [0, 0], sizes = [8, 1], strides = [1, 1]} : vector<8x256xf32> to vector<8x1xf32>
    %1072 = tpu.concatenate %1070, %1071 in 1 : vector<8x255xf32>, vector<8x1xf32> -> vector<8x256xf32>
    %1073 = vector.extract_strided_slice %1023 {offsets = [5, 0], sizes = [1, 256], strides = [1, 1]} : vector<9x256xf32> to vector<1x256xf32>
    %1074 = vector.broadcast %1073 : vector<1x256xf32> to vector<8x256xf32>
    %1075 = arith.mulf %1072, %1074 : vector<8x256xf32>
    %1076 = vector.extract_strided_slice %1022 {offsets = [5, 0, 0], sizes = [1, 8, 8], strides = [1, 1, 1]} : vector<9x8x8xf32> to vector<1x8x8xf32>
    %1077 = vector.shape_cast %1076 : vector<1x8x8xf32> to vector<8x8xf32>
    %cst_202 = arith.constant dense<0.000000e+00> : vector<8x256xf32>
    %1078 = tpu.matmul %1077, %1075, %cst_202 {dimension_numbers = #tpu.dot_dimension_numbers<[1], [0], [0], [1], [0, 0, 1, 1], [], []>} : vector<8x8xf32>, vector<8x256xf32>, vector<8x256xf32> -> vector<8x256xf32>
    %1079 = arith.addf %1069, %1078 : vector<8x256xf32>
    %1080 = vector.extract_strided_slice %1021 {offsets = [0, 15], sizes = [8, 241], strides = [1, 1]} : vector<8x256xf32> to vector<8x241xf32>
    %1081 = vector.extract_strided_slice %1021 {offsets = [0, 0], sizes = [8, 15], strides = [1, 1]} : vector<8x256xf32> to vector<8x15xf32>
    %1082 = tpu.concatenate %1080, %1081 in 1 : vector<8x241xf32>, vector<8x15xf32> -> vector<8x256xf32>
    %1083 = vector.extract_strided_slice %1023 {offsets = [6, 0], sizes = [1, 256], strides = [1, 1]} : vector<9x256xf32> to vector<1x256xf32>
    %1084 = vector.broadcast %1083 : vector<1x256xf32> to vector<8x256xf32>
    %1085 = arith.mulf %1082, %1084 : vector<8x256xf32>
    %1086 = vector.extract_strided_slice %1022 {offsets = [6, 0, 0], sizes = [1, 8, 8], strides = [1, 1, 1]} : vector<9x8x8xf32> to vector<1x8x8xf32>
    %1087 = vector.shape_cast %1086 : vector<1x8x8xf32> to vector<8x8xf32>
    %cst_203 = arith.constant dense<0.000000e+00> : vector<8x256xf32>
    %1088 = tpu.matmul %1087, %1085, %cst_203 {dimension_numbers = #tpu.dot_dimension_numbers<[1], [0], [0], [1], [0, 0, 1, 1], [], []>} : vector<8x8xf32>, vector<8x256xf32>, vector<8x256xf32> -> vector<8x256xf32>
    %1089 = arith.addf %1079, %1088 : vector<8x256xf32>
    %1090 = vector.extract_strided_slice %1021 {offsets = [0, 16], sizes = [8, 240], strides = [1, 1]} : vector<8x256xf32> to vector<8x240xf32>
    %1091 = vector.extract_strided_slice %1021 {offsets = [0, 0], sizes = [8, 16], strides = [1, 1]} : vector<8x256xf32> to vector<8x16xf32>
    %1092 = tpu.concatenate %1090, %1091 in 1 : vector<8x240xf32>, vector<8x16xf32> -> vector<8x256xf32>
    %1093 = vector.extract_strided_slice %1023 {offsets = [7, 0], sizes = [1, 256], strides = [1, 1]} : vector<9x256xf32> to vector<1x256xf32>
    %1094 = vector.broadcast %1093 : vector<1x256xf32> to vector<8x256xf32>
    %1095 = arith.mulf %1092, %1094 : vector<8x256xf32>
    %1096 = vector.extract_strided_slice %1022 {offsets = [7, 0, 0], sizes = [1, 8, 8], strides = [1, 1, 1]} : vector<9x8x8xf32> to vector<1x8x8xf32>
    %1097 = vector.shape_cast %1096 : vector<1x8x8xf32> to vector<8x8xf32>
    %cst_204 = arith.constant dense<0.000000e+00> : vector<8x256xf32>
    %1098 = tpu.matmul %1097, %1095, %cst_204 {dimension_numbers = #tpu.dot_dimension_numbers<[1], [0], [0], [1], [0, 0, 1, 1], [], []>} : vector<8x8xf32>, vector<8x256xf32>, vector<8x256xf32> -> vector<8x256xf32>
    %1099 = arith.addf %1089, %1098 : vector<8x256xf32>
    %1100 = vector.extract_strided_slice %1021 {offsets = [0, 17], sizes = [8, 239], strides = [1, 1]} : vector<8x256xf32> to vector<8x239xf32>
    %1101 = vector.extract_strided_slice %1021 {offsets = [0, 0], sizes = [8, 17], strides = [1, 1]} : vector<8x256xf32> to vector<8x17xf32>
    %1102 = tpu.concatenate %1100, %1101 in 1 : vector<8x239xf32>, vector<8x17xf32> -> vector<8x256xf32>
    %1103 = vector.extract_strided_slice %1023 {offsets = [8, 0], sizes = [1, 256], strides = [1, 1]} : vector<9x256xf32> to vector<1x256xf32>
    %1104 = vector.broadcast %1103 : vector<1x256xf32> to vector<8x256xf32>
    %1105 = arith.mulf %1102, %1104 : vector<8x256xf32>
    %1106 = vector.extract_strided_slice %1022 {offsets = [8, 0, 0], sizes = [1, 8, 8], strides = [1, 1, 1]} : vector<9x8x8xf32> to vector<1x8x8xf32>
    %1107 = vector.shape_cast %1106 : vector<1x8x8xf32> to vector<8x8xf32>
    %cst_205 = arith.constant dense<0.000000e+00> : vector<8x256xf32>
    %1108 = tpu.matmul %1107, %1105, %cst_205 {dimension_numbers = #tpu.dot_dimension_numbers<[1], [0], [0], [1], [0, 0, 1, 1], [], []>} : vector<8x8xf32>, vector<8x256xf32>, vector<8x256xf32> -> vector<8x256xf32>
    %1109 = arith.addf %1099, %1108 : vector<8x256xf32>
    %cst_206 = arith.constant 1.000000e-01 : f32
    %1110 = vector.broadcast %cst_206 : f32 to vector<8x256xf32>
    %1111 = arith.mulf %1110, %1109 : vector<8x256xf32>
    %1112 = arith.subf %915, %1111 : vector<8x256xf32>
    %c0_207 = arith.constant 0 : index
    %c0_208 = arith.constant 0 : index
    %c0_209 = arith.constant 0 : index
    %1113 = vector.load %arg13[%c0_207, %c0_208, %c0_209] : memref<9x4x8xf32, #tpu.memory_space<vmem>>, vector<9x4x8xf32>
    %c0_210 = arith.constant 0 : index
    %c0_211 = arith.constant 0 : index
    %1114 = vector.load %arg3[%c0_210, %c0_211] : memref<9x256xf32, #tpu.memory_space<vmem>>, vector<9x256xf32>
    %1115 = vector.extract_strided_slice %1112 {offsets = [0, 239], sizes = [8, 17], strides = [1, 1]} : vector<8x256xf32> to vector<8x17xf32>
    %1116 = vector.extract_strided_slice %1112 {offsets = [0, 0], sizes = [8, 239], strides = [1, 1]} : vector<8x256xf32> to vector<8x239xf32>
    %1117 = tpu.concatenate %1115, %1116 in 1 : vector<8x17xf32>, vector<8x239xf32> -> vector<8x256xf32>
    %1118 = vector.extract_strided_slice %1114 {offsets = [0, 0], sizes = [1, 256], strides = [1, 1]} : vector<9x256xf32> to vector<1x256xf32>
    %1119 = vector.broadcast %1118 : vector<1x256xf32> to vector<8x256xf32>
    %1120 = arith.mulf %1117, %1119 : vector<8x256xf32>
    %1121 = vector.extract_strided_slice %1113 {offsets = [0, 0, 0], sizes = [1, 4, 8], strides = [1, 1, 1]} : vector<9x4x8xf32> to vector<1x4x8xf32>
    %1122 = vector.shape_cast %1121 : vector<1x4x8xf32> to vector<4x8xf32>
    %cst_212 = arith.constant dense<0.000000e+00> : vector<4x256xf32>
    %1123 = tpu.matmul %1122, %1120, %cst_212 {dimension_numbers = #tpu.dot_dimension_numbers<[1], [0], [0], [1], [0, 0, 1, 1], [], []>} : vector<4x8xf32>, vector<8x256xf32>, vector<4x256xf32> -> vector<4x256xf32>
    %1124 = vector.extract_strided_slice %1112 {offsets = [0, 240], sizes = [8, 16], strides = [1, 1]} : vector<8x256xf32> to vector<8x16xf32>
    %1125 = vector.extract_strided_slice %1112 {offsets = [0, 0], sizes = [8, 240], strides = [1, 1]} : vector<8x256xf32> to vector<8x240xf32>
    %1126 = tpu.concatenate %1124, %1125 in 1 : vector<8x16xf32>, vector<8x240xf32> -> vector<8x256xf32>
    %1127 = vector.extract_strided_slice %1114 {offsets = [1, 0], sizes = [1, 256], strides = [1, 1]} : vector<9x256xf32> to vector<1x256xf32>
    %1128 = vector.broadcast %1127 : vector<1x256xf32> to vector<8x256xf32>
    %1129 = arith.mulf %1126, %1128 : vector<8x256xf32>
    %1130 = vector.extract_strided_slice %1113 {offsets = [1, 0, 0], sizes = [1, 4, 8], strides = [1, 1, 1]} : vector<9x4x8xf32> to vector<1x4x8xf32>
    %1131 = vector.shape_cast %1130 : vector<1x4x8xf32> to vector<4x8xf32>
    %cst_213 = arith.constant dense<0.000000e+00> : vector<4x256xf32>
    %1132 = tpu.matmul %1131, %1129, %cst_213 {dimension_numbers = #tpu.dot_dimension_numbers<[1], [0], [0], [1], [0, 0, 1, 1], [], []>} : vector<4x8xf32>, vector<8x256xf32>, vector<4x256xf32> -> vector<4x256xf32>
    %1133 = arith.addf %1123, %1132 : vector<4x256xf32>
    %1134 = vector.extract_strided_slice %1112 {offsets = [0, 241], sizes = [8, 15], strides = [1, 1]} : vector<8x256xf32> to vector<8x15xf32>
    %1135 = vector.extract_strided_slice %1112 {offsets = [0, 0], sizes = [8, 241], strides = [1, 1]} : vector<8x256xf32> to vector<8x241xf32>
    %1136 = tpu.concatenate %1134, %1135 in 1 : vector<8x15xf32>, vector<8x241xf32> -> vector<8x256xf32>
    %1137 = vector.extract_strided_slice %1114 {offsets = [2, 0], sizes = [1, 256], strides = [1, 1]} : vector<9x256xf32> to vector<1x256xf32>
    %1138 = vector.broadcast %1137 : vector<1x256xf32> to vector<8x256xf32>
    %1139 = arith.mulf %1136, %1138 : vector<8x256xf32>
    %1140 = vector.extract_strided_slice %1113 {offsets = [2, 0, 0], sizes = [1, 4, 8], strides = [1, 1, 1]} : vector<9x4x8xf32> to vector<1x4x8xf32>
    %1141 = vector.shape_cast %1140 : vector<1x4x8xf32> to vector<4x8xf32>
    %cst_214 = arith.constant dense<0.000000e+00> : vector<4x256xf32>
    %1142 = tpu.matmul %1141, %1139, %cst_214 {dimension_numbers = #tpu.dot_dimension_numbers<[1], [0], [0], [1], [0, 0, 1, 1], [], []>} : vector<4x8xf32>, vector<8x256xf32>, vector<4x256xf32> -> vector<4x256xf32>
    %1143 = arith.addf %1133, %1142 : vector<4x256xf32>
    %1144 = vector.extract_strided_slice %1112 {offsets = [0, 255], sizes = [8, 1], strides = [1, 1]} : vector<8x256xf32> to vector<8x1xf32>
    %1145 = vector.extract_strided_slice %1112 {offsets = [0, 0], sizes = [8, 255], strides = [1, 1]} : vector<8x256xf32> to vector<8x255xf32>
    %1146 = tpu.concatenate %1144, %1145 in 1 : vector<8x1xf32>, vector<8x255xf32> -> vector<8x256xf32>
    %1147 = vector.extract_strided_slice %1114 {offsets = [3, 0], sizes = [1, 256], strides = [1, 1]} : vector<9x256xf32> to vector<1x256xf32>
    %1148 = vector.broadcast %1147 : vector<1x256xf32> to vector<8x256xf32>
    %1149 = arith.mulf %1146, %1148 : vector<8x256xf32>
    %1150 = vector.extract_strided_slice %1113 {offsets = [3, 0, 0], sizes = [1, 4, 8], strides = [1, 1, 1]} : vector<9x4x8xf32> to vector<1x4x8xf32>
    %1151 = vector.shape_cast %1150 : vector<1x4x8xf32> to vector<4x8xf32>
    %cst_215 = arith.constant dense<0.000000e+00> : vector<4x256xf32>
    %1152 = tpu.matmul %1151, %1149, %cst_215 {dimension_numbers = #tpu.dot_dimension_numbers<[1], [0], [0], [1], [0, 0, 1, 1], [], []>} : vector<4x8xf32>, vector<8x256xf32>, vector<4x256xf32> -> vector<4x256xf32>
    %1153 = arith.addf %1143, %1152 : vector<4x256xf32>
    %1154 = vector.extract_strided_slice %1114 {offsets = [4, 0], sizes = [1, 256], strides = [1, 1]} : vector<9x256xf32> to vector<1x256xf32>
    %1155 = vector.broadcast %1154 : vector<1x256xf32> to vector<8x256xf32>
    %1156 = arith.mulf %1112, %1155 : vector<8x256xf32>
    %1157 = vector.extract_strided_slice %1113 {offsets = [4, 0, 0], sizes = [1, 4, 8], strides = [1, 1, 1]} : vector<9x4x8xf32> to vector<1x4x8xf32>
    %1158 = vector.shape_cast %1157 : vector<1x4x8xf32> to vector<4x8xf32>
    %cst_216 = arith.constant dense<0.000000e+00> : vector<4x256xf32>
    %1159 = tpu.matmul %1158, %1156, %cst_216 {dimension_numbers = #tpu.dot_dimension_numbers<[1], [0], [0], [1], [0, 0, 1, 1], [], []>} : vector<4x8xf32>, vector<8x256xf32>, vector<4x256xf32> -> vector<4x256xf32>
    %1160 = arith.addf %1153, %1159 : vector<4x256xf32>
    %1161 = vector.extract_strided_slice %1112 {offsets = [0, 1], sizes = [8, 255], strides = [1, 1]} : vector<8x256xf32> to vector<8x255xf32>
    %1162 = vector.extract_strided_slice %1112 {offsets = [0, 0], sizes = [8, 1], strides = [1, 1]} : vector<8x256xf32> to vector<8x1xf32>
    %1163 = tpu.concatenate %1161, %1162 in 1 : vector<8x255xf32>, vector<8x1xf32> -> vector<8x256xf32>
    %1164 = vector.extract_strided_slice %1114 {offsets = [5, 0], sizes = [1, 256], strides = [1, 1]} : vector<9x256xf32> to vector<1x256xf32>
    %1165 = vector.broadcast %1164 : vector<1x256xf32> to vector<8x256xf32>
    %1166 = arith.mulf %1163, %1165 : vector<8x256xf32>
    %1167 = vector.extract_strided_slice %1113 {offsets = [5, 0, 0], sizes = [1, 4, 8], strides = [1, 1, 1]} : vector<9x4x8xf32> to vector<1x4x8xf32>
    %1168 = vector.shape_cast %1167 : vector<1x4x8xf32> to vector<4x8xf32>
    %cst_217 = arith.constant dense<0.000000e+00> : vector<4x256xf32>
    %1169 = tpu.matmul %1168, %1166, %cst_217 {dimension_numbers = #tpu.dot_dimension_numbers<[1], [0], [0], [1], [0, 0, 1, 1], [], []>} : vector<4x8xf32>, vector<8x256xf32>, vector<4x256xf32> -> vector<4x256xf32>
    %1170 = arith.addf %1160, %1169 : vector<4x256xf32>
    %1171 = vector.extract_strided_slice %1112 {offsets = [0, 15], sizes = [8, 241], strides = [1, 1]} : vector<8x256xf32> to vector<8x241xf32>
    %1172 = vector.extract_strided_slice %1112 {offsets = [0, 0], sizes = [8, 15], strides = [1, 1]} : vector<8x256xf32> to vector<8x15xf32>
    %1173 = tpu.concatenate %1171, %1172 in 1 : vector<8x241xf32>, vector<8x15xf32> -> vector<8x256xf32>
    %1174 = vector.extract_strided_slice %1114 {offsets = [6, 0], sizes = [1, 256], strides = [1, 1]} : vector<9x256xf32> to vector<1x256xf32>
    %1175 = vector.broadcast %1174 : vector<1x256xf32> to vector<8x256xf32>
    %1176 = arith.mulf %1173, %1175 : vector<8x256xf32>
    %1177 = vector.extract_strided_slice %1113 {offsets = [6, 0, 0], sizes = [1, 4, 8], strides = [1, 1, 1]} : vector<9x4x8xf32> to vector<1x4x8xf32>
    %1178 = vector.shape_cast %1177 : vector<1x4x8xf32> to vector<4x8xf32>
    %cst_218 = arith.constant dense<0.000000e+00> : vector<4x256xf32>
    %1179 = tpu.matmul %1178, %1176, %cst_218 {dimension_numbers = #tpu.dot_dimension_numbers<[1], [0], [0], [1], [0, 0, 1, 1], [], []>} : vector<4x8xf32>, vector<8x256xf32>, vector<4x256xf32> -> vector<4x256xf32>
    %1180 = arith.addf %1170, %1179 : vector<4x256xf32>
    %1181 = vector.extract_strided_slice %1112 {offsets = [0, 16], sizes = [8, 240], strides = [1, 1]} : vector<8x256xf32> to vector<8x240xf32>
    %1182 = vector.extract_strided_slice %1112 {offsets = [0, 0], sizes = [8, 16], strides = [1, 1]} : vector<8x256xf32> to vector<8x16xf32>
    %1183 = tpu.concatenate %1181, %1182 in 1 : vector<8x240xf32>, vector<8x16xf32> -> vector<8x256xf32>
    %1184 = vector.extract_strided_slice %1114 {offsets = [7, 0], sizes = [1, 256], strides = [1, 1]} : vector<9x256xf32> to vector<1x256xf32>
    %1185 = vector.broadcast %1184 : vector<1x256xf32> to vector<8x256xf32>
    %1186 = arith.mulf %1183, %1185 : vector<8x256xf32>
    %1187 = vector.extract_strided_slice %1113 {offsets = [7, 0, 0], sizes = [1, 4, 8], strides = [1, 1, 1]} : vector<9x4x8xf32> to vector<1x4x8xf32>
    %1188 = vector.shape_cast %1187 : vector<1x4x8xf32> to vector<4x8xf32>
    %cst_219 = arith.constant dense<0.000000e+00> : vector<4x256xf32>
    %1189 = tpu.matmul %1188, %1186, %cst_219 {dimension_numbers = #tpu.dot_dimension_numbers<[1], [0], [0], [1], [0, 0, 1, 1], [], []>} : vector<4x8xf32>, vector<8x256xf32>, vector<4x256xf32> -> vector<4x256xf32>
    %1190 = arith.addf %1180, %1189 : vector<4x256xf32>
    %1191 = vector.extract_strided_slice %1112 {offsets = [0, 17], sizes = [8, 239], strides = [1, 1]} : vector<8x256xf32> to vector<8x239xf32>
    %1192 = vector.extract_strided_slice %1112 {offsets = [0, 0], sizes = [8, 17], strides = [1, 1]} : vector<8x256xf32> to vector<8x17xf32>
    %1193 = tpu.concatenate %1191, %1192 in 1 : vector<8x239xf32>, vector<8x17xf32> -> vector<8x256xf32>
    %1194 = vector.extract_strided_slice %1114 {offsets = [8, 0], sizes = [1, 256], strides = [1, 1]} : vector<9x256xf32> to vector<1x256xf32>
    %1195 = vector.broadcast %1194 : vector<1x256xf32> to vector<8x256xf32>
    %1196 = arith.mulf %1193, %1195 : vector<8x256xf32>
    %1197 = vector.extract_strided_slice %1113 {offsets = [8, 0, 0], sizes = [1, 4, 8], strides = [1, 1, 1]} : vector<9x4x8xf32> to vector<1x4x8xf32>
    %1198 = vector.shape_cast %1197 : vector<1x4x8xf32> to vector<4x8xf32>
    %cst_220 = arith.constant dense<0.000000e+00> : vector<4x256xf32>
    %1199 = tpu.matmul %1198, %1196, %cst_220 {dimension_numbers = #tpu.dot_dimension_numbers<[1], [0], [0], [1], [0, 0, 1, 1], [], []>} : vector<4x8xf32>, vector<8x256xf32>, vector<4x256xf32> -> vector<4x256xf32>
    %1200 = arith.addf %1190, %1199 : vector<4x256xf32>
    %c0_221 = arith.constant 0 : index
    %c0_222 = arith.constant 0 : index
    %c0_223 = arith.constant 0 : index
    %1201 = vector.load %arg14[%c0_221, %c0_222, %c0_223] : memref<1x4x256xf32, #tpu.memory_space<vmem>>, vector<1x4x256xf32>
    %1202 = vector.shape_cast %1201 : vector<1x4x256xf32> to vector<4x256xf32>
    %1203 = vector.shape_cast %1200 : vector<4x256xf32> to vector<1x4x256xf32>
    tpu.vector_store %arg14[%c0_221, %c0_222, %c0_223], %1203 {strides = array<i32>} : memref<1x4x256xf32, #tpu.memory_space<vmem>>, vector<1x4x256xf32>,
    return
  }
  func.func @transform_0(%arg0: i32) -> (i32, i32, i32) {
    %c0_i32 = arith.constant 0 : i32
    %c0_i32_0 = arith.constant 0 : i32
    %c0_i32_1 = arith.constant 0 : i32
    return %arg0, %c0_i32, %c0_i32_0 : i32, i32, i32
  }
  func.func @transform_1(%arg0: i32) -> (i32, i32, i32) {
    %c0_i32 = arith.constant 0 : i32
    %c0_i32_0 = arith.constant 0 : i32
    %c0_i32_1 = arith.constant 0 : i32
    %c0_i32_2 = arith.constant 0 : i32
    return %c0_i32, %c0_i32_0, %c0_i32_1 : i32, i32, i32
  }
  func.func @transform_2(%arg0: i32) -> (i32, i32) {
    %c0_i32 = arith.constant 0 : i32
    %c0_i32_0 = arith.constant 0 : i32
    %c0_i32_1 = arith.constant 0 : i32
    return %c0_i32, %c0_i32_0 : i32, i32
  }
  func.func @transform_3(%arg0: i32) -> (i32, i32, i32) {
    %c0_i32 = arith.constant 0 : i32
    %c0_i32_0 = arith.constant 0 : i32
    %c0_i32_1 = arith.constant 0 : i32
    %c0_i32_2 = arith.constant 0 : i32
    return %c0_i32, %c0_i32_0, %c0_i32_1 : i32, i32, i32
  }
  func.func @transform_4(%arg0: i32) -> (i32, i32, i32) {
    %c0_i32 = arith.constant 0 : i32
    %c0_i32_0 = arith.constant 0 : i32
    %c0_i32_1 = arith.constant 0 : i32
    %c0_i32_2 = arith.constant 0 : i32
    return %c0_i32, %c0_i32_0, %c0_i32_1 : i32, i32, i32
  }
  func.func @transform_5(%arg0: i32) -> (i32, i32, i32) {
    %c0_i32 = arith.constant 0 : i32
    %c0_i32_0 = arith.constant 0 : i32
    %c0_i32_1 = arith.constant 0 : i32
    %c0_i32_2 = arith.constant 0 : i32
    return %c0_i32, %c0_i32_0, %c0_i32_1 : i32, i32, i32
  }
  func.func @transform_6(%arg0: i32) -> (i32, i32) {
    %c0_i32 = arith.constant 0 : i32
    %c0_i32_0 = arith.constant 0 : i32
    %c0_i32_1 = arith.constant 0 : i32
    return %c0_i32, %c0_i32_0 : i32, i32
  }
  func.func @transform_7(%arg0: i32) -> (i32, i32, i32) {
    %c0_i32 = arith.constant 0 : i32
    %c0_i32_0 = arith.constant 0 : i32
    %c0_i32_1 = arith.constant 0 : i32
    %c0_i32_2 = arith.constant 0 : i32
    return %c0_i32, %c0_i32_0, %c0_i32_1 : i32, i32, i32
  }
  func.func @transform_8(%arg0: i32) -> (i32, i32, i32) {
    %c0_i32 = arith.constant 0 : i32
    %c0_i32_0 = arith.constant 0 : i32
    %c0_i32_1 = arith.constant 0 : i32
    %c0_i32_2 = arith.constant 0 : i32
    return %c0_i32, %c0_i32_0, %c0_i32_1 : i32, i32, i32
  }
  func.func @transform_9(%arg0: i32) -> (i32, i32) {
    %c0_i32 = arith.constant 0 : i32
    %c0_i32_0 = arith.constant 0 : i32
    %c0_i32_1 = arith.constant 0 : i32
    return %c0_i32, %c0_i32_0 : i32, i32
  }
  func.func @transform_10(%arg0: i32) -> (i32, i32, i32) {
    %c0_i32 = arith.constant 0 : i32
    %c0_i32_0 = arith.constant 0 : i32
    %c0_i32_1 = arith.constant 0 : i32
    %c0_i32_2 = arith.constant 0 : i32
    return %c0_i32, %c0_i32_0, %c0_i32_1 : i32, i32, i32
  }
  func.func @transform_11(%arg0: i32) -> (i32, i32) {
    %c0_i32 = arith.constant 0 : i32
    %c0_i32_0 = arith.constant 0 : i32
    %c0_i32_1 = arith.constant 0 : i32
    return %c0_i32, %c0_i32_0 : i32, i32
  }
  func.func @transform_12(%arg0: i32) -> (i32, i32, i32) {
    %c0_i32 = arith.constant 0 : i32
    %c0_i32_0 = arith.constant 0 : i32
    %c0_i32_1 = arith.constant 0 : i32
    %c0_i32_2 = arith.constant 0 : i32
    return %c0_i32, %c0_i32_0, %c0_i32_1 : i32, i32, i32
  }
  func.func @transform_13(%arg0: i32) -> (i32, i32, i32) {
    %c0_i32 = arith.constant 0 : i32
    %c0_i32_0 = arith.constant 0 : i32
    %c0_i32_1 = arith.constant 0 : i32
    return %arg0, %c0_i32, %c0_i32_0 : i32, i32, i32
  }
}

</mosaic_0001>

<bundles_post_ra>
// kernel: forward.1
= control target key start
LH: loop header
LB: loop body
LE: loop exit
PB: predicated region body
PF: predicated region fallthrough
CT: control target
= control target key end

     0   :  { %s14164_s0 = inlined_call_operand.vmem [shape: f32[2,4,256], index: 0, kind: input, shape index: {}]   ;;  %s14165_s1 = inlined_call_operand.hbm [shape: f32[9,8,4], index: 1, kind: input, shape index: {}]   ;;  %s14166_s2 = inlined_call_operand.hbm [shape: f32[9,256], index: 2, kind: input, shape index: {}]   ;;  %s14167_s3 = inlined_call_operand.hbm [shape: f32[9,8,8], index: 3, kind: input, shape index: {}]   ;;  %s14168_s4 = inlined_call_operand.hbm [shape: f32[9,8,8], index: 4, kind: input, shape index: {}]   ;;  %s14169_s5 = inlined_call_operand.hbm [shape: f32[9,16,8], index: 5, kind: input, shape index: {}]   ;;  %s14170_s6 = inlined_call_operand.hbm [shape: f32[256,64], index: 6, kind: input, shape index: {}]   ;;  %s14171_s7 = inlined_call_operand.hbm [shape: f32[9,16,16], index: 7, kind: input, shape index: {}]   ;;  %s14172_s8 = inlined_call_operand.vmem [shape: f32[9,16,16], index: 8, kind: input, shape index: {}]   ;;  %s14173_s9 = inlined_call_operand.vmem [shape: f32[9,64], index: 9, kind: input, shape index: {}]   ;;  %s14174_s10 = inlined_call_operand.hbm [shape: f32[9,8,16], index: 10, kind: input, shape index: {}]   ;;  %s14175_s11 = inlined_call_operand.hbm [shape: f32[64,256], index: 11, kind: input, shape index: {}]   ;;  %s14176_s12 = inlined_call_operand.hbm [shape: f32[9,4,8], index: 12, kind: input, shape index: {}]   ;;  %s14177_s13 = inlined_call_operand.vmem [shape: f32[2,4,256], index: 13, kind: output, shape index: {}]  }
   0x1   :  { %14233 = sst [smem:[#allocation29_spill]] %s14164_s0 }
   0x2   :  { %18 = vsyncpa [#allocation3], 0 }
   0x3   :  { %19 = vsyncpa [#allocation5], 0 }
   0x4   :  { %20 = vsyncpa [#allocation8], 0 }
   0x5   :  { %21 = vsyncpa [#allocation11], 0 }
   0x6   :  { %22 = vsyncpa [#allocation14], 0 }
   0x7   :  { %23 = vsyncpa [#allocation17], 0  ;;  %s12365_s25 = smov 0  }
   0x8 LB: > { %s12256_s26 = smov [#allocation4]   ;;  %s12371_s28 = sadd.s32 4294967295, %s12254_s25   ;;  %s12254_s25 = sphi %s12365_s25, %s29_s25  }
   0x9   : > { %s363_s27 = sshll.u32 %s12256_s26, 4  ;;  %p11125_p0 = scmp.ge.s32.totalorder %s12254_s25, 1  ;;  %s364_s27 = int_to_ptr.vmem [resolvable:$true] %s363_s27 }
   0xa   : > { %p338_p1 = scmp.lt.s32.totalorder %s12254_s25, 3  ;;  %p11837_p2 = scmp.eq.s32.totalorder %s12371_s28, 0 }
   0xb   : > { %s12257_s14 = smov [#allocation7]   ;;  %s12258_s16 = smov [#allocation10]  }
   0xc   : > { %p12376_p3 = pnand %p11125_p0, %p338_p1  ;;  %s389_s15 = sshll.u32 %s12257_s14, 4  ;;  %s12388_s15 = int_to_ptr.vmem [resolvable:$true] %s389_s15 }
   0xd   : > { %s415_s17 = sshll.u32 %s12258_s16, 4  ;;  %s11975_s19 = scalar_lea.vmem %s364_s27, 512  ;;  %s12390_s17 = int_to_ptr.vmem [resolvable:$true] %s415_s17 }
   0xe   : > { %p11806_p4 = pneg %p12376_p3  ;;  %p11976_p7 = scmp.ne.s32.totalorder %s364_s27, %s11975_s19 }
   0xf   : > { %p11983_p10 = scmp.lt.s32.totalorder %s364_s27, %s364_s27  ;;  %p11984_p11 = scmp.lt.s32.totalorder %s11975_s19, %s11975_s19 }
  0x10   : > { %p12384_p5 = pnand %p11837_p2, %p11806_p4 }
  0x11   : > { %p11985_p12 = por %p11984_p11, %p11983_p10 }
  0x12   : > { %p12394_p6 = pneg %p12384_p5 }
  0x14   : > { %p11978_p8 = pnand %p11976_p7, %p12394_p6 }
  0x16   : > { %p11979_p9 = pneg %p11978_p8 }
  0x18   : > { %p11986_p13 = pnand %p11985_p12, %p11979_p9 }
  0x1a   : > { %11989 = shalt.err (!%p11986_p13)
}
  0x1b   : > { %s12259_s20 = smov 256   ;;  %s12260_s21 = smov 16  }
  0x1c   : > { %11812 = dma.hbm_to_vmem [thread:$0]  (!%p12384_p5), %s14166_s2, 512, %s364_s27, [#allocation5], %s12259_s20, %s12259_s20, %s12260_s21  }
  0x1d   : > { %s12001_s24 = scalar_lea.vmem %s12388_s15, 1152  ;;  %p12009_p7 = scmp.lt.s32.totalorder %s12388_s15, %s12388_s15 }
  0x1e   : > { %p12002_p0 = scmp.ne.s32.totalorder %s12388_s15, %s12001_s24  ;;  %p12010_p8 = scmp.lt.s32.totalorder %s12001_s24, %s12001_s24 }
  0x20   : > { %p12004_p1 = pnand %p12002_p0, %p12394_p6  ;;  %p12011_p9 = por %p12010_p8, %p12009_p7 }
  0x22   : > { %p12005_p4 = pneg %p12004_p1 }
  0x24   : > { %p12012_p10 = pnand %p12011_p9, %p12005_p4 }
  0x26   : > { %12015 = shalt.err (!%p12012_p10)
}
  0x27   : > { %s12261_s26 = smov 128   ;;  %s12262_s14 = smov 8  }
  0x28   : > { %11818 = dma.hbm_to_vmem [thread:$0]  (!%p12384_p5), %s14168_s4, 1152, %s12388_s15, [#allocation8], %s12261_s26, %s12261_s26, %s12262_s14  }
  0x29   : > { %s12027_s19 = scalar_lea.vmem %s12390_s17, 4096  ;;  %p12035_p0 = scmp.lt.s32.totalorder %s12390_s17, %s12390_s17 }
  0x2a   : > { %p12028_p11 = scmp.ne.s32.totalorder %s12390_s17, %s12027_s19  ;;  %p12036_p1 = scmp.lt.s32.totalorder %s12027_s19, %s12027_s19 }
  0x2c   : > { %p12030_p12 = pnand %p12028_p11, %p12394_p6  ;;  %p12037_p4 = por %p12036_p1, %p12035_p0 }
  0x2e   : > { %p12031_p13 = pneg %p12030_p12 }
  0x30   : > { %p12038_p7 = pnand %p12037_p4, %p12031_p13 }
  0x32   : > { %12041 = shalt.err (!%p12038_p7)
}
  0x33   : > { %11824 = dma.hbm_to_vmem [thread:$0]  (!%p12384_p5), %s14170_s6, 4096, %s12390_s17, [#allocation11], %s12261_s26, %s12261_s26, %s12262_s14  }
  0x34   : > { %s12263_s15 = smov [#allocation13]   ;;  %s12264_s27 = smov [#allocation2]  }
  0x35   : > { %s447_s24 = sshll.u32 %s12263_s15, 4  ;;  %s350_s16 = sshll.u32 %s12264_s27, 4  ;;  %s448_s24 = int_to_ptr.vmem [resolvable:$true] %s447_s24  ;;  %s351_s16 = int_to_ptr.vmem [resolvable:$true] %s350_s16 }
  0x36   : > { %s12053_s19 = scalar_lea.vmem %s448_s24, 1152  ;;  %p12061_p11 = scmp.lt.s32.totalorder %s448_s24, %s448_s24 }
  0x37   : > { %p12054_p8 = scmp.ne.s32.totalorder %s448_s24, %s12053_s19  ;;  %p12062_p12 = scmp.lt.s32.totalorder %s12053_s19, %s12053_s19 }
  0x39   : > { %p12056_p9 = pnand %p12054_p8, %p12394_p6  ;;  %p12063_p13 = por %p12062_p12, %p12061_p11 }
  0x3b   : > { %p12057_p10 = pneg %p12056_p9 }
  0x3d   : > { %p12064_p0 = pnand %p12063_p13, %p12057_p10 }
  0x3f   : > { %12067 = shalt.err (!%p12064_p0)
}
  0x40   : > { %11830 = dma.hbm_to_vmem [thread:$0]  (!%p12384_p5), %s14174_s10, 1152, %s448_s24, [#allocation14], %s12261_s26, %s12261_s26, %s12262_s14  }
  0x41   : > { %s12079_s23 = scalar_lea.vmem %s351_s16, 1152  ;;  %p12087_p8 = scmp.lt.s32.totalorder %s351_s16, %s351_s16 }
  0x42   : > { %p12080_p1 = scmp.ne.s32.totalorder %s351_s16, %s12079_s23  ;;  %p12088_p9 = scmp.lt.s32.totalorder %s12079_s23, %s12079_s23 }
  0x44   : > { %p12082_p4 = pnand %p12080_p1, %p12394_p6  ;;  %p12089_p11 = por %p12088_p9, %p12087_p8 }
  0x46   : > { %p12083_p7 = pneg %p12082_p4 }
  0x48   : > { %p12090_p10 = pnand %p12089_p11, %p12083_p7 }
  0x4a   : > { %12093 = shalt.err (!%p12090_p10)
}
  0x4b   : > { %11809 = dma.hbm_to_vmem [thread:$0]  (!%p12384_p5), %s14165_s1, 1152, %s351_s16, [#allocation3], %s12261_s26, %s12261_s26, %s12262_s14  }
  0x4c   : > { %s12265_s24 = smov [#allocation6]   ;;  %s12266_s17 = smov [#allocation9]  }
  0x4d   : > { %s376_s19 = sshll.u32 %s12265_s24, 4  ;;  %s402_s22 = sshll.u32 %s12266_s17, 4  ;;  %s377_s19 = int_to_ptr.vmem [resolvable:$true] %s376_s19  ;;  %s403_s22 = int_to_ptr.vmem [resolvable:$true] %s402_s22 }
  0x4e   : > { %s12105_s23 = scalar_lea.vmem %s377_s19, 1152  ;;  %p12113_p1 = scmp.lt.s32.totalorder %s377_s19, %s377_s19 }
  0x4f   : > { %p12106_p12 = scmp.ne.s32.totalorder %s377_s19, %s12105_s23  ;;  %p12114_p4 = scmp.lt.s32.totalorder %s12105_s23, %s12105_s23 }
  0x51   : > { %p12108_p13 = pnand %p12106_p12, %p12394_p6  ;;  %p12115_p7 = por %p12114_p4, %p12113_p1 }
  0x53   : > { %p12109_p0 = pneg %p12108_p13 }
  0x55   : > { %p12116_p8 = pnand %p12115_p7, %p12109_p0 }
  0x57   : > { %12119 = shalt.err (!%p12116_p8)
}
  0x58   : > { %11815 = dma.hbm_to_vmem [thread:$0]  (!%p12384_p5), %s14167_s3, 1152, %s377_s19, [#allocation5], %s12261_s26, %s12261_s26, %s12262_s14  }
  0x59   : > { %s12131_s27 = scalar_lea.vmem %s403_s22, 2304  ;;  %p12139_p12 = scmp.lt.s32.totalorder %s403_s22, %s403_s22 }
  0x5a   : > { %p12132_p9 = scmp.ne.s32.totalorder %s403_s22, %s12131_s27  ;;  %p12140_p13 = scmp.lt.s32.totalorder %s12131_s27, %s12131_s27 }
  0x5c   : > { %p12134_p11 = pnand %p12132_p9, %p12394_p6  ;;  %p12141_p1 = por %p12140_p13, %p12139_p12 }
  0x5e   : > { %p12135_p10 = pneg %p12134_p11 }
  0x60   : > { %p12142_p0 = pnand %p12141_p1, %p12135_p10 }
  0x62   : > { %12145 = shalt.err (!%p12142_p0)
}
  0x63   : > { %11821 = dma.hbm_to_vmem [thread:$0]  (!%p12384_p5), %s14169_s5, 2304, %s403_s22, [#allocation8], %s12261_s26, %s12261_s26, %s12262_s14  }
  0x64   : > { %s12267_s19 = smov [#allocation12]   ;;  %s12268_s16 = smov [#allocation15]  }
  0x65   : > { %s428_s23 = sshll.u32 %s12267_s19, 4  ;;  %s460_s15 = sshll.u32 %s12268_s16, 4  ;;  %s429_s23 = int_to_ptr.vmem [resolvable:$true] %s428_s23  ;;  %s461_s15 = int_to_ptr.vmem [resolvable:$true] %s460_s15 }
  0x66   : > { %s12157_s27 = scalar_lea.vmem %s429_s23, 2304  ;;  %p12165_p9 = scmp.lt.s32.totalorder %s429_s23, %s429_s23 }
  0x67   : > { %p12158_p4 = scmp.ne.s32.totalorder %s429_s23, %s12157_s27  ;;  %p12166_p11 = scmp.lt.s32.totalorder %s12157_s27, %s12157_s27 }
  0x69   : > { %p12160_p7 = pnand %p12158_p4, %p12394_p6  ;;  %p12167_p10 = por %p12166_p11, %p12165_p9 }
  0x6b   : > { %p12161_p8 = pneg %p12160_p7 }
  0x6d   : > { %p12168_p12 = pnand %p12167_p10, %p12161_p8 }
  0x6f   : > { %12171 = shalt.err (!%p12168_p12)
}
  0x70   : > { %11827 = dma.hbm_to_vmem [thread:$0]  (!%p12384_p5), %s14171_s7, 2304, %s429_s23, [#allocation11], %s12261_s26, %s12261_s26, %s12262_s14  }
  0x71   : > { %s12183_s17 = scalar_lea.vmem %s461_s15, 2048  ;;  %p12191_p4 = scmp.lt.s32.totalorder %s461_s15, %s461_s15 }
  0x72   : > { %p12184_p13 = scmp.ne.s32.totalorder %s461_s15, %s12183_s17  ;;  %p12192_p7 = scmp.lt.s32.totalorder %s12183_s17, %s12183_s17 }
  0x74   : > { %p12186_p1 = pnand %p12184_p13, %p12394_p6  ;;  %p12193_p9 = por %p12192_p7, %p12191_p4 }
  0x76   : > { %p12187_p0 = pneg %p12186_p1 }
  0x78   : > { %p12194_p8 = pnand %p12193_p9, %p12187_p0 }
  0x7a   : > { %12197 = shalt.err (!%p12194_p8)
}
  0x7b   : > { %11833 = dma.hbm_to_vmem [thread:$0]  (!%p12384_p5), %s14175_s11, 2048, %s461_s15, [#allocation14], %s12259_s20, %s12259_s20, %s12260_s21  }
  0x7c   : > { %s12269_s26 = smov [#allocation16]  }
  0x7d   : > { %s473_s14 = sshll.u32 %s12269_s26, 4  ;;  %s474_s14 = int_to_ptr.vmem [resolvable:$true] %s473_s14 }
  0x7e   : > { %s12209_s23 = scalar_lea.vmem %s474_s14, 576  ;;  %p12217_p13 = scmp.lt.s32.totalorder %s474_s14, %s474_s14 }
  0x7f   : > { %p12210_p11 = scmp.ne.s32.totalorder %s474_s14, %s12209_s23  ;;  %p12218_p1 = scmp.lt.s32.totalorder %s12209_s23, %s12209_s23 }
  0x81   : > { %p12212_p10 = pnand %p12210_p11, %p12394_p6  ;;  %p12219_p0 = por %p12218_p1, %p12217_p13 }
  0x83   : > { %p12213_p12 = pneg %p12212_p10 }
  0x85   : > { %p12220_p4 = pnand %p12219_p0, %p12213_p12 }
  0x87   : > { %12223 = shalt.err (!%p12220_p4)
}
  0x88   : > { %s12270_s27 = smov 64   ;;  %s12271_s22 = smov 4  }
  0x89   : > { %11836 = dma.hbm_to_vmem [thread:$0]  (!%p12384_p5), %s14176_s12, 576, %s474_s14, [#allocation17], %s12270_s27, %s12270_s27, %s12271_s22  }
  0x8a   : > { %497 = sbr.rel (%p12376_p3) target bundleno = 7034 (0x1b7a), region = 72 }
  0x8f   : > { %12229 = dma.done.wait (%p11837_p2), [#allocation3], 1152  }
  0x90   : > { %12231 = vsyncadd (%p11837_p2), [#allocation3], 4294966144 }
  0x91   : > { %12233 = dma.done.wait (%p11837_p2), [#allocation5], 1664  }
  0x92   : > { %12235 = vsyncadd (%p11837_p2), [#allocation5], 4294965632 }
  0x93   : > { %12237 = dma.done.wait (%p11837_p2), [#allocation8], 3456  }
  0x94   : > { %12239 = vsyncadd (%p11837_p2), [#allocation8], 4294963840 }
  0x95   : > { %12241 = dma.done.wait (%p11837_p2), [#allocation11], 6400  }
  0x96   : > { %12243 = vsyncadd (%p11837_p2), [#allocation11], 4294960896 }
  0x97   : > { %12245 = dma.done.wait (%p11837_p2), [#allocation14], 3200  }
  0x98   : > { %12247 = vsyncadd (%p11837_p2), [#allocation14], 4294964096 }
  0x99   : > { %12249 = dma.done.wait (%p11837_p2), [#allocation17], 576  }
  0x9a   : > { %12251 = vsyncadd (%p11837_p2), [#allocation17], 4294966720  ;;  %p577_p3 = scmp.lt.s32.totalorder %s12371_s28, 1  ;;  %s14237_s0 = sld [smem:[#allocation29_spill]]  ;;  %v14178_v0 = vmov 0.0   ;;  %v613_v3 = vlaneseq  ;;  %v12564_v6 = vld [vmem:[#allocation4 + $0x8] sm:$0xff] }
  0x9b   : > { %718 = vmatprep.mubr.f32.mxu0 %v14178_v0  ;;  %798 = vmatprep.mubr.f32.mxu1 %v14178_v0  ;;  %s14189_s21 = smov 17   ;;  %s14193_s15 = smov 16   ;;  %v12569_v8 = vld [vmem:[#allocation4] sm:$0xff]  ;;  %vm628_vm0 = vcmask 130048   ;;  %vm608_vm1 = vcmask 138240   ;;  %vm647_vm2 = vcmask 1043456  }
  0x9c   : > { %s14273_s28 = smov (!%p577_p3, %s12371_s28), 1  ;;  %s14187_s19 = smov 15   ;;  %v12559_v4 = vshrl.u32 %v613_v3, 7  ;;  %vm810_vm3 = vcmask 121856   ;;  %v589_v29 = vld [vmem:[#allocation2 + $0x8] sm:$0xff]  ;;  %vm643_vm4 = vcmask 31744  }
  0x9d   : > { %s14182_s29 = sshll.u32 %s14273_s28, 3  ;;  %s14209_s16 = smov 1   ;;  %vm912_vm5 = vcmask 7168   ;;  %v588_v44 = vld [vmem:[#allocation2] sm:$0xff]  ;;  %v590_v45 = vld [vmem:[#allocation2 + $0x10] sm:$0xff]  ;;  %vm1108_vm6 = vcmask 1039360  }
  0x9e   : > { %s14213_s26 = smov 127   ;;  %s14191_s14 = smov 113   ;;  %v12562_v5 = vsub.s32 4, %v12559_v4  ;;  %v12567_v7 = vsub.s32 1, %v12559_v4  ;;  %v12580_v13 = vsub.s32 2, %v12559_v4  ;;  %v12591_v16 = vsub.s32 0, %v12559_v4 }
  0x9f   : > { %s14185_s23 = smov 112   ;;  %s14183_s27 = smov 111   ;;  %v12596_v20 = vsub.s32 3, %v12559_v4  ;;  %v12628_v35 = vsub.s32 5, %v12559_v4  ;;  %v12652_v52 = vsub.s32 6, %v12559_v4  ;;  %v591_v56 = vld [vmem:[#allocation2 + $0x18] sm:$0xff] }
  0xa0   : > { %s581_s20 = scalar_lea.vmem %s14237_s0, %s14182_s29  ;;  %v12573_v9 = vrot.slane %v12569_v8, %v12562_v5  ;;  %v12577_v10 = vrot.slane %v12564_v6, %v12562_v5  ;;  %v12584_v14 = vrot.slane %v12564_v6, %v12567_v7  ;;  %v12588_v15 = vrot.slane %v12569_v8, %v12567_v7  ;;  %v592_v57 = vld [vmem:[#allocation2 + $0x20] sm:$0xff]  ;;  %s14223_s22 = smov 72  }
  0xa1   : > { %v587_v1 = vld [vmem:[%s581_s20] sm:$0xff]  ;;  %v12602_v23 = vrot.slane %v12569_v8, %v12580_v13  ;;  %v12606_v24 = vrot.slane %v12564_v6, %v12580_v13  ;;  %v12612_v27 = vrot.slane %v12564_v6, %v12591_v16  ;;  %v12616_v28 = vrot.slane %v12569_v8, %v12591_v16  ;;  %s14219_s24 = smov 73   ;;  %s14231_s17 = smov 8  }
  0xa2   : > { %606 = vrot.lane.b32.xlu1 %v587_v1, %s14189_s21  ;;  %626 = vrot.lane.b32.xlu0 %v587_v1, %s14193_s15  ;;  %v602_v2 = vcombine.high %v587_v1, %v587_v1  ;;  %v1019_v17 = vcombine.low %v12573_v9, %v12577_v10  ;;  %v12621_v33 = vrot.slane %v12569_v8, %v12596_v20  ;;  %vm1210_vm7 = vcmask 924672   ;;  %s14215_s30 = smov 71   ;;  %s14221_s18 = smov 9  }
  0xa3   : > { %v12625_v34 = vrot.slane %v12564_v6, %v12596_v20  ;;  %v12649_v51 = vrot.slane %v12569_v8, %v12628_v35  ;;  %v12659_v55 = vrot.slane %v12564_v6, %v12628_v35  ;;  %v12671_v62 = vrot.slane %v12569_v8, %v12652_v52  ;;  %s14211_s20 = smov 65   ;;  %s14217_s29 = smov 7  }
  0xa4   : > { %v1021_v30 = vmul.f32 %v1019_v17, %v587_v1  ;;  %v12683_v3 = vsub.s32 7, %v12559_v4  ;;  %vm1312_vm8 = vcmask 916480   ;;  %vm1414_vm9 = vcmask 908288   ;;  %s14258_s0 = smov 8  }
  0xa5   : > { %14238 = vst [vmem:[#allocation24_spill] sm:$0xff] %v12671_v62  ;;  %vm1563_vm10 = vcmask 64512   ;;  %vm4177_vm11 = vcmask 72704   ;;  %vm4380_vm12 = vcmask 56320   ;;  %vm4676_vm13 = vcmask 515072  }
  0xa6   : > { %808 = vrot.lane.b32.xlu1 %v587_v1, %s14187_s19  ;;  %623 = vrot.lane.b32.xlu0 %v602_v2, %s14193_s15  ;;  %v1023_v46 = vcombine.high %v1021_v30, %v1021_v30  ;;  %vm4780_vm14 = vcmask 465920   ;;  %vm4884_vm15 = vcmask 457728  }
  0xaa   : > { %603 = vrot.lane.b32.xlu1 %v602_v2, %s14189_s21  ;;  %805 = vrot.lane.b32.xlu0 %v602_v2, %s14187_s19 }
  0xae   : > { %910 = vrot.lane.b32.xlu1 %v587_v1, %s14209_s16  ;;  %907 = vrot.lane.b32.xlu0 %v602_v2, %s14209_s16 }
  0xb2   : > { %1106 = vrot.lane.b32.xlu1 %v602_v2, %s14213_s26  ;;  %1104 = vrot.lane.b32.xlu0 %v587_v1, %s14213_s26 }
  0xb6   : > { %1208 = vrot.lane.b32.xlu1 %v602_v2, %s14191_s14  ;;  %1206 = vrot.lane.b32.xlu0 %v587_v1, %s14191_s14 }
  0xba   : > { %1310 = vrot.lane.b32.xlu1 %v602_v2, %s14185_s23  ;;  %1308 = vrot.lane.b32.xlu0 %v587_v1, %s14185_s23 }
  0xbe   : > { %1412 = vrot.lane.b32.xlu1 %v602_v2, %s14183_s27  ;;  %1410 = vrot.lane.b32.xlu0 %v587_v1, %s14183_s27  ;;  %v12679_v2 = vrot.slane %v12564_v6, %v12652_v52 }
  0xc0   : > { %14239 = vst [vmem:[#allocation25_spill] sm:$0xff] %v12679_v2 }
 0x114   : > { %v607_v11 = vpop.permute.xlu1 %606  ;;  %v627_v12 = vpop.permute.xlu0 %626 }
 0x118   : > { %v809_v18 = vpop.permute.xlu1 %808  ;;  %v624_v19 = vpop.permute.xlu0 %623 }
 0x119   : > { %v632_v21 = vsel %vm628_vm0, %v624_v19, %v627_v12  ;;  %v629_v22 = vsel %vm628_vm0, %v627_v12, %v624_v19 }
 0x11a   : > { %v642_v25 = vmul.f32 %v12584_v14, %v629_v22  ;;  %v641_v26 = vmul.f32 %v12588_v15, %v632_v21  ;;  %v12696_v22 = vrot.slane %v12569_v8, %v12683_v3 }
 0x11c   : > { %v604_v31 = vpop.permute.xlu1 %603  ;;  %11152 = vmatprep.subr.msk.mxu0 %vm647_vm2, %v642_v25  ;;  %v806_v32 = vpop.permute.xlu0 %805  ;;  %14240 = vst [vmem:[#allocation26_spill] sm:$0xff] %v12696_v22  ;;  %v12700_v25 = vrot.slane %v12564_v6, %v12683_v3  ;;  %v12710_v6 = vld [vmem:[#allocation4 + $0x10] ss:$0 sm:$0xff] }
 0x11d   : > { %v612_v36 = vsel %vm608_vm1, %v604_v31, %v607_v11  ;;  %v811_v37 = vsel %vm810_vm3, %v809_v18, %v806_v32  ;;  %v814_v38 = vsel %vm810_vm3, %v806_v32, %v809_v18  ;;  %11153 = vmatpush1.msk.msra.mxu0 %vm647_vm2, %v641_v26  ;;  %v609_v39 = vsel %vm608_vm1, %v607_v11, %v604_v31  ;;  %v593_v11 = vld [vmem:[#allocation2 + $0x28] sm:$0xff]  ;;  %v594_v26 = vld [vmem:[#allocation2 + $0x30] sm:$0xff] }
 0x11e   : > { %v823_v40 = vmul.f32 %v12602_v23, %v814_v38  ;;  %v824_v41 = vmul.f32 %v12606_v24, %v811_v37  ;;  %v622_v42 = vmul.f32 %v12612_v27, %v609_v39  ;;  %11154 = vmatmul.mubr.msk.f32.vlgmr.msra.gmra.mxu0 %vm643_vm4, %v589_v29  ;;  %v621_v43 = vmul.f32 %v12616_v28, %v612_v36  ;;  %v12712_v37 = vld [vmem:[#allocation4 + $0x18] ss:$0 sm:$0xff]  ;;  %v595_v38 = vld [vmem:[#allocation2 + $0x38] sm:$0xff] }
 0x11f   : > { %898 = vmatprep.mubr.f32.mxu0 %v14178_v0 }
 0x120   : > { %11155 = vmatprep.subr.msk.mxu1 %vm647_vm2, %v622_v42  ;;  %v911_v47 = vpop.permute.xlu1 %910  ;;  %11158 = vmatprep.subr.msk.mxu0 %vm647_vm2, %v824_v41  ;;  %v908_v48 = vpop.permute.xlu0 %907 }
 0x121   : > { %v913_v49 = vsel %vm912_vm5, %v911_v47, %v908_v48  ;;  %v916_v50 = vsel %vm912_vm5, %v908_v48, %v911_v47  ;;  %11156 = vmatpush1.msk.msra.mxu1 %vm647_vm2, %v621_v43  ;;  %11159 = vmatpush1.msk.msra.mxu0 %vm647_vm2, %v823_v40 }
 0x122   : > { %v925_v53 = vmul.f32 %v12621_v33, %v916_v50  ;;  %v926_v54 = vmul.f32 %v12625_v34, %v913_v49  ;;  %11157 = vmatmul.mubr.msk.f32.vlgmr.msra.gmra.mxu1 %vm643_vm4, %v588_v44  ;;  %11160 = vmatmul.mubr.msk.f32.vlgmr.msra.gmra.mxu0 %vm643_vm4, %v590_v45  ;;  %v596_v45 = vld [vmem:[#allocation2 + $0x40] sm:$0xff] }
 0x123   : > { %1000 = vmatprep.mubr.f32.mxu1 %v14178_v0  ;;  %11164 = vmatprep.subr.msk.mxu0 %vm647_vm2, %v1023_v46 }
 0x124   : > { %v1107_v58 = vpop.permute.xlu1 %1106  ;;  %11161 = vmatprep.subr.msk.mxu1 %vm647_vm2, %v926_v54  ;;  %v1105_v59 = vpop.permute.xlu0 %1104  ;;  %11165 = vmatpush1.msk.msra.mxu0 %vm647_vm2, %v1021_v30 }
 0x125   : > { %v1109_v60 = vsel %vm1108_vm6, %v1105_v59, %v1107_v58  ;;  %v1113_v61 = vsel %vm1108_vm6, %v1107_v58, %v1105_v59  ;;  %11162 = vmatpush1.msk.msra.mxu1 %vm647_vm2, %v925_v53  ;;  %1095 = vmatprep.mubr.f32.mxu0 %v14178_v0 }
 0x126   : > { %v1122_v63 = vmul.f32 %v12649_v51, %v1109_v60  ;;  %v1123_v1 = vmul.f32 %v12659_v55, %v1113_v61  ;;  %11163 = vmatmul.mubr.msk.f32.vlgmr.msra.gmra.mxu1 %vm643_vm4, %v591_v56  ;;  %11166 = vmatmul.mubr.msk.f32.vlgmr.msra.gmra.mxu0 %vm643_vm4, %v592_v57 }
 0x127   : > { %1197 = vmatprep.mubr.f32.mxu1 %v14178_v0  ;;  %1299 = vmatprep.mubr.f32.mxu0 %v14178_v0 }
 0x128   : > { %v1209_v12 = vpop.permute.xlu1 %1208  ;;  %11167 = vmatprep.subr.msk.mxu1 %vm647_vm2, %v1123_v1  ;;  %v1207_v17 = vpop.permute.xlu0 %1206 }
 0x129   : > { %v1211_v18 = vsel %vm1210_vm7, %v1207_v17, %v1209_v12  ;;  %v1215_v19 = vsel %vm1210_vm7, %v1209_v12, %v1207_v17  ;;  %11168 = vmatpush1.msk.msra.mxu1 %vm647_vm2, %v1122_v63 }
 0x12a   : > { %v1224_v21 = vmul.f32 %v12671_v62, %v1211_v18  ;;  %v1225_v4 = vmul.f32 %v12679_v2, %v1215_v19  ;;  %11169 = vmatmul.mubr.msk.f32.vlgmr.msra.gmra.mxu1 %vm643_vm4, %v593_v11 }
 0x12b   : > { %1401 = vmatprep.mubr.f32.mxu1 %v14178_v0 }
 0x12c   : > { %v1311_v29 = vpop.permute.xlu1 %1310  ;;  %11170 = vmatprep.subr.msk.mxu0 %vm647_vm2, %v1225_v4  ;;  %v1309_v30 = vpop.permute.xlu0 %1308 }
 0x12d   : > { %v1313_v31 = vsel %vm1312_vm8, %v1309_v30, %v1311_v29  ;;  %v1317_v32 = vsel %vm1312_vm8, %v1311_v29, %v1309_v30  ;;  %11171 = vmatpush1.msk.msra.mxu0 %vm647_vm2, %v1224_v21 }
 0x12e   : > { %v1326_v8 = vmul.f32 %v12696_v22, %v1313_v31  ;;  %v1327_v36 = vmul.f32 %v12700_v25, %v1317_v32  ;;  %11172 = vmatmul.mubr.msk.f32.vlgmr.msra.gmra.mxu0 %vm643_vm4, %v594_v26 }
 0x12f   : > { %1503 = vmatprep.mubr.f32.mxu0 %v14178_v0 }
 0x130   : > { %v1413_v39 = vpop.permute.xlu1 %1412  ;;  %11173 = vmatprep.subr.msk.mxu1 %vm647_vm2, %v1327_v36  ;;  %v1411_v40 = vpop.permute.xlu0 %1410 }
 0x131   : > { %v1415_v41 = vsel %vm1414_vm9, %v1411_v40, %v1413_v39  ;;  %v1419_v42 = vsel %vm1414_vm9, %v1413_v39, %v1411_v40  ;;  %11174 = vmatpush1.msk.msra.mxu1 %vm647_vm2, %v1326_v8 }
 0x132   : > { %v1428_v43 = vmul.f32 %v12710_v6, %v1415_v41  ;;  %v1429_v44 = vmul.f32 %v12712_v37, %v1419_v42  ;;  %11175 = vmatmul.mubr.msk.f32.vlgmr.msra.gmra.mxu1 %vm643_vm4, %v595_v38 }
 0x133   : > { %1631 = vmatprep.mubr.f32.mxu1 %v14178_v0 }
 0x134   : > { %11178 = vmatprep.subr.msk.mxu0 %vm647_vm2, %v1429_v44 }
 0x135   : > { %11179 = vmatpush1.msk.msra.mxu0 %vm647_vm2, %v1428_v43  ;;  %vm4988_vm2 = vcmask 449536  }
 0x136   : > { %11180 = vmatmul.mubr.msk.f32.vlgmr.msra.gmra.mxu0 %vm643_vm4, %v596_v45  ;;  %vm5080_vm4 = vcmask 523264  }
 0x137   : > { %1705 = vmatprep.mubr.f32.mxu0 %v14178_v0 }
 0x1de   : > { %v720_v46 = vpop.f32.mrf.mxu0 }
 0x1e0   : > { %v722_v47 = vpop.f32.mrf.mxu0 }
 0x1e2   : > { %v800_v48 = vpop.f32.mrf.mxu1  ;;  %v900_v49 = vpop.f32.mrf.mxu0 }
 0x1e3   : > { %v801_v50 = vadd.f32 %v800_v48, %v720_v46 }
 0x1e4   : > { %v802_v53 = vpop.f32.mrf.mxu1  ;;  %v902_v54 = vpop.f32.mrf.mxu0 }
 0x1e5   : > { %v803_v56 = vadd.f32 %v802_v53, %v722_v47  ;;  %v905_v57 = vadd.f32 %v900_v49, %v801_v50 }
 0x1e6   : > { %v1002_v58 = vpop.f32.mrf.mxu1  ;;  %v1097_v59 = vpop.f32.mrf.mxu0 }
 0x1e7   : > { %v906_v60 = vadd.f32 %v902_v54, %v803_v56  ;;  %v1007_v61 = vadd.f32 %v1002_v58, %v905_v57 }
 0x1e8   : > { %v1004_v63 = vpop.f32.mrf.mxu1  ;;  %v1099_v11 = vpop.f32.mrf.mxu0 }
 0x1e9   : > { %v1008_v1 = vadd.f32 %v1004_v63, %v906_v60  ;;  %v1102_v17 = vadd.f32 %v1097_v59, %v1007_v61 }
 0x1ea   : > { %v1199_v12 = vpop.f32.mrf.mxu1 }
 0x1eb   : > { %v1103_v18 = vadd.f32 %v1099_v11, %v1008_v1  ;;  %v1204_v4 = vadd.f32 %v1199_v12, %v1102_v17 }
 0x1ec   : > { %v1201_v19 = vpop.f32.mrf.mxu1 }
 0x1ed   : > { %v1205_v26 = vadd.f32 %v1201_v19, %v1103_v18  ;;  %v1531_v19 = vld [vmem:[#allocation6 + $0x8] sm:$0xff] }
 0x1ee   : > { %v1301_v21 = vpop.f32.mrf.mxu0 }
 0x1ef   : > { %v1306_v31 = vadd.f32 %v1301_v21, %v1204_v4 }
 0x1f0   : > { %v1303_v29 = vpop.f32.mrf.mxu0 }
 0x1f1   : > { %v1307_v8 = vadd.f32 %v1303_v29, %v1205_v26 }
 0x1f2   : > { %v1403_v30 = vpop.f32.mrf.mxu1 }
 0x1f3   : > { %v1408_v38 = vadd.f32 %v1403_v30, %v1306_v31 }
 0x1f4   : > { %v1405_v32 = vpop.f32.mrf.mxu1 }
 0x1f5   : > { %v1409_v39 = vadd.f32 %v1405_v32, %v1307_v8  ;;  %v1530_v32 = vld [vmem:[#allocation6] sm:$0xff] }
 0x1f6   : > { %v1505_v36 = vpop.f32.mrf.mxu0 }
 0x1f7   : > { %v1510_v41 = vadd.f32 %v1505_v36, %v1408_v38 }
 0x1f8   : > { %v1507_v40 = vpop.f32.mrf.mxu0 }
 0x1f9   : > { %v1511_v42 = vadd.f32 %v1507_v40, %v1409_v39 }
 0x1fb   : > { %v1512_v43 = vadd.f32 %v1511_v42, %v1510_v41 }
 0x1fd   : > { %1513 = vadd.xlane.f32.xlu0 %v1512_v43 }
 0x286   : > { %v1514_v44 = vpop.xlane.xlu0 %1513 }
 0x287   : > { %v1515_v45 = vmul.f32 0.00390625, %v1514_v44 }
 0x289   : > { %v1516_v46 = vsub.f32 %v1510_v41, %v1515_v45  ;;  %v1517_v47 = vsub.f32 %v1511_v42, %v1515_v45  ;;  %v1532_v42 = vld [vmem:[#allocation6 + $0x10] sm:$0xff] }
 0x28b   : > { %v1518_v48 = vmul.f32 %v1516_v46, %v1516_v46  ;;  %v1519_v49 = vmul.f32 %v1517_v47, %v1517_v47 }
 0x28d   : > { %v1520_v50 = vadd.f32 %v1519_v49, %v1518_v48 }
 0x28f   : > { %1521 = vadd.xlane.f32.xlu1 %v1520_v50 }
 0x318   : > { %v1522_v53 = vpop.xlane.xlu1 %1521 }
 0x319   : > { %v1523_v54 = vmul.f32 0.00390625, %v1522_v53  ;;  %v1533_v53 = vld [vmem:[#allocation6 + $0x18] sm:$0xff] }
 0x31b   : > { %v1524_v56 = vadd.f32 1e-05, %v1523_v54  ;;  %v1534_v54 = vld [vmem:[#allocation6 + $0x20] sm:$0xff] }
 0x31d   : > { %11905 = vrsqrt.f32 %v1524_v56 }
 0x32a   : > { %v11906_v57 = vpop.eup %11905 }
 0x32b   : > { %v1526_v58 = vmul.f32 %v11906_v57, %v1516_v46  ;;  %v1527_v59 = vmul.f32 %v11906_v57, %v1517_v47 }
 0x32d   : > { %v12727_v60 = vmax.f32 %v1526_v58, 0.0  ;;  %v12729_v61 = vmax.f32 %v1527_v59, 0.0 }
 0x32f   : > { %1552 = vrot.lane.b32.xlu0 %v12729_v61, %s14193_s15  ;;  %1555 = vrot.lane.b32.xlu1 %v12727_v60, %s14193_s15  ;;  %v1887_v45 = vmul.f32 %v12729_v61, %v12577_v10  ;;  %v1886_v48 = vmul.f32 %v12727_v60, %v12573_v9 }
 0x333   : > { %1540 = vrot.lane.b32.xlu0 %v12729_v61, %s14189_s21  ;;  %1544 = vrot.lane.b32.xlu1 %v12727_v60, %s14189_s21 }
 0x337   : > { %1712 = vrot.lane.b32.xlu0 %v12729_v61, %s14187_s19  ;;  %1715 = vrot.lane.b32.xlu1 %v12727_v60, %s14187_s19 }
 0x33b   : > { %1799 = vrot.lane.b32.xlu0 %v12729_v61, %s14209_s16  ;;  %1802 = vrot.lane.b32.xlu1 %v12727_v60, %s14209_s16 }
 0x33f   : > { %1964 = vrot.lane.b32.xlu0 %v12727_v60, %s14213_s26  ;;  %1966 = vrot.lane.b32.xlu1 %v12729_v61, %s14213_s26 }
 0x343   : > { %2051 = vrot.lane.b32.xlu0 %v12727_v60, %s14191_s14  ;;  %2053 = vrot.lane.b32.xlu1 %v12729_v61, %s14191_s14 }
 0x347   : > { %2138 = vrot.lane.b32.xlu0 %v12727_v60, %s14185_s23  ;;  %2140 = vrot.lane.b32.xlu1 %v12729_v61, %s14185_s23 }
 0x34b   : > { %2225 = vrot.lane.b32.xlu0 %v12727_v60, %s14183_s27  ;;  %2227 = vrot.lane.b32.xlu1 %v12729_v61, %s14183_s27 }
 0x3a1   : > { %v1553_v63 = vpop.permute.xlu0 %1552  ;;  %v1556_v1 = vpop.permute.xlu1 %1555 }
 0x3a2   : > { %v1557_v11 = vsel %vm628_vm0, %v1556_v1, %v1553_v63  ;;  %v1560_v12 = vsel %vm628_vm0, %v1553_v63, %v1556_v1 }
 0x3a3   : > { %v1561_v17 = vmul.f32 %v1560_v12, %v12588_v15  ;;  %v1562_v18 = vmul.f32 %v1557_v11, %v12584_v14  ;;  %v1535_v11 = vld [vmem:[#allocation6 + $0x28] sm:$0xff] }
 0x3a5   : > { %v1541_v21 = vpop.permute.xlu0 %1540  ;;  %1597 = vmatprep.subr.mxu1 %v1562_v18  ;;  %v1545_v4 = vpop.permute.xlu1 %1544 }
 0x3a6   : > { %v1546_v26 = vsel %vm608_vm1, %v1545_v4, %v1541_v21  ;;  %v1549_v29 = vsel %vm608_vm1, %v1541_v21, %v1545_v4  ;;  %1598 = vmatpush1.msra.mxu1 %v1561_v17 }
 0x3a7   : > { %v1550_v30 = vmul.f32 %v1549_v29, %v12616_v28  ;;  %v1551_v31 = vmul.f32 %v1546_v26, %v12612_v27  ;;  %11181 = vmatmul.mubr.msk.f32.vlgmr.msra.gmra.mxu1 %vm1563_vm10, %v1531_v19  ;;  %v1536_v26 = vld [vmem:[#allocation6 + $0x30] sm:$0xff] }
 0x3a8   : > { %1790 = vmatprep.mubr.f32.mxu1 %v14178_v0 }
 0x3a9   : > { %v1713_v8 = vpop.permute.xlu0 %1712  ;;  %1671 = vmatprep.subr.mxu0 %v1551_v31  ;;  %v1716_v36 = vpop.permute.xlu1 %1715 }
 0x3aa   : > { %v1717_v38 = vsel %vm810_vm3, %v1716_v36, %v1713_v8  ;;  %v1720_v39 = vsel %vm810_vm3, %v1713_v8, %v1716_v36  ;;  %1672 = vmatpush1.msra.mxu0 %v1550_v30 }
 0x3ab   : > { %v1721_v40 = vmul.f32 %v1720_v39, %v12602_v23  ;;  %v1722_v41 = vmul.f32 %v1717_v38, %v12606_v24  ;;  %11182 = vmatmul.mubr.msk.f32.vlgmr.msra.gmra.mxu0 %vm1563_vm10, %v1530_v32  ;;  %v1537_v38 = vld [vmem:[#allocation6 + $0x38] sm:$0xff] }
 0x3ac   : > { %1877 = vmatprep.mubr.f32.mxu0 %v14178_v0 }
 0x3ad   : > { %v1800_v43 = vpop.permute.xlu0 %1799  ;;  %1756 = vmatprep.subr.mxu1 %v1722_v41  ;;  %v1803_v44 = vpop.permute.xlu1 %1802 }
 0x3ae   : > { %v1804_v46 = vsel %vm912_vm5, %v1803_v44, %v1800_v43  ;;  %v1807_v47 = vsel %vm912_vm5, %v1800_v43, %v1803_v44  ;;  %1757 = vmatpush1.msra.mxu1 %v1721_v40 }
 0x3af   : > { %v1808_v49 = vmul.f32 %v1807_v47, %v12621_v33  ;;  %1921 = vmatprep.subr.mxu1 %v1887_v45  ;;  %11183 = vmatmul.mubr.msk.f32.vlgmr.msra.gmra.mxu1 %vm1563_vm10, %v1532_v42  ;;  %v1809_v50 = vmul.f32 %v1804_v46, %v12625_v34  ;;  %v1538_v45 = vld [vmem:[#allocation6 + $0x40] sm:$0xff] }
 0x3b0   : > { %1922 = vmatpush1.msra.mxu1 %v1886_v48  ;;  %1955 = vmatprep.mubr.f32.mxu1 %v14178_v0 }
 0x3b1   : > { %v1965_v56 = vpop.permute.xlu0 %1964  ;;  %1843 = vmatprep.subr.mxu0 %v1809_v50  ;;  %v1967_v57 = vpop.permute.xlu1 %1966 }
 0x3b2   : > { %v1968_v58 = vsel %vm1108_vm6, %v1965_v56, %v1967_v57  ;;  %v1972_v59 = vsel %vm1108_vm6, %v1967_v57, %v1965_v56  ;;  %1844 = vmatpush1.msra.mxu0 %v1808_v49 }
 0x3b3   : > { %v1973_v63 = vmul.f32 %v1968_v58, %v12649_v51  ;;  %11184 = vmatmul.mubr.msk.f32.vlgmr.msra.gmra.mxu0 %vm1563_vm10, %v1533_v53  ;;  %v1974_v1 = vmul.f32 %v1972_v59, %v12659_v55  ;;  %11185 = vmatmul.mubr.msk.f32.vlgmr.msra.gmra.mxu1 %vm1563_vm10, %v1534_v54 }
 0x3b4   : > { %2042 = vmatprep.mubr.f32.mxu0 %v14178_v0  ;;  %2129 = vmatprep.mubr.f32.mxu1 %v14178_v0 }
 0x3b5   : > { %v2052_v12 = vpop.permute.xlu0 %2051  ;;  %2008 = vmatprep.subr.mxu0 %v1974_v1  ;;  %v2054_v17 = vpop.permute.xlu1 %2053 }
 0x3b6   : > { %v2055_v18 = vsel %vm1210_vm7, %v2052_v12, %v2054_v17  ;;  %v2059_v19 = vsel %vm1210_vm7, %v2054_v17, %v2052_v12  ;;  %2009 = vmatpush1.msra.mxu0 %v1973_v63 }
 0x3b7   : > { %v2060_v21 = vmul.f32 %v2055_v18, %v12671_v62  ;;  %11186 = vmatmul.mubr.msk.f32.vlgmr.msra.gmra.mxu0 %vm1563_vm10, %v1535_v11  ;;  %v2061_v4 = vmul.f32 %v2059_v19, %v12679_v2 }
 0x3b8   : > { %2216 = vmatprep.mubr.f32.mxu0 %v14178_v0 }
 0x3b9   : > { %v2139_v29 = vpop.permute.xlu0 %2138  ;;  %v2141_v30 = vpop.permute.xlu1 %2140  ;;  %2095 = vmatprep.subr.mxu1 %v2061_v4 }
 0x3ba   : > { %v2142_v31 = vsel %vm1312_vm8, %v2139_v29, %v2141_v30  ;;  %v2146_v32 = vsel %vm1312_vm8, %v2141_v30, %v2139_v29  ;;  %2096 = vmatpush1.msra.mxu1 %v2060_v21 }
 0x3bb   : > { %v2147_v8 = vmul.f32 %v2142_v31, %v12696_v22  ;;  %11187 = vmatmul.mubr.msk.f32.vlgmr.msra.gmra.mxu1 %vm1563_vm10, %v1536_v26  ;;  %v2148_v36 = vmul.f32 %v2146_v32, %v12700_v25 }
 0x3bc   : > { %2303 = vmatprep.mubr.f32.mxu1 %v14178_v0 }
 0x3bd   : > { %v2226_v39 = vpop.permute.xlu0 %2225  ;;  %2182 = vmatprep.subr.mxu0 %v2148_v36  ;;  %v2228_v40 = vpop.permute.xlu1 %2227 }
 0x3be   : > { %v2229_v41 = vsel %vm1414_vm9, %v2226_v39, %v2228_v40  ;;  %v2233_v42 = vsel %vm1414_vm9, %v2228_v40, %v2226_v39  ;;  %2183 = vmatpush1.msra.mxu0 %v2147_v8 }
 0x3bf   : > { %v2234_v43 = vmul.f32 %v12710_v6, %v2229_v41  ;;  %11188 = vmatmul.mubr.msk.f32.vlgmr.msra.gmra.mxu0 %vm1563_vm10, %v1537_v38  ;;  %v2235_v44 = vmul.f32 %v12712_v37, %v2233_v42 }
 0x3c0   : > { %2430 = vmatprep.mubr.f32.mxu0 %v14178_v0 }
 0x3c1   : > { %2269 = vmatprep.subr.mxu1 %v2235_v44 }
 0x3c2   : > { %2270 = vmatpush1.msra.mxu1 %v2234_v43 }
 0x3c3   : > { %11189 = vmatmul.mubr.msk.f32.vlgmr.msra.gmra.mxu1 %vm1563_vm10, %v1538_v45 }
 0x3c4   : > { %2504 = vmatprep.mubr.f32.mxu1 %v14178_v0 }
 0x467   : > { %v1633_v46 = vpop.f32.mrf.mxu1 }
 0x469   : > { %v1635_v47 = vpop.f32.mrf.mxu1 }
 0x46b   : > { %v1707_v48 = vpop.f32.mrf.mxu0 }
 0x46c   : > { %v1708_v49 = vadd.f32 %v1707_v48, %v1633_v46 }
 0x46d   : > { %v1709_v50 = vpop.f32.mrf.mxu0 }
 0x46e   : > { %v1710_v53 = vadd.f32 %v1709_v50, %v1635_v47 }
 0x46f   : > { %v1792_v54 = vpop.f32.mrf.mxu1 }
 0x470   : > { %v1797_v56 = vadd.f32 %v1792_v54, %v1708_v49 }
 0x471   : > { %v1794_v57 = vpop.f32.mrf.mxu1 }
 0x472   : > { %v1798_v58 = vadd.f32 %v1794_v57, %v1710_v53 }
 0x473   : > { %v1879_v59 = vpop.f32.mrf.mxu0  ;;  %v1957_v63 = vpop.f32.mrf.mxu1 }
 0x474   : > { %v1884_v1 = vadd.f32 %v1879_v59, %v1797_v56 }
 0x475   : > { %v1881_v11 = vpop.f32.mrf.mxu0  ;;  %v1959_v17 = vpop.f32.mrf.mxu1 }
 0x476   : > { %v1885_v12 = vadd.f32 %v1881_v11, %v1798_v58  ;;  %v1962_v19 = vadd.f32 %v1957_v63, %v1884_v1 }
 0x477   : > { %v2044_v18 = vpop.f32.mrf.mxu0 }
 0x478   : > { %v1963_v21 = vadd.f32 %v1959_v17, %v1885_v12  ;;  %v2049_v29 = vadd.f32 %v2044_v18, %v1962_v19 }
 0x479   : > { %v2046_v4 = vpop.f32.mrf.mxu0 }
 0x47a   : > { %v2050_v30 = vadd.f32 %v2046_v4, %v1963_v21 }
 0x47b   : > { %v2131_v26 = vpop.f32.mrf.mxu1 }
 0x47c   : > { %v2136_v8 = vadd.f32 %v2131_v26, %v2049_v29  ;;  %v2331_v29 = vld [vmem:[#allocation7 + $0x8] sm:$0xff] }
 0x47d   : > { %v2133_v31 = vpop.f32.mrf.mxu1 }
 0x47e   : > { %v2137_v38 = vadd.f32 %v2133_v31, %v2050_v30 }
 0x47f   : > { %v2218_v32 = vpop.f32.mrf.mxu0 }
 0x480   : > { %v2223_v40 = vadd.f32 %v2218_v32, %v2136_v8 }
 0x481   : > { %v2220_v36 = vpop.f32.mrf.mxu0 }
 0x482   : > { %v2224_v41 = vadd.f32 %v2220_v36, %v2137_v38 }
 0x483   : > { %v2305_v39 = vpop.f32.mrf.mxu1 }
 0x484   : > { %v2310_v43 = vadd.f32 %v2305_v39, %v2223_v40  ;;  %v2330_v39 = vld [vmem:[#allocation7] sm:$0xff] }
 0x485   : > { %v2307_v42 = vpop.f32.mrf.mxu1 }
 0x486   : > { %v2311_v44 = vadd.f32 %v2307_v42, %v2224_v41 }
 0x488   : > { %v2312_v45 = vadd.f32 %v2311_v44, %v2310_v43 }
 0x48a   : > { %2313 = vadd.xlane.f32.xlu0 %v2312_v45 }
 0x513   : > { %v2314_v46 = vpop.xlane.xlu0 %2313 }
 0x514   : > { %v2315_v47 = vmul.f32 0.00390625, %v2314_v46  ;;  %v2332_v46 = vld [vmem:[#allocation7 + $0x10] sm:$0xff] }
 0x516   : > { %v2316_v48 = vsub.f32 %v2310_v43, %v2315_v47  ;;  %v2317_v49 = vsub.f32 %v2311_v44, %v2315_v47 }
 0x518   : > { %v2318_v50 = vmul.f32 %v2316_v48, %v2316_v48  ;;  %v2319_v53 = vmul.f32 %v2317_v49, %v2317_v49 }
 0x51a   : > { %v2320_v54 = vadd.f32 %v2319_v53, %v2318_v50 }
 0x51c   : > { %2321 = vadd.xlane.f32.xlu1 %v2320_v54 }
 0x5a5   : > { %v2322_v56 = vpop.xlane.xlu1 %2321 }
 0x5a6   : > { %v2323_v57 = vmul.f32 0.00390625, %v2322_v56 }
 0x5a8   : > { %v2324_v58 = vadd.f32 1e-05, %v2323_v57 }
 0x5aa   : > { %11907 = vrsqrt.f32 %v2324_v58  ;;  %v2333_v58 = vld [vmem:[#allocation7 + $0x18] sm:$0xff] }
 0x5b7   : > { %v11908_v59 = vpop.eup %11907 }
 0x5b8   : > { %v2326_v63 = vmul.f32 %v11908_v59, %v2316_v48  ;;  %v2327_v1 = vmul.f32 %v11908_v59, %v2317_v49  ;;  %v2334_v59 = vld [vmem:[#allocation7 + $0x20] sm:$0xff] }
 0x5ba   : > { %v2328_v11 = vmax.f32 %v2326_v63, 0.0  ;;  %v2329_v12 = vmax.f32 %v2327_v1, 0.0 }
 0x5bc   : > { %2352 = vrot.lane.b32.xlu0 %v2329_v12, %s14193_s15  ;;  %2355 = vrot.lane.b32.xlu1 %v2328_v11, %s14193_s15  ;;  %v2686_v49 = vmul.f32 %v2329_v12, %v12577_v10  ;;  %v2685_v54 = vmul.f32 %v2328_v11, %v12573_v9 }
 0x5c0   : > { %2340 = vrot.lane.b32.xlu0 %v2329_v12, %s14189_s21  ;;  %2344 = vrot.lane.b32.xlu1 %v2328_v11, %s14189_s21 }
 0x5c4   : > { %2511 = vrot.lane.b32.xlu0 %v2329_v12, %s14187_s19  ;;  %2514 = vrot.lane.b32.xlu1 %v2328_v11, %s14187_s19 }
 0x5c8   : > { %2598 = vrot.lane.b32.xlu0 %v2329_v12, %s14209_s16  ;;  %2601 = vrot.lane.b32.xlu1 %v2328_v11, %s14209_s16 }
 0x5cc   : > { %2763 = vrot.lane.b32.xlu0 %v2328_v11, %s14213_s26  ;;  %2765 = vrot.lane.b32.xlu1 %v2329_v12, %s14213_s26 }
 0x5d0   : > { %2850 = vrot.lane.b32.xlu0 %v2328_v11, %s14191_s14  ;;  %2852 = vrot.lane.b32.xlu1 %v2329_v12, %s14191_s14 }
 0x5d4   : > { %2937 = vrot.lane.b32.xlu0 %v2328_v11, %s14185_s23  ;;  %2939 = vrot.lane.b32.xlu1 %v2329_v12, %s14185_s23 }
 0x5d8   : > { %3024 = vrot.lane.b32.xlu0 %v2328_v11, %s14183_s27  ;;  %3026 = vrot.lane.b32.xlu1 %v2329_v12, %s14183_s27 }
 0x62e   : > { %v2353_v17 = vpop.permute.xlu0 %2352  ;;  %v2356_v18 = vpop.permute.xlu1 %2355 }
 0x62f   : > { %v2357_v19 = vsel %vm628_vm0, %v2356_v18, %v2353_v17  ;;  %v2360_v21 = vsel %vm628_vm0, %v2353_v17, %v2356_v18 }
 0x630   : > { %v2361_v4 = vmul.f32 %v2360_v21, %v12588_v15  ;;  %v2362_v26 = vmul.f32 %v2357_v19, %v12584_v14  ;;  %v2335_v19 = vld [vmem:[#allocation7 + $0x28] sm:$0xff] }
 0x632   : > { %v2341_v30 = vpop.permute.xlu0 %2340  ;;  %2396 = vmatprep.subr.mxu0 %v2362_v26  ;;  %v2345_v31 = vpop.permute.xlu1 %2344 }
 0x633   : > { %v2346_v32 = vsel %vm608_vm1, %v2345_v31, %v2341_v30  ;;  %v2349_v8 = vsel %vm608_vm1, %v2341_v30, %v2345_v31  ;;  %2397 = vmatpush1.msra.mxu0 %v2361_v4 }
 0x634   : > { %v2350_v36 = vmul.f32 %v2349_v8, %v12616_v28  ;;  %v2351_v38 = vmul.f32 %v2346_v32, %v12612_v27  ;;  %11190 = vmatmul.mubr.msk.f32.vlgmr.msra.gmra.mxu0 %vm1563_vm10, %v2331_v29  ;;  %v2336_v32 = vld [vmem:[#allocation7 + $0x30] sm:$0xff] }
 0x635   : > { %2589 = vmatprep.mubr.f32.mxu0 %v14178_v0 }
 0x636   : > { %v2512_v40 = vpop.permute.xlu0 %2511  ;;  %2470 = vmatprep.subr.mxu1 %v2351_v38  ;;  %v2515_v41 = vpop.permute.xlu1 %2514 }
 0x637   : > { %v2516_v42 = vsel %vm810_vm3, %v2515_v41, %v2512_v40  ;;  %v2519_v43 = vsel %vm810_vm3, %v2512_v40, %v2515_v41  ;;  %2471 = vmatpush1.msra.mxu1 %v2350_v36 }
 0x638   : > { %v2520_v44 = vmul.f32 %v2519_v43, %v12602_v23  ;;  %v2521_v45 = vmul.f32 %v2516_v42, %v12606_v24  ;;  %11191 = vmatmul.mubr.msk.f32.vlgmr.msra.gmra.mxu1 %vm1563_vm10, %v2330_v39  ;;  %v2337_v42 = vld [vmem:[#allocation7 + $0x38] sm:$0xff] }
 0x639   : > { %2676 = vmatprep.mubr.f32.mxu1 %v14178_v0 }
 0x63a   : > { %v2599_v47 = vpop.permute.xlu0 %2598  ;;  %2555 = vmatprep.subr.mxu0 %v2521_v45  ;;  %v2602_v48 = vpop.permute.xlu1 %2601 }
 0x63b   : > { %v2603_v50 = vsel %vm912_vm5, %v2602_v48, %v2599_v47  ;;  %v2606_v53 = vsel %vm912_vm5, %v2599_v47, %v2602_v48  ;;  %2556 = vmatpush1.msra.mxu0 %v2520_v44 }
 0x63c   : > { %v2607_v56 = vmul.f32 %v2606_v53, %v12621_v33  ;;  %2720 = vmatprep.subr.mxu0 %v2686_v49  ;;  %11192 = vmatmul.mubr.msk.f32.vlgmr.msra.gmra.mxu0 %vm1563_vm10, %v2332_v46  ;;  %v2608_v57 = vmul.f32 %v2603_v50, %v12625_v34  ;;  %v2338_v49 = vld [vmem:[#allocation7 + $0x40] sm:$0xff] }
 0x63d   : > { %2721 = vmatpush1.msra.mxu0 %v2685_v54  ;;  %2754 = vmatprep.mubr.f32.mxu0 %v14178_v0 }
 0x63e   : > { %v2764_v63 = vpop.permute.xlu0 %2763  ;;  %2642 = vmatprep.subr.mxu1 %v2608_v57  ;;  %v2766_v1 = vpop.permute.xlu1 %2765 }
 0x63f   : > { %v2767_v12 = vsel %vm1108_vm6, %v2764_v63, %v2766_v1  ;;  %v2771_v17 = vsel %vm1108_vm6, %v2766_v1, %v2764_v63  ;;  %2643 = vmatpush1.msra.mxu1 %v2607_v56 }
 0x640   : > { %v2772_v11 = vmul.f32 %v2767_v12, %v12649_v51  ;;  %11193 = vmatmul.mubr.msk.f32.vlgmr.msra.gmra.mxu1 %vm1563_vm10, %v2333_v58  ;;  %v2773_v18 = vmul.f32 %v2771_v17, %v12659_v55  ;;  %11194 = vmatmul.mubr.msk.f32.vlgmr.msra.gmra.mxu0 %vm1563_vm10, %v2334_v59 }
 0x641   : > { %2841 = vmatprep.mubr.f32.mxu1 %v14178_v0  ;;  %2928 = vmatprep.mubr.f32.mxu0 %v14178_v0 }
 0x642   : > { %v2851_v21 = vpop.permute.xlu0 %2850  ;;  %2807 = vmatprep.subr.mxu1 %v2773_v18  ;;  %v2853_v4 = vpop.permute.xlu1 %2852 }
 0x643   : > { %v2854_v26 = vsel %vm1210_vm7, %v2851_v21, %v2853_v4  ;;  %v2858_v29 = vsel %vm1210_vm7, %v2853_v4, %v2851_v21  ;;  %2808 = vmatpush1.msra.mxu1 %v2772_v11 }
 0x644   : > { %v2859_v30 = vmul.f32 %v2854_v26, %v12671_v62  ;;  %11195 = vmatmul.mubr.msk.f32.vlgmr.msra.gmra.mxu1 %vm1563_vm10, %v2335_v19  ;;  %v2860_v31 = vmul.f32 %v2858_v29, %v12679_v2 }
 0x645   : > { %3015 = vmatprep.mubr.f32.mxu1 %v14178_v0 }
 0x646   : > { %v2938_v8 = vpop.permute.xlu0 %2937  ;;  %v2940_v36 = vpop.permute.xlu1 %2939  ;;  %2894 = vmatprep.subr.mxu0 %v2860_v31 }
 0x647   : > { %v2941_v38 = vsel %vm1312_vm8, %v2938_v8, %v2940_v36  ;;  %v2945_v39 = vsel %vm1312_vm8, %v2940_v36, %v2938_v8  ;;  %2895 = vmatpush1.msra.mxu0 %v2859_v30 }
 0x648   : > { %v2946_v40 = vmul.f32 %v2941_v38, %v12696_v22  ;;  %11196 = vmatmul.mubr.msk.f32.vlgmr.msra.gmra.mxu0 %vm1563_vm10, %v2336_v32  ;;  %v2947_v41 = vmul.f32 %v2945_v39, %v12700_v25 }
 0x649   : > { %3102 = vmatprep.mubr.f32.mxu0 %v14178_v0 }
 0x64a   : > { %v3025_v43 = vpop.permute.xlu0 %3024  ;;  %2981 = vmatprep.subr.mxu1 %v2947_v41  ;;  %v3027_v44 = vpop.permute.xlu1 %3026 }
 0x64b   : > { %v3028_v45 = vsel %vm1414_vm9, %v3025_v43, %v3027_v44  ;;  %v3032_v46 = vsel %vm1414_vm9, %v3027_v44, %v3025_v43  ;;  %2982 = vmatpush1.msra.mxu1 %v2946_v40 }
 0x64c   : > { %v3033_v47 = vmul.f32 %v12710_v6, %v3028_v45  ;;  %11197 = vmatmul.mubr.msk.f32.vlgmr.msra.gmra.mxu1 %vm1563_vm10, %v2337_v42  ;;  %v3034_v48 = vmul.f32 %v12712_v37, %v3032_v46 }
 0x64d   : > { %3227 = vmatprep.mubr.f32.mxu1 %v14178_v0 }
 0x64e   : > { %3068 = vmatprep.subr.mxu0 %v3034_v48 }
 0x64f   : > { %3069 = vmatpush1.msra.mxu0 %v3033_v47 }
 0x650   : > { %11198 = vmatmul.mubr.msk.f32.vlgmr.msra.gmra.mxu0 %vm1563_vm10, %v2338_v49 }
 0x651   : > { %3310 = vmatprep.mubr.f32.mxu0 %v14178_v0 }
 0x6f4   : > { %v2432_v50 = vpop.f32.mrf.mxu0 }
 0x6f6   : > { %v2434_v53 = vpop.f32.mrf.mxu0 }
 0x6f8   : > { %v2506_v54 = vpop.f32.mrf.mxu1 }
 0x6f9   : > { %v2507_v56 = vadd.f32 %v2506_v54, %v2432_v50 }
 0x6fa   : > { %v2508_v57 = vpop.f32.mrf.mxu1 }
 0x6fb   : > { %v2509_v58 = vadd.f32 %v2508_v57, %v2434_v53 }
 0x6fc   : > { %v2591_v59 = vpop.f32.mrf.mxu0 }
 0x6fd   : > { %v2596_v63 = vadd.f32 %v2591_v59, %v2507_v56 }
 0x6fe   : > { %v2593_v1 = vpop.f32.mrf.mxu0 }
 0x6ff   : > { %v2597_v12 = vadd.f32 %v2593_v1, %v2509_v58  ;;  %v3117_v1 = vld [vmem:[#allocation9 + $0x10] sm:$0xff] }
 0x700   : > { %v2678_v17 = vpop.f32.mrf.mxu1  ;;  %v2756_v11 = vpop.f32.mrf.mxu0 }
 0x701   : > { %v2683_v18 = vadd.f32 %v2678_v17, %v2596_v63 }
 0x702   : > { %v2680_v19 = vpop.f32.mrf.mxu1  ;;  %v2758_v26 = vpop.f32.mrf.mxu0 }
 0x703   : > { %v2684_v21 = vadd.f32 %v2680_v19, %v2597_v12  ;;  %v2761_v4 = vadd.f32 %v2756_v11, %v2683_v18 }
 0x704   : > { %v2843_v29 = vpop.f32.mrf.mxu1 }
 0x705   : > { %v2762_v30 = vadd.f32 %v2758_v26, %v2684_v21  ;;  %v2848_v31 = vadd.f32 %v2843_v29, %v2761_v4  ;;  %v3118_v4 = vld [vmem:[#allocation9 + $0x18] sm:$0xff]  ;;  %v3115_v26 = vld [vmem:[#allocation9] sm:$0xff] }
 0x706   : > { %v2845_v32 = vpop.f32.mrf.mxu1 }
 0x707   : > { %v2849_v36 = vadd.f32 %v2845_v32, %v2762_v30 }
 0x708   : > { %v2930_v8 = vpop.f32.mrf.mxu0 }
 0x709   : > { %v2935_v38 = vadd.f32 %v2930_v8, %v2848_v31 }
 0x70a   : > { %v2932_v39 = vpop.f32.mrf.mxu0 }
 0x70b   : > { %v2936_v42 = vadd.f32 %v2932_v39, %v2849_v36  ;;  %v3119_v39 = vld [vmem:[#allocation9 + $0x20] sm:$0xff] }
 0x70c   : > { %v3017_v40 = vpop.f32.mrf.mxu1 }
 0x70d   : > { %v3022_v43 = vadd.f32 %v3017_v40, %v2935_v38  ;;  %v3116_v38 = vld [vmem:[#allocation9 + $0x8] sm:$0xff] }
 0x70e   : > { %v3019_v41 = vpop.f32.mrf.mxu1 }
 0x70f   : > { %v3023_v45 = vadd.f32 %v3019_v41, %v2936_v42 }
 0x710   : > { %v3104_v44 = vpop.f32.mrf.mxu0 }
 0x711   : > { %v3109_v46 = vadd.f32 %v3104_v44, %v3022_v43 }
 0x712   : > { %v3106_v47 = vpop.f32.mrf.mxu0 }
 0x713   : > { %v3111_v48 = vmul.f32 0.1, %v3109_v46  ;;  %v3110_v49 = vadd.f32 %v3106_v47, %v3023_v45 }
 0x715   : > { %v12886_v50 = vsub.f32 %v12727_v60, %v3111_v48  ;;  %v3112_v53 = vmul.f32 0.1, %v3110_v49  ;;  %v3120_v48 = vld [vmem:[#allocation9 + $0x28] sm:$0xff]  ;;  %v3121_v49 = vld [vmem:[#allocation9 + $0x30] sm:$0xff] }
 0x717   : > { %14241 = vst [vmem:[#allocation27_spill] sm:$0xff] %v12886_v50  ;;  %v12889_v54 = vsub.f32 %v12729_v61, %v3112_v53  ;;  %3149 = vrot.lane.b32.xlu1 %v12886_v50, %s14193_s15  ;;  %v3519_v46 = vmul.f32 %v12886_v50, %v12573_v9 }
 0x719   : > { %14242 = vst [vmem:[#allocation28_spill] sm:$0xff] %v12889_v54  ;;  %3146 = vrot.lane.b32.xlu0 %v12889_v54, %s14193_s15  ;;  %v3520_v43 = vmul.f32 %v12889_v54, %v12577_v10  ;;  %s14207_s15 = smov 119  }
 0x71b   : > { %3138 = vrot.lane.b32.xlu1 %v12886_v50, %s14189_s21 }
 0x71d   : > { %3134 = vrot.lane.b32.xlu0 %v12889_v54, %s14189_s21  ;;  %s14205_s21 = smov 57  }
 0x71f   : > { %3326 = vrot.lane.b32.xlu1 %v12886_v50, %s14187_s19 }
 0x721   : > { %3323 = vrot.lane.b32.xlu0 %v12889_v54, %s14187_s19  ;;  %s14195_s19 = smov 120  }
 0x723   : > { %3424 = vrot.lane.b32.xlu1 %v12886_v50, %s14209_s16 }
 0x725   : > { %3421 = vrot.lane.b32.xlu0 %v12889_v54, %s14209_s16 }
 0x727   : > { %3610 = vrot.lane.b32.xlu1 %v12889_v54, %s14213_s26 }
 0x729   : > { %3608 = vrot.lane.b32.xlu0 %v12886_v50, %s14213_s26 }
 0x72b   : > { %3708 = vrot.lane.b32.xlu1 %v12889_v54, %s14191_s14 }
 0x72d   : > { %3706 = vrot.lane.b32.xlu0 %v12886_v50, %s14191_s14  ;;  %s14199_s14 = smov 56  }
 0x72f   : > { %3806 = vrot.lane.b32.xlu1 %v12889_v54, %s14185_s23 }
 0x731   : > { %3804 = vrot.lane.b32.xlu0 %v12886_v50, %s14185_s23  ;;  %s14203_s23 = smov 63  }
 0x733   : > { %3904 = vrot.lane.b32.xlu1 %v12889_v54, %s14183_s27 }
 0x735   : > { %3902 = vrot.lane.b32.xlu0 %v12886_v50, %s14183_s27  ;;  %s14201_s27 = smov 121  }
 0x789   : > { %v3150_v60 = vpop.permute.xlu1 %3149 }
 0x78b   : > { %v3147_v61 = vpop.permute.xlu0 %3146 }
 0x78c   : > { %v3151_v56 = vsel %vm628_vm0, %v3150_v60, %v3147_v61  ;;  %v3154_v57 = vsel %vm628_vm0, %v3147_v61, %v3150_v60 }
 0x78d   : > { %v3155_v58 = vmul.f32 %v3154_v57, %v12588_v15  ;;  %v3139_v59 = vpop.permute.xlu1 %3138  ;;  %v3156_v63 = vmul.f32 %v3151_v56, %v12584_v14 }
 0x78f   : > { %3193 = vmatprep.subr.mxu1 %v3156_v63  ;;  %v3135_v12 = vpop.permute.xlu0 %3134  ;;  %v3123_v63 = vld [vmem:[#allocation9 + $0x40] sm:$0xff] }
 0x790   : > { %v3140_v17 = vsel %vm608_vm1, %v3139_v59, %v3135_v12  ;;  %v3143_v11 = vsel %vm608_vm1, %v3135_v12, %v3139_v59  ;;  %3194 = vmatpush1.msra.mxu1 %v3155_v58  ;;  %v3122_v59 = vld [vmem:[#allocation9 + $0x38] sm:$0xff] }
 0x791   : > { %v3144_v18 = vmul.f32 %v3143_v11, %v12616_v28  ;;  %v3327_v19 = vpop.permute.xlu1 %3326  ;;  %11199 = vmatmul.mubr.msk.f32.vlgmr.msra.gmra.mxu1 %vm1563_vm10, %v3117_v1  ;;  %v3145_v21 = vmul.f32 %v3140_v17, %v12612_v27 }
 0x792   : > { %3233 = vmatprep.mubr.f32.mxu1 %v14178_v0 }
 0x793   : > { %3276 = vmatprep.subr.mxu0 %v3145_v21  ;;  %v3324_v29 = vpop.permute.xlu0 %3323  ;;  %v3124_v21 = vld [vmem:[#allocation9 + $0x48] sm:$0xff] }
 0x794   : > { %v3328_v30 = vsel %vm810_vm3, %v3327_v19, %v3324_v29  ;;  %v3331_v31 = vsel %vm810_vm3, %v3324_v29, %v3327_v19  ;;  %3277 = vmatpush1.msra.mxu0 %v3144_v18 }
 0x795   : > { %v3332_v32 = vmul.f32 %v3331_v31, %v12602_v23  ;;  %v3425_v8 = vpop.permute.xlu1 %3424  ;;  %11200 = vmatmul.mubr.msk.f32.gmra.mxu1 %vm1563_vm10, %v3118_v4  ;;  %11201 = vmatmul.mubr.msk.f32.vlgmr.msra.gmra.mxu0 %vm1563_vm10, %v3115_v26  ;;  %v3333_v36 = vmul.f32 %v3328_v30, %v12606_v24  ;;  %v3125_v4 = vld [vmem:[#allocation9 + $0x50] sm:$0xff] }
 0x796   : > { %3316 = vmatprep.mubr.f32.mxu0 %v14178_v0  ;;  %3404 = vmatprep.mubr.f32.mxu1 %v14178_v0 }
 0x797   : > { %3370 = vmatprep.subr.mxu1 %v3333_v36  ;;  %v3422_v40 = vpop.permute.xlu0 %3421  ;;  %v3127_v36 = vld [vmem:[#allocation9 + $0x60] sm:$0xff] }
 0x798   : > { %v3426_v41 = vsel %vm912_vm5, %v3425_v8, %v3422_v40  ;;  %v3429_v42 = vsel %vm912_vm5, %v3422_v40, %v3425_v8  ;;  %3371 = vmatpush1.msra.mxu1 %v3332_v32  ;;  %v3126_v8 = vld [vmem:[#allocation9 + $0x58] sm:$0xff] }
 0x799   : > { %v3430_v44 = vmul.f32 %v3429_v42, %v12621_v33  ;;  %v3611_v45 = vpop.permute.xlu1 %3610  ;;  %11202 = vmatmul.mubr.msk.f32.gmra.mxu0 %vm1563_vm10, %v3116_v38  ;;  %11203 = vmatmul.mubr.msk.f32.vlgmr.msra.gmra.mxu1 %vm1563_vm10, %v3119_v39  ;;  %v3431_v47 = vmul.f32 %v3426_v41, %v12625_v34 }
 0x79a   : > { %3557 = vmatprep.subr.mxu1 %v3520_v43  ;;  %3410 = vmatprep.mubr.f32.mxu1 %v14178_v0 }
 0x79b   : > { %3558 = vmatpush1.msra.mxu1 %v3519_v46  ;;  %3468 = vmatprep.subr.mxu0 %v3431_v47  ;;  %v3609_v53 = vpop.permute.xlu0 %3608  ;;  %v3131_v46 = vld [vmem:[#allocation9 + $0x80] sm:$0xff] }
 0x79c   : > { %v3612_v60 = vsel %vm1108_vm6, %v3609_v53, %v3611_v45  ;;  %v3616_v61 = vsel %vm1108_vm6, %v3611_v45, %v3609_v53  ;;  %3469 = vmatpush1.msra.mxu0 %v3430_v44  ;;  %3502 = vmatprep.mubr.f32.mxu0 %v14178_v0  ;;  %v3128_v44 = vld [vmem:[#allocation9 + $0x68] sm:$0xff]  ;;  %v3129_v45 = vld [vmem:[#allocation9 + $0x70] sm:$0xff] }
 0x79d   : > { %v3617_v56 = vmul.f32 %v3612_v60, %v12649_v51  ;;  %v3709_v57 = vpop.permute.xlu1 %3708  ;;  %11204 = vmatmul.mubr.msk.f32.gmra.mxu1 %vm1563_vm10, %v3120_v48  ;;  %11205 = vmatmul.mubr.msk.f32.vlgmr.msra.gmra.mxu0 %vm1563_vm10, %v3121_v49  ;;  %v3618_v58 = vmul.f32 %v3616_v61, %v12659_v55 }
 0x79e   : > { %3508 = vmatprep.mubr.f32.mxu0 %v14178_v0  ;;  %3591 = vmatprep.mubr.f32.mxu1 %v14178_v0 }
 0x79f   : > { %3655 = vmatprep.subr.mxu0 %v3618_v58  ;;  %v3707_v1 = vpop.permute.xlu0 %3706 }
 0x7a0   : > { %v3710_v12 = vsel %vm1210_vm7, %v3707_v1, %v3709_v57  ;;  %v3714_v17 = vsel %vm1210_vm7, %v3709_v57, %v3707_v1  ;;  %3656 = vmatpush1.msra.mxu0 %v3617_v56 }
 0x7a1   : > { %v3715_v11 = vmul.f32 %v3710_v12, %v12671_v62  ;;  %v3807_v18 = vpop.permute.xlu1 %3806  ;;  %11206 = vmatmul.mubr.msk.f32.gmra.mxu0 %vm1563_vm10, %v3122_v59  ;;  %11207 = vmatmul.mubr.msk.f32.vlgmr.msra.gmra.mxu1 %vm1563_vm10, %v3123_v63  ;;  %v3716_v19 = vmul.f32 %v3714_v17, %v12679_v2 }
 0x7a2   : > { %3597 = vmatprep.mubr.f32.mxu1 %v14178_v0  ;;  %3689 = vmatprep.mubr.f32.mxu0 %v14178_v0 }
 0x7a3   : > { %v3805_v26 = vpop.permute.xlu0 %3804  ;;  %3753 = vmatprep.subr.mxu1 %v3716_v19 }
 0x7a4   : > { %v3808_v29 = vsel %vm1312_vm8, %v3805_v26, %v3807_v18  ;;  %v3812_v30 = vsel %vm1312_vm8, %v3807_v18, %v3805_v26  ;;  %3754 = vmatpush1.msra.mxu1 %v3715_v11 }
 0x7a5   : > { %v3813_v31 = vmul.f32 %v3808_v29, %v12696_v22  ;;  %11208 = vmatmul.mubr.msk.f32.gmra.mxu1 %vm1563_vm10, %v3124_v21  ;;  %11209 = vmatmul.mubr.msk.f32.vlgmr.msra.gmra.mxu0 %vm1563_vm10, %v3125_v4  ;;  %v3814_v32 = vmul.f32 %v3812_v30, %v12700_v25  ;;  %v3905_v38 = vpop.permute.xlu1 %3904 }
 0x7a6   : > { %3695 = vmatprep.mubr.f32.mxu0 %v14178_v0  ;;  %3787 = vmatprep.mubr.f32.mxu1 %v14178_v0 }
 0x7a7   : > { %3851 = vmatprep.subr.mxu0 %v3814_v32  ;;  %v3903_v39 = vpop.permute.xlu0 %3902 }
 0x7a8   : > { %v3906_v40 = vsel %vm1414_vm9, %v3903_v39, %v3905_v38  ;;  %v3910_v41 = vsel %vm1414_vm9, %v3905_v38, %v3903_v39  ;;  %3852 = vmatpush1.msra.mxu0 %v3813_v31 }
 0x7a9   : > { %v3911_v42 = vmul.f32 %v12710_v6, %v3906_v40  ;;  %11210 = vmatmul.mubr.msk.f32.gmra.mxu0 %vm1563_vm10, %v3126_v8  ;;  %11211 = vmatmul.mubr.msk.f32.vlgmr.msra.gmra.mxu1 %vm1563_vm10, %v3127_v36  ;;  %v3912_v43 = vmul.f32 %v12712_v37, %v3910_v41  ;;  %v3130_v6 = vld [vmem:[#allocation9 + $0x78] sm:$0xff]  ;;  %v3132_v37 = vld [vmem:[#allocation9 + $0x88] sm:$0xff] }
 0x7aa   : > { %3793 = vmatprep.mubr.f32.mxu1 %v14178_v0  ;;  %3885 = vmatprep.mubr.f32.mxu0 %v14178_v0 }
 0x7ab   : > { %3949 = vmatprep.subr.mxu1 %v3912_v43 }
 0x7ac   : > { %3950 = vmatpush1.msra.mxu1 %v3911_v42 }
 0x7ad   : > { %11212 = vmatmul.mubr.msk.f32.gmra.mxu1 %vm1563_vm10, %v3128_v44  ;;  %11213 = vmatmul.mubr.msk.f32.vlgmr.msra.gmra.mxu0 %vm1563_vm10, %v3129_v45 }
 0x7ae   : > { %3891 = vmatprep.mubr.f32.mxu0 %v14178_v0  ;;  %3983 = vmatprep.mubr.f32.mxu1 %v14178_v0 }
 0x7b1   : > { %11214 = vmatmul.mubr.msk.f32.gmra.mxu0 %vm1563_vm10, %v3130_v6  ;;  %11215 = vmatmul.mubr.msk.f32.vlgmr.msra.gmra.mxu1 %vm1563_vm10, %v3131_v46 }
 0x7b2   : > { %3989 = vmatprep.mubr.f32.mxu1 %v14178_v0 }
 0x7b5   : > { %11216 = vmatmul.mubr.msk.f32.gmra.mxu1 %vm1563_vm10, %v3132_v37 }
 0x851   : > { %v3229_v47 = vpop.f32.mrf.mxu1 }
 0x853   : > { %v3231_v48 = vpop.f32.mrf.mxu1 }
 0x855   : > { %v3235_v49 = vpop.f32.mrf.mxu1  ;;  %v3312_v53 = vpop.f32.mrf.mxu0 }
 0x856   : > { %v3313_v29 = vadd.f32 %v3312_v53, %v3229_v47 }
 0x857   : > { %v3237_v60 = vpop.f32.mrf.mxu1  ;;  %v3314_v61 = vpop.f32.mrf.mxu0 }
 0x858   : > { %v3315_v30 = vadd.f32 %v3314_v61, %v3231_v48 }
 0x859   : > { %v3318_v56 = vpop.f32.mrf.mxu0  ;;  %v3406_v57 = vpop.f32.mrf.mxu1 }
 0x85a   : > { %v3417_v8 = vadd.f32 %v3406_v57, %v3313_v29  ;;  %v3319_v40 = vadd.f32 %v3318_v56, %v3235_v49 }
 0x85b   : > { %v3320_v58 = vpop.f32.mrf.mxu0  ;;  %v3408_v59 = vpop.f32.mrf.mxu1 }
 0x85c   : > { %v3418_v36 = vadd.f32 %v3408_v59, %v3315_v30  ;;  %v3321_v41 = vadd.f32 %v3320_v58, %v3237_v60 }
 0x85d   : > { %v3412_v63 = vpop.f32.mrf.mxu1  ;;  %v3504_v1 = vpop.f32.mrf.mxu0 }
 0x85e   : > { %v3515_v42 = vadd.f32 %v3504_v1, %v3417_v8  ;;  %v3419_v6 = vadd.f32 %v3412_v63, %v3319_v40 }
 0x85f   : > { %v3414_v12 = vpop.f32.mrf.mxu1  ;;  %v3506_v17 = vpop.f32.mrf.mxu0 }
 0x860   : > { %v3516_v43 = vadd.f32 %v3506_v17, %v3418_v36  ;;  %v3420_v46 = vadd.f32 %v3414_v12, %v3321_v41 }
 0x861   : > { %v3510_v11 = vpop.f32.mrf.mxu0  ;;  %v3593_v18 = vpop.f32.mrf.mxu1 }
 0x862   : > { %v3604_v37 = vadd.f32 %v3593_v18, %v3515_v42  ;;  %v3517_v47 = vadd.f32 %v3510_v11, %v3419_v6  ;;  %v4051_v42 = vld [vmem:[#allocation10 + $0x78] sm:$0xff]  ;;  %v4048_v6 = vld [vmem:[#allocation10 + $0x60] sm:$0xff] }
 0x863   : > { %v3512_v19 = vpop.f32.mrf.mxu0  ;;  %v3595_v21 = vpop.f32.mrf.mxu1 }
 0x864   : > { %v3605_v0 = vadd.f32 %v3595_v21, %v3516_v43  ;;  %v3518_v48 = vadd.f32 %v3512_v19, %v3420_v46  ;;  %v4050_v43 = vld [vmem:[#allocation10 + $0x70] sm:$0xff]  ;;  %v4063_v46 = vld [vmem:[#allocation10 + $0xd8] sm:$0xff] }
 0x865   : > { %v3599_v4 = vpop.f32.mrf.mxu1  ;;  %v3691_v26 = vpop.f32.mrf.mxu0 }
 0x866   : > { %v3702_v53 = vadd.f32 %v3691_v26, %v3604_v37  ;;  %v3606_v29 = vadd.f32 %v3599_v4, %v3517_v47 }
 0x867   : > { %v3601_v31 = vpop.f32.mrf.mxu1  ;;  %v3693_v32 = vpop.f32.mrf.mxu0 }
 0x868   : > { %v3703_v61 = vadd.f32 %v3693_v32, %v3605_v0  ;;  %v3607_v30 = vadd.f32 %v3601_v31, %v3518_v48 }
 0x869   : > { %v3697_v38 = vpop.f32.mrf.mxu0  ;;  %v3789_v39 = vpop.f32.mrf.mxu1 }
 0x86a   : > { %v3800_v49 = vadd.f32 %v3789_v39, %v3702_v53  ;;  %v3704_v1 = vadd.f32 %v3697_v38, %v3606_v29  ;;  %v4067_v38 = vld [vmem:[#allocation10 + $0xf8] sm:$0xff] }
 0x86b   : > { %v3699_v44 = vpop.f32.mrf.mxu0  ;;  %v3791_v45 = vpop.f32.mrf.mxu1  ;;  %11332 = vmatprep.subr.mxu0 %v4067_v38  ;;  %v4054_v38 = vld [vmem:[#allocation10 + $0x90] sm:$0xff] }
 0x86c   : > { %v3801_v60 = vadd.f32 %v3791_v45, %v3703_v61  ;;  %v3705_v17 = vadd.f32 %v3699_v44, %v3607_v30  ;;  %11333 = vmatpush3.msra.mxu0 %v4051_v42  ;;  %v4049_v44 = vld [vmem:[#allocation10 + $0x68] sm:$0xff]  ;;  %v4064_v45 = vld [vmem:[#allocation10 + $0xe0] sm:$0xff]  ;;  %v4038_v42 = vld [vmem:[#allocation10 + $0x10] sm:$0xff] }
 0x86d   : > { %v3795_v54 = vpop.f32.mrf.mxu1  ;;  %v3887_v50 = vpop.f32.mrf.mxu0 }
 0x86e   : > { %v3898_v63 = vadd.f32 %v3887_v50, %v3800_v49  ;;  %v3802_v8 = vadd.f32 %v3795_v54, %v3704_v1  ;;  %v4066_v50 = vld [vmem:[#allocation10 + $0xf0] sm:$0xff]  ;;  %v4065_v54 = vld [vmem:[#allocation10 + $0xe8] sm:$0xff] }
 0x86f   : > { %v3797_v57 = vpop.f32.mrf.mxu1  ;;  %v3889_v59 = vpop.f32.mrf.mxu0  ;;  %11334 = vmatprep.subr.mxu0 %v4066_v50  ;;  %v4053_v50 = vld [vmem:[#allocation10 + $0x88] sm:$0xff] }
 0x870   : > { %v3899_v12 = vadd.f32 %v3889_v59, %v3801_v60  ;;  %v3803_v36 = vadd.f32 %v3797_v57, %v3705_v17  ;;  %11335 = vmatpush3.msra.mxu0 %v4050_v43  ;;  %v4047_v17 = vld [vmem:[#allocation10 + $0x58] sm:$0xff]  ;;  %v4037_v43 = vld [vmem:[#allocation10 + $0x8] sm:$0xff] }
 0x871   : > { %v3893_v56 = vpop.f32.mrf.mxu0  ;;  %v3985_v58 = vpop.f32.mrf.mxu1  ;;  %11336 = vmatprep.subr.mxu0 %v4065_v54  ;;  %v4052_v54 = vld [vmem:[#allocation10 + $0x80] sm:$0xff] }
 0x872   : > { %v3996_v11 = vadd.f32 %v3985_v58, %v3898_v63  ;;  %v3900_v0 = vadd.f32 %v3893_v56, %v3802_v8  ;;  %11337 = vmatpush3.msra.mxu0 %v4049_v44  ;;  %v4062_v63 = vld [vmem:[#allocation10 + $0xd0] sm:$0xff]  ;;  %v4060_v8 = vld [vmem:[#allocation10 + $0xc0] sm:$0xff] }
 0x873   : > { %v3895_v18 = vpop.f32.mrf.mxu0  ;;  %v3987_v21 = vpop.f32.mrf.mxu1  ;;  %11338 = vmatprep.subr.mxu0 %v4064_v45  ;;  %v4036_v44 = vld [vmem:[#allocation10] sm:$0xff] }
 0x874   : > { %v3997_v19 = vadd.f32 %v3987_v21, %v3899_v12  ;;  %v3901_v32 = vadd.f32 %v3895_v18, %v3803_v36  ;;  %11339 = vmatpush3.msra.mxu0 %v4048_v6  ;;  %v4046_v12 = vld [vmem:[#allocation10 + $0x50] sm:$0xff]  ;;  %v4061_v18 = vld [vmem:[#allocation10 + $0xc8] sm:$0xff]  ;;  %v4044_v36 = vld [vmem:[#allocation10 + $0x40] sm:$0xff] }
 0x875   : > { %v3991_v26 = vpop.f32.mrf.mxu1  ;;  %11340 = vmatprep.subr.mxu0 %v4063_v46  ;;  %v4045_v21 = vld [vmem:[#allocation10 + $0x48] sm:$0xff] }
 0x876   : > { %v4000_v40 = vadd.f32 %v3997_v19, %v3996_v11  ;;  %v3998_v31 = vadd.f32 %v3991_v26, %v3900_v0  ;;  %11341 = vmatpush3.msra.mxu0 %v4047_v17  ;;  %v4058_v26 = vld [vmem:[#allocation10 + $0xb0] sm:$0xff] }
 0x877   : > { %v3993_v4 = vpop.f32.mrf.mxu1  ;;  %11342 = vmatprep.subr.mxu0 %v4062_v63  ;;  %v4042_v0 = vld [vmem:[#allocation10 + $0x30] sm:$0xff] }
 0x878   : > { %v3999_v39 = vadd.f32 %v3993_v4, %v3901_v32  ;;  %4001 = vadd.xlane.f32.xlu0 %v4000_v40  ;;  %11343 = vmatpush3.msra.mxu0 %v4046_v12  ;;  %v4057_v32 = vld [vmem:[#allocation10 + $0xa8] sm:$0xff]  ;;  %v4056_v4 = vld [vmem:[#allocation10 + $0xa0] sm:$0xff] }
 0x879   : > { %11344 = vmatprep.subr.mxu0 %v4061_v18  ;;  %v4041_v40 = vld [vmem:[#allocation10 + $0x28] sm:$0xff] }
 0x87a   : > { %v4003_v41 = vadd.f32 %v3999_v39, %v3998_v31  ;;  %11345 = vmatpush3.msra.mxu0 %v4045_v21 }
 0x87b   : > { %11346 = vmatprep.subr.mxu0 %v4060_v8 }
 0x87c   : > { %4004 = vadd.xlane.f32.xlu1 %v4003_v41  ;;  %11347 = vmatpush3.msra.mxu0 %v4044_v36  ;;  %v4039_v41 = vld [vmem:[#allocation10 + $0x18] sm:$0xff]  ;;  %v4157_v36 = vld [vmem:[#allocation12 + $0x70] sm:$0xff] }
 0x901   : > { %v4002_v37 = vpop.xlane.xlu0 %4001 }
 0x902   : > { %v4006_v47 = vmul.f32 0.00390625, %v4002_v37 }
 0x904   : > { %v12993_v48 = vsub.f32 %v3996_v11, %v4006_v47  ;;  %v12995_v53 = vsub.f32 %v3997_v19, %v4006_v47  ;;  %v4059_v11 = vld [vmem:[#allocation10 + $0xb8] sm:$0xff] }
 0x905   : > { %v4005_v61 = vpop.xlane.xlu1 %4004  ;;  %11348 = vmatprep.subr.mxu0 %v4059_v11  ;;  %v4043_v19 = vld [vmem:[#allocation10 + $0x38] sm:$0xff] }
 0x906   : > { %v4007_v57 = vmul.f32 0.00390625, %v4005_v61  ;;  %v4012_v59 = vmul.f32 %v12993_v48, %v12993_v48  ;;  %v4013_v29 = vmul.f32 %v12995_v53, %v12995_v53  ;;  %11349 = vmatpush3.msra.mxu0 %v4043_v19 }
 0x907   : > { %11350 = vmatprep.subr.mxu0 %v4058_v26 }
 0x908   : > { %v13001_v30 = vsub.f32 %v3998_v31, %v4007_v57  ;;  %v13003_v49 = vsub.f32 %v3999_v39, %v4007_v57  ;;  %v4016_v60 = vadd.f32 %v4013_v29, %v4012_v59  ;;  %11351 = vmatpush3.msra.mxu0 %v4042_v0  ;;  %v4040_v31 = vld [vmem:[#allocation10 + $0x20] sm:$0xff]  ;;  %v4055_v39 = vld [vmem:[#allocation10 + $0x98] sm:$0xff] }
 0x909   : > { %11352 = vmatprep.subr.mxu0 %v4057_v32 }
 0x90a   : > { %4017 = vadd.xlane.f32.xlu0 %v4016_v60  ;;  %v4014_v56 = vmul.f32 %v13001_v30, %v13001_v30  ;;  %v4015_v58 = vmul.f32 %v13003_v49, %v13003_v49  ;;  %11353 = vmatpush3.msra.mxu0 %v4041_v40 }
 0x90b   : > { %11354 = vmatprep.subr.mxu0 %v4056_v4 }
 0x90c   : > { %v4019_v1 = vadd.f32 %v4015_v58, %v4014_v56  ;;  %11355 = vmatpush3.msra.mxu0 %v4040_v31 }
 0x90d   : > { %11356 = vmatprep.subr.mxu0 %v4055_v39 }
 0x90e   : > { %4020 = vadd.xlane.f32.xlu0 %v4019_v1  ;;  %11357 = vmatpush3.msra.mxu0 %v4039_v41 }
 0x90f   : > { %11358 = vmatprep.subr.mxu0 %v4054_v38 }
 0x910   : > { %11359 = vmatpush3.msra.mxu0 %v4038_v42 }
 0x911   : > { %11360 = vmatprep.subr.mxu0 %v4053_v50 }
 0x912   : > { %11361 = vmatpush3.msra.mxu0 %v4037_v43 }
 0x913   : > { %11362 = vmatprep.subr.mxu0 %v4052_v54 }
 0x914   : > { %11363 = vmatpush3.msra.mxu0 %v4036_v44 }
 0x993   : > { %v4018_v45 = vpop.xlane.xlu0 %4017 }
 0x994   : > { %v4022_v6 = vmul.f32 0.00390625, %v4018_v45  ;;  %v13098_v45 = vld [vmem:[%s14173_s9] sm:$0xff] }
 0x996   : > { %v4024_v46 = vadd.f32 1e-05, %v4022_v6  ;;  %v13102_v6 = vrot.slane %v13098_v45, %v12567_v7 }
 0x997   : > { %v4021_v37 = vpop.xlane.xlu0 %4020 }
 0x998   : > { %11909 = vrsqrt.f32 %v4024_v46  ;;  %v4023_v47 = vmul.f32 0.00390625, %v4021_v37 }
 0x99a   : > { %v4025_v61 = vadd.f32 1e-05, %v4023_v47 }
 0x99c   : > { %11911 = vrsqrt.f32 %v4025_v61 }
 0x9a5   : > { %v11910_v57 = vpop.eup %11909 }
 0x9a6   : > { %v4029_v59 = vmul.f32 %v11910_v57, %v12995_v53  ;;  %v4028_v29 = vmul.f32 %v11910_v57, %v12993_v48 }
 0x9a8   : > { %v4033_v60 = vmax.f32 %v4029_v59, 0.0  ;;  %v4032_v56 = vmax.f32 %v4028_v29, 0.0  ;;  %v13110_v29 = vrot.slane %v13098_v45, %v12591_v16  ;;  %v13118_v16 = vrot.slane %v13098_v45, %v12580_v13 }
 0x9a9   : > { %v11912_v58 = vpop.eup %11911 }
 0x9aa   : > { %4132 = vmatprep.mubr.f32.mxu0 %v4033_v60  ;;  %v4031_v1 = vmul.f32 %v11912_v58, %v13003_v49  ;;  %v4030_v17 = vmul.f32 %v11912_v58, %v13001_v30  ;;  %v4145_v49 = vld [vmem:[#allocation12 + $0x10] sm:$0xff] }
 0x9ab   : > { %4133 = vmatmul.mubr.f32.vlgmr.msra.gmra.mxu0 %v4032_v56  ;;  %11518 = vmatprep.mubr.msk.f32.mxu1 %vm628_vm0, %v4145_v49  ;;  %v4144_v49 = vld [vmem:[#allocation12 + $0x8] sm:$0xff] }
 0x9ac   : > { %v4035_v63 = vmax.f32 %v4031_v1, 0.0  ;;  %v4034_v12 = vmax.f32 %v4030_v17, 0.0  ;;  %v4146_v1 = vld [vmem:[#allocation12 + $0x18] sm:$0xff] }
 0x9ae   : > { %4137 = vmatprep.mubr.f32.mxu0 %v4035_v63  ;;  %v4143_v63 = vld [vmem:[#allocation12] sm:$0xff] }
 0x9af   : > { %4138 = vmatmul.mubr.f32.gmra.mxu0 %v4034_v12 }
 0x9b0   : > { %11567 = vmatprep.mubr.msk.f32.mxu0 %vm628_vm0, %v4157_v36 }
 0xa6b   : > { %v11364_v18 = vpop.f32.mrf.mxu0 }
 0xa6d   : > { %v11365_v21 = vpop.f32.mrf.mxu0 }
 0xa6e   : > { %v13013_v8 = vadd.f32 %v11365_v21, %v11364_v18 }
 0xa6f   : > { %v11367_v48 = vpop.f32.mrf.mxu0 }
 0xa70   : > { %4186 = vrot.lane.b32.xlu1 %v13013_v8, %s14223_s22  ;;  %4165 = vrot.lane.b32.xlu0 %v13013_v8, %s14219_s24 }
 0xa71   : > { %v11368_v53 = vpop.f32.mrf.mxu0 }
 0xa72   : > { %v13039_v30 = vadd.f32 %v11368_v53, %v11367_v48 }
 0xa74   : > { %4192 = vrot.lane.b32.xlu1 %v13013_v8, %s14231_s17  ;;  %4368 = vrot.lane.b32.xlu0 %v13013_v8, %s14215_s30 }
 0xa78   : > { %4171 = vrot.lane.b32.xlu1 %v13013_v8, %s14221_s18  ;;  %4472 = vrot.lane.b32.xlu0 %v13013_v8, %s14211_s20 }
 0xa7c   : > { %4374 = vrot.lane.b32.xlu1 %v13013_v8, %s14217_s29  ;;  %4664 = vrot.lane.b32.xlu0 %v13013_v8, %s14213_s26 }
 0xa80   : > { %4478 = vrot.lane.b32.xlu1 %v13013_v8, %s14209_s16  ;;  %4768 = vrot.lane.b32.xlu0 %v13013_v8, %s14201_s27 }
 0xa84   : > { %4670 = vrot.lane.b32.xlu1 %v13013_v8, %s14203_s23  ;;  %4872 = vrot.lane.b32.xlu0 %v13013_v8, %s14195_s19 }
 0xa88   : > { %4774 = vrot.lane.b32.xlu1 %v13013_v8, %s14205_s21  ;;  %4194 = vrot.lane.b32.xlu0 %v13039_v30, %s14231_s17 }
 0xa8c   : > { %4878 = vrot.lane.b32.xlu1 %v13013_v8, %s14199_s14  ;;  %4167 = vrot.lane.b32.xlu0 %v13039_v30, %s14219_s24 }
 0xa90   : > { %4370 = vrot.lane.b32.xlu0 %v13039_v30, %s14215_s30  ;;  %4188 = vrot.lane.b32.xlu1 %v13039_v30, %s14223_s22 }
 0xa94   : > { %4474 = vrot.lane.b32.xlu0 %v13039_v30, %s14211_s20  ;;  %4173 = vrot.lane.b32.xlu1 %v13039_v30, %s14221_s18 }
 0xa98   : > { %4666 = vrot.lane.b32.xlu0 %v13039_v30, %s14213_s26  ;;  %4376 = vrot.lane.b32.xlu1 %v13039_v30, %s14217_s29 }
 0xa9c   : > { %4770 = vrot.lane.b32.xlu0 %v13039_v30, %s14201_s27  ;;  %4480 = vrot.lane.b32.xlu1 %v13039_v30, %s14209_s16 }
 0xaa0   : > { %4874 = vrot.lane.b32.xlu0 %v13039_v30, %s14195_s19  ;;  %4672 = vrot.lane.b32.xlu1 %v13039_v30, %s14203_s23  ;;  %s14197_s19 = smov 55  }
 0xaa4   : > { %4978 = vrot.lane.b32.xlu0 %v13039_v30, %s14207_s15  ;;  %4776 = vrot.lane.b32.xlu1 %v13039_v30, %s14205_s21 }
 0xaa8   : > { %4976 = vrot.lane.b32.xlu0 %v13013_v8, %s14207_s15  ;;  %4880 = vrot.lane.b32.xlu1 %v13039_v30, %s14199_s14  ;;  %s14244_s14 = smov 56  }
 0xaac   : > { %4984 = vrot.lane.b32.xlu1 %v13039_v30, %s14197_s19 }
 0xab0   : > { %4982 = vrot.lane.b32.xlu1 %v13013_v8, %s14197_s19  ;;  %s14243_s19 = smov 120  }
 0xae2   : > { %v4166_v11 = vpop.permute.xlu0 %4165  ;;  %v4187_v19 = vpop.permute.xlu1 %4186 }
 0xae6   : > { %v4369_v26 = vpop.permute.xlu0 %4368  ;;  %v4193_v0 = vpop.permute.xlu1 %4192 }
 0xae7   : > { %v4198_v47 = vsel %vm1563_vm10, %v4187_v19, %v4193_v0  ;;  %v13128_v19 = vrot.slane %v13098_v45, %v12596_v20 }
 0xae8   : > { %v4204_v59 = vmul.f32 %v13102_v6, %v4198_v47 }
 0xaea   : > { %v4473_v32 = vpop.permute.xlu0 %4472  ;;  %v4172_v40 = vpop.permute.xlu1 %4171 }
 0xaeb   : > { %v4178_v7 = vsel %vm4177_vm11, %v4166_v11, %v4172_v40  ;;  %v4147_v11 = vld [vmem:[#allocation12 + $0x20] sm:$0xff] }
 0xaec   : > { %v4184_v12 = vmul.f32 %v13110_v29, %v4178_v7 }
 0xaee   : > { %v13083_v4 = vpop.permute.xlu0 %4664  ;;  %v4375_v31 = vpop.permute.xlu1 %4374 }
 0xaef   : > { %v4381_v48 = vsel %vm4380_vm12, %v4369_v26, %v4375_v31  ;;  %v4148_v31 = vld [vmem:[#allocation12 + $0x28] sm:$0xff] }
 0xaf0   : > { %v4387_v13 = vmul.f32 %v13118_v16, %v4381_v48  ;;  %v4154_v48 = vld [vmem:[#allocation12 + $0x58] sm:$0xff] }
 0xaf2   : > { %v13085_v39 = vpop.permute.xlu0 %4768  ;;  %v4479_v41 = vpop.permute.xlu1 %4478 }
 0xaf3   : > { %v4484_v0 = vsel %vm912_vm5, %v4473_v32, %v4479_v41  ;;  %v13139_v32 = vrot.slane %v13098_v45, %v12562_v5  ;;  %v4150_v41 = vld [vmem:[#allocation12 + $0x38] sm:$0xff] }
 0xaf4   : > { %v4490_v20 = vmul.f32 %v13128_v19, %v4484_v0 }
 0xaf5   : > { %v4580_v47 = vmul.f32 %v13039_v30, %v13139_v32 }
 0xaf6   : > { %v13087_v38 = vpop.permute.xlu0 %4872  ;;  %v13089_v42 = vpop.permute.xlu1 %4670 }
 0xaf7   : > { %v4677_v7 = vsel %vm4676_vm13, %v13083_v4, %v13089_v42  ;;  %v13165_v4 = vrot.slane %v13098_v45, %v12683_v3 }
 0xafa   : > { %v4195_v50 = vpop.permute.xlu0 %4194  ;;  %v13091_v43 = vpop.permute.xlu1 %4774 }
 0xafe   : > { %v4168_v54 = vpop.permute.xlu0 %4167  ;;  %v13093_v44 = vpop.permute.xlu1 %4878 }
 0xb02   : > { %v4371_v46 = vpop.permute.xlu0 %4370  ;;  %v4189_v37 = vpop.permute.xlu1 %4188 }
 0xb03   : > { %v4199_v61 = vsel %vm1563_vm10, %v4189_v37, %v4195_v50 }
 0xb04   : > { %v4205_v57 = vmul.f32 %v13102_v6, %v4199_v61  ;;  %v4151_v61 = vld [vmem:[#allocation12 + $0x40] sm:$0xff] }
 0xb06   : > { %v4475_v60 = vpop.permute.xlu0 %4474  ;;  %11514 = vmatprep.subr.mxu1 %v4205_v57  ;;  %v4174_v56 = vpop.permute.xlu1 %4173 }
 0xb07   : > { %v4179_v58 = vsel %vm4177_vm11, %v4168_v54, %v4174_v56  ;;  %11515 = vmatpush3.msra.mxu1 %v4205_v57  ;;  %v4579_v56 = vmul.f32 %v13013_v8, %v13139_v32 }
 0xb08   : > { %v4185_v17 = vmul.f32 %v13110_v29, %v4179_v58  ;;  %11516 = vmatprep.subr.mxu1 %v4204_v59  ;;  %v4152_v58 = vld [vmem:[#allocation12 + $0x48] sm:$0xff] }
 0xb09   : > { %11517 = vmatpush3.msra.mxu1 %v4204_v59  ;;  %v13147_v59 = vrot.slane %v13098_v45, %v12628_v35 }
 0xb0a   : > { %v4667_v18 = vpop.permute.xlu0 %4666  ;;  %11519 = vmatmul.mubr.msk.f32.vlgmr.msra.gmra.mxu1 %vm628_vm0, %v4146_v1  ;;  %11521 = vmatprep.subr.mxu1 %v4185_v17  ;;  %v4377_v21 = vpop.permute.xlu1 %4376  ;;  %v4153_v1 = vld [vmem:[#allocation12 + $0x50] sm:$0xff] }
 0xb0b   : > { %v4382_v53 = vsel %vm4380_vm12, %v4371_v46, %v4377_v21  ;;  %11522 = vmatpush3.msra.mxu1 %v4185_v17  ;;  %11525 = vmatprep.mubr.msk.f32.mxu1 %vm628_vm0, %v4143_v63  ;;  %v4149_v46 = vld [vmem:[#allocation12 + $0x30] sm:$0xff]  ;;  %v4683_v63 = vmul.f32 %v13147_v59, %v4677_v7 }
 0xb0c   : > { %v4388_v36 = vmul.f32 %v13118_v16, %v4382_v53  ;;  %11523 = vmatprep.subr.mxu1 %v4184_v12 }
 0xb0d   : > { %11524 = vmatpush3.msra.mxu1 %v4184_v12  ;;  %v13161_v12 = vrot.slane %v13098_v45, %v12652_v52  ;;  %v4885_v52 = vsel %vm4884_vm15, %v13087_v38, %v13093_v44 }
 0xb0e   : > { %11526 = vmatmul.mubr.msk.f32.vlgmr.msra.gmra.mxu1 %vm628_vm0, %v4144_v49  ;;  %11528 = vmatprep.subr.mxu1 %v4388_v36  ;;  %v4481_v26 = vpop.permute.xlu1 %4480  ;;  %v4771_v50 = vpop.permute.xlu0 %4770  ;;  %v4891_v38 = vmul.f32 %v13165_v4, %v4885_v52 }
 0xb0f   : > { %v4485_v40 = vsel %vm912_vm5, %v4475_v60, %v4481_v26  ;;  %11529 = vmatpush3.msra.mxu1 %v4388_v36  ;;  %11532 = vmatprep.mubr.msk.f32.mxu1 %vm628_vm0, %v4147_v11  ;;  %v4155_v36 = vld [vmem:[#allocation12 + $0x60] sm:$0xff]  ;;  %v4158_v26 = vld [vmem:[#allocation12 + $0x78] sm:$0xff] }
 0xb10   : > { %v4491_v54 = vmul.f32 %v13128_v19, %v4485_v40  ;;  %11530 = vmatprep.subr.mxu1 %v4387_v13 }
 0xb11   : > { %11531 = vmatpush3.msra.mxu1 %v4387_v13  ;;  %v4156_v13 = vld [vmem:[#allocation12 + $0x68] sm:$0xff] }
 0xb12   : > { %11533 = vmatmul.mubr.msk.f32.vlgmr.msra.gmra.mxu1 %vm628_vm0, %v4148_v31  ;;  %11535 = vmatprep.subr.mxu1 %v4491_v54  ;;  %v4673_v37 = vpop.permute.xlu1 %4672  ;;  %v4875_v60 = vpop.permute.xlu0 %4874  ;;  %v4159_v31 = vld [vmem:[#allocation12 + $0x80] sm:$0xff] }
 0xb13   : > { %11536 = vmatpush3.msra.mxu1 %v4491_v54  ;;  %11539 = vmatprep.mubr.msk.f32.mxu1 %vm628_vm0, %v4149_v46  ;;  %v4678_v57 = vsel %vm4676_vm13, %v4667_v18, %v4673_v37  ;;  %v4781_v18 = vsel %vm4780_vm14, %v13085_v39, %v13091_v43  ;;  %v13181_v39 = vld [vmem:[%s14173_s9 + $0x8] ss:$0 sm:$0xff]  ;;  %v4160_v46 = vld [vmem:[#allocation12 + $0x88] sm:$0xff] }
 0xb14   : > { %11537 = vmatprep.subr.mxu1 %v4490_v20  ;;  %v4684_v35 = vmul.f32 %v13147_v59, %v4678_v57  ;;  %v4787_v43 = vmul.f32 %v13161_v12, %v4781_v18 }
 0xb15   : > { %11538 = vmatpush3.msra.mxu1 %v4490_v20 }
 0xb16   : > { %11540 = vmatmul.mubr.msk.f32.vlgmr.msra.gmra.mxu1 %vm628_vm0, %v4150_v41  ;;  %11542 = vmatprep.subr.mxu1 %v4580_v47  ;;  %v4777_v5 = vpop.permute.xlu1 %4776  ;;  %v4979_v3 = vpop.permute.xlu0 %4978 }
 0xb17   : > { %11543 = vmatpush3.msra.mxu1 %v4580_v47  ;;  %11546 = vmatprep.mubr.msk.f32.mxu1 %vm628_vm0, %v4151_v61  ;;  %v4782_v17 = vsel %vm4780_vm14, %v4771_v50, %v4777_v5 }
 0xb18   : > { %11544 = vmatprep.subr.mxu1 %v4579_v56  ;;  %v4788_v45 = vmul.f32 %v13161_v12, %v4782_v17 }
 0xb19   : > { %11545 = vmatpush3.msra.mxu1 %v4579_v56 }
 0xb1a   : > { %11547 = vmatmul.mubr.msk.f32.vlgmr.msra.gmra.mxu1 %vm628_vm0, %v4152_v58  ;;  %11549 = vmatprep.subr.mxu1 %v4684_v35  ;;  %v4881_v42 = vpop.permute.xlu1 %4880  ;;  %v4977_v0 = vpop.permute.xlu0 %4976 }
 0xb1b   : > { %v4886_v21 = vsel %vm4884_vm15, %v4875_v60, %v4881_v42  ;;  %11550 = vmatpush3.msra.mxu1 %v4684_v35  ;;  %11553 = vmatprep.mubr.msk.f32.mxu1 %vm628_vm0, %v4153_v1 }
 0xb1c   : > { %v4892_v53 = vmul.f32 %v13165_v4, %v4886_v21  ;;  %11551 = vmatprep.subr.mxu1 %v4683_v63 }
 0xb1d   : > { %11552 = vmatpush3.msra.mxu1 %v4683_v63 }
 0xb1e   : > { %11554 = vmatmul.mubr.msk.f32.vlgmr.msra.gmra.mxu1 %vm628_vm0, %v4154_v48  ;;  %11556 = vmatprep.subr.mxu1 %v4788_v45  ;;  %v4985_v49 = vpop.permute.xlu1 %4984 }
 0xb1f   : > { %11563 = vmatprep.subr.mxu0 %v4892_v53  ;;  %v4990_v44 = vsel %vm4988_vm2, %v4979_v3, %v4985_v49  ;;  %11557 = vmatpush3.msra.mxu1 %v4788_v45 }
 0xb20   : > { %v4996_v11 = vmul.f32 %v13181_v39, %v4990_v44  ;;  %11564 = vmatpush3.msra.mxu0 %v4892_v53  ;;  %11558 = vmatprep.subr.mxu1 %v4787_v43 }
 0xb21   : > { %11565 = vmatprep.subr.mxu0 %v4891_v38  ;;  %11559 = vmatpush3.msra.mxu1 %v4787_v43 }
 0xb22   : > { %11560 = vmatprep.mubr.msk.f32.mxu1 %vm628_vm0, %v4155_v36  ;;  %11566 = vmatpush3.msra.mxu0 %v4891_v38  ;;  %v4983_v40 = vpop.permute.xlu1 %4982 }
 0xb23   : > { %11561 = vmatmul.mubr.msk.f32.vlgmr.msra.gmra.mxu1 %vm628_vm0, %v4156_v13  ;;  %11570 = vmatprep.subr.mxu1 %v4996_v11  ;;  %v4989_v50 = vsel %vm4988_vm2, %v4977_v0, %v4983_v40 }
 0xb24   : > { %v4995_v54 = vmul.f32 %v13181_v39, %v4989_v50  ;;  %11571 = vmatpush3.msra.mxu1 %v4996_v11  ;;  %11568 = vmatmul.mubr.msk.f32.vlgmr.msra.gmra.mxu0 %vm628_vm0, %v4158_v26 }
 0xb25   : > { %11574 = vmatprep.mubr.msk.f32.mxu1 %vm628_vm0, %v4159_v31 }
 0xb26   : > { %11572 = vmatprep.subr.mxu1 %v4995_v54 }
 0xb27   : > { %11573 = vmatpush3.msra.mxu1 %v4995_v54 }
 0xb28   : > { %11575 = vmatmul.mubr.msk.f32.vlgmr.msra.gmra.mxu1 %vm628_vm0, %v4160_v46 }
 0xbca   : > { %v11520_v20 = vpop.f32.mrf.mxu1 }
 0xbcc   : > { %v4278_v37 = vpop.f32.mrf.mxu1 }
 0xbce   : > { %v11527_v41 = vpop.f32.mrf.mxu1 }
 0xbcf   : > { %v4365_v56 = vadd.f32 %v11527_v41, %v11520_v20 }
 0xbd0   : > { %v4359_v47 = vpop.f32.mrf.mxu1 }
 0xbd1   : > { %v4360_v58 = vadd.f32 %v4359_v47, %v4278_v37 }
 0xbd2   : > { %v11534_v61 = vpop.f32.mrf.mxu1 }
 0xbd3   : > { %v4471_v35 = vadd.f32 %v11534_v61, %v4365_v56 }
 0xbd4   : > { %v4461_v57 = vpop.f32.mrf.mxu1 }
 0xbd5   : > { %v4470_v17 = vadd.f32 %v4461_v57, %v4360_v58 }
 0xbd6   : > { %v11541_v60 = vpop.f32.mrf.mxu1 }
 0xbd7   : > { %v4574_v63 = vadd.f32 %v11541_v60, %v4471_v35 }
 0xbd8   : > { %v4564_v5 = vpop.f32.mrf.mxu1 }
 0xbd9   : > { %v4573_v18 = vadd.f32 %v4564_v5, %v4470_v17 }
 0xbda   : > { %v11548_v7 = vpop.f32.mrf.mxu1 }
 0xbdb   : > { %v4663_v21 = vadd.f32 %v11548_v7, %v4574_v63 }
 0xbdc   : > { %v4653_v1 = vpop.f32.mrf.mxu1 }
 0xbdd   : > { %v4662_v52 = vadd.f32 %v4653_v1, %v4573_v18 }
 0xbde   : > { %v11555_v42 = vpop.f32.mrf.mxu1 }
 0xbdf   : > { %v4767_v3 = vadd.f32 %v11555_v42, %v4663_v21 }
 0xbe0   : > { %v4757_v48 = vpop.f32.mrf.mxu1 }
 0xbe1   : > { %v4766_v53 = vadd.f32 %v4757_v48, %v4662_v52 }
 0xbe3   : > { %v11562_v45 = vpop.f32.mrf.mxu1 }
 0xbe4   : > { %v4871_v43 = vadd.f32 %v11562_v45, %v4767_v3  ;;  %v11569_v49 = vpop.f32.mrf.mxu0  ;;  %v13238_v45 = vld [vmem:[%s14172_s8 + $0x10] sm:$0xff] }
 0xbe5   : > { %v4861_v38 = vpop.f32.mrf.mxu1  ;;  %11581 = vmatprep.mubr.msk.f32.mxu0 %vm628_vm0, %v13238_v45 }
 0xbe6   : > { %v4870_v44 = vadd.f32 %v4861_v38, %v4766_v53  ;;  %v4965_v36 = vpop.f32.mrf.mxu0  ;;  %v4975_v11 = vadd.f32 %v11569_v49, %v4871_v43  ;;  %v13249_v53 = vld [vmem:[%s14172_s8] sm:$0xff] }
 0xbe7   : > { %11588 = vmatprep.mubr.msk.f32.mxu1 %vm628_vm0, %v13249_v53 }
 0xbe8   : > { %v11576_v13 = vpop.f32.mrf.mxu1  ;;  %v4974_v26 = vadd.f32 %v4965_v36, %v4870_v44 }
 0xbe9   : > { %v5079_v0 = vadd.f32 %v11576_v13, %v4975_v11 }
 0xbea   : > { %v5069_v40 = vpop.f32.mrf.mxu1 }
 0xbeb   : > { %v5078_v31 = vadd.f32 %v5069_v40, %v4974_v26  ;;  %v5084_v50 = vsel %vm5080_vm4, %v5079_v0, 0.0 }
 0xbec   : > { %5085 = vadd.xlane.f32.xlu0 %v5084_v50 }
 0xbed   : > { %v5081_v54 = vsel %vm5080_vm4, %v5078_v31, 0.0 }
 0xbee   : > { %5082 = vadd.xlane.f32.xlu1 %v5081_v54 }
 0xc75   : > { %v5086_v46 = vpop.xlane.xlu0 %5085 }
 0xc76   : > { %v5088_v20 = vmul.f32 0.015625, %v5086_v46 }
 0xc77   : > { %v5083_v37 = vpop.xlane.xlu1 %5082 }
 0xc78   : > { %v5090_v41 = vsub.f32 %v5079_v0, %v5088_v20  ;;  %v5087_v47 = vmul.f32 0.015625, %v5083_v37 }
 0xc7a   : > { %v5089_v61 = vsub.f32 %v5078_v31, %v5087_v47  ;;  %v5092_v57 = vmul.f32 %v5090_v41, %v5090_v41 }
 0xc7c   : > { %v5096_v60 = vsel %vm5080_vm4, %v5092_v57, 0.0  ;;  %v5091_v5 = vmul.f32 %v5089_v61, %v5089_v61 }
 0xc7d   : > { %5097 = vadd.xlane.f32.xlu0 %v5096_v60 }
 0xc7e   : > { %v5093_v56 = vsel %vm5080_vm4, %v5091_v5, 0.0 }
 0xc81   : > { %5094 = vadd.xlane.f32.xlu0 %v5093_v56 }
 0xd06   : > { %v5098_v7 = vpop.xlane.xlu0 %5097 }
 0xd07   : > { %v5100_v58 = vmul.f32 0.015625, %v5098_v7 }
 0xd09   : > { %v5102_v35 = vadd.f32 1e-05, %v5100_v58 }
 0xd0a   : > { %v5095_v17 = vpop.xlane.xlu0 %5094 }
 0xd0b   : > { %11913 = vrsqrt.f32 %v5102_v35  ;;  %v5099_v18 = vmul.f32 0.015625, %v5095_v17  ;;  %v13297_v17 = vld [vmem:[%s14172_s8 + $0x18] sm:$0xff] }
 0xd0d   : > { %v5101_v21 = vadd.f32 1e-05, %v5099_v18 }
 0xd0f   : > { %11915 = vrsqrt.f32 %v5101_v21 }
 0xd18   : > { %v11914_v1 = vpop.eup %11913 }
 0xd19   : > { %v5106_v63 = vmul.f32 %v11914_v1, %v5090_v41 }
 0xd1b   : > { %v13199_v42 = vmax.f32 %v5106_v63, 0.0 }
 0xd1c   : > { %v11916_v48 = vpop.eup %11915 }
 0xd1d   : > { %5147 = vrot.lane.b32.xlu1 %v13199_v42, %s14223_s22  ;;  %5153 = vrot.lane.b32.xlu0 %v13199_v42, %s14231_s17  ;;  %v5105_v52 = vmul.f32 %v11916_v48, %v5089_v61  ;;  %v13303_v48 = vld [vmem:[%s14172_s8 + $0x20] sm:$0xff] }
 0xd1f   : > { %v13229_v3 = vmax.f32 %v5105_v52, 0.0 }
 0xd21   : > { %5131 = vrot.lane.b32.xlu1 %v13199_v42, %s14219_s24  ;;  %5325 = vrot.lane.b32.xlu0 %v13199_v42, %s14215_s30 }
 0xd25   : > { %5137 = vrot.lane.b32.xlu1 %v13199_v42, %s14221_s18  ;;  %5424 = vrot.lane.b32.xlu0 %v13199_v42, %s14211_s20 }
 0xd29   : > { %5331 = vrot.lane.b32.xlu1 %v13199_v42, %s14217_s29  ;;  %5608 = vrot.lane.b32.xlu0 %v13199_v42, %s14213_s26 }
 0xd2d   : > { %5430 = vrot.lane.b32.xlu1 %v13199_v42, %s14209_s16  ;;  %5707 = vrot.lane.b32.xlu0 %v13199_v42, %s14201_s27  ;;  %s14247_s16 = smov 121   ;;  %s14249_s27 = smov 57  }
 0xd31   : > { %5614 = vrot.lane.b32.xlu1 %v13199_v42, %s14203_s23  ;;  %5806 = vrot.lane.b32.xlu0 %v13199_v42, %s14243_s19  ;;  %s14248_s23 = smov 63  }
 0xd35   : > { %5713 = vrot.lane.b32.xlu1 %v13199_v42, %s14205_s21  ;;  %5905 = vrot.lane.b32.xlu0 %v13199_v42, %s14207_s15  ;;  %s14245_s21 = smov 55   ;;  %s14246_s15 = smov 1  }
 0xd39   : > { %5812 = vrot.lane.b32.xlu1 %v13199_v42, %s14244_s14  ;;  %5145 = vrot.lane.b32.xlu0 %v13229_v3, %s14223_s22  ;;  %s14253_s22 = smov 73  }
 0xd3d   : > { %5911 = vrot.lane.b32.xlu1 %v13199_v42, %s14245_s21  ;;  %5129 = vrot.lane.b32.xlu0 %v13229_v3, %s14219_s24  ;;  %s14252_s24 = smov 9  }
 0xd41   : > { %5151 = vrot.lane.b32.xlu1 %v13229_v3, %s14231_s17  ;;  %5323 = vrot.lane.b32.xlu0 %v13229_v3, %s14215_s30  ;;  %s14256_s30 = smov 65  }
 0xd45   : > { %5135 = vrot.lane.b32.xlu1 %v13229_v3, %s14221_s18  ;;  %5422 = vrot.lane.b32.xlu0 %v13229_v3, %s14211_s20  ;;  %s14250_s20 = smov 119   ;;  %s14254_s18 = smov 7  }
 0xd49   : > { %5329 = vrot.lane.b32.xlu1 %v13229_v3, %s14217_s29  ;;  %5606 = vrot.lane.b32.xlu0 %v13229_v3, %s14213_s26  ;;  %s14251_s29 = smov 72   ;;  %s14255_s26 = smov 71  }
 0xd4d   : > { %5428 = vrot.lane.b32.xlu1 %v13229_v3, %s14246_s15  ;;  %5705 = vrot.lane.b32.xlu0 %v13229_v3, %s14247_s16 }
 0xd51   : > { %5612 = vrot.lane.b32.xlu1 %v13229_v3, %s14248_s23  ;;  %5804 = vrot.lane.b32.xlu0 %v13229_v3, %s14243_s19 }
 0xd55   : > { %5711 = vrot.lane.b32.xlu1 %v13229_v3, %s14249_s27  ;;  %5903 = vrot.lane.b32.xlu0 %v13229_v3, %s14250_s20 }
 0xd59   : > { %5810 = vrot.lane.b32.xlu1 %v13229_v3, %s14244_s14 }
 0xd5d   : > { %5909 = vrot.lane.b32.xlu1 %v13229_v3, %s14245_s21 }
 0xd8f   : > { %v5154_v43 = vpop.permute.xlu0 %5153  ;;  %v5148_v49 = vpop.permute.xlu1 %5147 }
 0xd90   : > { %v5158_v38 = vsel %vm1563_vm10, %v5148_v49, %v5154_v43 }
 0xd91   : > { %v5160_v44 = vmul.f32 %v5158_v38, %v13102_v6  ;;  %v13313_v38 = vld [vmem:[%s14172_s8 + $0x8] sm:$0xff] }
 0xd93   : > { %v5326_v36 = vpop.permute.xlu0 %5325  ;;  %11577 = vmatprep.subr.mxu0 %v5160_v44  ;;  %v5132_v11 = vpop.permute.xlu1 %5131 }
 0xd94   : > { %11578 = vmatpush3.msra.mxu0 %v5160_v44 }
 0xd97   : > { %v5425_v13 = vpop.permute.xlu0 %5424  ;;  %v5138_v26 = vpop.permute.xlu1 %5137 }
 0xd98   : > { %v5142_v0 = vsel %vm4177_vm11, %v5132_v11, %v5138_v26  ;;  %v13321_v11 = vld [vmem:[%s14172_s8 + $0x30] sm:$0xff] }
 0xd99   : > { %v5144_v40 = vmul.f32 %v5142_v0, %v13110_v29 }
 0xd9b   : > { %v5609_v31 = vpop.permute.xlu0 %5608  ;;  %11584 = vmatprep.subr.mxu1 %v5144_v40  ;;  %v5332_v50 = vpop.permute.xlu1 %5331 }
 0xd9c   : > { %11585 = vmatpush3.msra.mxu1 %v5144_v40  ;;  %v5336_v58 = vsel %vm4380_vm12, %v5326_v36, %v5332_v50  ;;  %v13330_v40 = vld [vmem:[%s14172_s8 + $0x28] sm:$0xff] }
 0xd9d   : > { %v5338_v63 = vmul.f32 %v5336_v58, %v13118_v16 }
 0xd9f   : > { %v5708_v54 = vpop.permute.xlu0 %5707  ;;  %v5431_v46 = vpop.permute.xlu1 %5430 }
 0xda0   : > { %v5435_v52 = vsel %vm912_vm5, %v5425_v13, %v5431_v46  ;;  %v5522_v46 = vmul.f32 %v13199_v42, %v13139_v32  ;;  %v5521_v42 = vmul.f32 %v13229_v3, %v13139_v32  ;;  %v13361_v3 = vld [vmem:[%s14172_s8 + $0x48] sm:$0xff] }
 0xda1   : > { %v5437_v44 = vmul.f32 %v5435_v52, %v13128_v19  ;;  %v13379_v52 = vld [vmem:[%s14172_s8 + $0x60] sm:$0xff] }
 0xda3   : > { %v13285_v20 = vpop.permute.xlu0 %5806  ;;  %v5615_v37 = vpop.permute.xlu1 %5614 }
 0xda7   : > { %v13287_v41 = vpop.permute.xlu0 %5905  ;;  %v5714_v47 = vpop.permute.xlu1 %5713 }
 0xdab   : > { %v5146_v61 = vpop.permute.xlu0 %5145  ;;  %v5813_v57 = vpop.permute.xlu1 %5812 }
 0xdaf   : > { %v5130_v60 = vpop.permute.xlu0 %5129  ;;  %v13289_v5 = vpop.permute.xlu1 %5911 }
 0xdb3   : > { %v5324_v56 = vpop.permute.xlu0 %5323  ;;  %v5152_v7 = vpop.permute.xlu1 %5151 }
 0xdb4   : > { %v5157_v35 = vsel %vm1563_vm10, %v5146_v61, %v5152_v7  ;;  %v13339_v61 = vld [vmem:[%s14172_s8 + $0x40] sm:$0xff] }
 0xdb5   : > { %v5159_v1 = vmul.f32 %v5157_v35, %v13102_v6  ;;  %v13356_v35 = vld [vmem:[%s14172_s8 + $0x38] sm:$0xff] }
 0xdb7   : > { %v5423_v18 = vpop.permute.xlu0 %5422  ;;  %11579 = vmatprep.subr.mxu0 %v5159_v1  ;;  %v5136_v21 = vpop.permute.xlu1 %5135 }
 0xdb8   : > { %v5141_v43 = vsel %vm4177_vm11, %v5130_v60, %v5136_v21  ;;  %11580 = vmatpush3.msra.mxu0 %v5159_v1  ;;  %v5619_v60 = vsel %vm4676_vm13, %v5609_v31, %v5615_v37  ;;  %v13370_v21 = vld [vmem:[%s14172_s8 + $0x50] sm:$0xff] }
 0xdb9   : > { %v5143_v49 = vmul.f32 %v5141_v43, %v13110_v29  ;;  %11591 = vmatprep.subr.mxu0 %v5338_v63  ;;  %11582 = vmatmul.mubr.msk.f32.vlgmr.msra.gmra.mxu0 %vm628_vm0, %v13297_v17  ;;  %v5621_v31 = vmul.f32 %v5619_v60, %v13147_v59 }
 0xdba   : > { %11592 = vmatpush3.msra.mxu0 %v5338_v63  ;;  %11595 = vmatprep.mubr.msk.f32.mxu0 %vm628_vm0, %v13303_v48  ;;  %v5817_v63 = vsel %vm4884_vm15, %v13285_v20, %v5813_v57  ;;  %v13384_v57 = vld [vmem:[%s14172_s8 + $0x58] sm:$0xff] }
 0xdbb   : > { %11586 = vmatprep.subr.mxu1 %v5143_v49  ;;  %v5330_v36 = vpop.permute.xlu1 %5329  ;;  %v5607_v26 = vpop.permute.xlu0 %5606  ;;  %v5819_v43 = vmul.f32 %v5817_v63, %v13165_v4 }
 0xdbc   : > { %v5335_v13 = vsel %vm4380_vm12, %v5324_v56, %v5330_v36  ;;  %11587 = vmatpush3.msra.mxu1 %v5143_v49  ;;  %v5718_v56 = vsel %vm4780_vm14, %v5708_v54, %v5714_v47  ;;  %v5916_v49 = vsel %vm4988_vm2, %v13287_v41, %v13289_v5  ;;  %v13406_v41 = vld [vmem:[%s14172_s8 + $0x68] sm:$0xff] }
 0xdbd   : > { %v5337_v0 = vmul.f32 %v5335_v13, %v13118_v16  ;;  %11598 = vmatprep.subr.mxu1 %v5437_v44  ;;  %11589 = vmatmul.mubr.msk.f32.vlgmr.msra.gmra.mxu1 %vm628_vm0, %v13313_v38  ;;  %v5720_v54 = vmul.f32 %v5718_v56, %v13161_v12  ;;  %v5918_v5 = vmul.f32 %v13181_v39, %v5916_v49  ;;  %v13423_v56 = vld [vmem:[%s14172_s8 + $0x78] sm:$0xff] }
 0xdbe   : > { %11599 = vmatpush3.msra.mxu1 %v5437_v44  ;;  %11602 = vmatprep.mubr.msk.f32.mxu1 %vm628_vm0, %v13321_v11 }
 0xdbf   : > { %11593 = vmatprep.subr.mxu0 %v5337_v0  ;;  %v5429_v50 = vpop.permute.xlu1 %5428  ;;  %v5706_v37 = vpop.permute.xlu0 %5705 }
 0xdc0   : > { %v5434_v7 = vsel %vm912_vm5, %v5423_v18, %v5429_v50  ;;  %11594 = vmatpush3.msra.mxu0 %v5337_v0  ;;  %v13412_v50 = vld [vmem:[%s14172_s8 + $0x80] sm:$0xff] }
 0xdc1   : > { %v5436_v58 = vmul.f32 %v5434_v7, %v13128_v19  ;;  %11605 = vmatprep.subr.mxu0 %v5522_v46  ;;  %11596 = vmatmul.mubr.msk.f32.vlgmr.msra.gmra.mxu0 %vm628_vm0, %v13330_v40 }
 0xdc2   : > { %11606 = vmatpush3.msra.mxu0 %v5522_v46  ;;  %11609 = vmatprep.mubr.msk.f32.mxu0 %vm628_vm0, %v13339_v61 }
 0xdc3   : > { %11600 = vmatprep.subr.mxu1 %v5436_v58  ;;  %11607 = vmatprep.subr.mxu0 %v5521_v42  ;;  %v5613_v47 = vpop.permute.xlu1 %5612  ;;  %v5805_v36 = vpop.permute.xlu0 %5804 }
 0xdc4   : > { %v5618_v1 = vsel %vm4676_vm13, %v5607_v26, %v5613_v47  ;;  %11601 = vmatpush3.msra.mxu1 %v5436_v58  ;;  %11608 = vmatpush3.msra.mxu0 %v5521_v42  ;;  %v13399_v26 = vld [vmem:[%s14172_s8 + $0x70] sm:$0xff] }
 0xdc5   : > { %v5620_v18 = vmul.f32 %v5618_v1, %v13147_v59  ;;  %11612 = vmatprep.subr.mxu1 %v5621_v31  ;;  %11619 = vmatprep.subr.mxu0 %v5720_v54 }
 0xdc6   : > { %11603 = vmatmul.mubr.msk.f32.vlgmr.msra.gmra.mxu1 %vm628_vm0, %v13356_v35  ;;  %11610 = vmatmul.mubr.msk.f32.vlgmr.msra.gmra.mxu0 %vm628_vm0, %v13361_v3 }
 0xdc7   : > { %11613 = vmatpush3.msra.mxu1 %v5621_v31  ;;  %11620 = vmatpush3.msra.mxu0 %v5720_v54  ;;  %v5712_v20 = vpop.permute.xlu1 %5711  ;;  %v5904_v7 = vpop.permute.xlu0 %5903  ;;  %v13434_v54 = vld [vmem:[%s14172_s8 + $0x88] sm:$0xff] }
 0xdc8   : > { %11614 = vmatprep.subr.mxu1 %v5620_v18  ;;  %v5717_v44 = vsel %vm4780_vm14, %v5706_v37, %v5712_v20  ;;  %11616 = vmatprep.mubr.msk.f32.mxu1 %vm628_vm0, %v13370_v21 }
 0xdc9   : > { %v5719_v13 = vmul.f32 %v5717_v44, %v13161_v12  ;;  %11615 = vmatpush3.msra.mxu1 %v5620_v18  ;;  %11623 = vmatprep.mubr.msk.f32.mxu0 %vm628_vm0, %v13379_v52 }
 0xdca   : > { %11626 = vmatprep.subr.mxu1 %v5819_v43  ;;  %11617 = vmatmul.mubr.msk.f32.vlgmr.msra.gmra.mxu1 %vm628_vm0, %v13384_v57 }
 0xdcb   : > { %11627 = vmatpush3.msra.mxu1 %v5819_v43  ;;  %11621 = vmatprep.subr.mxu0 %v5719_v13  ;;  %v5811_v0 = vpop.permute.xlu1 %5810 }
 0xdcc   : > { %v5816_v46 = vsel %vm4884_vm15, %v5805_v36, %v5811_v0  ;;  %11622 = vmatpush3.msra.mxu0 %v5719_v13  ;;  %11630 = vmatprep.mubr.msk.f32.mxu1 %vm628_vm0, %v13399_v26 }
 0xdcd   : > { %v5818_v60 = vmul.f32 %v5816_v46, %v13165_v4  ;;  %11633 = vmatprep.subr.mxu0 %v5918_v5  ;;  %11624 = vmatmul.mubr.msk.f32.vlgmr.msra.gmra.mxu0 %vm628_vm0, %v13406_v41 }
 0xdce   : > { %11634 = vmatpush3.msra.mxu0 %v5918_v5  ;;  %11637 = vmatprep.mubr.msk.f32.mxu0 %vm628_vm0, %v13412_v50 }
 0xdcf   : > { %11628 = vmatprep.subr.mxu1 %v5818_v60  ;;  %v5910_v58 = vpop.permute.xlu1 %5909 }
 0xdd0   : > { %v5915_v42 = vsel %vm4988_vm2, %v5904_v7, %v5910_v58  ;;  %11629 = vmatpush3.msra.mxu1 %v5818_v60 }
 0xdd1   : > { %v5917_v31 = vmul.f32 %v13181_v39, %v5915_v42  ;;  %11631 = vmatmul.mubr.msk.f32.vlgmr.msra.gmra.mxu1 %vm628_vm0, %v13423_v56 }
 0xdd2   : > { %11644 = vmatprep.mubr.msk.f32.mxu1 %vm628_vm0, %v13238_v45 }
 0xdd3   : > { %11635 = vmatprep.subr.mxu0 %v5917_v31 }
 0xdd4   : > { %11636 = vmatpush3.msra.mxu0 %v5917_v31 }
 0xdd5   : > { %11638 = vmatmul.mubr.msk.f32.vlgmr.msra.gmra.mxu0 %vm628_vm0, %v13434_v54 }
 0xdd6   : > { %11651 = vmatprep.mubr.msk.f32.mxu0 %vm628_vm0, %v13249_v53 }
 0xe79   : > { %v11583_v37 = vpop.f32.mrf.mxu0 }
 0xe7b   : > { %v5233_v47 = vpop.f32.mrf.mxu0 }
 0xe7d   : > { %v11590_v1 = vpop.f32.mrf.mxu1 }
 0xe7e   : > { %v5320_v63 = vadd.f32 %v11590_v1, %v11583_v37 }
 0xe7f   : > { %v5314_v20 = vpop.f32.mrf.mxu1 }
 0xe80   : > { %v5315_v22 = vadd.f32 %v5314_v20, %v5233_v47 }
 0xe81   : > { %v11597_v18 = vpop.f32.mrf.mxu0 }
 0xe82   : > { %v5421_v43 = vadd.f32 %v11597_v18, %v5320_v63 }
 0xe83   : > { %v5411_v49 = vpop.f32.mrf.mxu0 }
 0xe84   : > { %v5420_v18 = vadd.f32 %v5411_v49, %v5315_v22 }
 0xe86   : > { %v11604_v44 = vpop.f32.mrf.mxu1  ;;  %v11611_v13 = vpop.f32.mrf.mxu0 }
 0xe87   : > { %v5520_v36 = vadd.f32 %v11604_v44, %v5421_v43 }
 0xe88   : > { %v5510_v45 = vpop.f32.mrf.mxu1  ;;  %v5595_v0 = vpop.f32.mrf.mxu0 }
 0xe89   : > { %v5605_v5 = vadd.f32 %v11611_v13, %v5520_v36  ;;  %v5519_v43 = vadd.f32 %v5510_v45, %v5420_v18 }
 0xe8a   : > { %v11618_v46 = vpop.f32.mrf.mxu1 }
 0xe8b   : > { %v5704_v60 = vadd.f32 %v11618_v46, %v5605_v5 }
 0xe8c   : > { %v5694_v7 = vpop.f32.mrf.mxu1 }
 0xe8d   : > { %v11625_v58 = vpop.f32.mrf.mxu0 }
 0xe8e   : > { %v5803_v42 = vadd.f32 %v11625_v58, %v5704_v60 }
 0xe8f   : > { %v5793_v31 = vpop.f32.mrf.mxu0 }
 0xe91   : > { %v11632_v53 = vpop.f32.mrf.mxu1 }
 0xe92   : > { %v5902_v2 = vadd.f32 %v11632_v53, %v5803_v42 }
 0xe93   : > { %v5892_v22 = vpop.f32.mrf.mxu1 }
 0xe95   : > { %v11639_v62 = vpop.f32.mrf.mxu0 }
 0xe96   : > { %v6001_v37 = vadd.f32 %v11639_v62, %v5902_v2  ;;  %v5604_v62 = vadd.f32 %v5595_v0, %v5519_v43 }
 0xe97   : > { %v5991_v47 = vpop.f32.mrf.mxu0 }
 0xe98   : > { %v6003_v1 = vmul.f32 0.1, %v6001_v37  ;;  %v5703_v2 = vadd.f32 %v5694_v7, %v5604_v62 }
 0xe9a   : > { %v13443_v63 = vsub.f32 %v13039_v30, %v6003_v1  ;;  %v5802_v30 = vadd.f32 %v5793_v31, %v5703_v2 }
 0xe9c   : > { %6032 = vrot.lane.b32.xlu1 %v13443_v63, %s14231_s17  ;;  %6026 = vrot.lane.b32.xlu0 %v13443_v63, %s14251_s29  ;;  %s14257_s17 = smov 127   ;;  %v5901_v20 = vadd.f32 %v5892_v22, %v5802_v30 }
 0xe9e   : > { %v6000_v49 = vadd.f32 %v5991_v47, %v5901_v20 }
 0xea0   : > { %6016 = vrot.lane.b32.xlu1 %v13443_v63, %s14252_s24  ;;  %6010 = vrot.lane.b32.xlu0 %v13443_v63, %s14253_s22  ;;  %v6002_v44 = vmul.f32 0.1, %v6000_v49 }
 0xea2   : > { %v13478_v36 = vsub.f32 %v13013_v8, %v6002_v44 }
 0xea4   : > { %6198 = vrot.lane.b32.xlu1 %v13443_v63, %s14254_s18  ;;  %6192 = vrot.lane.b32.xlu0 %v13443_v63, %s14255_s26 }
 0xea8   : > { %6291 = vrot.lane.b32.xlu1 %v13443_v63, %s14246_s15  ;;  %6285 = vrot.lane.b32.xlu0 %v13443_v63, %s14256_s30 }
 0xeac   : > { %6463 = vrot.lane.b32.xlu1 %v13443_v63, %s14248_s23  ;;  %6457 = vrot.lane.b32.xlu0 %v13443_v63, %s14257_s17 }
 0xeb0   : > { %6556 = vrot.lane.b32.xlu1 %v13443_v63, %s14249_s27  ;;  %6550 = vrot.lane.b32.xlu0 %v13443_v63, %s14247_s16 }
 0xeb4   : > { %6649 = vrot.lane.b32.xlu1 %v13443_v63, %s14244_s14  ;;  %6643 = vrot.lane.b32.xlu0 %v13443_v63, %s14243_s19 }
 0xeb8   : > { %6742 = vrot.lane.b32.xlu1 %v13443_v63, %s14245_s21  ;;  %6736 = vrot.lane.b32.xlu0 %v13443_v63, %s14250_s20 }
 0xebc   : > { %6030 = vrot.lane.b32.xlu1 %v13478_v36, %s14258_s0  ;;  %6024 = vrot.lane.b32.xlu0 %v13478_v36, %s14251_s29 }
 0xec0   : > { %6014 = vrot.lane.b32.xlu1 %v13478_v36, %s14252_s24  ;;  %6008 = vrot.lane.b32.xlu0 %v13478_v36, %s14253_s22 }
 0xec4   : > { %6196 = vrot.lane.b32.xlu1 %v13478_v36, %s14254_s18  ;;  %6190 = vrot.lane.b32.xlu0 %v13478_v36, %s14255_s26 }
 0xec8   : > { %6289 = vrot.lane.b32.xlu1 %v13478_v36, %s14246_s15  ;;  %6283 = vrot.lane.b32.xlu0 %v13478_v36, %s14256_s30 }
 0xecc   : > { %6461 = vrot.lane.b32.xlu1 %v13478_v36, %s14248_s23  ;;  %6455 = vrot.lane.b32.xlu0 %v13478_v36, %s14257_s17 }
 0xed0   : > { %6554 = vrot.lane.b32.xlu1 %v13478_v36, %s14249_s27  ;;  %6548 = vrot.lane.b32.xlu0 %v13478_v36, %s14247_s16 }
 0xed4   : > { %6647 = vrot.lane.b32.xlu1 %v13478_v36, %s14244_s14  ;;  %6641 = vrot.lane.b32.xlu0 %v13478_v36, %s14243_s19 }
 0xed8   : > { %6740 = vrot.lane.b32.xlu1 %v13478_v36, %s14245_s21  ;;  %6734 = vrot.lane.b32.xlu0 %v13478_v36, %s14250_s20 }
 0xf0e   : > { %v6033_v8 = vpop.permute.xlu1 %6032  ;;  %v6027_v13 = vpop.permute.xlu0 %6026 }
 0xf0f   : > { %v6037_v45 = vsel %vm1563_vm10, %v6027_v13, %v6033_v8 }
 0xf10   : > { %v6039_v5 = vmul.f32 %v6037_v45, %v13102_v6 }
 0xf12   : > { %v6017_v0 = vpop.permute.xlu1 %6016  ;;  %11640 = vmatprep.subr.mxu1 %v6039_v5  ;;  %v6011_v46 = vpop.permute.xlu0 %6010 }
 0xf13   : > { %v6021_v60 = vsel %vm4177_vm11, %v6011_v46, %v6017_v0  ;;  %11641 = vmatpush3.msra.mxu1 %v6039_v5 }
 0xf14   : > { %v6023_v7 = vmul.f32 %v6021_v60, %v13110_v29 }
 0xf16   : > { %v6199_v58 = vpop.permute.xlu1 %6198  ;;  %11647 = vmatprep.subr.mxu0 %v6023_v7  ;;  %v6193_v42 = vpop.permute.xlu0 %6192 }
 0xf17   : > { %11648 = vmatpush3.msra.mxu0 %v6023_v7  ;;  %v6203_v49 = vsel %vm4380_vm12, %v6193_v42, %v6199_v58 }
 0xf18   : > { %v6205_v13 = vmul.f32 %v6203_v49, %v13118_v16 }
 0xf1a   : > { %v6292_v53 = vpop.permute.xlu1 %6291  ;;  %v6286_v31 = vpop.permute.xlu0 %6285 }
 0xf1b   : > { %v6296_v0 = vsel %vm912_vm5, %v6286_v31, %v6292_v53 }
 0xf1c   : > { %v6298_v7 = vmul.f32 %v6296_v0, %v13128_v19 }
 0xf1e   : > { %v6464_v37 = vpop.permute.xlu1 %6463  ;;  %v6458_v1 = vpop.permute.xlu0 %6457 }
 0xf22   : > { %v6557_v18 = vpop.permute.xlu1 %6556  ;;  %v6551_v43 = vpop.permute.xlu0 %6550 }
 0xf23   : > { %v6561_v49 = vsel %vm4780_vm14, %v6551_v43, %v6557_v18 }
 0xf26   : > { %v6650_v62 = vpop.permute.xlu1 %6649  ;;  %v6644_v2 = vpop.permute.xlu0 %6643 }
 0xf2a   : > { %v13516_v22 = vpop.permute.xlu1 %6742  ;;  %v13518_v30 = vpop.permute.xlu0 %6736 }
 0xf2e   : > { %v6031_v47 = vpop.permute.xlu1 %6030  ;;  %v6025_v20 = vpop.permute.xlu0 %6024 }
 0xf2f   : > { %v6036_v44 = vsel %vm1563_vm10, %v6025_v20, %v6031_v47  ;;  %v6377_v47 = vmul.f32 %v13443_v63, %v13139_v32  ;;  %v6468_v20 = vsel %vm4676_vm13, %v6458_v1, %v6464_v37  ;;  %v6563_v37 = vmul.f32 %v6561_v49, %v13161_v12 }
 0xf30   : > { %v6038_v8 = vmul.f32 %v6036_v44, %v13102_v6 }
 0xf32   : > { %v6015_v45 = vpop.permute.xlu1 %6014  ;;  %11642 = vmatprep.subr.mxu1 %v6038_v8  ;;  %v6009_v5 = vpop.permute.xlu0 %6008 }
 0xf33   : > { %v6020_v46 = vsel %vm4177_vm11, %v6009_v5, %v6015_v45  ;;  %11643 = vmatpush3.msra.mxu1 %v6038_v8 }
 0xf34   : > { %v6022_v60 = vmul.f32 %v6020_v46, %v13110_v29  ;;  %11654 = vmatprep.subr.mxu1 %v6205_v13  ;;  %11645 = vmatmul.mubr.msk.f32.vlgmr.msra.gmra.mxu1 %vm628_vm0, %v13297_v17 }
 0xf35   : > { %11655 = vmatpush3.msra.mxu1 %v6205_v13  ;;  %11658 = vmatprep.mubr.msk.f32.mxu1 %vm628_vm0, %v13303_v48 }
 0xf36   : > { %v6197_v58 = vpop.permute.xlu1 %6196  ;;  %11649 = vmatprep.subr.mxu0 %v6022_v60  ;;  %v6191_v42 = vpop.permute.xlu0 %6190 }
 0xf37   : > { %v6202_v53 = vsel %vm4380_vm12, %v6191_v42, %v6197_v58  ;;  %11650 = vmatpush3.msra.mxu0 %v6022_v60 }
 0xf38   : > { %v6204_v31 = vmul.f32 %v6202_v53, %v13118_v16  ;;  %11661 = vmatprep.subr.mxu0 %v6298_v7  ;;  %11652 = vmatmul.mubr.msk.f32.vlgmr.msra.gmra.mxu0 %vm628_vm0, %v13313_v38  ;;  %v6376_v38 = vmul.f32 %v13478_v36, %v13139_v32 }
 0xf39   : > { %11662 = vmatpush3.msra.mxu0 %v6298_v7  ;;  %11665 = vmatprep.mubr.msk.f32.mxu0 %vm628_vm0, %v13321_v11  ;;  %v6470_v11 = vmul.f32 %v6468_v20, %v13147_v59 }
 0xf3a   : > { %v6290_v17 = vpop.permute.xlu1 %6289  ;;  %11656 = vmatprep.subr.mxu1 %v6204_v31  ;;  %v6284_v48 = vpop.permute.xlu0 %6283 }
 0xf3b   : > { %v6295_v44 = vsel %vm912_vm5, %v6284_v48, %v6290_v17  ;;  %11657 = vmatpush3.msra.mxu1 %v6204_v31 }
 0xf3c   : > { %v6297_v8 = vmul.f32 %v6295_v44, %v13128_v19  ;;  %11668 = vmatprep.subr.mxu1 %v6377_v47  ;;  %11659 = vmatmul.mubr.msk.f32.vlgmr.msra.gmra.mxu1 %vm628_vm0, %v13330_v40  ;;  %v6654_v40 = vsel %vm4884_vm15, %v6644_v2, %v6650_v62  ;;  %v6747_v62 = vsel %vm4988_vm2, %v13518_v30, %v13516_v22 }
 0xf3d   : > { %11669 = vmatpush3.msra.mxu1 %v6377_v47  ;;  %11672 = vmatprep.mubr.msk.f32.mxu1 %vm628_vm0, %v13339_v61  ;;  %v6656_v5 = vmul.f32 %v6654_v40, %v13165_v4 }
 0xf3e   : > { %v6462_v1 = vpop.permute.xlu1 %6461  ;;  %11663 = vmatprep.subr.mxu0 %v6297_v8  ;;  %v6456_v18 = vpop.permute.xlu0 %6455  ;;  %11670 = vmatprep.subr.mxu1 %v6376_v38 }
 0xf3f   : > { %v6467_v43 = vsel %vm4676_vm13, %v6456_v18, %v6462_v1  ;;  %11664 = vmatpush3.msra.mxu0 %v6297_v8  ;;  %11671 = vmatpush3.msra.mxu1 %v6376_v38 }
 0xf40   : > { %v6469_v13 = vmul.f32 %v6467_v43, %v13147_v59  ;;  %11675 = vmatprep.subr.mxu0 %v6470_v11  ;;  %11682 = vmatprep.subr.mxu1 %v6563_v37 }
 0xf41   : > { %11666 = vmatmul.mubr.msk.f32.vlgmr.msra.gmra.mxu0 %vm628_vm0, %v13356_v35  ;;  %11673 = vmatmul.mubr.msk.f32.vlgmr.msra.gmra.mxu1 %vm628_vm0, %v13361_v3  ;;  %v6749_v3 = vmul.f32 %v13181_v39, %v6747_v62 }
 0xf42   : > { %11676 = vmatpush3.msra.mxu0 %v6470_v11  ;;  %11683 = vmatpush3.msra.mxu1 %v6563_v37  ;;  %v6555_v61 = vpop.permute.xlu1 %6554  ;;  %v6549_v45 = vpop.permute.xlu0 %6548 }
 0xf43   : > { %11677 = vmatprep.subr.mxu0 %v6469_v13  ;;  %v6560_v2 = vsel %vm4780_vm14, %v6549_v45, %v6555_v61  ;;  %11679 = vmatprep.mubr.msk.f32.mxu0 %vm628_vm0, %v13370_v21 }
 0xf44   : > { %v6562_v35 = vmul.f32 %v6560_v2, %v13161_v12  ;;  %11678 = vmatpush3.msra.mxu0 %v6469_v13  ;;  %11686 = vmatprep.mubr.msk.f32.mxu1 %vm628_vm0, %v13379_v52 }
 0xf45   : > { %11689 = vmatprep.subr.mxu0 %v6656_v5  ;;  %11680 = vmatmul.mubr.msk.f32.vlgmr.msra.gmra.mxu0 %vm628_vm0, %v13384_v57 }
 0xf46   : > { %11690 = vmatpush3.msra.mxu0 %v6656_v5  ;;  %v6648_v22 = vpop.permute.xlu1 %6647  ;;  %v6642_v30 = vpop.permute.xlu0 %6641  ;;  %11684 = vmatprep.subr.mxu1 %v6562_v35 }
 0xf47   : > { %v6653_v0 = vsel %vm4884_vm15, %v6642_v30, %v6648_v22  ;;  %11685 = vmatpush3.msra.mxu1 %v6562_v35  ;;  %11693 = vmatprep.mubr.msk.f32.mxu0 %vm628_vm0, %v13399_v26  ;;  %v11925_v26 = vld [vmem:[#allocation12 + $0x10] sm:$0xff] }
 0xf48   : > { %v6655_v21 = vmul.f32 %v6653_v0, %v13165_v4  ;;  %11696 = vmatprep.subr.mxu1 %v6749_v3  ;;  %11687 = vmatmul.mubr.msk.f32.vlgmr.msra.gmra.mxu1 %vm628_vm0, %v13406_v41  ;;  %v11926_v41 = vld [vmem:[#allocation12] sm:$0xff] }
 0xf49   : > { %11697 = vmatpush3.msra.mxu1 %v6749_v3  ;;  %11700 = vmatprep.mubr.msk.f32.mxu1 %vm628_vm0, %v13412_v50 }
 0xf4a   : > { %v6741_v52 = vpop.permute.xlu1 %6740  ;;  %11691 = vmatprep.subr.mxu0 %v6655_v21  ;;  %v6735_v57 = vpop.permute.xlu0 %6734 }
 0xf4b   : > { %v6746_v46 = vsel %vm4988_vm2, %v6735_v57, %v6741_v52  ;;  %11692 = vmatpush3.msra.mxu0 %v6655_v21 }
 0xf4c   : > { %v6748_v60 = vmul.f32 %v13181_v39, %v6746_v46  ;;  %11694 = vmatmul.mubr.msk.f32.vlgmr.msra.gmra.mxu0 %vm628_vm0, %v13423_v56 }
 0xf4d   : > { %11707 = vmatprep.mubr.msk.f32.mxu0 %vm628_vm0, %v11925_v26 }
 0xf4e   : > { %11698 = vmatprep.subr.mxu1 %v6748_v60 }
 0xf4f   : > { %11699 = vmatpush3.msra.mxu1 %v6748_v60 }
 0xf50   : > { %11701 = vmatmul.mubr.msk.f32.vlgmr.msra.gmra.mxu1 %vm628_vm0, %v13434_v54 }
 0xf51   : > { %11714 = vmatprep.mubr.msk.f32.mxu1 %vm628_vm0, %v11926_v41 }
 0xff4   : > { %v11646_v50 = vpop.f32.mrf.mxu1 }
 0xff6   : > { %v6106_v7 = vpop.f32.mrf.mxu1 }
 0xff8   : > { %v11653_v58 = vpop.f32.mrf.mxu0 }
 0xff9   : > { %v6187_v42 = vadd.f32 %v11653_v58, %v11646_v50 }
 0xffa   : > { %v6181_v53 = vpop.f32.mrf.mxu0 }
 0xffb   : > { %v6182_v39 = vadd.f32 %v6181_v53, %v6106_v7 }
 0xffc   : > { %v11660_v31 = vpop.f32.mrf.mxu1 }
 0xffd   : > { %v6282_v17 = vadd.f32 %v11660_v31, %v6187_v42 }
 0xffe   : > { %v6272_v56 = vpop.f32.mrf.mxu1 }
 0xfff   : > { %v6281_v48 = vadd.f32 %v6272_v56, %v6182_v39 }
0x1001   : > { %v11667_v47 = vpop.f32.mrf.mxu0  ;;  %v11674_v20 = vpop.f32.mrf.mxu1 }
0x1002   : > { %v6375_v49 = vadd.f32 %v11667_v47, %v6282_v17 }
0x1003   : > { %v6365_v44 = vpop.f32.mrf.mxu0  ;;  %v6444_v54 = vpop.f32.mrf.mxu1 }
0x1004   : > { %v6374_v8 = vadd.f32 %v6365_v44, %v6281_v48  ;;  %v6454_v38 = vadd.f32 %v11674_v20, %v6375_v49 }
0x1005   : > { %v11681_v11 = vpop.f32.mrf.mxu0 }
0x1006   : > { %v6453_v37 = vadd.f32 %v6444_v54, %v6374_v8  ;;  %v6547_v1 = vadd.f32 %v11681_v11, %v6454_v38 }
0x1007   : > { %v6537_v18 = vpop.f32.mrf.mxu0 }
0x1008   : > { %v11688_v43 = vpop.f32.mrf.mxu1  ;;  %v6546_v40 = vadd.f32 %v6537_v18, %v6453_v37 }
0x1009   : > { %v6640_v13 = vadd.f32 %v11688_v43, %v6547_v1 }
0x100a   : > { %v6630_v61 = vpop.f32.mrf.mxu1 }
0x100b   : > { %v6639_v62 = vadd.f32 %v6630_v61, %v6546_v40 }
0x100c   : > { %v11695_v45 = vpop.f32.mrf.mxu0 }
0x100d   : > { %v6733_v2 = vadd.f32 %v11695_v45, %v6640_v13 }
0x100e   : > { %v6723_v5 = vpop.f32.mrf.mxu0 }
0x100f   : > { %v6732_v3 = vadd.f32 %v6723_v5, %v6639_v62 }
0x1010   : > { %v11702_v35 = vpop.f32.mrf.mxu1 }
0x1011   : > { %v6826_v22 = vadd.f32 %v11702_v35, %v6733_v2 }
0x1012   : > { %v6816_v30 = vpop.f32.mrf.mxu1 }
0x1013   : > { %v6825_v0 = vadd.f32 %v6816_v30, %v6732_v3  ;;  %v6830_v21 = vsel %vm5080_vm4, %v6826_v22, 0.0 }
0x1014   : > { %6831 = vadd.xlane.f32.xlu0 %v6830_v21 }
0x1015   : > { %v6827_v52 = vsel %vm5080_vm4, %v6825_v0, 0.0 }
0x1016   : > { %6828 = vadd.xlane.f32.xlu1 %v6827_v52 }
0x109d   : > { %v6832_v57 = vpop.xlane.xlu0 %6831 }
0x109e   : > { %v6834_v46 = vmul.f32 0.015625, %v6832_v57 }
0x109f   : > { %v6829_v60 = vpop.xlane.xlu1 %6828 }
0x10a0   : > { %v6836_v26 = vsub.f32 %v6826_v22, %v6834_v46  ;;  %v6833_v41 = vmul.f32 0.015625, %v6829_v60 }
0x10a2   : > { %v6835_v50 = vsub.f32 %v6825_v0, %v6833_v41  ;;  %v6838_v7 = vmul.f32 %v6836_v26, %v6836_v26 }
0x10a4   : > { %v6842_v58 = vsel %vm5080_vm4, %v6838_v7, 0.0  ;;  %v6837_v42 = vmul.f32 %v6835_v50, %v6835_v50 }
0x10a5   : > { %6843 = vadd.xlane.f32.xlu0 %v6842_v58 }
0x10a6   : > { %v6839_v53 = vsel %vm5080_vm4, %v6837_v42, 0.0 }
0x10a9   : > { %6840 = vadd.xlane.f32.xlu0 %v6839_v53 }
0x112e   : > { %v6844_v39 = vpop.xlane.xlu0 %6843 }
0x112f   : > { %v6846_v31 = vmul.f32 0.015625, %v6844_v39 }
0x1131   : > { %v6848_v17 = vadd.f32 1e-05, %v6846_v31 }
0x1132   : > { %v6841_v48 = vpop.xlane.xlu0 %6840 }
0x1133   : > { %11917 = vrsqrt.f32 %v6848_v17  ;;  %v6845_v49 = vmul.f32 0.015625, %v6841_v48  ;;  %v11927_v48 = vld [vmem:[#allocation12 + $0x18] sm:$0xff] }
0x1135   : > { %v6847_v44 = vadd.f32 1e-05, %v6845_v49 }
0x1137   : > { %11919 = vrsqrt.f32 %v6847_v44 }
0x1140   : > { %v11918_v56 = vpop.eup %11917 }
0x1141   : > { %v6852_v47 = vmul.f32 %v11918_v56, %v6836_v26 }
0x1143   : > { %v13592_v20 = vmax.f32 %v6852_v47, 0.0  ;;  %v11928_v47 = vld [vmem:[#allocation12 + $0x20] sm:$0xff] }
0x1144   : > { %v11920_v8 = vpop.eup %11919 }
0x1145   : > { %6875 = vrot.lane.b32.xlu1 %v13592_v20, %s14251_s29  ;;  %6881 = vrot.lane.b32.xlu0 %v13592_v20, %s14258_s0  ;;  %v6851_v38 = vmul.f32 %v11920_v8, %v6835_v50 }
0x1147   : > { %v13622_v54 = vmax.f32 %v6851_v38, 0.0 }
0x1149   : > { %6859 = vrot.lane.b32.xlu1 %v13592_v20, %s14253_s22  ;;  %7041 = vrot.lane.b32.xlu0 %v13592_v20, %s14255_s26 }
0x114d   : > { %6865 = vrot.lane.b32.xlu1 %v13592_v20, %s14252_s24  ;;  %7134 = vrot.lane.b32.xlu0 %v13592_v20, %s14256_s30 }
0x1151   : > { %7047 = vrot.lane.b32.xlu1 %v13592_v20, %s14254_s18  ;;  %7306 = vrot.lane.b32.xlu0 %v13592_v20, %s14257_s17 }
0x1155   : > { %7140 = vrot.lane.b32.xlu1 %v13592_v20, %s14246_s15  ;;  %7399 = vrot.lane.b32.xlu0 %v13592_v20, %s14247_s16 }
0x1159   : > { %7312 = vrot.lane.b32.xlu1 %v13592_v20, %s14248_s23  ;;  %7492 = vrot.lane.b32.xlu0 %v13592_v20, %s14243_s19 }
0x115d   : > { %7405 = vrot.lane.b32.xlu1 %v13592_v20, %s14249_s27  ;;  %7585 = vrot.lane.b32.xlu0 %v13592_v20, %s14250_s20 }
0x1161   : > { %7498 = vrot.lane.b32.xlu1 %v13592_v20, %s14244_s14  ;;  %6873 = vrot.lane.b32.xlu0 %v13622_v54, %s14251_s29 }
0x1165   : > { %7591 = vrot.lane.b32.xlu1 %v13592_v20, %s14245_s21  ;;  %6857 = vrot.lane.b32.xlu0 %v13622_v54, %s14253_s22 }
0x1169   : > { %6879 = vrot.lane.b32.xlu1 %v13622_v54, %s14258_s0  ;;  %7039 = vrot.lane.b32.xlu0 %v13622_v54, %s14255_s26 }
0x116d   : > { %6863 = vrot.lane.b32.xlu1 %v13622_v54, %s14252_s24  ;;  %7132 = vrot.lane.b32.xlu0 %v13622_v54, %s14256_s30 }
0x1171   : > { %7045 = vrot.lane.b32.xlu1 %v13622_v54, %s14254_s18  ;;  %7304 = vrot.lane.b32.xlu0 %v13622_v54, %s14257_s17 }
0x1175   : > { %7138 = vrot.lane.b32.xlu1 %v13622_v54, %s14246_s15  ;;  %7397 = vrot.lane.b32.xlu0 %v13622_v54, %s14247_s16  ;;  %s14263_s16 = smov 15  }
0x1179   : > { %7310 = vrot.lane.b32.xlu1 %v13622_v54, %s14248_s23  ;;  %7490 = vrot.lane.b32.xlu0 %v13622_v54, %s14243_s19  ;;  %s14261_s19 = smov 113   ;;  %s14264_s23 = smov 112  }
0x117d   : > { %7403 = vrot.lane.b32.xlu1 %v13622_v54, %s14249_s27  ;;  %7583 = vrot.lane.b32.xlu0 %v13622_v54, %s14250_s20  ;;  %s14260_s20 = smov 16   ;;  %s14265_s27 = smov 111  }
0x1181   : > { %7496 = vrot.lane.b32.xlu1 %v13622_v54, %s14244_s14  ;;  %s14262_s14 = smov 17  }
0x1185   : > { %7589 = vrot.lane.b32.xlu1 %v13622_v54, %s14245_s21 }
0x11b7   : > { %v6882_v11 = vpop.permute.xlu0 %6881  ;;  %v6876_v37 = vpop.permute.xlu1 %6875 }
0x11b8   : > { %v6886_v1 = vsel %vm1563_vm10, %v6876_v37, %v6882_v11  ;;  %v11930_v11 = vld [vmem:[#allocation12 + $0x30] sm:$0xff] }
0x11b9   : > { %v6888_v18 = vmul.f32 %v6886_v1, %v13102_v6  ;;  %v7226_v1 = vmul.f32 %v13592_v20, %v13139_v32 }
0x11bb   : > { %v7042_v43 = vpop.permute.xlu0 %7041  ;;  %11703 = vmatprep.subr.mxu0 %v6888_v18  ;;  %v6860_v40 = vpop.permute.xlu1 %6859 }
0x11bc   : > { %11704 = vmatpush3.msra.mxu0 %v6888_v18 }
0x11bf   : > { %v7135_v13 = vpop.permute.xlu0 %7134  ;;  %v6866_v61 = vpop.permute.xlu1 %6865 }
0x11c0   : > { %v6870_v45 = vsel %vm4177_vm11, %v6860_v40, %v6866_v61  ;;  %v7225_v61 = vmul.f32 %v13622_v54, %v13139_v32  ;;  %v11933_v54 = vld [vmem:[#allocation12 + $0x38] sm:$0xff] }
0x11c1   : > { %v6872_v5 = vmul.f32 %v6870_v45, %v13110_v29  ;;  %v11932_v45 = vld [vmem:[#allocation12 + $0x40] sm:$0xff] }
0x11c3   : > { %v7307_v62 = vpop.permute.xlu0 %7306  ;;  %11710 = vmatprep.subr.mxu1 %v6872_v5  ;;  %v7048_v2 = vpop.permute.xlu1 %7047 }
0x11c4   : > { %11711 = vmatpush3.msra.mxu1 %v6872_v5  ;;  %v7052_v50 = vsel %vm4380_vm12, %v7042_v43, %v7048_v2 }
0x11c5   : > { %v7054_v42 = vmul.f32 %v7052_v50, %v13118_v16 }
0x11c7   : > { %v7400_v35 = vpop.permute.xlu0 %7399  ;;  %v7141_v3 = vpop.permute.xlu1 %7140 }
0x11c8   : > { %v7145_v31 = vsel %vm912_vm5, %v7135_v13, %v7141_v3  ;;  %v11931_v13 = vld [vmem:[#allocation12 + $0x28] sm:$0xff] }
0x11c9   : > { %v11934_v3 = vld [vmem:[#allocation12 + $0x48] sm:$0xff] }
0x11cb   : > { %v13664_v22 = vpop.permute.xlu0 %7492  ;;  %v7313_v30 = vpop.permute.xlu1 %7312 }
0x11cc   : > { %v7317_v18 = vsel %vm4676_vm13, %v7307_v62, %v7313_v30 }
0x11cd   : > { %v7319_v20 = vmul.f32 %v7317_v18, %v13147_v59  ;;  %v7686_v18 = vld [vmem:[#allocation15 + $0x30] sm:$0xff] }
0x11cf   : > { %v13666_v0 = vpop.permute.xlu0 %7585  ;;  %v7406_v21 = vpop.permute.xlu1 %7405 }
0x11d0   : > { %v7410_v43 = vsel %vm4780_vm14, %v7400_v35, %v7406_v21 }
0x11d1   : > { %v7412_v5 = vmul.f32 %v7410_v43, %v13161_v12  ;;  %v7685_v43 = vld [vmem:[#allocation15 + $0x28] sm:$0xff] }
0x11d3   : > { %v6874_v52 = vpop.permute.xlu0 %6873  ;;  %v7499_v57 = vpop.permute.xlu1 %7498 }
0x11d4   : > { %v7503_v35 = vsel %vm4884_vm15, %v13664_v22, %v7499_v57  ;;  %v11935_v22 = vld [vmem:[#allocation12 + $0x50] sm:$0xff] }
0x11d5   : > { %v7505_v21 = vmul.f32 %v7503_v35, %v13165_v4 }
0x11d7   : > { %v6858_v46 = vpop.permute.xlu0 %6857  ;;  %v13668_v60 = vpop.permute.xlu1 %7591 }
0x11db   : > { %v7040_v26 = vpop.permute.xlu0 %7039  ;;  %v6880_v41 = vpop.permute.xlu1 %6879 }
0x11dc   : > { %v6885_v7 = vsel %vm1563_vm10, %v6874_v52, %v6880_v41  ;;  %v7596_v52 = vsel %vm4988_vm2, %v13666_v0, %v13668_v60  ;;  %v11937_v41 = vld [vmem:[#allocation12 + $0x58] sm:$0xff]  ;;  %v11938_v0 = vld [vmem:[%s14173_s9 + $0x8] ss:$0 sm:$0xff] }
0x11dd   : > { %v6887_v58 = vmul.f32 %v6885_v7, %v13102_v6  ;;  %v7147_v6 = vmul.f32 %v7145_v31, %v13128_v19  ;;  %v7598_v60 = vmul.f32 %v11938_v0, %v7596_v52 }
0x11df   : > { %v7133_v53 = vpop.permute.xlu0 %7132  ;;  %11705 = vmatprep.subr.mxu0 %v6887_v58  ;;  %v6864_v39 = vpop.permute.xlu1 %6863 }
0x11e0   : > { %v6869_v17 = vsel %vm4177_vm11, %v6858_v46, %v6864_v39  ;;  %11706 = vmatpush3.msra.mxu0 %v6887_v58 }
0x11e1   : > { %v6871_v56 = vmul.f32 %v6869_v17, %v13110_v29  ;;  %11717 = vmatprep.subr.mxu0 %v7054_v42  ;;  %11708 = vmatmul.mubr.msk.f32.vlgmr.msra.gmra.mxu0 %vm628_vm0, %v11927_v48  ;;  %v11929_v29 = vld [vmem:[#allocation12 + $0x8] sm:$0xff]  ;;  %v11942_v48 = vld [vmem:[#allocation12 + $0x78] sm:$0xff] }
0x11e2   : > { %11718 = vmatpush3.msra.mxu0 %v7054_v42  ;;  %11721 = vmatprep.mubr.msk.f32.mxu0 %vm628_vm0, %v11928_v47  ;;  %v11940_v42 = vld [vmem:[#allocation12 + $0x68] sm:$0xff]  ;;  %v14259_v47 = vmov 0.0  }
0x11e3   : > { %11712 = vmatprep.subr.mxu1 %v6871_v56  ;;  %v7046_v49 = vpop.permute.xlu1 %7045  ;;  %v7305_v8 = vpop.permute.xlu0 %7304 }
0x11e4   : > { %v7051_v44 = vsel %vm4380_vm12, %v7040_v26, %v7046_v49  ;;  %11713 = vmatpush3.msra.mxu1 %v6871_v56  ;;  %v11936_v26 = vld [vmem:[#allocation12 + $0x60] sm:$0xff]  ;;  %v7694_v49 = vld [vmem:[#allocation15 + $0x70] sm:$0xff] }
0x11e5   : > { %v7053_v38 = vmul.f32 %v7051_v44, %v13118_v16  ;;  %11724 = vmatprep.subr.mxu1 %v7147_v6  ;;  %11715 = vmatmul.mubr.msk.f32.vlgmr.msra.gmra.mxu1 %vm628_vm0, %v11929_v29  ;;  %v7693_v44 = vld [vmem:[#allocation15 + $0x68] sm:$0xff]  ;;  %v7690_v29 = vld [vmem:[#allocation15 + $0x50] sm:$0xff] }
0x11e6   : > { %11725 = vmatpush3.msra.mxu1 %v7147_v6  ;;  %11728 = vmatprep.mubr.msk.f32.mxu1 %vm628_vm0, %v11930_v11  ;;  %v7695_v6 = vld [vmem:[#allocation15 + $0x78] sm:$0xff]  ;;  %v7689_v11 = vld [vmem:[#allocation15 + $0x48] sm:$0xff] }
0x11e7   : > { %11719 = vmatprep.subr.mxu0 %v7053_v38  ;;  %v7139_v37 = vpop.permute.xlu1 %7138  ;;  %v7398_v62 = vpop.permute.xlu0 %7397 }
0x11e8   : > { %v7144_v40 = vsel %vm912_vm5, %v7133_v53, %v7139_v37  ;;  %11720 = vmatpush3.msra.mxu0 %v7053_v38  ;;  %v11941_v53 = vld [vmem:[#allocation12 + $0x80] sm:$0xff]  ;;  %v7691_v38 = vld [vmem:[#allocation15 + $0x58] sm:$0xff]  ;;  %v7688_v37 = vld [vmem:[#allocation15 + $0x40] sm:$0xff] }
0x11e9   : > { %v7146_v16 = vmul.f32 %v7144_v40, %v13128_v19  ;;  %11731 = vmatprep.subr.mxu0 %v7226_v1  ;;  %11722 = vmatmul.mubr.msk.f32.vlgmr.msra.gmra.mxu0 %vm628_vm0, %v11931_v13  ;;  %v7684_v40 = vld [vmem:[#allocation15 + $0x20] sm:$0xff]  ;;  %v7682_v13 = vld [vmem:[#allocation15 + $0x10] sm:$0xff] }
0x11ea   : > { %11732 = vmatpush3.msra.mxu0 %v7226_v1  ;;  %11735 = vmatprep.mubr.msk.f32.mxu0 %vm628_vm0, %v11932_v45  ;;  %v7687_v1 = vld [vmem:[#allocation15 + $0x38] sm:$0xff]  ;;  %v7680_v45 = vld [vmem:[#allocation15] sm:$0xff] }
0x11eb   : > { %11726 = vmatprep.subr.mxu1 %v7146_v16  ;;  %11733 = vmatprep.subr.mxu0 %v7225_v61  ;;  %v7311_v2 = vpop.permute.xlu1 %7310  ;;  %v7491_v57 = vpop.permute.xlu0 %7490 }
0x11ec   : > { %v7316_v19 = vsel %vm4676_vm13, %v7305_v8, %v7311_v2  ;;  %11727 = vmatpush3.msra.mxu1 %v7146_v16  ;;  %11734 = vmatpush3.msra.mxu0 %v7225_v61  ;;  %v7692_v8 = vld [vmem:[#allocation15 + $0x60] sm:$0xff]  ;;  %v7683_v16 = vld [vmem:[#allocation15 + $0x18] sm:$0xff]  ;;  %v7681_v61 = vld [vmem:[#allocation15 + $0x8] sm:$0xff] }
0x11ed   : > { %v7318_v32 = vmul.f32 %v7316_v19, %v13147_v59  ;;  %11738 = vmatprep.subr.mxu1 %v7319_v20  ;;  %11745 = vmatprep.subr.mxu0 %v7412_v5 }
0x11ee   : > { %11729 = vmatmul.mubr.msk.f32.vlgmr.msra.gmra.mxu1 %vm628_vm0, %v11933_v54  ;;  %11736 = vmatmul.mubr.msk.f32.vlgmr.msra.gmra.mxu0 %vm628_vm0, %v11934_v3 }
0x11ef   : > { %11739 = vmatpush3.msra.mxu1 %v7319_v20  ;;  %11746 = vmatpush3.msra.mxu0 %v7412_v5  ;;  %v7404_v30 = vpop.permute.xlu1 %7403  ;;  %v7584_v39 = vpop.permute.xlu0 %7583 }
0x11f0   : > { %11740 = vmatprep.subr.mxu1 %v7318_v32  ;;  %v7409_v59 = vsel %vm4780_vm14, %v7398_v62, %v7404_v30  ;;  %11742 = vmatprep.mubr.msk.f32.mxu1 %vm628_vm0, %v11935_v22 }
0x11f1   : > { %v7411_v46 = vmul.f32 %v7409_v59, %v13161_v12  ;;  %11741 = vmatpush3.msra.mxu1 %v7318_v32  ;;  %11749 = vmatprep.mubr.msk.f32.mxu0 %vm628_vm0, %v11936_v26  ;;  %v11939_v12 = vld [vmem:[#allocation12 + $0x70] sm:$0xff] }
0x11f2   : > { %11752 = vmatprep.subr.mxu1 %v7505_v21  ;;  %11743 = vmatmul.mubr.msk.f32.vlgmr.msra.gmra.mxu1 %vm628_vm0, %v11937_v41 }
0x11f3   : > { %11753 = vmatpush3.msra.mxu1 %v7505_v21  ;;  %11747 = vmatprep.subr.mxu0 %v7411_v46  ;;  %v7497_v50 = vpop.permute.xlu1 %7496 }
0x11f4   : > { %v7502_v7 = vsel %vm4884_vm15, %v7491_v57, %v7497_v50  ;;  %11748 = vmatpush3.msra.mxu0 %v7411_v46  ;;  %11756 = vmatprep.mubr.msk.f32.mxu1 %vm628_vm0, %v11939_v12 }
0x11f5   : > { %v7504_v58 = vmul.f32 %v7502_v7, %v13165_v4  ;;  %11759 = vmatprep.subr.mxu0 %v7598_v60  ;;  %11750 = vmatmul.mubr.msk.f32.vlgmr.msra.gmra.mxu0 %vm628_vm0, %v11940_v42  ;;  %v11943_v4 = vld [vmem:[#allocation12 + $0x88] sm:$0xff] }
0x11f6   : > { %11760 = vmatpush3.msra.mxu0 %v7598_v60  ;;  %11763 = vmatprep.mubr.msk.f32.mxu0 %vm628_vm0, %v11941_v53 }
0x11f7   : > { %11754 = vmatprep.subr.mxu1 %v7504_v58  ;;  %v7590_v31 = vpop.permute.xlu1 %7589 }
0x11f8   : > { %v7595_v17 = vsel %vm4988_vm2, %v7584_v39, %v7590_v31  ;;  %11755 = vmatpush3.msra.mxu1 %v7504_v58 }
0x11f9   : > { %v7597_v56 = vmul.f32 %v11938_v0, %v7595_v17  ;;  %11757 = vmatmul.mubr.msk.f32.vlgmr.msra.gmra.mxu1 %vm628_vm0, %v11942_v48  ;;  %7718 = vmatprep.subr.mxu1 %v7695_v6 }
0x11fa   : > { %7766 = vmatprep.mubr.f32.mxu1 %v14259_v47  ;;  %7719 = vmatpush1.msra.mxu1 %v7694_v49 }
0x11fb   : > { %11761 = vmatprep.subr.mxu0 %v7597_v56  ;;  %7720 = vmatprep.subr.mxu1 %v7693_v44 }
0x11fc   : > { %11762 = vmatpush3.msra.mxu0 %v7597_v56  ;;  %7721 = vmatpush1.msra.mxu1 %v7692_v8 }
0x11fd   : > { %11764 = vmatmul.mubr.msk.f32.vlgmr.msra.gmra.mxu0 %vm628_vm0, %v11943_v4  ;;  %7722 = vmatprep.subr.mxu1 %v7691_v38 }
0x11fe   : > { %7903 = vmatprep.mubr.f32.mxu0 %v14259_v47  ;;  %7723 = vmatpush1.msra.mxu1 %v7690_v29 }
0x11ff   : > { %7724 = vmatprep.subr.mxu1 %v7689_v11 }
0x1200   : > { %7725 = vmatpush1.msra.mxu1 %v7688_v37 }
0x1201   : > { %7726 = vmatprep.subr.mxu1 %v7687_v1 }
0x1202   : > { %7727 = vmatpush1.msra.mxu1 %v7686_v18 }
0x1203   : > { %7728 = vmatprep.subr.mxu1 %v7685_v43 }
0x1204   : > { %7729 = vmatpush1.msra.mxu1 %v7684_v40 }
0x1205   : > { %7730 = vmatprep.subr.mxu1 %v7683_v16 }
0x1206   : > { %7731 = vmatpush1.msra.mxu1 %v7682_v13 }
0x1207   : > { %7732 = vmatprep.subr.mxu1 %v7681_v61 }
0x1208   : > { %7733 = vmatpush1.msra.mxu1 %v7680_v45 }
0x12a1   : > { %v11709_v20 = vpop.f32.mrf.mxu0 }
0x12a3   : > { %v6955_v5 = vpop.f32.mrf.mxu0 }
0x12a5   : > { %v11716_v62 = vpop.f32.mrf.mxu1 }
0x12a6   : > { %v7036_v2 = vadd.f32 %v11716_v62, %v11709_v20 }
0x12a7   : > { %v7030_v19 = vpop.f32.mrf.mxu1 }
0x12a8   : > { %v7031_v35 = vadd.f32 %v7030_v19, %v6955_v5 }
0x12a9   : > { %v11723_v32 = vpop.f32.mrf.mxu0 }
0x12aa   : > { %v7131_v54 = vadd.f32 %v11723_v32, %v7036_v2 }
0x12ab   : > { %v7121_v3 = vpop.f32.mrf.mxu0 }
0x12ac   : > { %v7130_v30 = vadd.f32 %v7121_v3, %v7031_v35 }
0x12ae   : > { %v11730_v21 = vpop.f32.mrf.mxu1  ;;  %v11737_v52 = vpop.f32.mrf.mxu0 }
0x12af   : > { %v7224_v59 = vadd.f32 %v11730_v21, %v7131_v54 }
0x12b0   : > { %v7214_v22 = vpop.f32.mrf.mxu1  ;;  %v7293_v46 = vpop.f32.mrf.mxu0 }
0x12b1   : > { %v7223_v57 = vadd.f32 %v7214_v22, %v7130_v30  ;;  %v7303_v26 = vadd.f32 %v11737_v52, %v7224_v59 }
0x12b2   : > { %v11744_v41 = vpop.f32.mrf.mxu1 }
0x12b3   : > { %v7302_v0 = vadd.f32 %v7293_v46, %v7223_v57  ;;  %v7396_v7 = vadd.f32 %v11744_v41, %v7303_v26 }
0x12b4   : > { %v7386_v60 = vpop.f32.mrf.mxu1 }
0x12b5   : > { %v11751_v50 = vpop.f32.mrf.mxu0  ;;  %v7395_v12 = vadd.f32 %v7386_v60, %v7302_v0 }
0x12b6   : > { %v7489_v53 = vadd.f32 %v11751_v50, %v7396_v7 }
0x12b7   : > { %v7479_v58 = vpop.f32.mrf.mxu0 }
0x12b8   : > { %v7488_v31 = vadd.f32 %v7479_v58, %v7395_v12 }
0x12b9   : > { %v11758_v42 = vpop.f32.mrf.mxu1 }
0x12ba   : > { %v7582_v56 = vadd.f32 %v11758_v42, %v7489_v53  ;;  %v7780_v42 = vld [vmem:[#allocation13 + $0x8] sm:$0xff] }
0x12bb   : > { %v7572_v39 = vpop.f32.mrf.mxu1 }
0x12bc   : > { %v7581_v48 = vadd.f32 %v7572_v39, %v7488_v31 }
0x12bd   : > { %v11765_v17 = vpop.f32.mrf.mxu0 }
0x12be   : > { %v7675_v6 = vadd.f32 %v11765_v17, %v7582_v56 }
0x12bf   : > { %v7665_v4 = vpop.f32.mrf.mxu0 }
0x12c0   : > { %v7674_v49 = vadd.f32 %v7665_v4, %v7581_v48  ;;  %v7677_v8 = vmul.f32 0.1, %v7675_v6 }
0x12c2   : > { %v7676_v44 = vmul.f32 0.1, %v7674_v49  ;;  %v7679_v29 = vsub.f32 %v13443_v63, %v7677_v8  ;;  %v7779_v8 = vld [vmem:[#allocation13] sm:$0xff] }
0x12c4   : > { %v7678_v38 = vsub.f32 %v13478_v36, %v7676_v44 }
0x12c6   : > { %11290 = vmatmul.mubr.msk.f32.vlgmr.msra.gmra.mxu1 %vm5080_vm4, %v7678_v38 }
0x12c7   : > { %7772 = vmatprep.mubr.f32.mxu1 %v14259_v47 }
0x12ca   : > { %11291 = vmatmul.mubr.msk.f32.gmra.mxu1 %vm5080_vm4, %v7679_v29 }
0x12cb   : > { %8349 = vmatprep.mubr.f32.mxu1 %v14259_v47 }
0x1386   : > { %v13730_v11 = vpop.f32.mrf.mxu1 }
0x1387   : > { %8260 = vrot.lane.b32.xlu0 %v13730_v11, %s14257_s17  ;;  %7820 = vrot.lane.b32.xlu1 %v13730_v11, %s14260_s20 }
0x1388   : > { %v13740_v36 = vpop.f32.mrf.mxu1 }
0x138a   : > { %v13758_v63 = vpop.f32.mrf.mxu1 }
0x138b   : > { %8358 = vrot.lane.b32.xlu0 %v13730_v11, %s14261_s19  ;;  %7798 = vrot.lane.b32.xlu1 %v13730_v11, %s14262_s14 }
0x138c   : > { %v13768_v37 = vpop.f32.mrf.mxu1 }
0x138f   : > { %7990 = vrot.lane.b32.xlu1 %v13730_v11, %s14263_s16  ;;  %7814 = vrot.lane.b32.xlu0 %v13740_v36, %s14260_s20 }
0x1393   : > { %8088 = vrot.lane.b32.xlu1 %v13730_v11, %s14246_s15  ;;  %7790 = vrot.lane.b32.xlu0 %v13740_v36, %s14262_s14 }
0x1397   : > { %8262 = vrot.lane.b32.xlu1 %v13740_v36, %s14257_s17  ;;  %7984 = vrot.lane.b32.xlu0 %v13740_v36, %s14263_s16 }
0x139b   : > { %8360 = vrot.lane.b32.xlu1 %v13740_v36, %s14261_s19  ;;  %8082 = vrot.lane.b32.xlu0 %v13740_v36, %s14246_s15 }
0x139f   : > { %8264 = vrot.lane.b32.xlu0 %v13758_v63, %s14257_s17  ;;  %7822 = vrot.lane.b32.xlu1 %v13758_v63, %s14260_s20 }
0x13a3   : > { %8362 = vrot.lane.b32.xlu0 %v13758_v63, %s14261_s19  ;;  %7800 = vrot.lane.b32.xlu1 %v13758_v63, %s14262_s14 }
0x13a7   : > { %7992 = vrot.lane.b32.xlu1 %v13758_v63, %s14263_s16  ;;  %7816 = vrot.lane.b32.xlu0 %v13768_v37, %s14260_s20 }
0x13ab   : > { %8090 = vrot.lane.b32.xlu1 %v13758_v63, %s14246_s15  ;;  %7792 = vrot.lane.b32.xlu0 %v13768_v37, %s14262_s14 }
0x13af   : > { %8458 = vrot.lane.b32.xlu1 %v13740_v36, %s14264_s23  ;;  %7986 = vrot.lane.b32.xlu0 %v13768_v37, %s14263_s16 }
0x13b3   : > { %8266 = vrot.lane.b32.xlu1 %v13768_v37, %s14257_s17  ;;  %8084 = vrot.lane.b32.xlu0 %v13768_v37, %s14246_s15 }
0x13b7   : > { %8364 = vrot.lane.b32.xlu1 %v13768_v37, %s14261_s19  ;;  %8460 = vrot.lane.b32.xlu0 %v13758_v63, %s14264_s23 }
0x13bb   : > { %8462 = vrot.lane.b32.xlu1 %v13768_v37, %s14264_s23  ;;  %8456 = vrot.lane.b32.xlu0 %v13730_v11, %s14264_s23 }
0x13bf   : > { %8560 = vrot.lane.b32.xlu1 %v13768_v37, %s14265_s27  ;;  %8558 = vrot.lane.b32.xlu0 %v13758_v63, %s14265_s27 }
0x13c3   : > { %8556 = vrot.lane.b32.xlu1 %v13740_v36, %s14265_s27  ;;  %8554 = vrot.lane.b32.xlu0 %v13730_v11, %s14265_s27 }
0x13f9   : > { %v13802_v1 = vpop.permute.xlu0 %8260  ;;  %v7821_v18 = vpop.permute.xlu1 %7820 }
0x13fd   : > { %v13804_v43 = vpop.permute.xlu0 %8358  ;;  %v7799_v40 = vpop.permute.xlu1 %7798 }
0x1401   : > { %v7991_v16 = vpop.permute.xlu1 %7990  ;;  %v7815_v13 = vpop.permute.xlu0 %7814 }
0x1402   : > { %v7824_v21 = vsel %vm628_vm0, %v7821_v18, %v7815_v13  ;;  %v7830_v52 = vsel %vm628_vm0, %v7815_v13, %v7821_v18 }
0x1403   : > { %v7832_v26 = vmul.f32 %v7830_v52, %v12588_v15  ;;  %v7833_v41 = vmul.f32 %v7824_v21, %v12584_v14  ;;  %v7781_v21 = vld [vmem:[#allocation13 + $0x10] sm:$0xff] }
0x1405   : > { %v13806_v61 = vpop.permute.xlu1 %8088  ;;  %v7791_v45 = vpop.permute.xlu0 %7790 }
0x1406   : > { %v7802_v50 = vsel %vm608_vm1, %v7799_v40, %v7791_v45  ;;  %v7808_v7 = vsel %vm608_vm1, %v7791_v45, %v7799_v40 }
0x1407   : > { %v7810_v31 = vmul.f32 %v7808_v7, %v12616_v28  ;;  %v7811_v17 = vmul.f32 %v7802_v50, %v12612_v27  ;;  %v8183_v7 = vmul.f32 %v13768_v37, %v12577_v10  ;;  %v8181_v37 = vmul.f32 %v13740_v36, %v12577_v10 }
0x1409   : > { %v13808_v20 = vpop.permute.xlu1 %8262  ;;  %v7985_v5 = vpop.permute.xlu0 %7984 }
0x140a   : > { %v7994_v56 = vsel %vm810_vm3, %v7991_v16, %v7985_v5  ;;  %v8000_v6 = vsel %vm810_vm3, %v7985_v5, %v7991_v16  ;;  %v8276_v18 = vsel %vm1108_vm6, %v13808_v20, %v13802_v1 }
0x140b   : > { %v8002_v40 = vmul.f32 %v8000_v6, %v12602_v23  ;;  %v8003_v16 = vmul.f32 %v7994_v56, %v12606_v24  ;;  %v14266_v56 = vld [vmem:[#allocation26_spill] sm:$0xff] }
0x140d   : > { %v13810_v62 = vpop.permute.xlu1 %8360  ;;  %v13812_v2 = vpop.permute.xlu0 %8082 }
0x140e   : > { %v8092_v13 = vsel %vm912_vm5, %v13806_v61, %v13812_v2  ;;  %v8366_v36 = vsel %vm1210_vm7, %v13804_v43, %v13810_v62 }
0x1411   : > { %v8265_v19 = vpop.permute.xlu0 %8264  ;;  %v7823_v35 = vpop.permute.xlu1 %7822 }
0x1415   : > { %v13814_v32 = vpop.permute.xlu0 %8362  ;;  %v7801_v54 = vpop.permute.xlu1 %7800 }
0x1419   : > { %v7993_v3 = vpop.permute.xlu1 %7992  ;;  %v7817_v30 = vpop.permute.xlu0 %7816 }
0x141a   : > { %v7825_v59 = vsel %vm628_vm0, %v7823_v35, %v7817_v30  ;;  %v7831_v22 = vsel %vm628_vm0, %v7817_v30, %v7823_v35 }
0x141b   : > { %v7834_v57 = vmul.f32 %v7831_v22, %v12588_v15  ;;  %v7835_v46 = vmul.f32 %v7825_v59, %v12584_v14 }
0x141d   : > { %v8091_v0 = vpop.permute.xlu1 %8090  ;;  %7867 = vmatprep.subr.mxu0 %v7835_v46  ;;  %v7793_v60 = vpop.permute.xlu0 %7792  ;;  %v8268_v46 = vsel %vm1108_vm6, %v13802_v1, %v13808_v20 }
0x141e   : > { %v7803_v12 = vsel %vm608_vm1, %v7801_v54, %v7793_v60  ;;  %v7809_v58 = vsel %vm608_vm1, %v7793_v60, %v7801_v54  ;;  %7868 = vmatpush1.msra.mxu0 %v7834_v57  ;;  %v8101_v60 = vmul.f32 %v8092_v13, %v12625_v34  ;;  %v8278_v1 = vmul.f32 %v8268_v46, %v12649_v51 }
0x141f   : > { %v7812_v53 = vmul.f32 %v7809_v58, %v12616_v28  ;;  %v7813_v39 = vmul.f32 %v7803_v12, %v12612_v27  ;;  %7869 = vmatprep.subr.mxu0 %v7833_v41  ;;  %v8182_v12 = vmul.f32 %v13758_v63, %v12573_v9  ;;  %v8180_v63 = vmul.f32 %v13730_v11, %v12573_v9 }
0x1420   : > { %7870 = vmatpush1.msra.mxu0 %v7832_v26  ;;  %v8279_v26 = vmul.f32 %v8276_v18, %v12659_v55 }
0x1421   : > { %v13833_v48 = vpop.permute.xlu1 %8458  ;;  %11292 = vmatmul.mubr.msk.f32.vlgmr.msra.gmra.mxu0 %vm628_vm0, %v7780_v42  ;;  %7941 = vmatprep.subr.mxu0 %v7813_v39  ;;  %v7987_v4 = vpop.permute.xlu0 %7986 }
0x1422   : > { %v7995_v49 = vsel %vm810_vm3, %v7993_v3, %v7987_v4  ;;  %v8001_v44 = vsel %vm810_vm3, %v7987_v4, %v7993_v3  ;;  %7942 = vmatpush1.msra.mxu0 %v7812_v53  ;;  %7977 = vmatprep.mubr.f32.mxu0 %v14259_v47 }
0x1423   : > { %v8004_v38 = vmul.f32 %v8001_v44, %v12602_v23  ;;  %v8005_v29 = vmul.f32 %v7995_v49, %v12606_v24  ;;  %7943 = vmatprep.subr.mxu0 %v7811_v17  ;;  %v7784_v17 = vld [vmem:[#allocation13 + $0x28] sm:$0xff]  ;;  %v7783_v49 = vld [vmem:[#allocation13 + $0x20] sm:$0xff] }
0x1424   : > { %7944 = vmatpush1.msra.mxu0 %v7810_v31  ;;  %v14267_v44 = vld [vmem:[#allocation24_spill] sm:$0xff] }
0x1425   : > { %v8267_v45 = vpop.permute.xlu1 %8266  ;;  %11293 = vmatmul.mubr.msk.f32.vlgmr.msra.gmra.mxu0 %vm628_vm0, %v7779_v8  ;;  %8037 = vmatprep.subr.mxu0 %v8005_v29  ;;  %v8085_v5 = vpop.permute.xlu0 %8084  ;;  %v14268_v8 = vld [vmem:[#allocation25_spill] sm:$0xff] }
0x1426   : > { %v8269_v35 = vsel %vm1108_vm6, %v8265_v19, %v8267_v45  ;;  %v8277_v54 = vsel %vm1108_vm6, %v8267_v45, %v8265_v19  ;;  %v8093_v3 = vsel %vm912_vm5, %v8091_v0, %v8085_v5  ;;  %v8099_v30 = vsel %vm912_vm5, %v8085_v5, %v8091_v0  ;;  %8038 = vmatpush1.msra.mxu0 %v8004_v38  ;;  %v13909_v5 = vld [vmem:[#allocation4 + $0x18] ss:$0 sm:$0xff] }
0x1427   : > { %v8280_v52 = vmul.f32 %v8269_v35, %v12649_v51  ;;  %v8281_v59 = vmul.f32 %v8277_v54, %v12659_v55  ;;  %v8102_v22 = vmul.f32 %v8099_v30, %v12621_v33  ;;  %v8103_v57 = vmul.f32 %v8093_v3, %v12625_v34  ;;  %8039 = vmatprep.subr.mxu0 %v8003_v16  ;;  %v7785_v35 = vld [vmem:[#allocation13 + $0x30] sm:$0xff]  ;;  %v13913_v3 = vld [vmem:[#allocation4 + $0x10] ss:$0 sm:$0xff] }
0x1428   : > { %v8098_v19 = vsel %vm912_vm5, %v13812_v2, %v13806_v61  ;;  %8040 = vmatpush1.msra.mxu0 %v8002_v40  ;;  %8073 = vmatprep.mubr.f32.mxu0 %v14259_v47  ;;  %v7782_v61 = vld [vmem:[#allocation13 + $0x18] sm:$0xff]  ;;  %v8376_v45 = vmul.f32 %v8366_v36, %v14267_v44 }
0x1429   : > { %8313 = vmatprep.subr.mxu1 %v8281_v59  ;;  %v8365_v41 = vpop.permute.xlu1 %8364  ;;  %11294 = vmatmul.mubr.msk.f32.vlgmr.msra.gmra.mxu0 %vm628_vm0, %v7781_v21  ;;  %v8461_v0 = vpop.permute.xlu0 %8460  ;;  %v8100_v20 = vmul.f32 %v8098_v19, %v12621_v33 }
0x142a   : > { %8135 = vmatprep.subr.mxu0 %v8103_v57  ;;  %8314 = vmatpush1.msra.mxu1 %v8280_v52  ;;  %v8367_v58 = vsel %vm1210_vm7, %v13814_v32, %v8365_v41  ;;  %v8375_v42 = vsel %vm1210_vm7, %v8365_v41, %v13814_v32  ;;  %v8374_v32 = vsel %vm1210_vm7, %v13810_v62, %v13804_v43  ;;  %v7786_v57 = vld [vmem:[#allocation13 + $0x38] sm:$0xff] }
0x142b   : > { %8136 = vmatpush1.msra.mxu0 %v8102_v22  ;;  %8315 = vmatprep.subr.mxu1 %v8279_v26  ;;  %v8378_v11 = vmul.f32 %v8367_v58, %v14267_v44  ;;  %v8379_v38 = vmul.f32 %v8375_v42, %v14268_v8  ;;  %v8377_v43 = vmul.f32 %v8374_v32, %v14268_v8  ;;  %v7787_v26 = vld [vmem:[#allocation13 + $0x40] sm:$0xff] }
0x142c   : > { %8137 = vmatprep.subr.mxu0 %v8101_v60  ;;  %8171 = vmatprep.mubr.f32.mxu0 %v14259_v47 }
0x142d   : > { %8138 = vmatpush1.msra.mxu0 %v8100_v20  ;;  %8316 = vmatpush1.msra.mxu1 %v8278_v1  ;;  %v8463_v2 = vpop.permute.xlu1 %8462  ;;  %v8457_v50 = vpop.permute.xlu0 %8456 }
0x142e   : > { %v8465_v53 = vsel %vm1312_vm8, %v8461_v0, %v8463_v2  ;;  %v8473_v39 = vsel %vm1312_vm8, %v8463_v2, %v8461_v0  ;;  %11295 = vmatmul.mubr.msk.f32.vlgmr.msra.gmra.mxu0 %vm628_vm0, %v7782_v61  ;;  %8215 = vmatprep.subr.mxu0 %v8183_v7  ;;  %v8472_v6 = vsel %vm1312_vm8, %v13833_v48, %v8457_v50 }
0x142f   : > { %v8477_v31 = vmul.f32 %v8473_v39, %v12700_v25  ;;  %v8476_v4 = vmul.f32 %v8465_v53, %v14266_v56  ;;  %8216 = vmatpush1.msra.mxu0 %v8182_v12  ;;  %8251 = vmatprep.mubr.f32.mxu0 %v14259_v47  ;;  %v8464_v40 = vsel %vm1312_vm8, %v8457_v50, %v13833_v48 }
0x1430   : > { %8217 = vmatprep.subr.mxu0 %v8181_v37  ;;  %11297 = vmatmul.mubr.msk.f32.vlgmr.msra.gmra.mxu1 %vm628_vm0, %v7784_v17  ;;  %v8475_v62 = vmul.f32 %v8472_v6, %v12700_v25  ;;  %v8474_v54 = vmul.f32 %v8464_v40, %v14266_v56 }
0x1431   : > { %v8561_v29 = vpop.permute.xlu1 %8560  ;;  %8509 = vmatprep.subr.mxu1 %v8477_v31  ;;  %v8559_v18 = vpop.permute.xlu0 %8558  ;;  %8218 = vmatpush1.msra.mxu0 %v8180_v63 }
0x1432   : > { %v8563_v16 = vsel %vm1414_vm9, %v8559_v18, %v8561_v29  ;;  %v8571_v13 = vsel %vm1414_vm9, %v8561_v29, %v8559_v18  ;;  %11296 = vmatmul.mubr.msk.f32.vlgmr.msra.gmra.mxu0 %vm628_vm0, %v7783_v49  ;;  %8411 = vmatprep.subr.mxu0 %v8379_v38 }
0x1433   : > { %v8575_v48 = vmul.f32 %v13909_v5, %v8571_v13  ;;  %8412 = vmatpush1.msra.mxu0 %v8378_v11  ;;  %8510 = vmatpush1.msra.mxu1 %v8476_v4  ;;  %v8574_v30 = vmul.f32 %v13913_v3, %v8563_v16 }
0x1434   : > { %8413 = vmatprep.subr.mxu0 %v8377_v43  ;;  %8511 = vmatprep.subr.mxu1 %v8475_v62 }
0x1435   : > { %v8557_v21 = vpop.permute.xlu1 %8556  ;;  %v8555_v52 = vpop.permute.xlu0 %8554  ;;  %8414 = vmatpush1.msra.mxu0 %v8376_v45  ;;  %8447 = vmatprep.mubr.f32.mxu0 %v14259_v47 }
0x1436   : > { %v8562_v59 = vsel %vm1414_vm9, %v8555_v52, %v8557_v21  ;;  %v8570_v22 = vsel %vm1414_vm9, %v8557_v21, %v8555_v52  ;;  %8512 = vmatpush1.msra.mxu1 %v8474_v54  ;;  %11298 = vmatmul.mubr.msk.f32.vlgmr.msra.gmra.mxu0 %vm628_vm0, %v7785_v35 }
0x1437   : > { %v8572_v46 = vmul.f32 %v13913_v3, %v8562_v59  ;;  %v8573_v19 = vmul.f32 %v13909_v5, %v8570_v22  ;;  %8607 = vmatprep.subr.mxu0 %v8575_v48  ;;  %8545 = vmatprep.mubr.f32.mxu1 %v14259_v47 }
0x1438   : > { %8608 = vmatpush1.msra.mxu0 %v8574_v30  ;;  %11299 = vmatmul.mubr.msk.f32.vlgmr.msra.gmra.mxu1 %vm628_vm0, %v7786_v57 }
0x1439   : > { %8609 = vmatprep.subr.mxu0 %v8573_v19  ;;  %8643 = vmatprep.mubr.f32.mxu0 %v14259_v47 }
0x143a   : > { %8610 = vmatpush1.msra.mxu0 %v8572_v46  ;;  %8760 = vmatprep.mubr.f32.mxu1 %v14259_v47 }
0x143b   : > { %11300 = vmatmul.mubr.msk.f32.vlgmr.msra.gmra.mxu0 %vm628_vm0, %v7787_v26 }
0x143c   : > { %8831 = vmatprep.mubr.f32.mxu0 %v14259_v47 }
0x14e1   : > { %v7905_v41 = vpop.f32.mrf.mxu0 }
0x14e3   : > { %v7907_v0 = vpop.f32.mrf.mxu0 }
0x14e5   : > { %v7979_v60 = vpop.f32.mrf.mxu0 }
0x14e6   : > { %v7980_v2 = vadd.f32 %v7979_v60, %v7905_v41 }
0x14e7   : > { %v7981_v1 = vpop.f32.mrf.mxu0 }
0x14e8   : > { %v7982_v7 = vadd.f32 %v7981_v1, %v7907_v0 }
0x14e9   : > { %v8075_v20 = vpop.f32.mrf.mxu0 }
0x14ea   : > { %v8080_v12 = vadd.f32 %v8075_v20, %v7980_v2 }
0x14eb   : > { %v8077_v61 = vpop.f32.mrf.mxu0 }
0x14ec   : > { %v8081_v42 = vadd.f32 %v8077_v61, %v7982_v7  ;;  %v14269_v61 = vld [vmem:[#allocation27_spill] sm:$0xff] }
0x14ee   : > { %v8173_v50 = vpop.f32.mrf.mxu0 }
0x14ef   : > { %v8178_v53 = vadd.f32 %v8173_v50, %v8080_v12  ;;  %v14270_v50 = vld [vmem:[#allocation28_spill] sm:$0xff] }
0x14f0   : > { %v8175_v58 = vpop.f32.mrf.mxu0  ;;  %v8351_v39 = vpop.f32.mrf.mxu1 }
0x14f1   : > { %v8179_v37 = vadd.f32 %v8175_v58, %v8081_v42 }
0x14f2   : > { %v8253_v31 = vpop.f32.mrf.mxu0  ;;  %v8353_v32 = vpop.f32.mrf.mxu1 }
0x14f3   : > { %v8258_v63 = vadd.f32 %v8253_v31, %v8178_v53 }
0x14f4   : > { %v8255_v17 = vpop.f32.mrf.mxu0 }
0x14f5   : > { %v8259_v4 = vadd.f32 %v8255_v17, %v8179_v37  ;;  %v8356_v6 = vadd.f32 %v8351_v39, %v8258_v63 }
0x14f6   : > { %v8449_v49 = vpop.f32.mrf.mxu0 }
0x14f7   : > { %v8357_v36 = vadd.f32 %v8353_v32, %v8259_v4  ;;  %v8454_v11 = vadd.f32 %v8449_v49, %v8356_v6  ;;  %v11946_v49 = vld [vmem:[#allocation7 + $0x8] sm:$0xff] }
0x14f8   : > { %v8451_v38 = vpop.f32.mrf.mxu0  ;;  %v8547_v29 = vpop.f32.mrf.mxu1 }
0x14f9   : > { %v8455_v18 = vadd.f32 %v8451_v38, %v8357_v36  ;;  %v8552_v13 = vadd.f32 %v8547_v29, %v8454_v11 }
0x14fa   : > { %v8549_v40 = vpop.f32.mrf.mxu1 }
0x14fb   : > { %v8645_v16 = vpop.f32.mrf.mxu0  ;;  %v8553_v43 = vadd.f32 %v8549_v40, %v8455_v18 }
0x14fc   : > { %v8650_v45 = vadd.f32 %v8645_v16, %v8552_v13  ;;  %v11947_v16 = vld [vmem:[#allocation7] sm:$0xff] }
0x14fd   : > { %v8647_v62 = vpop.f32.mrf.mxu0 }
0x14fe   : > { %v8651_v48 = vadd.f32 %v8647_v62, %v8553_v43 }
0x1500   : > { %v8652_v35 = vadd.f32 %v8651_v48, %v8650_v45 }
0x1502   : > { %8653 = vadd.xlane.f32.xlu0 %v8652_v35 }
0x158b   : > { %v8654_v54 = vpop.xlane.xlu0 %8653 }
0x158c   : > { %v8655_v30 = vmul.f32 0.00390625, %v8654_v54 }
0x158e   : > { %v8656_v21 = vsub.f32 %v8650_v45, %v8655_v30  ;;  %v8657_v52 = vsub.f32 %v8651_v48, %v8655_v30 }
0x1590   : > { %v8658_v59 = vmul.f32 %v8656_v21, %v8656_v21  ;;  %v8659_v22 = vmul.f32 %v8657_v52, %v8657_v52 }
0x1592   : > { %v8660_v57 = vadd.f32 %v8659_v22, %v8658_v59 }
0x1594   : > { %8661 = vadd.xlane.f32.xlu1 %v8660_v57 }
0x161d   : > { %v8662_v46 = vpop.xlane.xlu1 %8661 }
0x161e   : > { %v8663_v19 = vmul.f32 0.00390625, %v8662_v46 }
0x1620   : > { %v8664_v26 = vadd.f32 1e-05, %v8663_v19 }
0x1622   : > { %11921 = vrsqrt.f32 %v8664_v26  ;;  %v11949_v26 = vld [vmem:[#allocation7 + $0x18] sm:$0xff] }
0x162f   : > { %v11922_v41 = vpop.eup %11921 }
0x1630   : > { %v8666_v0 = vmul.f32 %v11922_v41, %v8656_v21  ;;  %v8667_v60 = vmul.f32 %v11922_v41, %v8657_v52  ;;  %v11948_v21 = vld [vmem:[#allocation7 + $0x10] sm:$0xff]  ;;  %v11950_v41 = vld [vmem:[#allocation7 + $0x20] sm:$0xff] }
0x1632   : > { %v8668_v1 = vmax.f32 %v8666_v0, 0.0  ;;  %v8669_v20 = vmax.f32 %v8667_v60, 0.0 }
0x1634   : > { %v13929_v2 = vadd.f32 %v8668_v1, %v14269_v61  ;;  %v13932_v7 = vadd.f32 %v8669_v20, %v14270_v50 }
0x1636   : > { %8685 = vrot.lane.b32.xlu0 %v13932_v7, %s14260_s20  ;;  %8688 = vrot.lane.b32.xlu1 %v13929_v2, %s14260_s20  ;;  %v9007_v62 = vmul.f32 %v13932_v7, %v12577_v10  ;;  %v9006_v35 = vmul.f32 %v13929_v2, %v12573_v9 }
0x163a   : > { %8673 = vrot.lane.b32.xlu0 %v13932_v7, %s14262_s14  ;;  %8677 = vrot.lane.b32.xlu1 %v13929_v2, %s14262_s14 }
0x163e   : > { %8838 = vrot.lane.b32.xlu0 %v13932_v7, %s14263_s16  ;;  %8841 = vrot.lane.b32.xlu1 %v13929_v2, %s14263_s16 }
0x1642   : > { %8922 = vrot.lane.b32.xlu0 %v13932_v7, %s14246_s15  ;;  %8925 = vrot.lane.b32.xlu1 %v13929_v2, %s14246_s15 }
0x1646   : > { %9081 = vrot.lane.b32.xlu0 %v13929_v2, %s14257_s17  ;;  %9083 = vrot.lane.b32.xlu1 %v13932_v7, %s14257_s17 }
0x164a   : > { %9165 = vrot.lane.b32.xlu0 %v13929_v2, %s14261_s19  ;;  %9167 = vrot.lane.b32.xlu1 %v13932_v7, %s14261_s19 }
0x164e   : > { %9249 = vrot.lane.b32.xlu0 %v13929_v2, %s14264_s23  ;;  %9251 = vrot.lane.b32.xlu1 %v13932_v7, %s14264_s23 }
0x1652   : > { %9333 = vrot.lane.b32.xlu0 %v13929_v2, %s14265_s27  ;;  %9335 = vrot.lane.b32.xlu1 %v13932_v7, %s14265_s27 }
0x16a8   : > { %v8686_v12 = vpop.permute.xlu0 %8685  ;;  %v8689_v58 = vpop.permute.xlu1 %8688 }
0x16a9   : > { %v8690_v42 = vsel %vm628_vm0, %v8689_v58, %v8686_v12  ;;  %v8693_v53 = vsel %vm628_vm0, %v8686_v12, %v8689_v58  ;;  %v11951_v12 = vld [vmem:[#allocation7 + $0x28] sm:$0xff] }
0x16aa   : > { %v8694_v39 = vmul.f32 %v8693_v53, %v12588_v15  ;;  %v8695_v31 = vmul.f32 %v8690_v42, %v12584_v14 }
0x16ac   : > { %v8674_v37 = vpop.permute.xlu0 %8673  ;;  %8726 = vmatprep.subr.mxu1 %v8695_v31  ;;  %v8678_v63 = vpop.permute.xlu1 %8677 }
0x16ad   : > { %v8679_v17 = vsel %vm608_vm1, %v8678_v63, %v8674_v37  ;;  %v8682_v32 = vsel %vm608_vm1, %v8674_v37, %v8678_v63  ;;  %8727 = vmatpush1.msra.mxu1 %v8694_v39  ;;  %v11952_v63 = vld [vmem:[#allocation7 + $0x30] sm:$0xff] }
0x16ae   : > { %v8683_v4 = vmul.f32 %v8682_v32, %v12616_v28  ;;  %v8684_v6 = vmul.f32 %v8679_v17, %v12612_v27  ;;  %11301 = vmatmul.mubr.msk.f32.vlgmr.msra.gmra.mxu1 %vm1563_vm10, %v11946_v49 }
0x16af   : > { %8913 = vmatprep.mubr.f32.mxu1 %v14259_v47 }
0x16b0   : > { %v8839_v36 = vpop.permute.xlu0 %8838  ;;  %8797 = vmatprep.subr.mxu0 %v8684_v6  ;;  %v8842_v11 = vpop.permute.xlu1 %8841 }
0x16b1   : > { %v8843_v38 = vsel %vm810_vm3, %v8842_v11, %v8839_v36  ;;  %v8846_v29 = vsel %vm810_vm3, %v8839_v36, %v8842_v11  ;;  %8798 = vmatpush1.msra.mxu0 %v8683_v4  ;;  %v11953_v11 = vld [vmem:[#allocation7 + $0x38] sm:$0xff] }
0x16b2   : > { %v8847_v18 = vmul.f32 %v8846_v29, %v12602_v23  ;;  %v8848_v40 = vmul.f32 %v8843_v38, %v12606_v24  ;;  %11302 = vmatmul.mubr.msk.f32.vlgmr.msra.gmra.mxu0 %vm1563_vm10, %v11947_v16  ;;  %v11954_v38 = vld [vmem:[#allocation7 + $0x40] sm:$0xff] }
0x16b3   : > { %8997 = vmatprep.mubr.f32.mxu0 %v14259_v47 }
0x16b4   : > { %v8923_v13 = vpop.permute.xlu0 %8922  ;;  %8879 = vmatprep.subr.mxu1 %v8848_v40  ;;  %v8926_v43 = vpop.permute.xlu1 %8925 }
0x16b5   : > { %v8927_v45 = vsel %vm912_vm5, %v8926_v43, %v8923_v13  ;;  %v8930_v48 = vsel %vm912_vm5, %v8923_v13, %v8926_v43  ;;  %8880 = vmatpush1.msra.mxu1 %v8847_v18 }
0x16b6   : > { %v8931_v54 = vmul.f32 %v8930_v48, %v12621_v33  ;;  %v8932_v30 = vmul.f32 %v8927_v45, %v12625_v34  ;;  %9038 = vmatprep.subr.mxu1 %v9007_v62  ;;  %11303 = vmatmul.mubr.msk.f32.vlgmr.msra.gmra.mxu1 %vm1563_vm10, %v11948_v21 }
0x16b7   : > { %9039 = vmatpush1.msra.mxu1 %v9006_v35  ;;  %9072 = vmatprep.mubr.f32.mxu1 %v14259_v47 }
0x16b8   : > { %v9082_v52 = vpop.permute.xlu0 %9081  ;;  %8963 = vmatprep.subr.mxu0 %v8932_v30  ;;  %v9084_v59 = vpop.permute.xlu1 %9083 }
0x16b9   : > { %v9085_v22 = vsel %vm1108_vm6, %v9082_v52, %v9084_v59  ;;  %v9089_v57 = vsel %vm1108_vm6, %v9084_v59, %v9082_v52  ;;  %8964 = vmatpush1.msra.mxu0 %v8931_v54 }
0x16ba   : > { %v9090_v46 = vmul.f32 %v9085_v22, %v12649_v51  ;;  %v9091_v19 = vmul.f32 %v9089_v57, %v12659_v55  ;;  %11304 = vmatmul.mubr.msk.f32.vlgmr.msra.gmra.mxu0 %vm1563_vm10, %v11949_v26  ;;  %11305 = vmatmul.mubr.msk.f32.vlgmr.msra.gmra.mxu1 %vm1563_vm10, %v11950_v41 }
0x16bb   : > { %9156 = vmatprep.mubr.f32.mxu0 %v14259_v47  ;;  %9240 = vmatprep.mubr.f32.mxu1 %v14259_v47 }
0x16bc   : > { %v9166_v0 = vpop.permute.xlu0 %9165  ;;  %9122 = vmatprep.subr.mxu0 %v9091_v19  ;;  %v9168_v60 = vpop.permute.xlu1 %9167 }
0x16bd   : > { %v9169_v1 = vsel %vm1210_vm7, %v9166_v0, %v9168_v60  ;;  %v9173_v20 = vsel %vm1210_vm7, %v9168_v60, %v9166_v0  ;;  %9123 = vmatpush1.msra.mxu0 %v9090_v46 }
0x16be   : > { %v9174_v61 = vmul.f32 %v9169_v1, %v14267_v44  ;;  %v9175_v50 = vmul.f32 %v9173_v20, %v14268_v8  ;;  %11306 = vmatmul.mubr.msk.f32.vlgmr.msra.gmra.mxu0 %vm1563_vm10, %v11951_v12 }
0x16bf   : > { %9324 = vmatprep.mubr.f32.mxu0 %v14259_v47 }
0x16c0   : > { %v9250_v58 = vpop.permute.xlu0 %9249  ;;  %v9252_v42 = vpop.permute.xlu1 %9251  ;;  %9206 = vmatprep.subr.mxu1 %v9175_v50 }
0x16c1   : > { %v9253_v53 = vsel %vm1312_vm8, %v9250_v58, %v9252_v42  ;;  %v9257_v39 = vsel %vm1312_vm8, %v9252_v42, %v9250_v58  ;;  %9207 = vmatpush1.msra.mxu1 %v9174_v61 }
0x16c2   : > { %v9258_v31 = vmul.f32 %v9253_v53, %v14266_v56  ;;  %v9259_v37 = vmul.f32 %v9257_v39, %v12700_v25  ;;  %11307 = vmatmul.mubr.msk.f32.vlgmr.msra.gmra.mxu1 %vm1563_vm10, %v11952_v63 }
0x16c3   : > { %9408 = vmatprep.mubr.f32.mxu1 %v14259_v47 }
0x16c4   : > { %v9334_v17 = vpop.permute.xlu0 %9333  ;;  %9290 = vmatprep.subr.mxu0 %v9259_v37  ;;  %v9336_v32 = vpop.permute.xlu1 %9335 }
0x16c5   : > { %v9337_v4 = vsel %vm1414_vm9, %v9334_v17, %v9336_v32  ;;  %v9341_v6 = vsel %vm1414_vm9, %v9336_v32, %v9334_v17  ;;  %9291 = vmatpush1.msra.mxu0 %v9258_v31 }
0x16c6   : > { %v9342_v49 = vmul.f32 %v13913_v3, %v9337_v4  ;;  %v9343_v36 = vmul.f32 %v13909_v5, %v9341_v6  ;;  %11308 = vmatmul.mubr.msk.f32.vlgmr.msra.gmra.mxu0 %vm1563_vm10, %v11953_v11 }
0x16c7   : > { %9523 = vmatprep.mubr.f32.mxu0 %v14259_v47 }
0x16c8   : > { %9374 = vmatprep.subr.mxu1 %v9343_v36 }
0x16c9   : > { %9375 = vmatpush1.msra.mxu1 %v9342_v49 }
0x16ca   : > { %11309 = vmatmul.mubr.msk.f32.vlgmr.msra.gmra.mxu1 %vm1563_vm10, %v11954_v38 }
0x16cb   : > { %9594 = vmatprep.mubr.f32.mxu1 %v14259_v47 }
0x176e   : > { %v8762_v29 = vpop.f32.mrf.mxu1 }
0x1770   : > { %v8764_v18 = vpop.f32.mrf.mxu1 }
0x1772   : > { %v8833_v40 = vpop.f32.mrf.mxu0 }
0x1773   : > { %v8834_v16 = vadd.f32 %v8833_v40, %v8762_v29 }
0x1774   : > { %v8835_v13 = vpop.f32.mrf.mxu0 }
0x1775   : > { %v8836_v43 = vadd.f32 %v8835_v13, %v8764_v18 }
0x1776   : > { %v8915_v62 = vpop.f32.mrf.mxu1 }
0x1777   : > { %v8920_v45 = vadd.f32 %v8915_v62, %v8834_v16 }
0x1778   : > { %v8917_v48 = vpop.f32.mrf.mxu1 }
0x1779   : > { %v8921_v35 = vadd.f32 %v8917_v48, %v8836_v43 }
0x177a   : > { %v8999_v54 = vpop.f32.mrf.mxu0  ;;  %v9074_v30 = vpop.f32.mrf.mxu1 }
0x177b   : > { %v9004_v21 = vadd.f32 %v8999_v54, %v8920_v45 }
0x177c   : > { %v9001_v52 = vpop.f32.mrf.mxu0  ;;  %v9076_v22 = vpop.f32.mrf.mxu1 }
0x177d   : > { %v9005_v59 = vadd.f32 %v9001_v52, %v8921_v35  ;;  %v9079_v46 = vadd.f32 %v9074_v30, %v9004_v21 }
0x177e   : > { %v9158_v57 = vpop.f32.mrf.mxu0 }
0x177f   : > { %v9080_v19 = vadd.f32 %v9076_v22, %v9005_v59  ;;  %v9163_v0 = vadd.f32 %v9158_v57, %v9079_v46 }
0x1780   : > { %v9160_v26 = vpop.f32.mrf.mxu0 }
0x1781   : > { %v9164_v60 = vadd.f32 %v9160_v26, %v9080_v19  ;;  %v11955_v26 = vld [vmem:[#allocation6 + $0x8] sm:$0xff] }
0x1782   : > { %v9242_v41 = vpop.f32.mrf.mxu1 }
0x1783   : > { %v9247_v61 = vadd.f32 %v9242_v41, %v9163_v0 }
0x1784   : > { %v9244_v1 = vpop.f32.mrf.mxu1 }
0x1785   : > { %v9248_v12 = vadd.f32 %v9244_v1, %v9164_v60 }
0x1786   : > { %v9326_v20 = vpop.f32.mrf.mxu0 }
0x1787   : > { %v9331_v42 = vadd.f32 %v9326_v20, %v9247_v61 }
0x1788   : > { %v9328_v50 = vpop.f32.mrf.mxu0 }
0x1789   : > { %v9332_v53 = vadd.f32 %v9328_v50, %v9248_v12  ;;  %v11956_v50 = vld [vmem:[#allocation6] sm:$0xff] }
0x178a   : > { %v9410_v58 = vpop.f32.mrf.mxu1 }
0x178b   : > { %v9415_v31 = vadd.f32 %v9410_v58, %v9331_v42 }
0x178c   : > { %v9412_v39 = vpop.f32.mrf.mxu1 }
0x178d   : > { %v9416_v37 = vadd.f32 %v9412_v39, %v9332_v53 }
0x178f   : > { %v9417_v63 = vadd.f32 %v9416_v37, %v9415_v31 }
0x1791   : > { %9418 = vadd.xlane.f32.xlu0 %v9417_v63 }
0x181a   : > { %v9419_v17 = vpop.xlane.xlu0 %9418 }
0x181b   : > { %v9420_v32 = vmul.f32 0.00390625, %v9419_v17  ;;  %v11957_v17 = vld [vmem:[#allocation6 + $0x10] sm:$0xff] }
0x181d   : > { %v9421_v4 = vsub.f32 %v9415_v31, %v9420_v32  ;;  %v9422_v6 = vsub.f32 %v9416_v37, %v9420_v32 }
0x181f   : > { %v9423_v49 = vmul.f32 %v9421_v4, %v9421_v4  ;;  %v9424_v36 = vmul.f32 %v9422_v6, %v9422_v6 }
0x1821   : > { %v9425_v11 = vadd.f32 %v9424_v36, %v9423_v49 }
0x1823   : > { %9426 = vadd.xlane.f32.xlu1 %v9425_v11 }
0x18ac   : > { %v9427_v38 = vpop.xlane.xlu1 %9426 }
0x18ad   : > { %v9428_v29 = vmul.f32 0.00390625, %v9427_v38  ;;  %v11958_v38 = vld [vmem:[#allocation6 + $0x18] sm:$0xff] }
0x18af   : > { %v9429_v18 = vadd.f32 1e-05, %v9428_v29  ;;  %v11959_v29 = vld [vmem:[#allocation6 + $0x20] sm:$0xff] }
0x18b1   : > { %11923 = vrsqrt.f32 %v9429_v18 }
0x18be   : > { %v11924_v40 = vpop.eup %11923 }
0x18bf   : > { %v9431_v16 = vmul.f32 %v11924_v40, %v9421_v4  ;;  %v9432_v13 = vmul.f32 %v11924_v40, %v9422_v6 }
0x18c1   : > { %v9433_v43 = vmax.f32 %v9431_v16, 0.0  ;;  %v9434_v62 = vmax.f32 %v9432_v13, 0.0 }
0x18c3   : > { %9448 = vrot.lane.b32.xlu0 %v9434_v62, %s14260_s20  ;;  %9451 = vrot.lane.b32.xlu1 %v9433_v43, %s14260_s20  ;;  %v9770_v42 = vmul.f32 %v9434_v62, %v12577_v10  ;;  %v9769_v31 = vmul.f32 %v9433_v43, %v12573_v9 }
0x18c7   : > { %9436 = vrot.lane.b32.xlu0 %v9434_v62, %s14262_s14  ;;  %9440 = vrot.lane.b32.xlu1 %v9433_v43, %s14262_s14 }
0x18cb   : > { %9601 = vrot.lane.b32.xlu0 %v9434_v62, %s14263_s16  ;;  %9604 = vrot.lane.b32.xlu1 %v9433_v43, %s14263_s16 }
0x18cf   : > { %9685 = vrot.lane.b32.xlu0 %v9434_v62, %s14246_s15  ;;  %9688 = vrot.lane.b32.xlu1 %v9433_v43, %s14246_s15 }
0x18d3   : > { %9844 = vrot.lane.b32.xlu0 %v9433_v43, %s14257_s17  ;;  %9846 = vrot.lane.b32.xlu1 %v9434_v62, %s14257_s17 }
0x18d7   : > { %9928 = vrot.lane.b32.xlu0 %v9433_v43, %s14261_s19  ;;  %9930 = vrot.lane.b32.xlu1 %v9434_v62, %s14261_s19 }
0x18db   : > { %10012 = vrot.lane.b32.xlu0 %v9433_v43, %s14264_s23  ;;  %10014 = vrot.lane.b32.xlu1 %v9434_v62, %s14264_s23 }
0x18df   : > { %10096 = vrot.lane.b32.xlu0 %v9433_v43, %s14265_s27  ;;  %10098 = vrot.lane.b32.xlu1 %v9434_v62, %s14265_s27 }
0x1935   : > { %v9449_v45 = vpop.permute.xlu0 %9448  ;;  %v9452_v48 = vpop.permute.xlu1 %9451 }
0x1936   : > { %v9453_v35 = vsel %vm628_vm0, %v9452_v48, %v9449_v45  ;;  %v9456_v54 = vsel %vm628_vm0, %v9449_v45, %v9452_v48  ;;  %v11960_v45 = vld [vmem:[#allocation6 + $0x28] sm:$0xff] }
0x1937   : > { %v9457_v30 = vmul.f32 %v9456_v54, %v12588_v15  ;;  %v9458_v21 = vmul.f32 %v9453_v35, %v12584_v14 }
0x1939   : > { %v9437_v52 = vpop.permute.xlu0 %9436  ;;  %9489 = vmatprep.subr.mxu0 %v9458_v21  ;;  %v9441_v59 = vpop.permute.xlu1 %9440 }
0x193a   : > { %v9442_v22 = vsel %vm608_vm1, %v9441_v59, %v9437_v52  ;;  %v9445_v57 = vsel %vm608_vm1, %v9437_v52, %v9441_v59  ;;  %9490 = vmatpush1.msra.mxu0 %v9457_v30  ;;  %v11961_v59 = vld [vmem:[#allocation6 + $0x30] sm:$0xff] }
0x193b   : > { %v9446_v46 = vmul.f32 %v9445_v57, %v12616_v28  ;;  %v9447_v19 = vmul.f32 %v9442_v22, %v12612_v27  ;;  %11310 = vmatmul.mubr.msk.f32.vlgmr.msra.gmra.mxu0 %vm1563_vm10, %v11955_v26 }
0x193c   : > { %9676 = vmatprep.mubr.f32.mxu0 %v14259_v47 }
0x193d   : > { %v9602_v41 = vpop.permute.xlu0 %9601  ;;  %9560 = vmatprep.subr.mxu1 %v9447_v19  ;;  %v9605_v0 = vpop.permute.xlu1 %9604 }
0x193e   : > { %v9606_v60 = vsel %vm810_vm3, %v9605_v0, %v9602_v41  ;;  %v9609_v1 = vsel %vm810_vm3, %v9602_v41, %v9605_v0  ;;  %9561 = vmatpush1.msra.mxu1 %v9446_v46  ;;  %v11962_v0 = vld [vmem:[#allocation6 + $0x38] sm:$0xff] }
0x193f   : > { %v9610_v20 = vmul.f32 %v9609_v1, %v12602_v23  ;;  %v9611_v61 = vmul.f32 %v9606_v60, %v12606_v24  ;;  %11311 = vmatmul.mubr.msk.f32.vlgmr.msra.gmra.mxu1 %vm1563_vm10, %v11956_v50  ;;  %v11963_v60 = vld [vmem:[#allocation6 + $0x40] sm:$0xff] }
0x1940   : > { %9760 = vmatprep.mubr.f32.mxu1 %v14259_v47 }
0x1941   : > { %v9686_v12 = vpop.permute.xlu0 %9685  ;;  %9642 = vmatprep.subr.mxu0 %v9611_v61  ;;  %v9689_v58 = vpop.permute.xlu1 %9688 }
0x1942   : > { %v9690_v53 = vsel %vm912_vm5, %v9689_v58, %v9686_v12  ;;  %v9693_v39 = vsel %vm912_vm5, %v9686_v12, %v9689_v58  ;;  %9643 = vmatpush1.msra.mxu0 %v9610_v20 }
0x1943   : > { %v9694_v37 = vmul.f32 %v9693_v39, %v12621_v33  ;;  %v9695_v63 = vmul.f32 %v9690_v53, %v12625_v34  ;;  %9801 = vmatprep.subr.mxu0 %v9770_v42  ;;  %11312 = vmatmul.mubr.msk.f32.vlgmr.msra.gmra.mxu0 %vm1563_vm10, %v11957_v17 }
0x1944   : > { %9802 = vmatpush1.msra.mxu0 %v9769_v31  ;;  %9835 = vmatprep.mubr.f32.mxu0 %v14259_v47 }
0x1945   : > { %v9845_v32 = vpop.permute.xlu0 %9844  ;;  %9726 = vmatprep.subr.mxu1 %v9695_v63  ;;  %v9847_v4 = vpop.permute.xlu1 %9846 }
0x1946   : > { %v9848_v6 = vsel %vm1108_vm6, %v9845_v32, %v9847_v4  ;;  %v9852_v49 = vsel %vm1108_vm6, %v9847_v4, %v9845_v32  ;;  %9727 = vmatpush1.msra.mxu1 %v9694_v37 }
0x1947   : > { %v9853_v36 = vmul.f32 %v9848_v6, %v12649_v51  ;;  %v9854_v11 = vmul.f32 %v9852_v49, %v12659_v55  ;;  %11313 = vmatmul.mubr.msk.f32.vlgmr.msra.gmra.mxu1 %vm1563_vm10, %v11958_v38  ;;  %11314 = vmatmul.mubr.msk.f32.vlgmr.msra.gmra.mxu0 %vm1563_vm10, %v11959_v29 }
0x1948   : > { %9919 = vmatprep.mubr.f32.mxu1 %v14259_v47  ;;  %10003 = vmatprep.mubr.f32.mxu0 %v14259_v47 }
0x1949   : > { %v9929_v18 = vpop.permute.xlu0 %9928  ;;  %9885 = vmatprep.subr.mxu1 %v9854_v11  ;;  %v9931_v40 = vpop.permute.xlu1 %9930 }
0x194a   : > { %v9932_v16 = vsel %vm1210_vm7, %v9929_v18, %v9931_v40  ;;  %v9936_v13 = vsel %vm1210_vm7, %v9931_v40, %v9929_v18  ;;  %9886 = vmatpush1.msra.mxu1 %v9853_v36 }
0x194b   : > { %v9937_v43 = vmul.f32 %v9932_v16, %v14267_v44  ;;  %v9938_v62 = vmul.f32 %v9936_v13, %v14268_v8  ;;  %11315 = vmatmul.mubr.msk.f32.vlgmr.msra.gmra.mxu1 %vm1563_vm10, %v11960_v45 }
0x194c   : > { %10087 = vmatprep.mubr.f32.mxu1 %v14259_v47 }
0x194d   : > { %v10013_v48 = vpop.permute.xlu0 %10012  ;;  %v10015_v35 = vpop.permute.xlu1 %10014  ;;  %9969 = vmatprep.subr.mxu0 %v9938_v62 }
0x194e   : > { %v10016_v54 = vsel %vm1312_vm8, %v10013_v48, %v10015_v35  ;;  %v10020_v30 = vsel %vm1312_vm8, %v10015_v35, %v10013_v48  ;;  %9970 = vmatpush1.msra.mxu0 %v9937_v43 }
0x194f   : > { %v10021_v21 = vmul.f32 %v10016_v54, %v14266_v56  ;;  %v10022_v52 = vmul.f32 %v10020_v30, %v12700_v25  ;;  %11316 = vmatmul.mubr.msk.f32.vlgmr.msra.gmra.mxu0 %vm1563_vm10, %v11961_v59 }
0x1950   : > { %10171 = vmatprep.mubr.f32.mxu0 %v14259_v47 }
0x1951   : > { %v10097_v22 = vpop.permute.xlu0 %10096  ;;  %10053 = vmatprep.subr.mxu1 %v10022_v52  ;;  %v10099_v57 = vpop.permute.xlu1 %10098 }
0x1952   : > { %v10100_v46 = vsel %vm1414_vm9, %v10097_v22, %v10099_v57  ;;  %v10104_v19 = vsel %vm1414_vm9, %v10099_v57, %v10097_v22  ;;  %10054 = vmatpush1.msra.mxu1 %v10021_v21 }
0x1953   : > { %v10105_v26 = vmul.f32 %v13913_v3, %v10100_v46  ;;  %v10106_v41 = vmul.f32 %v13909_v5, %v10104_v19  ;;  %11317 = vmatmul.mubr.msk.f32.vlgmr.msra.gmra.mxu1 %vm1563_vm10, %v11962_v0 }
0x1954   : > { %10284 = vmatprep.mubr.f32.mxu1 %v14259_v47 }
0x1955   : > { %10137 = vmatprep.subr.mxu0 %v10106_v41 }
0x1956   : > { %10138 = vmatpush1.msra.mxu0 %v10105_v26 }
0x1957   : > { %11318 = vmatmul.mubr.msk.f32.vlgmr.msra.gmra.mxu0 %vm1563_vm10, %v11963_v60 }
0x1958   : > { %10358 = vmatprep.mubr.f32.mxu0 %v14259_v47 }
0x19fb   : > { %v9525_v1 = vpop.f32.mrf.mxu0 }
0x19fd   : > { %v9527_v20 = vpop.f32.mrf.mxu0 }
0x19ff   : > { %v9596_v61 = vpop.f32.mrf.mxu1 }
0x1a00   : > { %v9597_v50 = vadd.f32 %v9596_v61, %v9525_v1 }
0x1a01   : > { %v9598_v12 = vpop.f32.mrf.mxu1 }
0x1a02   : > { %v9599_v58 = vadd.f32 %v9598_v12, %v9527_v20  ;;  %v10185_v20 = vld [vmem:[#allocation16 + $0x4] sm:$0xf] }
0x1a03   : > { %v9678_v42 = vpop.f32.mrf.mxu0 }
0x1a04   : > { %v9683_v53 = vadd.f32 %v9678_v42, %v9597_v50 }
0x1a05   : > { %v9680_v39 = vpop.f32.mrf.mxu0 }
0x1a06   : > { %v9684_v31 = vadd.f32 %v9680_v39, %v9599_v58 }
0x1a07   : > { %v9762_v37 = vpop.f32.mrf.mxu1  ;;  %v9837_v63 = vpop.f32.mrf.mxu0 }
0x1a08   : > { %v9767_v17 = vadd.f32 %v9762_v37, %v9683_v53 }
0x1a09   : > { %v9764_v32 = vpop.f32.mrf.mxu1  ;;  %v9839_v49 = vpop.f32.mrf.mxu0 }
0x1a0a   : > { %v9768_v4 = vadd.f32 %v9764_v32, %v9684_v31  ;;  %v9842_v6 = vadd.f32 %v9837_v63, %v9767_v17 }
0x1a0b   : > { %v9921_v36 = vpop.f32.mrf.mxu1 }
0x1a0c   : > { %v9843_v11 = vadd.f32 %v9839_v49, %v9768_v4  ;;  %v9926_v38 = vadd.f32 %v9921_v36, %v9842_v6  ;;  %v10186_v4 = vld [vmem:[#allocation16 + $0x8] sm:$0xf] }
0x1a0d   : > { %v9923_v29 = vpop.f32.mrf.mxu1 }
0x1a0e   : > { %v9927_v40 = vadd.f32 %v9923_v29, %v9843_v11 }
0x1a0f   : > { %v10005_v18 = vpop.f32.mrf.mxu0 }
0x1a10   : > { %v10010_v16 = vadd.f32 %v10005_v18, %v9926_v38 }
0x1a11   : > { %v10007_v13 = vpop.f32.mrf.mxu0 }
0x1a12   : > { %v10011_v45 = vadd.f32 %v10007_v13, %v9927_v40 }
0x1a13   : > { %v10089_v43 = vpop.f32.mrf.mxu1 }
0x1a14   : > { %v10094_v48 = vadd.f32 %v10089_v43, %v10010_v16  ;;  %v10188_v16 = vld [vmem:[#allocation16 + $0x10] sm:$0xf] }
0x1a15   : > { %v10091_v62 = vpop.f32.mrf.mxu1 }
0x1a16   : > { %v10095_v54 = vadd.f32 %v10091_v62, %v10011_v45  ;;  %v10190_v45 = vld [vmem:[#allocation16 + $0x18] sm:$0xf] }
0x1a17   : > { %v10173_v35 = vpop.f32.mrf.mxu0 }
0x1a18   : > { %v10178_v30 = vadd.f32 %v10173_v35, %v10094_v48 }
0x1a19   : > { %v10175_v21 = vpop.f32.mrf.mxu0 }
0x1a1a   : > { %v10180_v52 = vmul.f32 0.1, %v10178_v30  ;;  %v10179_v59 = vadd.f32 %v10175_v21, %v10095_v54  ;;  %v10191_v54 = vld [vmem:[#allocation16 + $0x1c] sm:$0xf] }
0x1a1c   : > { %v10182_v22 = vsub.f32 %v13929_v2, %v10180_v52  ;;  %v10181_v57 = vmul.f32 0.1, %v10179_v59 }
0x1a1e   : > { %10617 = vrot.lane.b32.xlu0 %v10182_v22, %s14257_s17  ;;  %10209 = vrot.lane.b32.xlu1 %v10182_v22, %s14260_s20  ;;  %v10183_v46 = vsub.f32 %v13932_v7, %v10181_v57  ;;  %v10539_v38 = vmul.f32 %v10182_v22, %v12573_v9 }
0x1a20   : > { %v10540_v32 = vmul.f32 %v10183_v46, %v12577_v10  ;;  %v10187_v10 = vld [vmem:[#allocation16 + $0xc] sm:$0xf] }
0x1a22   : > { %10198 = vrot.lane.b32.xlu1 %v10182_v22, %s14262_s14  ;;  %10206 = vrot.lane.b32.xlu0 %v10183_v46, %s14260_s20 }
0x1a26   : > { %10368 = vrot.lane.b32.xlu1 %v10182_v22, %s14263_s16  ;;  %10194 = vrot.lane.b32.xlu0 %v10183_v46, %s14262_s14 }
0x1a2a   : > { %10455 = vrot.lane.b32.xlu1 %v10182_v22, %s14246_s15  ;;  %10365 = vrot.lane.b32.xlu0 %v10183_v46, %s14263_s16 }
0x1a2e   : > { %10619 = vrot.lane.b32.xlu1 %v10183_v46, %s14257_s17  ;;  %10452 = vrot.lane.b32.xlu0 %v10183_v46, %s14246_s15  ;;  %s14271_s17 = sshll.u32 %s14273_s28, 3 }
0x1a2f   : > { %s586_s24 = scalar_lea.vmem %s14177_s13, %s14271_s17 }
0x1a32   : > { %10706 = vrot.lane.b32.xlu1 %v10183_v46, %s14261_s19  ;;  %10704 = vrot.lane.b32.xlu0 %v10182_v22, %s14261_s19 }
0x1a36   : > { %10793 = vrot.lane.b32.xlu1 %v10183_v46, %s14264_s23  ;;  %10791 = vrot.lane.b32.xlu0 %v10182_v22, %s14264_s23 }
0x1a3a   : > { %10880 = vrot.lane.b32.xlu1 %v10183_v46, %s14265_s27  ;;  %10878 = vrot.lane.b32.xlu0 %v10182_v22, %s14265_s27  ;;  %v10192_v22 = vld [vmem:[#allocation16 + $0x20] sm:$0xf] }
0x1a90   : > { %v10618_v2 = vpop.permute.xlu0 %10617  ;;  %v10210_v7 = vpop.permute.xlu1 %10209 }
0x1a94   : > { %v10199_v19 = vpop.permute.xlu1 %10198  ;;  %v10207_v26 = vpop.permute.xlu0 %10206 }
0x1a95   : > { %v10211_v41 = vsel %vm628_vm0, %v10210_v7, %v10207_v26  ;;  %v10214_v0 = vsel %vm628_vm0, %v10207_v26, %v10210_v7 }
0x1a96   : > { %v10215_v60 = vmul.f32 %v10214_v0, %v12588_v15  ;;  %v10216_v1 = vmul.f32 %v10211_v41, %v12584_v14  ;;  %v10184_v15 = vld [vmem:[#allocation16] sm:$0xf] }
0x1a98   : > { %v10369_v61 = vpop.permute.xlu1 %10368  ;;  %10250 = vmatprep.subr.mxu1 %v10216_v1  ;;  %v10195_v50 = vpop.permute.xlu0 %10194 }
0x1a99   : > { %v10200_v12 = vsel %vm608_vm1, %v10199_v19, %v10195_v50  ;;  %v10203_v58 = vsel %vm608_vm1, %v10195_v50, %v10199_v19  ;;  %10251 = vmatpush1.msra.mxu1 %v10215_v60 }
0x1a9a   : > { %v10204_v42 = vmul.f32 %v10203_v58, %v12616_v28  ;;  %v10205_v53 = vmul.f32 %v10200_v12, %v12612_v27  ;;  %11319 = vmatmul.mubr.msk.f32.vlgmr.msra.gmra.mxu1 %vm1563_vm10, %v10185_v20 }
0x1a9b   : > { %10443 = vmatprep.mubr.f32.mxu1 %v14259_v47 }
0x1a9c   : > { %v10456_v39 = vpop.permute.xlu1 %10455  ;;  %10324 = vmatprep.subr.mxu0 %v10205_v53  ;;  %v10366_v14 = vpop.permute.xlu0 %10365 }
0x1a9d   : > { %v10370_v31 = vsel %vm810_vm3, %v10369_v61, %v10366_v14  ;;  %v10373_v37 = vsel %vm810_vm3, %v10366_v14, %v10369_v61  ;;  %10325 = vmatpush1.msra.mxu0 %v10204_v42 }
0x1a9e   : > { %v10374_v63 = vmul.f32 %v10373_v37, %v12602_v23  ;;  %v10375_v17 = vmul.f32 %v10370_v31, %v12606_v24  ;;  %11320 = vmatmul.mubr.msk.f32.vlgmr.msra.gmra.mxu0 %vm1563_vm10, %v10184_v15 }
0x1a9f   : > { %10530 = vmatprep.mubr.f32.mxu0 %v14259_v47 }
0x1aa0   : > { %v10620_v27 = vpop.permute.xlu1 %10619  ;;  %10409 = vmatprep.subr.mxu1 %v10375_v17  ;;  %v10453_v28 = vpop.permute.xlu0 %10452 }
0x1aa1   : > { %v10625_v6 = vsel %vm1108_vm6, %v10620_v27, %v10618_v2  ;;  %v10457_v49 = vsel %vm912_vm5, %v10456_v39, %v10453_v28  ;;  %v10460_v36 = vsel %vm912_vm5, %v10453_v28, %v10456_v39  ;;  %10410 = vmatpush1.msra.mxu1 %v10374_v63  ;;  %v10621_v23 = vsel %vm1108_vm6, %v10618_v2, %v10620_v27 }
0x1aa2   : > { %v10461_v24 = vmul.f32 %v10460_v36, %v12621_v33  ;;  %v10462_v11 = vmul.f32 %v10457_v49, %v12625_v34  ;;  %10574 = vmatprep.subr.mxu1 %v10540_v32  ;;  %11321 = vmatmul.mubr.msk.f32.vlgmr.msra.gmra.mxu1 %vm1563_vm10, %v10186_v4  ;;  %v10627_v29 = vmul.f32 %v10625_v6, %v12659_v55  ;;  %v10189_v55 = vld [vmem:[#allocation16 + $0x14] sm:$0xf] }
0x1aa3   : > { %10575 = vmatpush1.msra.mxu1 %v10539_v38  ;;  %v10626_v13 = vmul.f32 %v10621_v23, %v12649_v51  ;;  %10608 = vmatprep.mubr.f32.mxu1 %v14259_v47 }
0x1aa4   : > { %v10707_v18 = vpop.permute.xlu1 %10706  ;;  %10496 = vmatprep.subr.mxu0 %v10462_v11  ;;  %v10705_v40 = vpop.permute.xlu0 %10704 }
0x1aa5   : > { %v10708_v43 = vsel %vm1210_vm7, %v10705_v40, %v10707_v18  ;;  %v10712_v33 = vsel %vm1210_vm7, %v10707_v18, %v10705_v40  ;;  %10497 = vmatpush1.msra.mxu0 %v10461_v24 }
0x1aa6   : > { %v10713_v9 = vmul.f32 %v10708_v43, %v14267_v44  ;;  %v10714_v34 = vmul.f32 %v10712_v33, %v14268_v8  ;;  %10661 = vmatprep.subr.mxu0 %v10627_v29  ;;  %11322 = vmatmul.mubr.msk.f32.vlgmr.msra.gmra.mxu0 %vm1563_vm10, %v10187_v10 }
0x1aa7   : > { %10662 = vmatpush1.msra.mxu0 %v10626_v13  ;;  %11323 = vmatmul.mubr.msk.f32.vlgmr.msra.gmra.mxu1 %vm1563_vm10, %v10188_v16 }
0x1aa8   : > { %v10794_v62 = vpop.permute.xlu1 %10793  ;;  %v10792_v51 = vpop.permute.xlu0 %10791  ;;  %10748 = vmatprep.subr.mxu1 %v10714_v34  ;;  %10695 = vmatprep.mubr.f32.mxu0 %v14259_v47 }
0x1aa9   : > { %v10795_v48 = vsel %vm1312_vm8, %v10792_v51, %v10794_v62  ;;  %v10799_v35 = vsel %vm1312_vm8, %v10794_v62, %v10792_v51  ;;  %10749 = vmatpush1.msra.mxu1 %v10713_v9  ;;  %10782 = vmatprep.mubr.f32.mxu1 %v14259_v47 }
0x1aaa   : > { %v10800_v44 = vmul.f32 %v10795_v48, %v14266_v56  ;;  %v10801_v8 = vmul.f32 %v10799_v35, %v12700_v25  ;;  %11324 = vmatmul.mubr.msk.f32.vlgmr.msra.gmra.mxu0 %vm1563_vm10, %v10189_v55 }
0x1aab   : > { %11325 = vmatmul.mubr.msk.f32.vlgmr.msra.gmra.mxu1 %vm1563_vm10, %v10190_v45  ;;  %10869 = vmatprep.mubr.f32.mxu0 %v14259_v47 }
0x1aac   : > { %v10881_v30 = vpop.permute.xlu1 %10880  ;;  %10835 = vmatprep.subr.mxu0 %v10801_v8  ;;  %v10879_v21 = vpop.permute.xlu0 %10878  ;;  %10956 = vmatprep.mubr.f32.mxu1 %v14259_v47 }
0x1aad   : > { %v10882_v52 = vsel %vm1414_vm9, %v10879_v21, %v10881_v30  ;;  %v10886_v59 = vsel %vm1414_vm9, %v10881_v30, %v10879_v21  ;;  %10836 = vmatpush1.msra.mxu0 %v10800_v44 }
0x1aae   : > { %v10887_v56 = vmul.f32 %v13913_v3, %v10882_v52  ;;  %v10888_v25 = vmul.f32 %v13909_v5, %v10886_v59  ;;  %11326 = vmatmul.mubr.msk.f32.vlgmr.msra.gmra.mxu0 %vm1563_vm10, %v10191_v54 }
0x1ab0   : > { %10922 = vmatprep.subr.mxu1 %v10888_v25 }
0x1ab1   : > { %10923 = vmatpush1.msra.mxu1 %v10887_v56 }
0x1ab2   : > { %11327 = vmatmul.mubr.msk.f32.vlgmr.msra.gmra.mxu1 %vm1563_vm10, %v10192_v22 }
0x1b5a   : > { %v10286_v57 = vpop.f32.mrf.mxu1 }
0x1b5c   : > { %v10288_v2 = vpop.f32.mrf.mxu1 }
0x1b5e   : > { %v10360_v46 = vpop.f32.mrf.mxu0 }
0x1b5f   : > { %v10361_v47 = vadd.f32 %v10360_v46, %v10286_v57 }
0x1b60   : > { %v10362_v7 = vpop.f32.mrf.mxu0 }
0x1b61   : > { %v10363_v19 = vadd.f32 %v10362_v7, %v10288_v2 }
0x1b62   : > { %v10445_v26 = vpop.f32.mrf.mxu1 }
0x1b63   : > { %v10450_v41 = vadd.f32 %v10445_v26, %v10361_v47 }
0x1b64   : > { %v10447_v0 = vpop.f32.mrf.mxu1 }
0x1b65   : > { %v10451_v3 = vadd.f32 %v10447_v0, %v10363_v19 }
0x1b66   : > { %v10532_v60 = vpop.f32.mrf.mxu0 }
0x1b67   : > { %v10537_v1 = vadd.f32 %v10532_v60, %v10450_v41  ;;  %v10610_v5 = vpop.f32.mrf.mxu1 }
0x1b68   : > { %v10534_v20 = vpop.f32.mrf.mxu0 }
0x1b69   : > { %v10538_v61 = vadd.f32 %v10534_v20, %v10451_v3  ;;  %v10615_v50 = vadd.f32 %v10610_v5, %v10537_v1  ;;  %v10612_v12 = vpop.f32.mrf.mxu1 }
0x1b6a   : > { %v10697_v58 = vpop.f32.mrf.mxu0 }
0x1b6b   : > { %v10616_v42 = vadd.f32 %v10612_v12, %v10538_v61  ;;  %v10702_v53 = vadd.f32 %v10697_v58, %v10615_v50  ;;  %v10784_v15 = vpop.f32.mrf.mxu1 }
0x1b6c   : > { %v10699_v39 = vpop.f32.mrf.mxu0 }
0x1b6d   : > { %v10703_v14 = vadd.f32 %v10699_v39, %v10616_v42  ;;  %v10786_v31 = vpop.f32.mrf.mxu1  ;;  %v10789_v63 = vadd.f32 %v10784_v15, %v10702_v53 }
0x1b6e   : > { %v10871_v37 = vpop.f32.mrf.mxu0 }
0x1b6f   : > { %v10790_v17 = vadd.f32 %v10786_v31, %v10703_v14  ;;  %v10876_v32 = vadd.f32 %v10871_v37, %v10789_v63 }
0x1b70   : > { %v10873_v27 = vpop.f32.mrf.mxu0 }
0x1b71   : > { %v10877_v4 = vadd.f32 %v10873_v27, %v10790_v17 }
0x1b72   : > { %v10958_v28 = vpop.f32.mrf.mxu1 }
0x1b73   : > { %v10963_v49 = vadd.f32 %v10958_v28, %v10876_v32 }
0x1b74   : > { %v10960_v6 = vpop.f32.mrf.mxu1 }
0x1b75   : > { %v10964_v36 = vadd.f32 %v10960_v6, %v10877_v4 }
0x1b77   : > { %v10967_v23 = vcombine.low %v10963_v49, %v10964_v36 }
0x1b79   : > { %10969 = vst [vmem:[%s586_s24] sm:$0xff] %v10967_v23 }
0x1b7a PF: > { %s29_s25 = sadd.s32 1, %s12254_s25  }
0x1b7b   : > { %p26_p2 = scmp.ge.s32.totalorder %s29_s25, 4  }
0x1b7d   :  { %28 = sbr.rel (!%p26_p2) target bundleno = 8 (0x8), region = 143 }
0x1b82   :  { %10991 = vsyncpa [#allocation3], 1 }
0x1b83   :  { %10993 = vsyncpa [#allocation3 + $0x1], 1 }
0x1b84   :  { %10994 = vsyncpa [#allocation5], 1 }
0x1b85   :  { %10995 = vsyncpa [#allocation8], 1 }
0x1b86   :  { %10996 = vsyncpa [#allocation11], 1 }
0x1b87   :  { %10997 = vsyncpa [#allocation14], 1 }
0x1b88   :  { %10998 = vsyncpa [#allocation17], 1 }

</bundles_post_ra>
